<compile_context>
chip_gen: v7x
topology: tpu7x:2x2x1
jax: 0.10.0
libtpu: 0.0.40
codegen_flags: <defaults>
</compile_context>

<pallas_src>
import functools

import jax
import jax.numpy as jnp
from jax.experimental import pallas as pl
from jax.experimental.pallas import tpu as pltpu

HIDDEN = 768  # fixed by nn.Linear(768, ...) in COIL.__init__


def _round_up(x, m):
    return (x + m - 1) // m * m


# --------------------------------------------------------------------------
# Kernel 1: fused projection  y = x @ [W_tok|0|W_cls|0] + b
#   - f32 x cast to bf16 in-kernel, f32 accumulate on the MXU
#   - log(1 + relu(.)) applied to the (128-aligned) token column section only
#   - output bf16, lane-dense (P = T_pad + C_pad, both multiples of 128)
# --------------------------------------------------------------------------
def _proj_kernel(x_ref, w_ref, b_ref, o_ref, *, tok_pad, log_relu):
    y = jnp.dot(x_ref[...].astype(jnp.bfloat16), w_ref[...],
                preferred_element_type=jnp.float32)
    y = y + b_ref[...]
    if log_relu:
        # static 128-aligned column slices: no iota/where over the full tile
        o_ref[:, :tok_pad] = jnp.log1p(
            jnp.maximum(y[:, :tok_pad], 0.0)).astype(o_ref.dtype)
        o_ref[:, tok_pad:] = y[:, tok_pad:].astype(o_ref.dtype)
    else:
        o_ref[...] = y.astype(o_ref.dtype)


def fused_proj(x_f32, w_fused, b_fused, *, tok_pad, log_relu, tm_max=1024):
    """x: (N, H) f32, w_fused: (H, P) bf16, b_fused: (P,) f32 -> (N, P) bf16."""
    N, H = x_f32.shape
    P = w_fused.shape[1]
    tm = min(tm_max, _round_up(N, 8))
    kern = functools.partial(_proj_kernel, tok_pad=tok_pad, log_relu=log_relu)
    return pl.pallas_call(
        kern,
        out_shape=jax.ShapeDtypeStruct((N, P), jnp.bfloat16),
        grid_spec=pltpu.PrefetchScalarGridSpec(
            num_scalar_prefetch=0,
            grid=(pl.cdiv(N, tm),),            # ragged last block handled by Pallas
            in_specs=[
                pl.BlockSpec((tm, H), lambda i: (i, 0)),
                pl.BlockSpec((H, P), lambda i: (0, 0)),   # weights resident
                pl.BlockSpec((1, P), lambda i: (0, 0)),
            ],
            out_specs=pl.BlockSpec((tm, P), lambda i: (i, 0)),
        ),
        compiler_params=pltpu.CompilerParams(
            dimension_semantics=("parallel",),
            vmem_limit_bytes=32 * 1024 * 1024),
    )(x_f32, w_fused, b_fused.reshape(1, P))


# --------------------------------------------------------------------------
# Kernel 2: COIL training-branch scoring (cartesian token scoring, pooling=max
#            + cls scores).  Grid = (doc blocks [parallel],) only; the doc-token
#            axis Ld is a statically-unrolled loop over the resident doc block.
# --------------------------------------------------------------------------
def _coil_score_kernel(qrep_ref, qids_ref, qmask_ref, qcls_ref,
                       drep_ref, dids_ref, dcls_ref, o_ref, *, Ld, Q, Lq):
    qrep = qrep_ref[...]                       # (Q*Lq, T) bf16   (resident)
    qids = qids_ref[...]                       # (Q*Lq, 1) int32  (resident)
    QL = qrep.shape[0]
    td = o_ref.shape[1]
    # reps >= 0 after log1p(relu) and masked values are 0, so 0-init == masked max
    acc = jnp.zeros((QL, td), jnp.float32)
    for j in range(Ld):                        # Ld static -> fully unrolled, static slices
        dj = drep_ref[:, j, :]                 # (td, T) bf16
        s = jax.lax.dot_general(qrep, dj, (((1,), (1,)), ((), ())),
                                preferred_element_type=jnp.float32)   # (QL, td)
        em = qids == dids_ref[pl.ds(j, 1), :]  # (QL,1)==(1,td) -> (QL,td)
        acc = jnp.maximum(acc, jnp.where(em, s, 0.0))
    # masked per-query sum over Lq (folds qry_attention_mask and the [:,1:] drop)
    pooled = (acc * qmask_ref[...]).reshape(Q, Lq, td)
    tok = jnp.sum(pooled, axis=1)              # (Q, td) f32
    cls = jax.lax.dot_general(qcls_ref[...], dcls_ref[...],
                              (((1,), (1,)), ((), ())),
                              preferred_element_type=jnp.float32)     # (Q, td)
    o_ref[...] = tok + cls


def coil_scores(qry_reps, doc_reps, qry_ids, doc_ids, qry_mask, qry_cls, doc_cls,
                *, Q, Lq, D, Ld):
    T = qry_reps.shape[1]
    C = qry_cls.shape[1]
    QL = Q * Lq

    # Pad the doc axis to a lane-dense multiple of 128: padded docs have zero
    # reps / zero cls and ids = -1 (never exact-match), so their scores are 0
    # and are sliced off below (CE semantics unchanged).
    D_pad = _round_up(D, 128)
    td = 128
    if D_pad != D:
        doc_reps = jnp.pad(doc_reps, ((0, D_pad - D), (0, 0), (0, 0)))
        doc_cls = jnp.pad(doc_cls, ((0, D_pad - D), (0, 0)))
        doc_ids = jnp.pad(doc_ids, ((0, D_pad - D), (0, 0)), constant_values=-1)

    dids_t = doc_ids.astype(jnp.int32).T                    # (Ld, D_pad), tiny
    qids_c = qry_ids.astype(jnp.int32).reshape(QL, 1)
    qmask = (qry_mask.astype(jnp.float32)
             * (jnp.arange(Lq) >= 1).astype(jnp.float32)[None, :]).reshape(QL, 1)

    kern = functools.partial(_coil_score_kernel, Ld=Ld, Q=Q, Lq=Lq)
    scores = pl.pallas_call(
        kern,
        out_shape=jax.ShapeDtypeStruct((Q, D_pad), jnp.float32),
        grid_spec=pltpu.PrefetchScalarGridSpec(
            num_scalar_prefetch=0,
            grid=(D_pad // td,),
            in_specs=[
                pl.BlockSpec((QL, T), lambda i: (0, 0)),          # qrep  (resident)
                pl.BlockSpec((QL, 1), lambda i: (0, 0)),          # qids  (resident)
                pl.BlockSpec((QL, 1), lambda i: (0, 0)),          # qmask (resident)
                pl.BlockSpec((Q, C), lambda i: (0, 0)),           # qcls  (resident)
                pl.BlockSpec((td, Ld, T), lambda i: (i, 0, 0)),   # doc-rep block (no transpose)
                pl.BlockSpec((Ld, td), lambda i: (0, i)),         # doc-id block (resident per block)
                pl.BlockSpec((td, C), lambda i: (i, 0)),          # doc-cls block
            ],
            out_specs=pl.BlockSpec((Q, td), lambda i: (0, i)),    # lane-dense output
        ),
        compiler_params=pltpu.CompilerParams(
            dimension_semantics=("parallel",),
            vmem_limit_bytes=32 * 1024 * 1024),
    )(qry_reps, qids_c, qmask, qry_cls, doc_reps, dids_t, doc_cls)
    return scores[:, :D]


# --------------------------------------------------------------------------
# Parameter init (deterministic, matches nn.Linear shapes) + forward wrapper
# --------------------------------------------------------------------------
def init_params(key, token_dim, cls_dim):
    k1, k2, k3, k4 = jax.random.split(key, 4)
    bound = 1.0 / (HIDDEN ** 0.5)
    return dict(
        tok_w=jax.random.uniform(k1, (token_dim, HIDDEN), jnp.float32, -bound, bound),
        tok_b=jax.random.uniform(k2, (token_dim,), jnp.float32, -bound, bound),
        cls_w=jax.random.uniform(k3, (cls_dim, HIDDEN), jnp.float32, -bound, bound),
        cls_b=jax.random.uniform(k4, (cls_dim,), jnp.float32, -bound, bound),
    )


def coil_forward(params, qry_hidden, qry_ids, qry_mask, doc_hidden, doc_ids,
                 *, group_size, token_rep_relu=True):
    # TODO(synk): the HF transformer backbone (self.model) is not implemented;
    # qry_hidden / doc_hidden stand in for last_hidden_state.
    # TODO(synk): torch.distributed all_gather (x_device_negatives) not implemented.
    # TODO(synk): inference branch (compute_tok_score_pair) not implemented; this
    # is the training branch (cartesian scoring + cross-entropy).
    Q, Lq, H = qry_hidden.shape
    D, Ld, _ = doc_hidden.shape
    token_dim = params["tok_w"].shape[0]
    cls_dim = params["cls_w"].shape[0]

    # fused, 128-lane-padded projection weights: [W_tok^T|0 | W_cls^T|0] -> (H, P)
    T_pad = _round_up(token_dim, 128)
    C_pad = _round_up(cls_dim, 128)
    w_fused = jnp.concatenate(
        [jnp.pad(params["tok_w"].T, ((0, 0), (0, T_pad - token_dim))),
         jnp.pad(params["cls_w"].T, ((0, 0), (0, C_pad - cls_dim)))],
        axis=1).astype(jnp.bfloat16)
    b_fused = jnp.concatenate(
        [jnp.pad(params["tok_b"], (0, T_pad - token_dim)),
         jnp.pad(params["cls_b"], (0, C_pad - cls_dim))])

    q_proj = fused_proj(qry_hidden.reshape(Q * Lq, H), w_fused, b_fused,
                        tok_pad=T_pad, log_relu=token_rep_relu)
    d_proj = fused_proj(doc_hidden.reshape(D * Ld, H), w_fused, b_fused,
                        tok_pad=T_pad, log_relu=token_rep_relu)

    # 128-aligned slices of the lane-dense projection slab (cheap, no transpose)
    qry_reps = q_proj[:, :T_pad]                                    # (Q*Lq, T_pad) bf16
    doc_reps = d_proj[:, :T_pad].reshape(D, Ld, T_pad)              # (D, Ld, T_pad) bf16
    qry_cls = q_proj.reshape(Q, Lq, -1)[:, 0, T_pad:]               # (Q, C_pad) bf16
    doc_cls = d_proj.reshape(D, Ld, -1)[:, 0, T_pad:]               # (D, C_pad) bf16

    scores = coil_scores(qry_reps, doc_reps, qry_ids, doc_ids, qry_mask,
                         qry_cls, doc_cls, Q=Q, Lq=Lq, D=D, Ld=Ld)   # (Q, D) f32

    # cross-entropy (mean), labels = arange(Q) * train_group_size (left to XLA)
    labels = jnp.arange(Q) * group_size
    logp = jax.nn.log_softmax(scores, axis=-1)
    loss = -jnp.mean(jnp.take_along_axis(logp, labels[:, None], axis=1))
    return loss, scores.reshape(-1)


# --------------------------------------------------------------------------
# Pure-JAX reference of the same forward (mirrors the bf16/f32 precision
# decisions of the kernels so the comparison is apples-to-apples).
# --------------------------------------------------------------------------
def reference(params, qry_hidden, qry_ids, qry_mask, doc_hidden, doc_ids,
              group_size):
    bf16 = jnp.bfloat16

    def lin(x, w, b):
        return jnp.dot(x.astype(bf16), w.T.astype(bf16),
                       preferred_element_type=jnp.float32) + b

    Q, Lq, H = qry_hidden.shape
    D, Ld, _ = doc_hidden.shape
    qreps = jnp.log1p(jax.nn.relu(lin(qry_hidden.reshape(Q * Lq, H),
                                      params["tok_w"], params["tok_b"])))
    dreps = jnp.log1p(jax.nn.relu(lin(doc_hidden.reshape(D * Ld, H),
                                      params["tok_w"], params["tok_b"])))
    qreps = qreps.astype(bf16).reshape(Q, Lq, -1)
    dreps = dreps.astype(bf16).reshape(D, Ld, -1)
    qcls = lin(qry_hidden[:, 0], params["cls_w"], params["cls_b"]).astype(bf16)
    dcls = lin(doc_hidden[:, 0], params["cls_w"], params["cls_b"]).astype(bf16)

    s = jnp.einsum("qit,djt->qidj", qreps, dreps,
                   preferred_element_type=jnp.float32)
    em = qry_ids[:, :, None, None] == doc_ids[None, None, :, :]
    pooled = jnp.where(em, s, 0.0).max(axis=3)                     # (Q, Lq, D)
    tok = (pooled * qry_mask.astype(jnp.float32)[:, :, None])[:, 1:].sum(axis=1)
    cls_scores = jnp.dot(qcls, dcls.T, preferred_element_type=jnp.float32)
    scores = tok + cls_scores
    labels = jnp.arange(Q) * group_size
    logp = jax.nn.log_softmax(scores, axis=-1)
    loss = -jnp.mean(logp[jnp.arange(Q), labels])
    return loss, scores.reshape(-1)


if __name__ == "__main__":
    key = jax.random.PRNGKey(0)
    Q, Lq, Ld, group_size = 2, 8, 16, 2
    D = Q * group_size
    token_dim, cls_dim = 32, 128

    kp, kq, kd, kqi, kdi = jax.random.split(key, 5)
    params = init_params(kp, token_dim, cls_dim)
    qry_hidden = jax.random.normal(kq, (Q, Lq, HIDDEN), jnp.float32) * 0.05
    doc_hidden = jax.random.normal(kd, (D, Ld, HIDDEN), jnp.float32) * 0.05
    qry_ids = jax.random.randint(kqi, (Q, Lq), 0, 16, jnp.int32)
    doc_ids = jax.random.randint(kdi, (D, Ld), 0, 16, jnp.int32)
    # query attention mask: first 6 positions real, rest padding
    qry_mask = ((jnp.arange(Lq)[None, :] < 6).astype(jnp.int32)
                * jnp.ones((Q, 1), jnp.int32))

    fwd = jax.jit(functools.partial(coil_forward, group_size=group_size))
    loss, scores = fwd(params, qry_hidden, qry_ids, qry_mask, doc_hidden, doc_ids)
    loss, scores = jax.block_until_ready((loss, scores))

    ref_loss, ref_scores = reference(params, qry_hidden, qry_ids, qry_mask,
                                     doc_hidden, doc_ids, group_size)
    ref_loss, ref_scores = jax.block_until_ready((ref_loss, ref_scores))

    assert jnp.allclose(scores, ref_scores, atol=1e-3, rtol=1e-2), (scores, ref_scores)
    assert jnp.allclose(loss, ref_loss, atol=1e-3, rtol=1e-3), (loss, ref_loss)
    print("KERNEL_OK")
</pallas_src>

<mosaic_0001>
module attributes {stable_mosaic.version = 11 : i64} {
  func.func @_proj_kernel(%arg0: i32, %arg1: memref<16x768xf32, #tpu.memory_space<vmem>>, %arg2: memref<768x256xbf16, #tpu.memory_space<vmem>>, %arg3: memref<1x256xf32, #tpu.memory_space<vmem>>, %arg4: memref<16x256xbf16, #tpu.memory_space<vmem>>) attributes {dimension_semantics = [#tpu.dimension_semantics<parallel>], iteration_bounds = array<i64: 1>, scalar_prefetch = 0 : i64, scratch_operands = 0 : i64, tpu.core_type = #tpu.core_type<tc>, window_params = [{transform_indices = @transform_0, window_bounds = array<i64: 16, 768>}, {pipeline_mode = #tpu.pipeline_mode<synchronous>, transform_indices = @transform_1, window_bounds = array<i64: 768, 256>}, {pipeline_mode = #tpu.pipeline_mode<synchronous>, transform_indices = @transform_2, window_bounds = array<i64: 1, 256>}, {transform_indices = @transform_3, window_bounds = array<i64: 16, 256>}]} {
    %c0 = arith.constant 0 : index
    %c0_0 = arith.constant 0 : index
    %0 = vector.load %arg1[%c0, %c0_0] : memref<16x768xf32, #tpu.memory_space<vmem>>, vector<16x768xf32>
    %1 = arith.truncf %0 : vector<16x768xf32> to vector<16x768xbf16>
    %c0_1 = arith.constant 0 : index
    %c0_2 = arith.constant 0 : index
    %2 = vector.load %arg2[%c0_1, %c0_2] : memref<768x256xbf16, #tpu.memory_space<vmem>>, vector<768x256xbf16>
    %cst = arith.constant dense<0.000000e+00> : vector<16x256xf32>
    %3 = tpu.matmul %1, %2, %cst {dimension_numbers = #tpu.dot_dimension_numbers<[1], [0], [0], [1], [0, 0, 1, 1], [], []>} : vector<16x768xbf16>, vector<768x256xbf16>, vector<16x256xf32> -> vector<16x256xf32>
    %c0_3 = arith.constant 0 : index
    %c0_4 = arith.constant 0 : index
    %4 = vector.load %arg3[%c0_3, %c0_4] : memref<1x256xf32, #tpu.memory_space<vmem>>, vector<1x256xf32>
    %5 = vector.broadcast %4 : vector<1x256xf32> to vector<16x256xf32>
    %6 = arith.addf %3, %5 : vector<16x256xf32>
    %7 = vector.extract_strided_slice %6 {offsets = [0, 0], sizes = [16, 128], strides = [1, 1]} : vector<16x256xf32> to vector<16x128xf32>
    %cst_5 = arith.constant 0.000000e+00 : f32
    %8 = vector.broadcast %cst_5 : f32 to vector<16x128xf32>
    %9 = arith.maximumf %7, %8 : vector<16x128xf32>
    %10 = math.log1p %9 : vector<16x128xf32>
    %11 = arith.truncf %10 : vector<16x128xf32> to vector<16x128xbf16>
    %c0_6 = arith.constant 0 : index
    %c0_7 = arith.constant 0 : index
    %12 = vector.load %arg4[%c0_6, %c0_7] : memref<16x256xbf16, #tpu.memory_space<vmem>>, vector<16x128xbf16>
    tpu.vector_store %arg4[%c0_6, %c0_7], %11 {strides = array<i32>} : memref<16x256xbf16, #tpu.memory_space<vmem>>, vector<16x128xbf16>,
    %13 = vector.extract_strided_slice %6 {offsets = [0, 128], sizes = [16, 128], strides = [1, 1]} : vector<16x256xf32> to vector<16x128xf32>
    %14 = arith.truncf %13 : vector<16x128xf32> to vector<16x128xbf16>
    %c0_8 = arith.constant 0 : index
    %c128 = arith.constant 128 : index
    %15 = vector.load %arg4[%c0_8, %c128] : memref<16x256xbf16, #tpu.memory_space<vmem>>, vector<16x128xbf16>
    tpu.vector_store %arg4[%c0_8, %c128], %14 {strides = array<i32>} : memref<16x256xbf16, #tpu.memory_space<vmem>>, vector<16x128xbf16>,
    return
  }
  func.func @transform_0(%arg0: i32) -> (i32, i32) {
    %c0_i32 = arith.constant 0 : i32
    %c0_i32_0 = arith.constant 0 : i32
    return %arg0, %c0_i32 : i32, i32
  }
  func.func @transform_1(%arg0: i32) -> (i32, i32) {
    %c0_i32 = arith.constant 0 : i32
    %c0_i32_0 = arith.constant 0 : i32
    %c0_i32_1 = arith.constant 0 : i32
    return %c0_i32, %c0_i32_0 : i32, i32
  }
  func.func @transform_2(%arg0: i32) -> (i32, i32) {
    %c0_i32 = arith.constant 0 : i32
    %c0_i32_0 = arith.constant 0 : i32
    %c0_i32_1 = arith.constant 0 : i32
    return %c0_i32, %c0_i32_0 : i32, i32
  }
  func.func @transform_3(%arg0: i32) -> (i32, i32) {
    %c0_i32 = arith.constant 0 : i32
    %c0_i32_0 = arith.constant 0 : i32
    return %arg0, %c0_i32 : i32, i32
  }
}

module attributes {stable_mosaic.version = 11 : i64} {
  func.func @_proj_kernel(%arg0: i32, %arg1: memref<64x768xf32, #tpu.memory_space<vmem>>, %arg2: memref<768x256xbf16, #tpu.memory_space<vmem>>, %arg3: memref<1x256xf32, #tpu.memory_space<vmem>>, %arg4: memref<64x256xbf16, #tpu.memory_space<vmem>>) attributes {dimension_semantics = [#tpu.dimension_semantics<parallel>], iteration_bounds = array<i64: 1>, scalar_prefetch = 0 : i64, scratch_operands = 0 : i64, tpu.core_type = #tpu.core_type<tc>, window_params = [{transform_indices = @transform_0, window_bounds = array<i64: 64, 768>}, {pipeline_mode = #tpu.pipeline_mode<synchronous>, transform_indices = @transform_1, window_bounds = array<i64: 768, 256>}, {pipeline_mode = #tpu.pipeline_mode<synchronous>, transform_indices = @transform_2, window_bounds = array<i64: 1, 256>}, {transform_indices = @transform_3, window_bounds = array<i64: 64, 256>}]} {
    %c0 = arith.constant 0 : index
    %c0_0 = arith.constant 0 : index
    %0 = vector.load %arg1[%c0, %c0_0] : memref<64x768xf32, #tpu.memory_space<vmem>>, vector<64x768xf32>
    %1 = arith.truncf %0 : vector<64x768xf32> to vector<64x768xbf16>
    %c0_1 = arith.constant 0 : index
    %c0_2 = arith.constant 0 : index
    %2 = vector.load %arg2[%c0_1, %c0_2] : memref<768x256xbf16, #tpu.memory_space<vmem>>, vector<768x256xbf16>
    %cst = arith.constant dense<0.000000e+00> : vector<64x256xf32>
    %3 = tpu.matmul %1, %2, %cst {dimension_numbers = #tpu.dot_dimension_numbers<[1], [0], [0], [1], [0, 0, 1, 1], [], []>} : vector<64x768xbf16>, vector<768x256xbf16>, vector<64x256xf32> -> vector<64x256xf32>
    %c0_3 = arith.constant 0 : index
    %c0_4 = arith.constant 0 : index
    %4 = vector.load %arg3[%c0_3, %c0_4] : memref<1x256xf32, #tpu.memory_space<vmem>>, vector<1x256xf32>
    %5 = vector.broadcast %4 : vector<1x256xf32> to vector<64x256xf32>
    %6 = arith.addf %3, %5 : vector<64x256xf32>
    %7 = vector.extract_strided_slice %6 {offsets = [0, 0], sizes = [64, 128], strides = [1, 1]} : vector<64x256xf32> to vector<64x128xf32>
    %cst_5 = arith.constant 0.000000e+00 : f32
    %8 = vector.broadcast %cst_5 : f32 to vector<64x128xf32>
    %9 = arith.maximumf %7, %8 : vector<64x128xf32>
    %10 = math.log1p %9 : vector<64x128xf32>
    %11 = arith.truncf %10 : vector<64x128xf32> to vector<64x128xbf16>
    %c0_6 = arith.constant 0 : index
    %c0_7 = arith.constant 0 : index
    %12 = vector.load %arg4[%c0_6, %c0_7] : memref<64x256xbf16, #tpu.memory_space<vmem>>, vector<64x128xbf16>
    tpu.vector_store %arg4[%c0_6, %c0_7], %11 {strides = array<i32>} : memref<64x256xbf16, #tpu.memory_space<vmem>>, vector<64x128xbf16>,
    %13 = vector.extract_strided_slice %6 {offsets = [0, 128], sizes = [64, 128], strides = [1, 1]} : vector<64x256xf32> to vector<64x128xf32>
    %14 = arith.truncf %13 : vector<64x128xf32> to vector<64x128xbf16>
    %c0_8 = arith.constant 0 : index
    %c128 = arith.constant 128 : index
    %15 = vector.load %arg4[%c0_8, %c128] : memref<64x256xbf16, #tpu.memory_space<vmem>>, vector<64x128xbf16>
    tpu.vector_store %arg4[%c0_8, %c128], %14 {strides = array<i32>} : memref<64x256xbf16, #tpu.memory_space<vmem>>, vector<64x128xbf16>,
    return
  }
  func.func @transform_0(%arg0: i32) -> (i32, i32) {
    %c0_i32 = arith.constant 0 : i32
    %c0_i32_0 = arith.constant 0 : i32
    return %arg0, %c0_i32 : i32, i32
  }
  func.func @transform_1(%arg0: i32) -> (i32, i32) {
    %c0_i32 = arith.constant 0 : i32
    %c0_i32_0 = arith.constant 0 : i32
    %c0_i32_1 = arith.constant 0 : i32
    return %c0_i32, %c0_i32_0 : i32, i32
  }
  func.func @transform_2(%arg0: i32) -> (i32, i32) {
    %c0_i32 = arith.constant 0 : i32
    %c0_i32_0 = arith.constant 0 : i32
    %c0_i32_1 = arith.constant 0 : i32
    return %c0_i32, %c0_i32_0 : i32, i32
  }
  func.func @transform_3(%arg0: i32) -> (i32, i32) {
    %c0_i32 = arith.constant 0 : i32
    %c0_i32_0 = arith.constant 0 : i32
    return %arg0, %c0_i32 : i32, i32
  }
}

module attributes {stable_mosaic.version = 11 : i64} {
  func.func @_coil_score_kernel(%arg0: i32, %arg1: memref<16x128xbf16, #tpu.memory_space<vmem>>, %arg2: memref<16x1xi32, #tpu.memory_space<vmem>>, %arg3: memref<16x1xf32, #tpu.memory_space<vmem>>, %arg4: memref<2x128xbf16, #tpu.memory_space<vmem>>, %arg5: memref<128x16x128xbf16, #tpu.memory_space<vmem>>, %arg6: memref<16x128xi32, #tpu.memory_space<vmem>>, %arg7: memref<128x128xbf16, #tpu.memory_space<vmem>>, %arg8: memref<2x128xf32, #tpu.memory_space<vmem>>) attributes {dimension_semantics = [#tpu.dimension_semantics<parallel>], iteration_bounds = array<i64: 1>, scalar_prefetch = 0 : i64, scratch_operands = 0 : i64, tpu.core_type = #tpu.core_type<tc>, window_params = [{pipeline_mode = #tpu.pipeline_mode<synchronous>, transform_indices = @transform_0, window_bounds = array<i64: 16, 128>}, {pipeline_mode = #tpu.pipeline_mode<synchronous>, transform_indices = @transform_1, window_bounds = array<i64: 16, 1>}, {pipeline_mode = #tpu.pipeline_mode<synchronous>, transform_indices = @transform_2, window_bounds = array<i64: 16, 1>}, {pipeline_mode = #tpu.pipeline_mode<synchronous>, transform_indices = @transform_3, window_bounds = array<i64: 2, 128>}, {transform_indices = @transform_4, window_bounds = array<i64: 128, 16, 128>}, {transform_indices = @transform_5, window_bounds = array<i64: 16, 128>}, {transform_indices = @transform_6, window_bounds = array<i64: 128, 128>}, {transform_indices = @transform_7, window_bounds = array<i64: 2, 128>}]} {
    %c0 = arith.constant 0 : index
    %c0_0 = arith.constant 0 : index
    %0 = vector.load %arg1[%c0, %c0_0] : memref<16x128xbf16, #tpu.memory_space<vmem>>, vector<16x128xbf16>
    %c0_1 = arith.constant 0 : index
    %c0_2 = arith.constant 0 : index
    %1 = vector.load %arg2[%c0_1, %c0_2] : memref<16x1xi32, #tpu.memory_space<vmem>>, vector<16x1xi32>
    %cst = arith.constant 0.000000e+00 : f32
    %2 = vector.broadcast %cst : f32 to vector<16x128xf32>
    %c0_3 = arith.constant 0 : index
    %c0_4 = arith.constant 0 : index
    %c0_5 = arith.constant 0 : index
    %3 = vector.load %arg5[%c0_3, %c0_4, %c0_5] : memref<128x16x128xbf16, #tpu.memory_space<vmem>>, vector<128x1x128xbf16>
    %4 = vector.shape_cast %3 : vector<128x1x128xbf16> to vector<128x128xbf16>
    %cst_6 = arith.constant dense<0.000000e+00> : vector<16x128xf32>
    %5 = tpu.matmul %0, %4, %cst_6 {dimension_numbers = #tpu.dot_dimension_numbers<[1], [1], [0], [0], [0, 0, 1, 0], [], []>} : vector<16x128xbf16>, vector<128x128xbf16>, vector<16x128xf32> -> vector<16x128xf32>
    %c0_7 = arith.constant 0 : index
    %c0_8 = arith.constant 0 : index
    %6 = vector.load %arg6[%c0_7, %c0_8] : memref<16x128xi32, #tpu.memory_space<vmem>>, vector<1x128xi32>
    %7 = vector.broadcast %1 : vector<16x1xi32> to vector<16x128xi32>
    %8 = vector.broadcast %6 : vector<1x128xi32> to vector<16x128xi32>
    %9 = arith.cmpi eq, %7, %8 : vector<16x128xi32>
    %cst_9 = arith.constant 0.000000e+00 : f32
    %10 = vector.broadcast %cst_9 : f32 to vector<16x128xf32>
    %11 = arith.select %9, %5, %10 : vector<16x128xi1>, vector<16x128xf32>
    %12 = arith.maximumf %2, %11 : vector<16x128xf32>
    %c0_10 = arith.constant 0 : index
    %c1 = arith.constant 1 : index
    %c0_11 = arith.constant 0 : index
    %13 = vector.load %arg5[%c0_10, %c1, %c0_11] : memref<128x16x128xbf16, #tpu.memory_space<vmem>>, vector<128x1x128xbf16>
    %14 = vector.shape_cast %13 : vector<128x1x128xbf16> to vector<128x128xbf16>
    %cst_12 = arith.constant dense<0.000000e+00> : vector<16x128xf32>
    %15 = tpu.matmul %0, %14, %cst_12 {dimension_numbers = #tpu.dot_dimension_numbers<[1], [1], [0], [0], [0, 0, 1, 0], [], []>} : vector<16x128xbf16>, vector<128x128xbf16>, vector<16x128xf32> -> vector<16x128xf32>
    %c1_13 = arith.constant 1 : index
    %c0_14 = arith.constant 0 : index
    %16 = vector.load %arg6[%c1_13, %c0_14] : memref<16x128xi32, #tpu.memory_space<vmem>>, vector<1x128xi32>
    %17 = vector.broadcast %1 : vector<16x1xi32> to vector<16x128xi32>
    %18 = vector.broadcast %16 : vector<1x128xi32> to vector<16x128xi32>
    %19 = arith.cmpi eq, %17, %18 : vector<16x128xi32>
    %cst_15 = arith.constant 0.000000e+00 : f32
    %20 = vector.broadcast %cst_15 : f32 to vector<16x128xf32>
    %21 = arith.select %19, %15, %20 : vector<16x128xi1>, vector<16x128xf32>
    %22 = arith.maximumf %12, %21 : vector<16x128xf32>
    %c0_16 = arith.constant 0 : index
    %c2 = arith.constant 2 : index
    %c0_17 = arith.constant 0 : index
    %23 = vector.load %arg5[%c0_16, %c2, %c0_17] : memref<128x16x128xbf16, #tpu.memory_space<vmem>>, vector<128x1x128xbf16>
    %24 = vector.shape_cast %23 : vector<128x1x128xbf16> to vector<128x128xbf16>
    %cst_18 = arith.constant dense<0.000000e+00> : vector<16x128xf32>
    %25 = tpu.matmul %0, %24, %cst_18 {dimension_numbers = #tpu.dot_dimension_numbers<[1], [1], [0], [0], [0, 0, 1, 0], [], []>} : vector<16x128xbf16>, vector<128x128xbf16>, vector<16x128xf32> -> vector<16x128xf32>
    %c2_19 = arith.constant 2 : index
    %c0_20 = arith.constant 0 : index
    %26 = vector.load %arg6[%c2_19, %c0_20] : memref<16x128xi32, #tpu.memory_space<vmem>>, vector<1x128xi32>
    %27 = vector.broadcast %1 : vector<16x1xi32> to vector<16x128xi32>
    %28 = vector.broadcast %26 : vector<1x128xi32> to vector<16x128xi32>
    %29 = arith.cmpi eq, %27, %28 : vector<16x128xi32>
    %cst_21 = arith.constant 0.000000e+00 : f32
    %30 = vector.broadcast %cst_21 : f32 to vector<16x128xf32>
    %31 = arith.select %29, %25, %30 : vector<16x128xi1>, vector<16x128xf32>
    %32 = arith.maximumf %22, %31 : vector<16x128xf32>
    %c0_22 = arith.constant 0 : index
    %c3 = arith.constant 3 : index
    %c0_23 = arith.constant 0 : index
    %33 = vector.load %arg5[%c0_22, %c3, %c0_23] : memref<128x16x128xbf16, #tpu.memory_space<vmem>>, vector<128x1x128xbf16>
    %34 = vector.shape_cast %33 : vector<128x1x128xbf16> to vector<128x128xbf16>
    %cst_24 = arith.constant dense<0.000000e+00> : vector<16x128xf32>
    %35 = tpu.matmul %0, %34, %cst_24 {dimension_numbers = #tpu.dot_dimension_numbers<[1], [1], [0], [0], [0, 0, 1, 0], [], []>} : vector<16x128xbf16>, vector<128x128xbf16>, vector<16x128xf32> -> vector<16x128xf32>
    %c3_25 = arith.constant 3 : index
    %c0_26 = arith.constant 0 : index
    %36 = vector.load %arg6[%c3_25, %c0_26] : memref<16x128xi32, #tpu.memory_space<vmem>>, vector<1x128xi32>
    %37 = vector.broadcast %1 : vector<16x1xi32> to vector<16x128xi32>
    %38 = vector.broadcast %36 : vector<1x128xi32> to vector<16x128xi32>
    %39 = arith.cmpi eq, %37, %38 : vector<16x128xi32>
    %cst_27 = arith.constant 0.000000e+00 : f32
    %40 = vector.broadcast %cst_27 : f32 to vector<16x128xf32>
    %41 = arith.select %39, %35, %40 : vector<16x128xi1>, vector<16x128xf32>
    %42 = arith.maximumf %32, %41 : vector<16x128xf32>
    %c0_28 = arith.constant 0 : index
    %c4 = arith.constant 4 : index
    %c0_29 = arith.constant 0 : index
    %43 = vector.load %arg5[%c0_28, %c4, %c0_29] : memref<128x16x128xbf16, #tpu.memory_space<vmem>>, vector<128x1x128xbf16>
    %44 = vector.shape_cast %43 : vector<128x1x128xbf16> to vector<128x128xbf16>
    %cst_30 = arith.constant dense<0.000000e+00> : vector<16x128xf32>
    %45 = tpu.matmul %0, %44, %cst_30 {dimension_numbers = #tpu.dot_dimension_numbers<[1], [1], [0], [0], [0, 0, 1, 0], [], []>} : vector<16x128xbf16>, vector<128x128xbf16>, vector<16x128xf32> -> vector<16x128xf32>
    %c4_31 = arith.constant 4 : index
    %c0_32 = arith.constant 0 : index
    %46 = vector.load %arg6[%c4_31, %c0_32] : memref<16x128xi32, #tpu.memory_space<vmem>>, vector<1x128xi32>
    %47 = vector.broadcast %1 : vector<16x1xi32> to vector<16x128xi32>
    %48 = vector.broadcast %46 : vector<1x128xi32> to vector<16x128xi32>
    %49 = arith.cmpi eq, %47, %48 : vector<16x128xi32>
    %cst_33 = arith.constant 0.000000e+00 : f32
    %50 = vector.broadcast %cst_33 : f32 to vector<16x128xf32>
    %51 = arith.select %49, %45, %50 : vector<16x128xi1>, vector<16x128xf32>
    %52 = arith.maximumf %42, %51 : vector<16x128xf32>
    %c0_34 = arith.constant 0 : index
    %c5 = arith.constant 5 : index
    %c0_35 = arith.constant 0 : index
    %53 = vector.load %arg5[%c0_34, %c5, %c0_35] : memref<128x16x128xbf16, #tpu.memory_space<vmem>>, vector<128x1x128xbf16>
    %54 = vector.shape_cast %53 : vector<128x1x128xbf16> to vector<128x128xbf16>
    %cst_36 = arith.constant dense<0.000000e+00> : vector<16x128xf32>
    %55 = tpu.matmul %0, %54, %cst_36 {dimension_numbers = #tpu.dot_dimension_numbers<[1], [1], [0], [0], [0, 0, 1, 0], [], []>} : vector<16x128xbf16>, vector<128x128xbf16>, vector<16x128xf32> -> vector<16x128xf32>
    %c5_37 = arith.constant 5 : index
    %c0_38 = arith.constant 0 : index
    %56 = vector.load %arg6[%c5_37, %c0_38] : memref<16x128xi32, #tpu.memory_space<vmem>>, vector<1x128xi32>
    %57 = vector.broadcast %1 : vector<16x1xi32> to vector<16x128xi32>
    %58 = vector.broadcast %56 : vector<1x128xi32> to vector<16x128xi32>
    %59 = arith.cmpi eq, %57, %58 : vector<16x128xi32>
    %cst_39 = arith.constant 0.000000e+00 : f32
    %60 = vector.broadcast %cst_39 : f32 to vector<16x128xf32>
    %61 = arith.select %59, %55, %60 : vector<16x128xi1>, vector<16x128xf32>
    %62 = arith.maximumf %52, %61 : vector<16x128xf32>
    %c0_40 = arith.constant 0 : index
    %c6 = arith.constant 6 : index
    %c0_41 = arith.constant 0 : index
    %63 = vector.load %arg5[%c0_40, %c6, %c0_41] : memref<128x16x128xbf16, #tpu.memory_space<vmem>>, vector<128x1x128xbf16>
    %64 = vector.shape_cast %63 : vector<128x1x128xbf16> to vector<128x128xbf16>
    %cst_42 = arith.constant dense<0.000000e+00> : vector<16x128xf32>
    %65 = tpu.matmul %0, %64, %cst_42 {dimension_numbers = #tpu.dot_dimension_numbers<[1], [1], [0], [0], [0, 0, 1, 0], [], []>} : vector<16x128xbf16>, vector<128x128xbf16>, vector<16x128xf32> -> vector<16x128xf32>
    %c6_43 = arith.constant 6 : index
    %c0_44 = arith.constant 0 : index
    %66 = vector.load %arg6[%c6_43, %c0_44] : memref<16x128xi32, #tpu.memory_space<vmem>>, vector<1x128xi32>
    %67 = vector.broadcast %1 : vector<16x1xi32> to vector<16x128xi32>
    %68 = vector.broadcast %66 : vector<1x128xi32> to vector<16x128xi32>
    %69 = arith.cmpi eq, %67, %68 : vector<16x128xi32>
    %cst_45 = arith.constant 0.000000e+00 : f32
    %70 = vector.broadcast %cst_45 : f32 to vector<16x128xf32>
    %71 = arith.select %69, %65, %70 : vector<16x128xi1>, vector<16x128xf32>
    %72 = arith.maximumf %62, %71 : vector<16x128xf32>
    %c0_46 = arith.constant 0 : index
    %c7 = arith.constant 7 : index
    %c0_47 = arith.constant 0 : index
    %73 = vector.load %arg5[%c0_46, %c7, %c0_47] : memref<128x16x128xbf16, #tpu.memory_space<vmem>>, vector<128x1x128xbf16>
    %74 = vector.shape_cast %73 : vector<128x1x128xbf16> to vector<128x128xbf16>
    %cst_48 = arith.constant dense<0.000000e+00> : vector<16x128xf32>
    %75 = tpu.matmul %0, %74, %cst_48 {dimension_numbers = #tpu.dot_dimension_numbers<[1], [1], [0], [0], [0, 0, 1, 0], [], []>} : vector<16x128xbf16>, vector<128x128xbf16>, vector<16x128xf32> -> vector<16x128xf32>
    %c7_49 = arith.constant 7 : index
    %c0_50 = arith.constant 0 : index
    %76 = vector.load %arg6[%c7_49, %c0_50] : memref<16x128xi32, #tpu.memory_space<vmem>>, vector<1x128xi32>
    %77 = vector.broadcast %1 : vector<16x1xi32> to vector<16x128xi32>
    %78 = vector.broadcast %76 : vector<1x128xi32> to vector<16x128xi32>
    %79 = arith.cmpi eq, %77, %78 : vector<16x128xi32>
    %cst_51 = arith.constant 0.000000e+00 : f32
    %80 = vector.broadcast %cst_51 : f32 to vector<16x128xf32>
    %81 = arith.select %79, %75, %80 : vector<16x128xi1>, vector<16x128xf32>
    %82 = arith.maximumf %72, %81 : vector<16x128xf32>
    %c0_52 = arith.constant 0 : index
    %c8 = arith.constant 8 : index
    %c0_53 = arith.constant 0 : index
    %83 = vector.load %arg5[%c0_52, %c8, %c0_53] : memref<128x16x128xbf16, #tpu.memory_space<vmem>>, vector<128x1x128xbf16>
    %84 = vector.shape_cast %83 : vector<128x1x128xbf16> to vector<128x128xbf16>
    %cst_54 = arith.constant dense<0.000000e+00> : vector<16x128xf32>
    %85 = tpu.matmul %0, %84, %cst_54 {dimension_numbers = #tpu.dot_dimension_numbers<[1], [1], [0], [0], [0, 0, 1, 0], [], []>} : vector<16x128xbf16>, vector<128x128xbf16>, vector<16x128xf32> -> vector<16x128xf32>
    %c8_55 = arith.constant 8 : index
    %c0_56 = arith.constant 0 : index
    %86 = vector.load %arg6[%c8_55, %c0_56] : memref<16x128xi32, #tpu.memory_space<vmem>>, vector<1x128xi32>
    %87 = vector.broadcast %1 : vector<16x1xi32> to vector<16x128xi32>
    %88 = vector.broadcast %86 : vector<1x128xi32> to vector<16x128xi32>
    %89 = arith.cmpi eq, %87, %88 : vector<16x128xi32>
    %cst_57 = arith.constant 0.000000e+00 : f32
    %90 = vector.broadcast %cst_57 : f32 to vector<16x128xf32>
    %91 = arith.select %89, %85, %90 : vector<16x128xi1>, vector<16x128xf32>
    %92 = arith.maximumf %82, %91 : vector<16x128xf32>
    %c0_58 = arith.constant 0 : index
    %c9 = arith.constant 9 : index
    %c0_59 = arith.constant 0 : index
    %93 = vector.load %arg5[%c0_58, %c9, %c0_59] : memref<128x16x128xbf16, #tpu.memory_space<vmem>>, vector<128x1x128xbf16>
    %94 = vector.shape_cast %93 : vector<128x1x128xbf16> to vector<128x128xbf16>
    %cst_60 = arith.constant dense<0.000000e+00> : vector<16x128xf32>
    %95 = tpu.matmul %0, %94, %cst_60 {dimension_numbers = #tpu.dot_dimension_numbers<[1], [1], [0], [0], [0, 0, 1, 0], [], []>} : vector<16x128xbf16>, vector<128x128xbf16>, vector<16x128xf32> -> vector<16x128xf32>
    %c9_61 = arith.constant 9 : index
    %c0_62 = arith.constant 0 : index
    %96 = vector.load %arg6[%c9_61, %c0_62] : memref<16x128xi32, #tpu.memory_space<vmem>>, vector<1x128xi32>
    %97 = vector.broadcast %1 : vector<16x1xi32> to vector<16x128xi32>
    %98 = vector.broadcast %96 : vector<1x128xi32> to vector<16x128xi32>
    %99 = arith.cmpi eq, %97, %98 : vector<16x128xi32>
    %cst_63 = arith.constant 0.000000e+00 : f32
    %100 = vector.broadcast %cst_63 : f32 to vector<16x128xf32>
    %101 = arith.select %99, %95, %100 : vector<16x128xi1>, vector<16x128xf32>
    %102 = arith.maximumf %92, %101 : vector<16x128xf32>
    %c0_64 = arith.constant 0 : index
    %c10 = arith.constant 10 : index
    %c0_65 = arith.constant 0 : index
    %103 = vector.load %arg5[%c0_64, %c10, %c0_65] : memref<128x16x128xbf16, #tpu.memory_space<vmem>>, vector<128x1x128xbf16>
    %104 = vector.shape_cast %103 : vector<128x1x128xbf16> to vector<128x128xbf16>
    %cst_66 = arith.constant dense<0.000000e+00> : vector<16x128xf32>
    %105 = tpu.matmul %0, %104, %cst_66 {dimension_numbers = #tpu.dot_dimension_numbers<[1], [1], [0], [0], [0, 0, 1, 0], [], []>} : vector<16x128xbf16>, vector<128x128xbf16>, vector<16x128xf32> -> vector<16x128xf32>
    %c10_67 = arith.constant 10 : index
    %c0_68 = arith.constant 0 : index
    %106 = vector.load %arg6[%c10_67, %c0_68] : memref<16x128xi32, #tpu.memory_space<vmem>>, vector<1x128xi32>
    %107 = vector.broadcast %1 : vector<16x1xi32> to vector<16x128xi32>
    %108 = vector.broadcast %106 : vector<1x128xi32> to vector<16x128xi32>
    %109 = arith.cmpi eq, %107, %108 : vector<16x128xi32>
    %cst_69 = arith.constant 0.000000e+00 : f32
    %110 = vector.broadcast %cst_69 : f32 to vector<16x128xf32>
    %111 = arith.select %109, %105, %110 : vector<16x128xi1>, vector<16x128xf32>
    %112 = arith.maximumf %102, %111 : vector<16x128xf32>
    %c0_70 = arith.constant 0 : index
    %c11 = arith.constant 11 : index
    %c0_71 = arith.constant 0 : index
    %113 = vector.load %arg5[%c0_70, %c11, %c0_71] : memref<128x16x128xbf16, #tpu.memory_space<vmem>>, vector<128x1x128xbf16>
    %114 = vector.shape_cast %113 : vector<128x1x128xbf16> to vector<128x128xbf16>
    %cst_72 = arith.constant dense<0.000000e+00> : vector<16x128xf32>
    %115 = tpu.matmul %0, %114, %cst_72 {dimension_numbers = #tpu.dot_dimension_numbers<[1], [1], [0], [0], [0, 0, 1, 0], [], []>} : vector<16x128xbf16>, vector<128x128xbf16>, vector<16x128xf32> -> vector<16x128xf32>
    %c11_73 = arith.constant 11 : index
    %c0_74 = arith.constant 0 : index
    %116 = vector.load %arg6[%c11_73, %c0_74] : memref<16x128xi32, #tpu.memory_space<vmem>>, vector<1x128xi32>
    %117 = vector.broadcast %1 : vector<16x1xi32> to vector<16x128xi32>
    %118 = vector.broadcast %116 : vector<1x128xi32> to vector<16x128xi32>
    %119 = arith.cmpi eq, %117, %118 : vector<16x128xi32>
    %cst_75 = arith.constant 0.000000e+00 : f32
    %120 = vector.broadcast %cst_75 : f32 to vector<16x128xf32>
    %121 = arith.select %119, %115, %120 : vector<16x128xi1>, vector<16x128xf32>
    %122 = arith.maximumf %112, %121 : vector<16x128xf32>
    %c0_76 = arith.constant 0 : index
    %c12 = arith.constant 12 : index
    %c0_77 = arith.constant 0 : index
    %123 = vector.load %arg5[%c0_76, %c12, %c0_77] : memref<128x16x128xbf16, #tpu.memory_space<vmem>>, vector<128x1x128xbf16>
    %124 = vector.shape_cast %123 : vector<128x1x128xbf16> to vector<128x128xbf16>
    %cst_78 = arith.constant dense<0.000000e+00> : vector<16x128xf32>
    %125 = tpu.matmul %0, %124, %cst_78 {dimension_numbers = #tpu.dot_dimension_numbers<[1], [1], [0], [0], [0, 0, 1, 0], [], []>} : vector<16x128xbf16>, vector<128x128xbf16>, vector<16x128xf32> -> vector<16x128xf32>
    %c12_79 = arith.constant 12 : index
    %c0_80 = arith.constant 0 : index
    %126 = vector.load %arg6[%c12_79, %c0_80] : memref<16x128xi32, #tpu.memory_space<vmem>>, vector<1x128xi32>
    %127 = vector.broadcast %1 : vector<16x1xi32> to vector<16x128xi32>
    %128 = vector.broadcast %126 : vector<1x128xi32> to vector<16x128xi32>
    %129 = arith.cmpi eq, %127, %128 : vector<16x128xi32>
    %cst_81 = arith.constant 0.000000e+00 : f32
    %130 = vector.broadcast %cst_81 : f32 to vector<16x128xf32>
    %131 = arith.select %129, %125, %130 : vector<16x128xi1>, vector<16x128xf32>
    %132 = arith.maximumf %122, %131 : vector<16x128xf32>
    %c0_82 = arith.constant 0 : index
    %c13 = arith.constant 13 : index
    %c0_83 = arith.constant 0 : index
    %133 = vector.load %arg5[%c0_82, %c13, %c0_83] : memref<128x16x128xbf16, #tpu.memory_space<vmem>>, vector<128x1x128xbf16>
    %134 = vector.shape_cast %133 : vector<128x1x128xbf16> to vector<128x128xbf16>
    %cst_84 = arith.constant dense<0.000000e+00> : vector<16x128xf32>
    %135 = tpu.matmul %0, %134, %cst_84 {dimension_numbers = #tpu.dot_dimension_numbers<[1], [1], [0], [0], [0, 0, 1, 0], [], []>} : vector<16x128xbf16>, vector<128x128xbf16>, vector<16x128xf32> -> vector<16x128xf32>
    %c13_85 = arith.constant 13 : index
    %c0_86 = arith.constant 0 : index
    %136 = vector.load %arg6[%c13_85, %c0_86] : memref<16x128xi32, #tpu.memory_space<vmem>>, vector<1x128xi32>
    %137 = vector.broadcast %1 : vector<16x1xi32> to vector<16x128xi32>
    %138 = vector.broadcast %136 : vector<1x128xi32> to vector<16x128xi32>
    %139 = arith.cmpi eq, %137, %138 : vector<16x128xi32>
    %cst_87 = arith.constant 0.000000e+00 : f32
    %140 = vector.broadcast %cst_87 : f32 to vector<16x128xf32>
    %141 = arith.select %139, %135, %140 : vector<16x128xi1>, vector<16x128xf32>
    %142 = arith.maximumf %132, %141 : vector<16x128xf32>
    %c0_88 = arith.constant 0 : index
    %c14 = arith.constant 14 : index
    %c0_89 = arith.constant 0 : index
    %143 = vector.load %arg5[%c0_88, %c14, %c0_89] : memref<128x16x128xbf16, #tpu.memory_space<vmem>>, vector<128x1x128xbf16>
    %144 = vector.shape_cast %143 : vector<128x1x128xbf16> to vector<128x128xbf16>
    %cst_90 = arith.constant dense<0.000000e+00> : vector<16x128xf32>
    %145 = tpu.matmul %0, %144, %cst_90 {dimension_numbers = #tpu.dot_dimension_numbers<[1], [1], [0], [0], [0, 0, 1, 0], [], []>} : vector<16x128xbf16>, vector<128x128xbf16>, vector<16x128xf32> -> vector<16x128xf32>
    %c14_91 = arith.constant 14 : index
    %c0_92 = arith.constant 0 : index
    %146 = vector.load %arg6[%c14_91, %c0_92] : memref<16x128xi32, #tpu.memory_space<vmem>>, vector<1x128xi32>
    %147 = vector.broadcast %1 : vector<16x1xi32> to vector<16x128xi32>
    %148 = vector.broadcast %146 : vector<1x128xi32> to vector<16x128xi32>
    %149 = arith.cmpi eq, %147, %148 : vector<16x128xi32>
    %cst_93 = arith.constant 0.000000e+00 : f32
    %150 = vector.broadcast %cst_93 : f32 to vector<16x128xf32>
    %151 = arith.select %149, %145, %150 : vector<16x128xi1>, vector<16x128xf32>
    %152 = arith.maximumf %142, %151 : vector<16x128xf32>
    %c0_94 = arith.constant 0 : index
    %c15 = arith.constant 15 : index
    %c0_95 = arith.constant 0 : index
    %153 = vector.load %arg5[%c0_94, %c15, %c0_95] : memref<128x16x128xbf16, #tpu.memory_space<vmem>>, vector<128x1x128xbf16>
    %154 = vector.shape_cast %153 : vector<128x1x128xbf16> to vector<128x128xbf16>
    %cst_96 = arith.constant dense<0.000000e+00> : vector<16x128xf32>
    %155 = tpu.matmul %0, %154, %cst_96 {dimension_numbers = #tpu.dot_dimension_numbers<[1], [1], [0], [0], [0, 0, 1, 0], [], []>} : vector<16x128xbf16>, vector<128x128xbf16>, vector<16x128xf32> -> vector<16x128xf32>
    %c15_97 = arith.constant 15 : index
    %c0_98 = arith.constant 0 : index
    %156 = vector.load %arg6[%c15_97, %c0_98] : memref<16x128xi32, #tpu.memory_space<vmem>>, vector<1x128xi32>
    %157 = vector.broadcast %1 : vector<16x1xi32> to vector<16x128xi32>
    %158 = vector.broadcast %156 : vector<1x128xi32> to vector<16x128xi32>
    %159 = arith.cmpi eq, %157, %158 : vector<16x128xi32>
    %cst_99 = arith.constant 0.000000e+00 : f32
    %160 = vector.broadcast %cst_99 : f32 to vector<16x128xf32>
    %161 = arith.select %159, %155, %160 : vector<16x128xi1>, vector<16x128xf32>
    %162 = arith.maximumf %152, %161 : vector<16x128xf32>
    %c0_100 = arith.constant 0 : index
    %c0_101 = arith.constant 0 : index
    %163 = vector.load %arg3[%c0_100, %c0_101] : memref<16x1xf32, #tpu.memory_space<vmem>>, vector<16x1xf32>
    %164 = vector.broadcast %163 : vector<16x1xf32> to vector<16x128xf32>
    %165 = arith.mulf %162, %164 : vector<16x128xf32>
    %166 = vector.shape_cast %165 : vector<16x128xf32> to vector<2x8x128xf32>
    %cst_102 = arith.constant dense<0.000000e+00> : vector<2x128xf32>
    %167 = vector.multi_reduction <add>, %166, %cst_102 [1] : vector<2x8x128xf32> to vector<2x128xf32>
    %c0_103 = arith.constant 0 : index
    %c0_104 = arith.constant 0 : index
    %168 = vector.load %arg4[%c0_103, %c0_104] : memref<2x128xbf16, #tpu.memory_space<vmem>>, vector<2x128xbf16>
    %c0_105 = arith.constant 0 : index
    %c0_106 = arith.constant 0 : index
    %169 = vector.load %arg7[%c0_105, %c0_106] : memref<128x128xbf16, #tpu.memory_space<vmem>>, vector<128x128xbf16>
    %cst_107 = arith.constant dense<0.000000e+00> : vector<2x128xf32>
    %170 = tpu.matmul %168, %169, %cst_107 {dimension_numbers = #tpu.dot_dimension_numbers<[1], [1], [0], [0], [0, 0, 1, 0], [], []>} : vector<2x128xbf16>, vector<128x128xbf16>, vector<2x128xf32> -> vector<2x128xf32>
    %171 = arith.addf %167, %170 : vector<2x128xf32>
    %c0_108 = arith.constant 0 : index
    %c0_109 = arith.constant 0 : index
    %172 = vector.load %arg8[%c0_108, %c0_109] : memref<2x128xf32, #tpu.memory_space<vmem>>, vector<2x128xf32>
    tpu.vector_store %arg8[%c0_108, %c0_109], %171 {strides = array<i32>} : memref<2x128xf32, #tpu.memory_space<vmem>>, vector<2x128xf32>,
    return
  }
  func.func @transform_0(%arg0: i32) -> (i32, i32) {
    %c0_i32 = arith.constant 0 : i32
    %c0_i32_0 = arith.constant 0 : i32
    %c0_i32_1 = arith.constant 0 : i32
    return %c0_i32, %c0_i32_0 : i32, i32
  }
  func.func @transform_1(%arg0: i32) -> (i32, i32) {
    %c0_i32 = arith.constant 0 : i32
    %c0_i32_0 = arith.constant 0 : i32
    %c0_i32_1 = arith.constant 0 : i32
    return %c0_i32, %c0_i32_0 : i32, i32
  }
  func.func @transform_2(%arg0: i32) -> (i32, i32) {
    %c0_i32 = arith.constant 0 : i32
    %c0_i32_0 = arith.constant 0 : i32
    %c0_i32_1 = arith.constant 0 : i32
    return %c0_i32, %c0_i32_0 : i32, i32
  }
  func.func @transform_3(%arg0: i32) -> (i32, i32) {
    %c0_i32 = arith.constant 0 : i32
    %c0_i32_0 = arith.constant 0 : i32
    %c0_i32_1 = arith.constant 0 : i32
    return %c0_i32, %c0_i32_0 : i32, i32
  }
  func.func @transform_4(%arg0: i32) -> (i32, i32, i32) {
    %c0_i32 = arith.constant 0 : i32
    %c0_i32_0 = arith.constant 0 : i32
    %c0_i32_1 = arith.constant 0 : i32
    return %arg0, %c0_i32, %c0_i32_0 : i32, i32, i32
  }
  func.func @transform_5(%arg0: i32) -> (i32, i32) {
    %c0_i32 = arith.constant 0 : i32
    %c0_i32_0 = arith.constant 0 : i32
    return %c0_i32, %arg0 : i32, i32
  }
  func.func @transform_6(%arg0: i32) -> (i32, i32) {
    %c0_i32 = arith.constant 0 : i32
    %c0_i32_0 = arith.constant 0 : i32
    return %arg0, %c0_i32 : i32, i32
  }
  func.func @transform_7(%arg0: i32) -> (i32, i32) {
    %c0_i32 = arith.constant 0 : i32
    %c0_i32_0 = arith.constant 0 : i32
    return %c0_i32, %arg0 : i32, i32
  }
}

</mosaic_0001>

<bundles_post_ra>
// kernel: coil_forward.3
= control target key start
LH: loop header
LB: loop body
LE: loop exit
PB: predicated region body
PF: predicated region fallthrough
CT: control target
= control target key end

     0   :  { %s1421_s1 = inlined_call_operand.vmem [shape: bf16[768,256], index: 1, kind: input, shape index: {}]   ;;  %s1422_s0 = inlined_call_operand.vmem [shape: f32[16,768], index: 0, kind: input, shape index: {}]   ;;  %s1423_s2 = inlined_call_operand.vmem [shape: f32[1,256], index: 2, kind: input, shape index: {}]   ;;  %s1424_s3 = inlined_call_operand.vmem [shape: bf16[16,256], index: 3, kind: output, shape index: {}]  }
   0x1   :  { %v920_v0 = vld [vmem:[%s1421_s1 + $0x104] ss:$8 sps:$4 sm:$0xff]   ;;  %v922_v1 = vld [vmem:[%s1421_s1 + $0x100] ss:$8 sps:$4 sm:$0xff]   ;;  %v923_v2 = vld [vmem:[%s1421_s1 + $0x114] ss:$8 sps:$4 sm:$0xff]  }
   0x2   :  { %663 = vmatprep.subr.bf16.mxu0 %v920_v0  ;;  %v925_v3 = vld [vmem:[%s1421_s1 + $0x110] ss:$8 sps:$4 sm:$0xff]   ;;  %v926_v4 = vld [vmem:[%s1421_s1 + $0x124] ss:$8 sps:$4 sm:$0xff]   ;;  %v928_v5 = vld [vmem:[%s1421_s1 + $0x120] ss:$8 sps:$4 sm:$0xff]  }
   0x3   :  { %664 = vmatpush1.bf16.msra.mxu0 %v922_v1  ;;  %v929_v6 = vld [vmem:[%s1421_s1 + $0x134] ss:$8 sps:$4 sm:$0xff]   ;;  %v931_v7 = vld [vmem:[%s1421_s1 + $0x130] ss:$8 sps:$4 sm:$0xff]   ;;  %v932_v8 = vld [vmem:[%s1421_s1 + $0x144] ss:$8 sps:$4 sm:$0xff]  }
   0x4   :  { %665 = vmatprep.subr.bf16.mxu0 %v923_v2  ;;  %v934_v9 = vld [vmem:[%s1421_s1 + $0x140] ss:$8 sps:$4 sm:$0xff]   ;;  %v935_v10 = vld [vmem:[%s1421_s1 + $0x154] ss:$8 sps:$4 sm:$0xff]   ;;  %v937_v11 = vld [vmem:[%s1421_s1 + $0x150] ss:$8 sps:$4 sm:$0xff]  }
   0x5   :  { %v938_v12 = vld [vmem:[%s1421_s1 + $0x164] ss:$8 sps:$4 sm:$0xff]   ;;  %v967_v14 = vld [vmem:[%s1421_s1] ss:$8 sps:$4 sm:$0xff]   ;;  %v941_v16 = vld [vmem:[%s1421_s1 + $0x174] ss:$8 sps:$4 sm:$0xff]  }
   0x6   :  { %v965_v13 = vld [vmem:[%s1421_s1 + $0x4] ss:$8 sps:$4 sm:$0xff]   ;;  %v940_v15 = vld [vmem:[%s1421_s1 + $0x160] ss:$8 sps:$4 sm:$0xff]   ;;  %v971_v17 = vld [vmem:[%s1421_s1 + $0x14] ss:$8 sps:$4 sm:$0xff]  }
   0x7   :  { %666 = vmatpush1.bf16.msra.mxu0 %v925_v3  ;;  %620 = vmatprep.subr.bf16.mxu1 %v965_v13  ;;  %v973_v18 = vld [vmem:[%s1421_s1 + $0x10] ss:$8 sps:$4 sm:$0xff]   ;;  %v23_v20 = vld [vmem:[%s1422_s0 + $0x48] sm:$0xff]  ;;  %v983_v27 = vld [vmem:[%s1421_s1 + $0x34] ss:$8 sps:$4 sm:$0xff]  }
   0x8   :  { %667 = vmatprep.subr.bf16.mxu0 %v926_v4  ;;  %621 = vmatpush1.bf16.msra.mxu1 %v967_v14  ;;  %v17_v19 = vld [vmem:[%s1422_s0 + $0x18] sm:$0xff]  ;;  %v977_v23 = vld [vmem:[%s1421_s1 + $0x24] ss:$8 sps:$4 sm:$0xff]   ;;  %v979_v24 = vld [vmem:[%s1421_s1 + $0x20] ss:$8 sps:$4 sm:$0xff]  }
   0x9   :  { %622 = vmatprep.subr.bf16.mxu1 %v971_v17  ;;  %v29_v21 = vpack.c.bf16 %v23_v20, %v17_v19  ;;  %v943_v22 = vld [vmem:[%s1421_s1 + $0x170] ss:$8 sps:$4 sm:$0xff]   ;;  %v944_v25 = vld [vmem:[%s1421_s1 + $0x184] ss:$8 sps:$4 sm:$0xff]   ;;  %v946_v26 = vld [vmem:[%s1421_s1 + $0x180] ss:$8 sps:$4 sm:$0xff]  }
   0xa   :  { %v947_v28 = vld [vmem:[%s1421_s1 + $0x194] ss:$8 sps:$4 sm:$0xff]   ;;  %v985_v29 = vld [vmem:[%s1421_s1 + $0x30] ss:$8 sps:$4 sm:$0xff]   ;;  %v989_v30 = vld [vmem:[%s1421_s1 + $0x44] ss:$8 sps:$4 sm:$0xff]  }
   0xb   :  { %668 = vmatpush1.bf16.msra.mxu0 %v928_v5  ;;  %695 = vmatprep.mubr.bf16.mxu0 %v29_v21  ;;  %v949_v31 = vld [vmem:[%s1421_s1 + $0x190] ss:$8 sps:$4 sm:$0xff]   ;;  %v950_v32 = vld [vmem:[%s1421_s1 + $0x1a4] ss:$8 sps:$4 sm:$0xff]   ;;  %v991_v33 = vld [vmem:[%s1421_s1 + $0x40] ss:$8 sps:$4 sm:$0xff]  }
   0xc   :  { %669 = vmatprep.subr.bf16.mxu0 %v929_v6  ;;  %623 = vmatpush1.bf16.msra.mxu1 %v973_v18  ;;  %v995_v34 = vld [vmem:[%s1421_s1 + $0x54] ss:$8 sps:$4 sm:$0xff]   ;;  %v952_v35 = vld [vmem:[%s1421_s1 + $0x1a0] ss:$8 sps:$4 sm:$0xff]   ;;  %v997_v37 = vld [vmem:[%s1421_s1 + $0x50] ss:$8 sps:$4 sm:$0xff]  }
   0xd   :  { %624 = vmatprep.subr.bf16.mxu1 %v977_v23  ;;  %v953_v36 = vld [vmem:[%s1421_s1 + $0x1b4] ss:$8 sps:$4 sm:$0xff]   ;;  %v1001_v38 = vld [vmem:[%s1421_s1 + $0x64] ss:$8 sps:$4 sm:$0xff]   ;;  %v955_v39 = vld [vmem:[%s1421_s1 + $0x1b0] ss:$8 sps:$4 sm:$0xff]  }
   0xe   :  { %v956_v40 = vld [vmem:[%s1421_s1 + $0x1c4] ss:$8 sps:$4 sm:$0xff]   ;;  %v1003_v41 = vld [vmem:[%s1421_s1 + $0x60] ss:$8 sps:$4 sm:$0xff]   ;;  %v1007_v42 = vld [vmem:[%s1421_s1 + $0x74] ss:$8 sps:$4 sm:$0xff]  }
   0xf   :  { %670 = vmatpush1.bf16.msra.mxu0 %v931_v7  ;;  %v958_v43 = vld [vmem:[%s1421_s1 + $0x1c0] ss:$8 sps:$4 sm:$0xff]   ;;  %v959_v44 = vld [vmem:[%s1421_s1 + $0x1d4] ss:$8 sps:$4 sm:$0xff]   ;;  %v1009_v45 = vld [vmem:[%s1421_s1 + $0x70] ss:$8 sps:$4 sm:$0xff]  }
  0x10   :  { %671 = vmatprep.subr.bf16.mxu0 %v932_v8  ;;  %625 = vmatpush1.bf16.msra.mxu1 %v979_v24  ;;  %v1013_v46 = vld [vmem:[%s1421_s1 + $0x84] ss:$8 sps:$4 sm:$0xff]   ;;  %v961_v47 = vld [vmem:[%s1421_s1 + $0x1d0] ss:$8 sps:$4 sm:$0xff]   ;;  %v1015_v49 = vld [vmem:[%s1421_s1 + $0x80] ss:$8 sps:$4 sm:$0xff]  }
  0x11   :  { %626 = vmatprep.subr.bf16.mxu1 %v983_v27  ;;  %v962_v48 = vld [vmem:[%s1421_s1 + $0x1e4] ss:$8 sps:$4 sm:$0xff]   ;;  %v1019_v50 = vld [vmem:[%s1421_s1 + $0x94] ss:$8 sps:$4 sm:$0xff]   ;;  %v964_v51 = vld [vmem:[%s1421_s1 + $0x1e0] ss:$8 sps:$4 sm:$0xff]  }
  0x12   :  { %v968_v52 = vld [vmem:[%s1421_s1 + $0x1f4] ss:$8 sps:$4 sm:$0xff]   ;;  %v1021_v53 = vld [vmem:[%s1421_s1 + $0x90] ss:$8 sps:$4 sm:$0xff]   ;;  %v1025_v54 = vld [vmem:[%s1421_s1 + $0xa4] ss:$8 sps:$4 sm:$0xff]  }
  0x13   :  { %672 = vmatpush1.bf16.msra.mxu0 %v934_v9  ;;  %v970_v55 = vld [vmem:[%s1421_s1 + $0x1f0] ss:$8 sps:$4 sm:$0xff]   ;;  %v976_v56 = vld [vmem:[%s1421_s1 + $0x204] ss:$8 sps:$4 sm:$0xff]   ;;  %v1027_v59 = vld [vmem:[%s1421_s1 + $0xa0] ss:$8 sps:$4 sm:$0xff]  }
  0x14   :  { %673 = vmatprep.subr.bf16.mxu0 %v935_v10  ;;  %627 = vmatpush1.bf16.msra.mxu1 %v985_v29  ;;  %v16_v57 = vld [vmem:[%s1422_s0 + $0x10] sm:$0xff]  ;;  %v22_v58 = vld [vmem:[%s1422_s0 + $0x40] sm:$0xff]  ;;  %v15_v2 = vld [vmem:[%s1422_s0 + $0x8] sm:$0xff] }
  0x15   :  { %628 = vmatprep.subr.bf16.mxu1 %v989_v30  ;;  %v1031_v60 = vld [vmem:[%s1421_s1 + $0xb4] ss:$8 sps:$4 sm:$0xff]   ;;  %v974_v61 = vld [vmem:[%s1421_s1 + $0x200] ss:$8 sps:$4 sm:$0xff]   ;;  %v28_v62 = vpack.c.bf16 %v22_v58, %v16_v57  ;;  %v1033_v0 = vld [vmem:[%s1421_s1 + $0xb0] ss:$8 sps:$4 sm:$0xff]  }
  0x16   :  { %v982_v63 = vld [vmem:[%s1421_s1 + $0x214] ss:$8 sps:$4 sm:$0xff]   ;;  %v1037_v1 = vld [vmem:[%s1421_s1 + $0xc4] ss:$8 sps:$4 sm:$0xff]   ;;  %v980_v6 = vld [vmem:[%s1421_s1 + $0x210] ss:$8 sps:$4 sm:$0xff]  }
  0x17   :  { %674 = vmatpush1.bf16.msra.mxu0 %v937_v11  ;;  %v21_v3 = vld [vmem:[%s1422_s0 + $0x38] sm:$0xff]  ;;  %v19_v5 = vld [vmem:[%s1422_s0 + $0x28] sm:$0xff]  ;;  %v20_v23 = vld [vmem:[%s1422_s0 + $0x30] sm:$0xff] }
  0x18   :  { %675 = vmatprep.subr.bf16.mxu0 %v938_v12  ;;  %629 = vmatpush1.bf16.msra.mxu1 %v991_v33  ;;  %v27_v4 = vpack.c.bf16 %v21_v3, %v15_v2  ;;  %v1039_v7 = vld [vmem:[%s1421_s1 + $0xc0] ss:$8 sps:$4 sm:$0xff]   ;;  %v25_v8 = vld [vmem:[%s1422_s0 + $0x58] sm:$0xff]  ;;  %v988_v9 = vld [vmem:[%s1421_s1 + $0x224] ss:$8 sps:$4 sm:$0xff]  }
  0x19   :  { %630 = vmatprep.subr.bf16.mxu1 %v995_v34  ;;  %v1043_v10 = vld [vmem:[%s1421_s1 + $0xd4] ss:$8 sps:$4 sm:$0xff]   ;;  %v31_v11 = vpack.c.bf16 %v25_v8, %v19_v5  ;;  %v986_v12 = vld [vmem:[%s1421_s1 + $0x220] ss:$8 sps:$4 sm:$0xff]   ;;  %v1045_v13 = vld [vmem:[%s1421_s1 + $0xd0] ss:$8 sps:$4 sm:$0xff]  }
  0x1a   :  { %652 = vmatprep.mubr.bf16.mxu1 %v27_v4  ;;  %v994_v14 = vld [vmem:[%s1421_s1 + $0x234] ss:$8 sps:$4 sm:$0xff]   ;;  %v1051_v17 = vld [vmem:[%s1421_s1 + $0xe0] ss:$8 sps:$4 sm:$0xff]   ;;  %v1000_v18 = vld [vmem:[%s1421_s1 + $0x244] ss:$8 sps:$4 sm:$0xff]  }
  0x1b   :  { %676 = vmatpush1.bf16.msra.mxu0 %v940_v15  ;;  %v1049_v15 = vld [vmem:[%s1421_s1 + $0xe4] ss:$8 sps:$4 sm:$0xff]   ;;  %v1055_v19 = vld [vmem:[%s1421_s1 + $0xf4] ss:$8 sps:$4 sm:$0xff]   ;;  %v998_v20 = vld [vmem:[%s1421_s1 + $0x240] ss:$8 sps:$4 sm:$0xff]  }
  0x1c   :  { %677 = vmatprep.subr.bf16.mxu0 %v941_v16  ;;  %631 = vmatpush1.bf16.msra.mxu1 %v997_v37  ;;  %v992_v16 = vld [vmem:[%s1421_s1 + $0x230] ss:$8 sps:$4 sm:$0xff]   ;;  %v1006_v24 = vld [vmem:[%s1421_s1 + $0x254] ss:$8 sps:$4 sm:$0xff]   ;;  %v1012_v27 = vld [vmem:[%s1421_s1 + $0x264] ss:$8 sps:$4 sm:$0xff]  }
  0x1d   :  { %632 = vmatprep.subr.bf16.mxu1 %v1001_v38  ;;  %v1057_v21 = vld [vmem:[%s1421_s1 + $0xf0] ss:$8 sps:$4 sm:$0xff]   ;;  %v1018_v29 = vld [vmem:[%s1421_s1 + $0x274] ss:$8 sps:$4 sm:$0xff]   ;;  %v128_v57 = vld [vmem:[%s1423_s2] sm:$0x3] }
  0x1e   :  { %v1016_v30 = vld [vmem:[%s1421_s1 + $0x270] ss:$8 sps:$4 sm:$0xff]   ;;  %v1030_v33 = vld [vmem:[%s1421_s1 + $0x294] ss:$8 sps:$4 sm:$0xff]  }
  0x1f   :  { %678 = vmatpush1.bf16.msra.mxu0 %v943_v22  ;;  %v14_v22 = vld [vmem:[%s1422_s0] sm:$0xff]  ;;  %v1028_v34 = vld [vmem:[%s1421_s1 + $0x290] ss:$8 sps:$4 sm:$0xff]   ;;  %v1042_v37 = vld [vmem:[%s1421_s1 + $0x2b4] ss:$8 sps:$4 sm:$0xff]  }
  0x20   :  { %679 = vmatprep.subr.bf16.mxu0 %v944_v25  ;;  %633 = vmatpush1.bf16.msra.mxu1 %v1003_v41  ;;  %v26_v25 = vpack.c.bf16 %v20_v23, %v14_v22  ;;  %v1040_v38 = vld [vmem:[%s1421_s1 + $0x2b0] ss:$8 sps:$4 sm:$0xff]   ;;  %v1054_v41 = vld [vmem:[%s1421_s1 + $0x2d4] ss:$8 sps:$4 sm:$0xff]  }
  0x21   :  { %634 = vmatprep.subr.bf16.mxu1 %v1007_v42  ;;  %v1052_v42 = vld [vmem:[%s1421_s1 + $0x2d0] ss:$8 sps:$4 sm:$0xff]  }
  0x23   :  { %680 = vmatpush1.bf16.msra.mxu0 %v946_v26  ;;  %v1004_v26 = vld [vmem:[%s1421_s1 + $0x250] ss:$8 sps:$4 sm:$0xff]  }
  0x24   :  { %681 = vmatprep.subr.bf16.mxu0 %v947_v28  ;;  %635 = vmatpush1.bf16.msra.mxu1 %v1009_v45  ;;  %v1010_v28 = vld [vmem:[%s1421_s1 + $0x260] ss:$8 sps:$4 sm:$0xff]   ;;  %v1063_v45 = vld [vmem:[%s1421_s1 + $0x2f4] ss:$8 sps:$4 sm:$0xff]  }
  0x25   :  { %636 = vmatprep.subr.bf16.mxu1 %v1013_v46  ;;  %v1061_v46 = vld [vmem:[%s1421_s1 + $0x2f0] ss:$8 sps:$4 sm:$0xff]  }
  0x27   :  { %682 = vmatpush1.bf16.msra.mxu0 %v949_v31  ;;  %v1024_v31 = vld [vmem:[%s1421_s1 + $0x284] ss:$8 sps:$4 sm:$0xff]  }
  0x28   :  { %683 = vmatprep.subr.bf16.mxu0 %v950_v32  ;;  %637 = vmatpush1.bf16.msra.mxu1 %v1015_v49  ;;  %v1022_v32 = vld [vmem:[%s1421_s1 + $0x280] ss:$8 sps:$4 sm:$0xff]  }
  0x29   :  { %638 = vmatprep.subr.bf16.mxu1 %v1019_v50 }
  0x2b   :  { %684 = vmatpush1.bf16.msra.mxu0 %v952_v35  ;;  %v1036_v35 = vld [vmem:[%s1421_s1 + $0x2a4] ss:$8 sps:$4 sm:$0xff]  }
  0x2c   :  { %685 = vmatprep.subr.bf16.mxu0 %v953_v36  ;;  %639 = vmatpush1.bf16.msra.mxu1 %v1021_v53  ;;  %v1034_v36 = vld [vmem:[%s1421_s1 + $0x2a0] ss:$8 sps:$4 sm:$0xff]  }
  0x2d   :  { %640 = vmatprep.subr.bf16.mxu1 %v1025_v54  ;;  %v130_v54 = vlaneseq }
  0x2f   :  { %686 = vmatpush1.bf16.msra.mxu0 %v955_v39  ;;  %v1048_v39 = vld [vmem:[%s1421_s1 + $0x2c4] ss:$8 sps:$4 sm:$0xff]  }
  0x30   :  { %687 = vmatprep.subr.bf16.mxu0 %v956_v40  ;;  %641 = vmatpush1.bf16.msra.mxu1 %v1027_v59  ;;  %v1046_v40 = vld [vmem:[%s1421_s1 + $0x2c0] ss:$8 sps:$4 sm:$0xff]  }
  0x31   :  { %642 = vmatprep.subr.bf16.mxu1 %v1031_v60 }
  0x33   :  { %688 = vmatpush1.bf16.msra.mxu0 %v958_v43  ;;  %v1060_v43 = vld [vmem:[%s1421_s1 + $0x2e4] ss:$8 sps:$4 sm:$0xff]  }
  0x34   :  { %689 = vmatprep.subr.bf16.mxu0 %v959_v44  ;;  %643 = vmatpush1.bf16.msra.mxu1 %v1033_v0  ;;  %v1058_v44 = vld [vmem:[%s1421_s1 + $0x2e0] ss:$8 sps:$4 sm:$0xff]  }
  0x35   :  { %644 = vmatprep.subr.bf16.mxu1 %v1037_v1 }
  0x37   :  { %690 = vmatpush1.bf16.msra.mxu0 %v961_v47  ;;  %v18_v47 = vld [vmem:[%s1422_s0 + $0x20] sm:$0xff] }
  0x38   :  { %691 = vmatprep.subr.bf16.mxu0 %v962_v48  ;;  %645 = vmatpush1.bf16.msra.mxu1 %v1039_v7  ;;  %v24_v48 = vld [vmem:[%s1422_s0 + $0x50] sm:$0xff] }
  0x39   :  { %646 = vmatprep.subr.bf16.mxu1 %v1043_v10  ;;  %v30_v49 = vpack.c.bf16 %v24_v48, %v18_v47 }
  0x3b   :  { %692 = vmatpush1.bf16.msra.mxu0 %v964_v51 }
  0x3c   :  { %693 = vmatprep.subr.bf16.mxu0 %v968_v52  ;;  %647 = vmatpush1.bf16.msra.mxu1 %v1045_v13 }
  0x3d   :  { %648 = vmatprep.subr.bf16.mxu1 %v1049_v15 }
  0x3f   :  { %694 = vmatpush1.bf16.msra.mxu0 %v970_v55  ;;  %v131_v55 = vshrl.u32 %v130_v54, 7 }
  0x40   :  { %706 = vmatprep.subr.bf16.mxu0 %v976_v56  ;;  %649 = vmatpush1.bf16.msra.mxu1 %v1051_v17 }
  0x41   :  { %650 = vmatprep.subr.bf16.mxu1 %v1055_v19  ;;  %v132_v56 = vsub.s32 0, %v131_v55  ;;  %v136_v58 = vsub.s32 1, %v131_v55 }
  0x42   :  { %696 = vmatmul.mubr.bf16.vlgmr.msra.gmra.mrb[0].mxu0 %v28_v62 }
  0x43   :  { %707 = vmatpush1.bf16.msra.mxu0 %v974_v61  ;;  %738 = vmatprep.mubr.bf16.mxu0 %v31_v11  ;;  %v133_v59 = vrot.slane %v128_v57, %v132_v56  ;;  %v137_v60 = vrot.slane %v128_v57, %v136_v58 }
  0x44   :  { %708 = vmatprep.subr.bf16.mxu0 %v982_v63  ;;  %651 = vmatpush1.bf16.msra.mxu1 %v1057_v21 }
  0x47   :  { %709 = vmatpush1.bf16.msra.mxu0 %v980_v6  ;;  %653 = vmatmul.mubr.bf16.vlgmr.msra.gmra.mrb[0].mxu1 %v26_v25 }
  0x48   :  { %710 = vmatprep.subr.bf16.mxu0 %v988_v9 }
  0x4b   :  { %711 = vmatpush1.bf16.msra.mxu0 %v986_v12 }
  0x4c   :  { %712 = vmatprep.subr.bf16.mxu0 %v994_v14 }
  0x4f   :  { %713 = vmatpush1.bf16.msra.mxu0 %v992_v16 }
  0x50   :  { %714 = vmatprep.subr.bf16.mxu0 %v1000_v18 }
  0x53   :  { %715 = vmatpush1.bf16.msra.mxu0 %v998_v20 }
  0x54   :  { %716 = vmatprep.subr.bf16.mxu0 %v1006_v24 }
  0x57   :  { %717 = vmatpush1.bf16.msra.mxu0 %v1004_v26 }
  0x58   :  { %718 = vmatprep.subr.bf16.mxu0 %v1012_v27 }
  0x5b   :  { %719 = vmatpush1.bf16.msra.mxu0 %v1010_v28 }
  0x5c   :  { %720 = vmatprep.subr.bf16.mxu0 %v1018_v29 }
  0x5f   :  { %721 = vmatpush1.bf16.msra.mxu0 %v1016_v30 }
  0x60   :  { %722 = vmatprep.subr.bf16.mxu0 %v1024_v31 }
  0x63   :  { %723 = vmatpush1.bf16.msra.mxu0 %v1022_v32 }
  0x64   :  { %724 = vmatprep.subr.bf16.mxu0 %v1030_v33 }
  0x67   :  { %725 = vmatpush1.bf16.msra.mxu0 %v1028_v34 }
  0x68   :  { %726 = vmatprep.subr.bf16.mxu0 %v1036_v35 }
  0x6b   :  { %727 = vmatpush1.bf16.msra.mxu0 %v1034_v36 }
  0x6c   :  { %728 = vmatprep.subr.bf16.mxu0 %v1042_v37 }
  0x6f   :  { %729 = vmatpush1.bf16.msra.mxu0 %v1040_v38 }
  0x70   :  { %730 = vmatprep.subr.bf16.mxu0 %v1048_v39 }
  0x73   :  { %731 = vmatpush1.bf16.msra.mxu0 %v1046_v40 }
  0x74   :  { %732 = vmatprep.subr.bf16.mxu0 %v1054_v41 }
  0x77   :  { %733 = vmatpush1.bf16.msra.mxu0 %v1052_v42 }
  0x78   :  { %734 = vmatprep.subr.bf16.mxu0 %v1060_v43 }
  0x7b   :  { %735 = vmatpush1.bf16.msra.mxu0 %v1058_v44 }
  0x7c   :  { %736 = vmatprep.subr.bf16.mxu0 %v1063_v45 }
  0x7f   :  { %737 = vmatpush1.bf16.msra.mxu0 %v1061_v46 }
  0x82   :  { %739 = vmatmul.mubr.bf16.vlgmr.msra.gmra.mrb[0].mxu0 %v30_v49 }
 0x11a   :  { %v654_v50 = vpop.f32.mrb[0].mxu1 }
 0x11b   :  { %v656_v51 = vpop.f32.mrb[1].mxu1  ;;  %v655_v61 = vadd.f32 %v654_v50, %v133_v59 }
 0x11c   :  { %v658_v52 = vpop.f32.mrb[2].mxu1  ;;  %v657_v62 = vadd.f32 %v656_v51, %v137_v60 }
 0x11d   :  { %v660_v53 = vpop.f32.mrb[3].mxu1  ;;  %v659_v0 = vadd.f32 %v658_v52, %v133_v59 }
 0x11e   :  { %v661_v3 = vadd.f32 %v660_v53, %v137_v60 }
 0x155   :  { %v740_v63 = vpop.f32.mrb[0].mxu0 }
 0x156   :  { %v909_v1 = vadd.f32 %v740_v63, %v655_v61  ;;  %v742_v2 = vpop.f32.mrb[1].mxu0 }
 0x157   :  { %v911_v4 = vadd.f32 %v742_v2, %v657_v62  ;;  %v744_v5 = vpop.f32.mrb[2].mxu0 }
 0x158   :  { %v749_v6 = vmax.f32 %v909_v1, 0.0  ;;  %v913_v7 = vadd.f32 %v744_v5, %v659_v0  ;;  %v746_v8 = vpop.f32.mrb[3].mxu0 }
 0x159   :  { %v915_v9 = vadd.f32 %v746_v8, %v661_v3 }
 0x15a   :  { %v751_v10 = vadd.f32 1.0, %v749_v6  ;;  %v750_v11 = vmax.f32 %v913_v7, 0.0  ;;  %v754_v13 = vmul.f32 -0.5, %v749_v6  ;;  %v757_v16 = vand.u32 2147483647, %v749_v6 }
 0x15c   :  { %1064 = vlog2.f32 %v751_v10  ;;  %v760_v12 = vadd.f32 1.0, %v750_v11  ;;  %v763_v14 = vmul.f32 -0.5, %v750_v11  ;;  %v755_v15 = vadd.f32 1.0, %v754_v13 }
 0x15d   :  { %v766_v19 = vand.u32 2147483647, %v750_v11  ;;  %vm758_vm0 = vcmp.lt.f32.partialorder %v757_v16, 0.0004427343 }
 0x15e   :  { %1066 = vlog2.f32 %v760_v12  ;;  %v764_v17 = vadd.f32 1.0, %v763_v14  ;;  %v756_v21 = vmul.f32 %v755_v15, %v749_v6 }
 0x15f   :  { %vm767_vm1 = vcmp.lt.f32.partialorder %v766_v19, 0.0004427343 }
 0x160   :  { %v765_v25 = vmul.f32 %v764_v17, %v750_v11 }
 0x166   :  { %v1065_v18 = vpop.eup %1064 }
 0x167   :  { %v753_v20 = vmul.f32 0.6931472, %v1065_v18 }
 0x168   :  { %v1067_v22 = vpop.eup %1066 }
 0x169   :  { %v759_v23 = vsel %vm758_vm0, %v756_v21, %v753_v20  ;;  %v762_v24 = vmul.f32 0.6931472, %v1067_v22 }
 0x16a   :  { %v900_v26 = vpack.c.bf16 %v911_v4, %v759_v23 }
 0x16b   :  { %v768_v27 = vsel %vm767_vm1, %v765_v25, %v762_v24 }
 0x16c   :  { %901 = vst [vmem:[%s1424_s3] sm:$0xff] %v900_v26   ;;  %v905_v28 = vpack.c.bf16 %v915_v9, %v768_v27 }
 0x16e   :  { %907 = vst [vmem:[%s1424_s3 + $0x8] sm:$0xff] %v905_v28  }

// kernel: coil_forward.4
= control target key start
LH: loop header
LB: loop body
LE: loop exit
PB: predicated region body
PF: predicated region fallthrough
CT: control target
= control target key end

     0   :  { %s2032_s1 = inlined_call_operand.vmem [shape: bf16[768,256], index: 1, kind: input, shape index: {}]   ;;  %s2033_s0 = inlined_call_operand.vmem [shape: f32[64,768], index: 0, kind: input, shape index: {}]   ;;  %s2034_s2 = inlined_call_operand.vmem [shape: f32[1,256], index: 2, kind: input, shape index: {}]   ;;  %s2035_s3 = inlined_call_operand.vmem [shape: bf16[64,256], index: 3, kind: output, shape index: {}]  }
   0x1   :  { %v1265_v0 = vld [vmem:[%s2032_s1 + $0x4] ss:$8 sps:$4 sm:$0xff]   ;;  %v1269_v2 = vld [vmem:[%s2032_s1] ss:$8 sps:$4 sm:$0xff]   ;;  %v1271_v4 = vld [vmem:[%s2032_s1 + $0x14] ss:$8 sps:$4 sm:$0xff]  }
   0x2   :  { %v1267_v1 = vld [vmem:[%s2032_s1 + $0x104] ss:$8 sps:$4 sm:$0xff]   ;;  %674 = vmatprep.subr.bf16.mxu1 %v1265_v0  ;;  %v1270_v3 = vld [vmem:[%s2032_s1 + $0x100] ss:$8 sps:$4 sm:$0xff]   ;;  %v1273_v5 = vld [vmem:[%s2032_s1 + $0x114] ss:$8 sps:$4 sm:$0xff]  }
   0x3   :  { %747 = vmatprep.subr.bf16.mxu0 %v1267_v1  ;;  %675 = vmatpush1.bf16.msra.mxu1 %v1269_v2  ;;  %v1275_v6 = vld [vmem:[%s2032_s1 + $0x10] ss:$8 sps:$4 sm:$0xff]   ;;  %v1277_v8 = vld [vmem:[%s2032_s1 + $0x24] ss:$8 sps:$4 sm:$0xff]   ;;  %v1281_v10 = vld [vmem:[%s2032_s1 + $0x20] ss:$8 sps:$4 sm:$0xff]  }
   0x4   :  { %748 = vmatpush1.bf16.msra.mxu0 %v1270_v3  ;;  %676 = vmatprep.subr.bf16.mxu1 %v1271_v4  ;;  %v1276_v7 = vld [vmem:[%s2032_s1 + $0x110] ss:$8 sps:$4 sm:$0xff]   ;;  %v1279_v9 = vld [vmem:[%s2032_s1 + $0x124] ss:$8 sps:$4 sm:$0xff]   ;;  %v1282_v11 = vld [vmem:[%s2032_s1 + $0x120] ss:$8 sps:$4 sm:$0xff]  }
   0x5   :  { %749 = vmatprep.subr.bf16.mxu0 %v1273_v5  ;;  %v1283_v12 = vld [vmem:[%s2032_s1 + $0x34] ss:$8 sps:$4 sm:$0xff]   ;;  %v1287_v14 = vld [vmem:[%s2032_s1 + $0x30] ss:$8 sps:$4 sm:$0xff]   ;;  %v1289_v16 = vld [vmem:[%s2032_s1 + $0x44] ss:$8 sps:$4 sm:$0xff]  }
   0x6   :  { %v1285_v13 = vld [vmem:[%s2032_s1 + $0x134] ss:$8 sps:$4 sm:$0xff]   ;;  %v1288_v15 = vld [vmem:[%s2032_s1 + $0x130] ss:$8 sps:$4 sm:$0xff]   ;;  %v1291_v17 = vld [vmem:[%s2032_s1 + $0x144] ss:$8 sps:$4 sm:$0xff]  }
   0x7   :  { %677 = vmatpush1.bf16.msra.mxu1 %v1275_v6  ;;  %v1293_v18 = vld [vmem:[%s2032_s1 + $0x40] ss:$8 sps:$4 sm:$0xff]   ;;  %v1295_v20 = vld [vmem:[%s2032_s1 + $0x54] ss:$8 sps:$4 sm:$0xff]   ;;  %v1299_v22 = vld [vmem:[%s2032_s1 + $0x50] ss:$8 sps:$4 sm:$0xff]  }
   0x8   :  { %750 = vmatpush1.bf16.msra.mxu0 %v1276_v7  ;;  %678 = vmatprep.subr.bf16.mxu1 %v1277_v8  ;;  %v1294_v19 = vld [vmem:[%s2032_s1 + $0x140] ss:$8 sps:$4 sm:$0xff]   ;;  %v1297_v21 = vld [vmem:[%s2032_s1 + $0x154] ss:$8 sps:$4 sm:$0xff]   ;;  %v1300_v23 = vld [vmem:[%s2032_s1 + $0x150] ss:$8 sps:$4 sm:$0xff]  }
   0x9   :  { %751 = vmatprep.subr.bf16.mxu0 %v1279_v9  ;;  %v1301_v24 = vld [vmem:[%s2032_s1 + $0x64] ss:$8 sps:$4 sm:$0xff]   ;;  %v1305_v26 = vld [vmem:[%s2032_s1 + $0x60] ss:$8 sps:$4 sm:$0xff]   ;;  %v1307_v28 = vld [vmem:[%s2032_s1 + $0x74] ss:$8 sps:$4 sm:$0xff]  }
   0xa   :  { %v1303_v25 = vld [vmem:[%s2032_s1 + $0x164] ss:$8 sps:$4 sm:$0xff]   ;;  %v1306_v27 = vld [vmem:[%s2032_s1 + $0x160] ss:$8 sps:$4 sm:$0xff]   ;;  %v1309_v29 = vld [vmem:[%s2032_s1 + $0x174] ss:$8 sps:$4 sm:$0xff]  }
   0xb   :  { %679 = vmatpush1.bf16.msra.mxu1 %v1281_v10  ;;  %v1311_v30 = vld [vmem:[%s2032_s1 + $0x70] ss:$8 sps:$4 sm:$0xff]   ;;  %v1313_v32 = vld [vmem:[%s2032_s1 + $0x84] ss:$8 sps:$4 sm:$0xff]   ;;  %v1317_v34 = vld [vmem:[%s2032_s1 + $0x80] ss:$8 sps:$4 sm:$0xff]  }
   0xc   :  { %752 = vmatpush1.bf16.msra.mxu0 %v1282_v11  ;;  %680 = vmatprep.subr.bf16.mxu1 %v1283_v12  ;;  %v1312_v31 = vld [vmem:[%s2032_s1 + $0x170] ss:$8 sps:$4 sm:$0xff]   ;;  %v1315_v33 = vld [vmem:[%s2032_s1 + $0x184] ss:$8 sps:$4 sm:$0xff]   ;;  %v1318_v35 = vld [vmem:[%s2032_s1 + $0x180] ss:$8 sps:$4 sm:$0xff]  }
   0xd   :  { %753 = vmatprep.subr.bf16.mxu0 %v1285_v13  ;;  %v1319_v36 = vld [vmem:[%s2032_s1 + $0x94] ss:$8 sps:$4 sm:$0xff]   ;;  %v1323_v38 = vld [vmem:[%s2032_s1 + $0x90] ss:$8 sps:$4 sm:$0xff]   ;;  %v1325_v40 = vld [vmem:[%s2032_s1 + $0xa4] ss:$8 sps:$4 sm:$0xff]  }
   0xe   :  { %v1321_v37 = vld [vmem:[%s2032_s1 + $0x194] ss:$8 sps:$4 sm:$0xff]   ;;  %v1324_v39 = vld [vmem:[%s2032_s1 + $0x190] ss:$8 sps:$4 sm:$0xff]   ;;  %v1327_v41 = vld [vmem:[%s2032_s1 + $0x1a4] ss:$8 sps:$4 sm:$0xff]  }
   0xf   :  { %681 = vmatpush1.bf16.msra.mxu1 %v1287_v14  ;;  %v1329_v42 = vld [vmem:[%s2032_s1 + $0xa0] ss:$8 sps:$4 sm:$0xff]   ;;  %v1331_v44 = vld [vmem:[%s2032_s1 + $0xb4] ss:$8 sps:$4 sm:$0xff]   ;;  %v1335_v47 = vld [vmem:[%s2032_s1 + $0xb0] ss:$8 sps:$4 sm:$0xff]  }
  0x10   :  { %754 = vmatpush1.bf16.msra.mxu0 %v1288_v15  ;;  %682 = vmatprep.subr.bf16.mxu1 %v1289_v16  ;;  %v1330_v43 = vld [vmem:[%s2032_s1 + $0x1a0] ss:$8 sps:$4 sm:$0xff]   ;;  %v1333_v45 = vld [vmem:[%s2032_s1 + $0x1b4] ss:$8 sps:$4 sm:$0xff]   ;;  %v1336_v48 = vld [vmem:[%s2032_s1 + $0x1b0] ss:$8 sps:$4 sm:$0xff]  }
  0x11   :  { %755 = vmatprep.subr.bf16.mxu0 %v1291_v17  ;;  %v15_v46 = vld [vmem:[%s2033_s0 + $0x8] sm:$0xff]  ;;  %v21_v49 = vld [vmem:[%s2033_s0 + $0x38] sm:$0xff]  ;;  %v14_v6 = vld [vmem:[%s2033_s0] sm:$0xff] }
  0x12   :  { %v63_v50 = vpack.c.bf16 %v21_v49, %v15_v46  ;;  %v17_v51 = vld [vmem:[%s2033_s0 + $0x18] sm:$0xff]  ;;  %v23_v52 = vld [vmem:[%s2033_s0 + $0x48] sm:$0xff]  ;;  %v20_v7 = vld [vmem:[%s2033_s0 + $0x30] sm:$0xff] }
  0x13   :  { %683 = vmatpush1.bf16.msra.mxu1 %v1293_v18  ;;  %v1337_v53 = vld [vmem:[%s2032_s1 + $0xc4] ss:$8 sps:$4 sm:$0xff]   ;;  %v65_v55 = vpack.c.bf16 %v23_v52, %v17_v51  ;;  %v1341_v56 = vld [vmem:[%s2032_s1 + $0xc0] ss:$8 sps:$4 sm:$0xff]   ;;  %v1343_v58 = vld [vmem:[%s2032_s1 + $0xd4] ss:$8 sps:$4 sm:$0xff]   ;;  %v62_v12 = vpack.c.bf16 %v20_v7, %v14_v6 }
  0x14   :  { %756 = vmatpush1.bf16.msra.mxu0 %v1294_v19  ;;  %684 = vmatprep.subr.bf16.mxu1 %v1295_v20  ;;  %v1339_v54 = vld [vmem:[%s2032_s1 + $0x1c4] ss:$8 sps:$4 sm:$0xff]   ;;  %v1342_v57 = vld [vmem:[%s2032_s1 + $0x1c0] ss:$8 sps:$4 sm:$0xff]   ;;  %v1345_v59 = vld [vmem:[%s2032_s1 + $0x1d4] ss:$8 sps:$4 sm:$0xff]  }
  0x15   :  { %757 = vmatprep.subr.bf16.mxu0 %v1297_v21  ;;  %706 = vmatprep.mubr.bf16.mxu1 %v63_v50  ;;  %v1347_v60 = vld [vmem:[%s2032_s1 + $0xd0] ss:$8 sps:$4 sm:$0xff]   ;;  %v1349_v62 = vld [vmem:[%s2032_s1 + $0xe4] ss:$8 sps:$4 sm:$0xff]   ;;  %v1353_v0 = vld [vmem:[%s2032_s1 + $0xe0] ss:$8 sps:$4 sm:$0xff]  }
  0x16   :  { %779 = vmatprep.mubr.bf16.mxu0 %v65_v55  ;;  %v1348_v61 = vld [vmem:[%s2032_s1 + $0x1d0] ss:$8 sps:$4 sm:$0xff]   ;;  %v1351_v63 = vld [vmem:[%s2032_s1 + $0x1e4] ss:$8 sps:$4 sm:$0xff]   ;;  %v1354_v1 = vld [vmem:[%s2032_s1 + $0x1e0] ss:$8 sps:$4 sm:$0xff]  }
  0x17   :  { %685 = vmatpush1.bf16.msra.mxu1 %v1299_v22  ;;  %v1355_v2 = vld [vmem:[%s2032_s1 + $0xf4] ss:$8 sps:$4 sm:$0xff]   ;;  %v1359_v4 = vld [vmem:[%s2032_s1 + $0xf0] ss:$8 sps:$4 sm:$0xff]   ;;  %v22_v9 = vld [vmem:[%s2033_s0 + $0x40] sm:$0xff] }
  0x18   :  { %758 = vmatpush1.bf16.msra.mxu0 %v1300_v23  ;;  %686 = vmatprep.subr.bf16.mxu1 %v1301_v24  ;;  %v1357_v3 = vld [vmem:[%s2032_s1 + $0x1f4] ss:$8 sps:$4 sm:$0xff]   ;;  %v1360_v5 = vld [vmem:[%s2032_s1 + $0x1f0] ss:$8 sps:$4 sm:$0xff]   ;;  %v1363_v10 = vld [vmem:[%s2032_s1 + $0x204] ss:$8 sps:$4 sm:$0xff]  }
  0x19   :  { %759 = vmatprep.subr.bf16.mxu0 %v1303_v25  ;;  %v16_v8 = vld [vmem:[%s2033_s0 + $0x10] sm:$0xff]  ;;  %v27_v11 = vld [vmem:[%s2033_s0 + $0x68] sm:$0xff]  ;;  %v33_v14 = vld [vmem:[%s2033_s0 + $0x98] sm:$0xff] }
  0x1a   :  { %v64_v13 = vpack.c.bf16 %v22_v9, %v16_v8  ;;  %v29_v15 = vld [vmem:[%s2033_s0 + $0x78] sm:$0xff]  ;;  %v35_v16 = vld [vmem:[%s2033_s0 + $0xa8] sm:$0xff]  ;;  %v69_v19 = vpack.c.bf16 %v33_v14, %v27_v11  ;;  %v26_v22 = vld [vmem:[%s2033_s0 + $0x60] sm:$0xff] }
  0x1b   :  { %687 = vmatpush1.bf16.msra.mxu1 %v1305_v26  ;;  %v1361_v17 = vld [vmem:[%s2032_s1 + $0x200] ss:$8 sps:$4 sm:$0xff]   ;;  %v1366_v18 = vld [vmem:[%s2032_s1 + $0x214] ss:$8 sps:$4 sm:$0xff]   ;;  %v71_v20 = vpack.c.bf16 %v35_v16, %v29_v15  ;;  %v1364_v21 = vld [vmem:[%s2032_s1 + $0x210] ss:$8 sps:$4 sm:$0xff]  }
  0x1c   :  { %760 = vmatpush1.bf16.msra.mxu0 %v1306_v27  ;;  %688 = vmatprep.subr.bf16.mxu1 %v1307_v28  ;;  %v32_v23 = vld [vmem:[%s2033_s0 + $0x90] sm:$0xff]  ;;  %v34_v25 = vld [vmem:[%s2033_s0 + $0xa0] sm:$0xff]  ;;  %v39_v27 = vld [vmem:[%s2033_s0 + $0xc8] sm:$0xff] }
  0x1d   :  { %761 = vmatprep.subr.bf16.mxu0 %v1309_v29  ;;  %v28_v24 = vld [vmem:[%s2033_s0 + $0x70] sm:$0xff]  ;;  %v1369_v26 = vld [vmem:[%s2032_s1 + $0x224] ss:$8 sps:$4 sm:$0xff]   ;;  %v68_v28 = vpack.c.bf16 %v32_v23, %v26_v22  ;;  %v57_v46 = vld [vmem:[%s2033_s0 + $0x158] sm:$0xff] }
  0x1e   :  { %v70_v29 = vpack.c.bf16 %v34_v25, %v28_v24  ;;  %v1373_v49 = vld [vmem:[%s2032_s1 + $0x240] ss:$8 sps:$4 sm:$0xff]   ;;  %v1378_v50 = vld [vmem:[%s2032_s1 + $0x254] ss:$8 sps:$4 sm:$0xff]   ;;  %v1387_v6 = vld [vmem:[%s2032_s1 + $0x284] ss:$8 sps:$4 sm:$0xff]  }
  0x1f   :  { %689 = vmatpush1.bf16.msra.mxu1 %v1311_v30  ;;  %v45_v30 = vld [vmem:[%s2033_s0 + $0xf8] sm:$0xff]  ;;  %v56_v55 = vld [vmem:[%s2033_s0 + $0x150] sm:$0xff]  ;;  %v1385_v7 = vld [vmem:[%s2032_s1 + $0x280] ss:$8 sps:$4 sm:$0xff]  }
  0x20   :  { %762 = vmatpush1.bf16.msra.mxu0 %v1312_v31  ;;  %690 = vmatprep.subr.bf16.mxu1 %v1313_v32  ;;  %v41_v31 = vld [vmem:[%s2033_s0 + $0xd8] sm:$0xff]  ;;  %v47_v32 = vld [vmem:[%s2033_s0 + $0x108] sm:$0xff]  ;;  %v18_v22 = vld [vmem:[%s2033_s0 + $0x20] sm:$0xff] }
  0x21   :  { %763 = vmatprep.subr.bf16.mxu0 %v1315_v33  ;;  %v1367_v33 = vld [vmem:[%s2032_s1 + $0x220] ss:$8 sps:$4 sm:$0xff]   ;;  %v1390_v8 = vld [vmem:[%s2032_s1 + $0x294] ss:$8 sps:$4 sm:$0xff]   ;;  %v1388_v9 = vld [vmem:[%s2032_s1 + $0x290] ss:$8 sps:$4 sm:$0xff]  }
  0x22   :  { %v1391_v11 = vld [vmem:[%s2032_s1 + $0x2a0] ss:$8 sps:$4 sm:$0xff]   ;;  %v1399_v14 = vld [vmem:[%s2032_s1 + $0x2c4] ss:$8 sps:$4 sm:$0xff]   ;;  %v1402_v16 = vld [vmem:[%s2032_s1 + $0x2d4] ss:$8 sps:$4 sm:$0xff]  }
  0x23   :  { %691 = vmatpush1.bf16.msra.mxu1 %v1317_v34  ;;  %v1372_v34 = vld [vmem:[%s2032_s1 + $0x234] ss:$8 sps:$4 sm:$0xff]   ;;  %v1397_v15 = vld [vmem:[%s2032_s1 + $0x2c0] ss:$8 sps:$4 sm:$0xff]  }
  0x24   :  { %764 = vmatpush1.bf16.msra.mxu0 %v1318_v35  ;;  %692 = vmatprep.subr.bf16.mxu1 %v1319_v36  ;;  %v75_v35 = vpack.c.bf16 %v45_v30, %v39_v27  ;;  %v77_v36 = vpack.c.bf16 %v47_v32, %v41_v31  ;;  %v24_v23 = vld [vmem:[%s2033_s0 + $0x50] sm:$0xff]  ;;  %v42_v24 = vld [vmem:[%s2033_s0 + $0xe0] sm:$0xff]  ;;  %v37_v27 = vld [vmem:[%s2033_s0 + $0xb8] sm:$0xff] }
  0x25   :  { %765 = vmatprep.subr.bf16.mxu0 %v1321_v37  ;;  %v1370_v37 = vld [vmem:[%s2032_s1 + $0x230] ss:$8 sps:$4 sm:$0xff]   ;;  %v66_v30 = vpack.c.bf16 %v24_v23, %v18_v22 }
  0x26   :  { %v48_v25 = vld [vmem:[%s2033_s0 + $0x110] sm:$0xff] }
  0x27   :  { %693 = vmatpush1.bf16.msra.mxu1 %v1323_v38  ;;  %v38_v38 = vld [vmem:[%s2033_s0 + $0xc0] sm:$0xff]  ;;  %v78_v31 = vpack.c.bf16 %v48_v25, %v42_v24 }
  0x28   :  { %766 = vmatpush1.bf16.msra.mxu0 %v1324_v39  ;;  %694 = vmatprep.subr.bf16.mxu1 %v1325_v40  ;;  %v44_v39 = vld [vmem:[%s2033_s0 + $0xf0] sm:$0xff] }
  0x29   :  { %767 = vmatprep.subr.bf16.mxu0 %v1327_v41  ;;  %v40_v40 = vld [vmem:[%s2033_s0 + $0xd0] sm:$0xff]  ;;  %v46_v41 = vld [vmem:[%s2033_s0 + $0x100] sm:$0xff] }
  0x2b   :  { %695 = vmatpush1.bf16.msra.mxu1 %v1329_v42  ;;  %v1375_v42 = vld [vmem:[%s2032_s1 + $0x244] ss:$8 sps:$4 sm:$0xff]  }
  0x2c   :  { %768 = vmatpush1.bf16.msra.mxu0 %v1330_v43  ;;  %696 = vmatprep.subr.bf16.mxu1 %v1331_v44  ;;  %v51_v43 = vld [vmem:[%s2033_s0 + $0x128] sm:$0xff]  ;;  %v74_v44 = vpack.c.bf16 %v44_v39, %v38_v38 }
  0x2d   :  { %769 = vmatprep.subr.bf16.mxu0 %v1333_v45  ;;  %v76_v45 = vpack.c.bf16 %v46_v41, %v40_v40  ;;  %v81_v51 = vpack.c.bf16 %v57_v46, %v51_v43  ;;  %v184_v43 = vlaneseq }
  0x2f   :  { %697 = vmatpush1.bf16.msra.mxu1 %v1335_v47  ;;  %v53_v47 = vld [vmem:[%s2033_s0 + $0x138] sm:$0xff] }
  0x30   :  { %770 = vmatpush1.bf16.msra.mxu0 %v1336_v48  ;;  %698 = vmatprep.subr.bf16.mxu1 %v1337_v53  ;;  %v59_v48 = vld [vmem:[%s2033_s0 + $0x168] sm:$0xff]  ;;  %v1376_v53 = vld [vmem:[%s2032_s1 + $0x250] ss:$8 sps:$4 sm:$0xff]  }
  0x31   :  { %771 = vmatprep.subr.bf16.mxu0 %v1339_v54  ;;  %v83_v52 = vpack.c.bf16 %v59_v48, %v53_v47  ;;  %v50_v54 = vld [vmem:[%s2033_s0 + $0x120] sm:$0xff] }
  0x33   :  { %699 = vmatpush1.bf16.msra.mxu1 %v1341_v56  ;;  %v52_v56 = vld [vmem:[%s2033_s0 + $0x130] sm:$0xff] }
  0x34   :  { %772 = vmatpush1.bf16.msra.mxu0 %v1342_v57  ;;  %700 = vmatprep.subr.bf16.mxu1 %v1343_v58  ;;  %v58_v57 = vld [vmem:[%s2033_s0 + $0x160] sm:$0xff] }
  0x35   :  { %773 = vmatprep.subr.bf16.mxu0 %v1345_v59  ;;  %v1381_v58 = vld [vmem:[%s2032_s1 + $0x264] ss:$8 sps:$4 sm:$0xff]  }
  0x36   :  { %v19_v59 = vld [vmem:[%s2033_s0 + $0x28] sm:$0xff] }
  0x37   :  { %701 = vmatpush1.bf16.msra.mxu1 %v1347_v60  ;;  %v80_v60 = vpack.c.bf16 %v56_v55, %v50_v54 }
  0x38   :  { %774 = vmatpush1.bf16.msra.mxu0 %v1348_v61  ;;  %702 = vmatprep.subr.bf16.mxu1 %v1349_v62  ;;  %v82_v61 = vpack.c.bf16 %v58_v57, %v52_v56  ;;  %v25_v62 = vld [vmem:[%s2033_s0 + $0x58] sm:$0xff] }
  0x39   :  { %775 = vmatprep.subr.bf16.mxu0 %v1351_v63  ;;  %v43_v63 = vld [vmem:[%s2033_s0 + $0xe8] sm:$0xff] }
  0x3b   :  { %703 = vmatpush1.bf16.msra.mxu1 %v1353_v0  ;;  %v49_v0 = vld [vmem:[%s2033_s0 + $0x118] sm:$0xff] }
  0x3c   :  { %776 = vmatpush1.bf16.msra.mxu0 %v1354_v1  ;;  %704 = vmatprep.subr.bf16.mxu1 %v1355_v2  ;;  %v1379_v1 = vld [vmem:[%s2032_s1 + $0x260] ss:$8 sps:$4 sm:$0xff]   ;;  %v1384_v2 = vld [vmem:[%s2032_s1 + $0x274] ss:$8 sps:$4 sm:$0xff]  }
  0x3d   :  { %777 = vmatprep.subr.bf16.mxu0 %v1357_v3  ;;  %v67_v3 = vpack.c.bf16 %v25_v62, %v19_v59 }
  0x3f   :  { %705 = vmatpush1.bf16.msra.mxu1 %v1359_v4  ;;  %v79_v4 = vpack.c.bf16 %v49_v0, %v43_v63 }
  0x40   :  { %778 = vmatpush1.bf16.msra.mxu0 %v1360_v5  ;;  %1185 = vmatprep.subr.bf16.mxu1 %v1363_v10  ;;  %v1382_v5 = vld [vmem:[%s2032_s1 + $0x270] ss:$8 sps:$4 sm:$0xff]  }
  0x41   :  { %820 = vmatprep.subr.bf16.mxu0 %v1363_v10  ;;  %v1393_v10 = vld [vmem:[%s2032_s1 + $0x2a4] ss:$8 sps:$4 sm:$0xff]  }
  0x42   :  { %707 = vmatmul.mubr.bf16.vlgmr.msra.gmra.mrb[0].mxu1 %v62_v12  ;;  %v1396_v12 = vld [vmem:[%s2032_s1 + $0x2b4] ss:$8 sps:$4 sm:$0xff]  }
  0x43   :  { %780 = vmatmul.mubr.bf16.vlgmr.msra.gmra.mrb[0].mxu0 %v64_v13  ;;  %1201 = vmatpush1.bf16.msra.mxu1 %v1361_v17  ;;  %v1394_v13 = vld [vmem:[%s2032_s1 + $0x2b0] ss:$8 sps:$4 sm:$0xff]  }
  0x44   :  { %821 = vmatpush1.bf16.msra.mxu0 %v1361_v17  ;;  %1186 = vmatprep.subr.bf16.mxu1 %v1366_v18  ;;  %v1400_v17 = vld [vmem:[%s2032_s1 + $0x2d0] ss:$8 sps:$4 sm:$0xff]  }
  0x45   :  { %822 = vmatprep.subr.bf16.mxu0 %v1366_v18  ;;  %716 = vmatprep.mubr.bf16.mxu1 %v69_v19  ;;  %v1405_v18 = vld [vmem:[%s2032_s1 + $0x2e4] ss:$8 sps:$4 sm:$0xff]   ;;  %v1403_v19 = vld [vmem:[%s2032_s1 + $0x2e0] ss:$8 sps:$4 sm:$0xff]  }
  0x46   :  { %789 = vmatprep.mubr.bf16.mxu0 %v71_v20  ;;  %v1408_v20 = vld [vmem:[%s2032_s1 + $0x2f4] ss:$8 sps:$4 sm:$0xff]  }
  0x47   :  { %1202 = vmatpush1.bf16.msra.mxu1 %v1364_v21 }
  0x48   :  { %823 = vmatpush1.bf16.msra.mxu0 %v1364_v21  ;;  %1187 = vmatprep.subr.bf16.mxu1 %v1369_v26  ;;  %v1406_v21 = vld [vmem:[%s2032_s1 + $0x2f0] ss:$8 sps:$4 sm:$0xff]  }
  0x49   :  { %824 = vmatprep.subr.bf16.mxu0 %v1369_v26  ;;  %v31_v26 = vld [vmem:[%s2033_s0 + $0x88] sm:$0xff] }
  0x4a   :  { %717 = vmatmul.mubr.bf16.gmra.mrb[4].mxu1 %v68_v28  ;;  %v55_v28 = vld [vmem:[%s2033_s0 + $0x148] sm:$0xff]  ;;  %v73_v32 = vpack.c.bf16 %v37_v27, %v31_v26 }
  0x4b   :  { %790 = vmatmul.mubr.bf16.gmra.mrb[4].mxu0 %v70_v29  ;;  %1203 = vmatpush1.bf16.msra.mxu1 %v1367_v33  ;;  %v61_v29 = vld [vmem:[%s2033_s0 + $0x178] sm:$0xff] }
  0x4c   :  { %825 = vmatpush1.bf16.msra.mxu0 %v1367_v33  ;;  %1188 = vmatprep.subr.bf16.mxu1 %v1372_v34  ;;  %v85_v33 = vpack.c.bf16 %v61_v29, %v55_v28 }
  0x4d   :  { %826 = vmatprep.subr.bf16.mxu0 %v1372_v34  ;;  %726 = vmatprep.mubr.bf16.mxu1 %v75_v35  ;;  %v30_v34 = vld [vmem:[%s2033_s0 + $0x80] sm:$0xff]  ;;  %v36_v35 = vld [vmem:[%s2033_s0 + $0xb0] sm:$0xff] }
  0x4e   :  { %799 = vmatprep.mubr.bf16.mxu0 %v77_v36  ;;  %v54_v36 = vld [vmem:[%s2033_s0 + $0x140] sm:$0xff]  ;;  %v72_v38 = vpack.c.bf16 %v36_v35, %v30_v34 }
  0x4f   :  { %1204 = vmatpush1.bf16.msra.mxu1 %v1370_v37 }
  0x50   :  { %827 = vmatpush1.bf16.msra.mxu0 %v1370_v37  ;;  %1189 = vmatprep.subr.bf16.mxu1 %v1375_v42  ;;  %v60_v37 = vld [vmem:[%s2033_s0 + $0x170] sm:$0xff] }
  0x51   :  { %828 = vmatprep.subr.bf16.mxu0 %v1375_v42  ;;  %v84_v39 = vpack.c.bf16 %v60_v37, %v54_v36 }
  0x52   :  { %727 = vmatmul.mubr.bf16.gmra.mrb[8].mxu1 %v74_v44 }
  0x53   :  { %800 = vmatmul.mubr.bf16.gmra.mrb[8].mxu0 %v76_v45  ;;  %1205 = vmatpush1.bf16.msra.mxu1 %v1373_v49  ;;  %v185_v45 = vshrl.u32 %v184_v43, 7 }
  0x54   :  { %829 = vmatpush1.bf16.msra.mxu0 %v1373_v49  ;;  %1190 = vmatprep.subr.bf16.mxu1 %v1378_v50 }
  0x55   :  { %830 = vmatprep.subr.bf16.mxu0 %v1378_v50  ;;  %736 = vmatprep.mubr.bf16.mxu1 %v81_v51  ;;  %v186_v49 = vsub.s32 0, %v185_v45  ;;  %v182_v51 = vld [vmem:[%s2034_s2] sm:$0x3] }
  0x56   :  { %809 = vmatprep.mubr.bf16.mxu0 %v83_v52  ;;  %v190_v52 = vsub.s32 1, %v185_v45 }
  0x57   :  { %1206 = vmatpush1.bf16.msra.mxu1 %v1376_v53 }
  0x58   :  { %831 = vmatpush1.bf16.msra.mxu0 %v1376_v53  ;;  %1191 = vmatprep.subr.bf16.mxu1 %v1381_v58  ;;  %v1888_v53 = vrot.slane %v182_v51, %v186_v49  ;;  %v1890_v54 = vrot.slane %v182_v51, %v190_v52 }
  0x59   :  { %832 = vmatprep.subr.bf16.mxu0 %v1381_v58 }
  0x5a   :  { %737 = vmatmul.mubr.bf16.gmra.mrb[12].mxu1 %v80_v60 }
  0x5b   :  { %810 = vmatmul.mubr.bf16.gmra.mrb[12].mxu0 %v82_v61  ;;  %1207 = vmatpush1.bf16.msra.mxu1 %v1379_v1 }
  0x5c   :  { %833 = vmatpush1.bf16.msra.mxu0 %v1379_v1  ;;  %1192 = vmatprep.subr.bf16.mxu1 %v1384_v2 }
  0x5d   :  { %834 = vmatprep.subr.bf16.mxu0 %v1384_v2  ;;  %852 = vmatprep.mubr.bf16.mxu0 %v67_v3 }
  0x5e   :  { %872 = vmatprep.mubr.bf16.mxu1 %v79_v4 }
  0x5f   :  { %1208 = vmatpush1.bf16.msra.mxu1 %v1382_v5 }
  0x60   :  { %835 = vmatpush1.bf16.msra.mxu0 %v1382_v5  ;;  %1193 = vmatprep.subr.bf16.mxu1 %v1387_v6 }
  0x61   :  { %836 = vmatprep.subr.bf16.mxu0 %v1387_v6 }
  0x63   :  { %1209 = vmatpush1.bf16.msra.mxu1 %v1385_v7 }
  0x64   :  { %837 = vmatpush1.bf16.msra.mxu0 %v1385_v7  ;;  %1194 = vmatprep.subr.bf16.mxu1 %v1390_v8 }
  0x65   :  { %838 = vmatprep.subr.bf16.mxu0 %v1390_v8 }
  0x67   :  { %1210 = vmatpush1.bf16.msra.mxu1 %v1388_v9 }
  0x68   :  { %839 = vmatpush1.bf16.msra.mxu0 %v1388_v9  ;;  %1195 = vmatprep.subr.bf16.mxu1 %v1393_v10 }
  0x69   :  { %840 = vmatprep.subr.bf16.mxu0 %v1393_v10 }
  0x6b   :  { %1211 = vmatpush1.bf16.msra.mxu1 %v1391_v11 }
  0x6c   :  { %841 = vmatpush1.bf16.msra.mxu0 %v1391_v11  ;;  %1196 = vmatprep.subr.bf16.mxu1 %v1396_v12 }
  0x6d   :  { %842 = vmatprep.subr.bf16.mxu0 %v1396_v12 }
  0x6f   :  { %1212 = vmatpush1.bf16.msra.mxu1 %v1394_v13 }
  0x70   :  { %843 = vmatpush1.bf16.msra.mxu0 %v1394_v13  ;;  %1197 = vmatprep.subr.bf16.mxu1 %v1399_v14 }
  0x71   :  { %844 = vmatprep.subr.bf16.mxu0 %v1399_v14 }
  0x73   :  { %1213 = vmatpush1.bf16.msra.mxu1 %v1397_v15 }
  0x74   :  { %845 = vmatpush1.bf16.msra.mxu0 %v1397_v15  ;;  %1198 = vmatprep.subr.bf16.mxu1 %v1402_v16 }
  0x75   :  { %846 = vmatprep.subr.bf16.mxu0 %v1402_v16 }
  0x77   :  { %1214 = vmatpush1.bf16.msra.mxu1 %v1400_v17 }
  0x78   :  { %847 = vmatpush1.bf16.msra.mxu0 %v1400_v17  ;;  %1199 = vmatprep.subr.bf16.mxu1 %v1405_v18 }
  0x79   :  { %848 = vmatprep.subr.bf16.mxu0 %v1405_v18 }
  0x7b   :  { %1215 = vmatpush1.bf16.msra.mxu1 %v1403_v19 }
  0x7c   :  { %849 = vmatpush1.bf16.msra.mxu0 %v1403_v19  ;;  %1200 = vmatprep.subr.bf16.mxu1 %v1408_v20 }
  0x7d   :  { %850 = vmatprep.subr.bf16.mxu0 %v1408_v20 }
  0x7f   :  { %1216 = vmatpush1.bf16.msra.mxu1 %v1406_v21 }
  0x80   :  { %851 = vmatpush1.bf16.msra.mxu0 %v1406_v21 }
  0x82   :  { %873 = vmatmul.mubr.bf16.vlgmr.msra.gmra.mrb[16].mxu1 %v78_v31 }
  0x83   :  { %853 = vmatmul.mubr.bf16.vlgmr.msra.gmra.mrb[0].mxu0 %v66_v30  ;;  %882 = vmatprep.mubr.bf16.mxu1 %v85_v33 }
  0x84   :  { %862 = vmatprep.mubr.bf16.mxu0 %v73_v32 }
  0x8a   :  { %883 = vmatmul.mubr.bf16.gmra.mrb[20].mxu1 %v84_v39 }
  0x8b   :  { %863 = vmatmul.mubr.bf16.gmra.mrb[4].mxu0 %v72_v38 }
 0x115   :  { %v708_v40 = vpop.f32.mrb[0].mxu1 }
 0x116   :  { %v710_v41 = vpop.f32.mrb[1].mxu1  ;;  %v709_v23 = vadd.f32 %v708_v40, %v1888_v53 }
 0x117   :  { %v712_v42 = vpop.f32.mrb[2].mxu1  ;;  %v711_v24 = vadd.f32 %v710_v41, %v1890_v54 }
 0x118   :  { %v714_v44 = vpop.f32.mrb[3].mxu1  ;;  %v713_v27 = vadd.f32 %v712_v42, %v1888_v53 }
 0x119   :  { %v715_v32 = vadd.f32 %v714_v44, %v1890_v54 }
 0x11d   :  { %v1877_v46 = vpop.f32.mrb[4].mxu1 }
 0x11e   :  { %v1879_v47 = vpop.f32.mrb[5].mxu1 }
 0x11f   :  { %v1881_v48 = vpop.f32.mrb[6].mxu1 }
 0x120   :  { %v1883_v50 = vpop.f32.mrb[7].mxu1 }
 0x125   :  { %v728_v55 = vpop.f32.mrb[8].mxu1 }
 0x126   :  { %v801_v56 = vpop.f32.mrb[8].mxu0  ;;  %v729_v57 = vadd.f32 %v728_v55, %v1888_v53  ;;  %v730_v58 = vpop.f32.mrb[9].mxu1 }
 0x127   :  { %v803_v59 = vpop.f32.mrb[9].mxu0  ;;  %v731_v60 = vadd.f32 %v730_v58, %v1890_v54  ;;  %v732_v61 = vpop.f32.mrb[10].mxu1 }
 0x128   :  { %v805_v62 = vpop.f32.mrb[10].mxu0  ;;  %v733_v63 = vadd.f32 %v732_v61, %v1888_v53  ;;  %v802_v0 = vadd.f32 %v801_v56, %v729_v57  ;;  %v734_v1 = vpop.f32.mrb[11].mxu1 }
 0x129   :  { %v807_v2 = vpop.f32.mrb[11].mxu0  ;;  %v735_v3 = vadd.f32 %v734_v1, %v1890_v54  ;;  %v804_v4 = vadd.f32 %v803_v59, %v731_v60  ;;  %v723_v1 = vadd.f32 %v1881_v48, %v1888_v53 }
 0x12a   :  { %v806_v5 = vadd.f32 %v805_v62, %v733_v63  ;;  %v719_v63 = vadd.f32 %v1877_v46, %v1888_v53 }
 0x12b   :  { %v808_v6 = vadd.f32 %v807_v2, %v735_v3 }
 0x12d   :  { %v738_v7 = vpop.f32.mrb[12].mxu1 }
 0x12e   :  { %v811_v8 = vpop.f32.mrb[12].mxu0  ;;  %v739_v9 = vadd.f32 %v738_v7, %v1888_v53  ;;  %v740_v10 = vpop.f32.mrb[13].mxu1 }
 0x12f   :  { %v813_v11 = vpop.f32.mrb[13].mxu0  ;;  %v741_v12 = vadd.f32 %v740_v10, %v1890_v54  ;;  %v742_v13 = vpop.f32.mrb[14].mxu1 }
 0x130   :  { %v815_v14 = vpop.f32.mrb[14].mxu0  ;;  %v743_v15 = vadd.f32 %v742_v13, %v1888_v53  ;;  %v1899_v16 = vadd.f32 %v811_v8, %v739_v9  ;;  %v744_v17 = vpop.f32.mrb[15].mxu1 }
 0x131   :  { %v817_v18 = vpop.f32.mrb[15].mxu0  ;;  %v745_v19 = vadd.f32 %v744_v17, %v1890_v54  ;;  %v1902_v20 = vadd.f32 %v813_v11, %v741_v12 }
 0x132   :  { %v1904_v21 = vadd.f32 %v815_v14, %v743_v15 }
 0x133   :  { %v1906_v22 = vadd.f32 %v817_v18, %v745_v19 }
 0x155   :  { %v874_v26 = vpop.f32.mrb[16].mxu1 }
 0x156   :  { %v854_v25 = vpop.f32.mrb[0].mxu0  ;;  %v875_v29 = vadd.f32 %v874_v26, %v802_v0  ;;  %v876_v31 = vpop.f32.mrb[17].mxu1  ;;  %v721_v0 = vadd.f32 %v1879_v47, %v1890_v54 }
 0x157   :  { %v1218_v28 = vadd.f32 %v854_v25, %v709_v23  ;;  %v856_v30 = vpop.f32.mrb[1].mxu0  ;;  %v877_v34 = vadd.f32 %v876_v31, %v804_v4  ;;  %v878_v36 = vpop.f32.mrb[18].mxu1 }
 0x158   :  { %v1220_v33 = vadd.f32 %v856_v30, %v711_v24  ;;  %v858_v35 = vpop.f32.mrb[2].mxu0  ;;  %v1914_v38 = vmax.f32 %v875_v29, 0.0  ;;  %v879_v40 = vadd.f32 %v878_v36, %v806_v5  ;;  %v880_v43 = vpop.f32.mrb[19].mxu1  ;;  %v725_v5 = vadd.f32 %v1883_v50, %v1890_v54 }
 0x159   :  { %v1912_v37 = vmax.f32 %v1218_v28, 0.0  ;;  %v1222_v39 = vadd.f32 %v858_v35, %v713_v27  ;;  %v860_v41 = vpop.f32.mrb[3].mxu0  ;;  %v1181_v42 = vpack.c.bf16 %v877_v34, %v877_v34  ;;  %v881_v51 = vadd.f32 %v880_v43, %v808_v6 }
 0x15a   :  { %v1177_v45 = vpack.c.bf16 %v1220_v33, %v1220_v33  ;;  %v1224_v49 = vadd.f32 %v860_v41, %v715_v32  ;;  %v937_v44 = vadd.f32 1.0, %v1914_v38  ;;  %v1926_v56 = vmax.f32 %v879_v40, 0.0 }
 0x15b   :  { %v901_v52 = vadd.f32 1.0, %v1912_v37  ;;  %1049 = vst [vmem:[%s2035_s3 + $0x24] sm:$0xf] %v1181_v42  ;;  %v1924_v55 = vmax.f32 %v1222_v39, 0.0  ;;  %v904_v57 = vmul.f32 -0.5, %v1912_v37  ;;  %v940_v58 = vmul.f32 -0.5, %v1914_v38 }
 0x15c   :  { %1045 = vst [vmem:[%s2035_s3 + $0x4] sm:$0xf] %v1177_v45  ;;  %v1178_v59 = vpack.c.bf16 %v1224_v49, %v1224_v49  ;;  %v946_v2 = vadd.f32 1.0, %v1926_v56  ;;  %v907_v6 = vand.u32 2147483647, %v1912_v37  ;;  %v1182_v53 = vpack.c.bf16 %v881_v51, %v881_v51 }
 0x15d   :  { %1409 = vlog2.f32 %v901_v52  ;;  %v910_v60 = vadd.f32 1.0, %v1924_v55  ;;  %v884_v62 = vpop.f32.mrb[20].mxu1  ;;  %v943_v46 = vand.u32 2147483647, %v1914_v38  ;;  %v905_v8 = vadd.f32 1.0, %v904_v57 }
 0x15e   :  { %1411 = vlog2.f32 %v937_v44  ;;  %v864_v61 = vpop.f32.mrb[4].mxu0  ;;  %1046 = vst [vmem:[%s2035_s3 + $0xc] sm:$0xf] %v1178_v59  ;;  %v886_v4 = vpop.f32.mrb[21].mxu1  ;;  %v941_v48 = vadd.f32 1.0, %v940_v58  ;;  %v913_v11 = vmul.f32 -0.5, %v1924_v55  ;;  %v885_v50 = vadd.f32 %v884_v62, %v1899_v16 }
 0x15f   :  { %v866_v3 = vpop.f32.mrb[5].mxu0  ;;  %1413 = vlog2.f32 %v910_v60  ;;  %v888_v7 = vpop.f32.mrb[22].mxu1  ;;  %v949_v12 = vmul.f32 -0.5, %v1926_v56  ;;  %v1226_v13 = vadd.f32 %v864_v61, %v719_v63  ;;  %v916_v54 = vand.u32 2147483647, %v1924_v55 }
 0x160   :  { %v868_v47 = vpop.f32.mrb[6].mxu0  ;;  %1415 = vlog2.f32 %v946_v2  ;;  %v890_v10 = vpop.f32.mrb[23].mxu1  ;;  %1050 = vst [vmem:[%s2035_s3 + $0x2c] sm:$0xf] %v1182_v53  ;;  %v1228_v14 = vadd.f32 %v866_v3, %v721_v0  ;;  %v887_v15 = vadd.f32 %v886_v4, %v1902_v20  ;;  %v952_v18 = vand.u32 2147483647, %v1926_v56 }
 0x161   :  { %v870_v9 = vpop.f32.mrb[7].mxu0  ;;  %v1230_v17 = vadd.f32 %v868_v47, %v723_v1  ;;  %v1954_v19 = vmax.f32 %v1226_v13, 0.0  ;;  %v1956_v23 = vmax.f32 %v885_v50, 0.0  ;;  %v889_v24 = vadd.f32 %v888_v7, %v1904_v21 }
 0x162   :  { %v1179_v25 = vpack.c.bf16 %v1228_v14, %v1228_v14  ;;  %v1183_v16 = vpack.c.bf16 %v887_v15, %v887_v15  ;;  %v1232_v27 = vadd.f32 %v870_v9, %v725_v5  ;;  %v914_v28 = vadd.f32 1.0, %v913_v11 }
 0x163   :  { %v1959_v26 = vmax.f32 %v1230_v17, 0.0  ;;  %v950_v29 = vadd.f32 1.0, %v949_v12  ;;  %v919_v30 = vadd.f32 1.0, %v1954_v19  ;;  %v955_v20 = vadd.f32 1.0, %v1956_v23 }
 0x164   :  { %vm908_vm0 = vcmp.lt.f32.partialorder %v907_v6, 0.0004427343  ;;  %vm1963_vm1 = vcmp.lt.f32.partialorder %v943_v46, 0.0004427343  ;;  %1047 = vst [vmem:[%s2035_s3 + $0x14] sm:$0xf] %v1179_v25  ;;  %v906_v35 = vmul.f32 %v905_v8, %v1912_v37  ;;  %v942_v36 = vmul.f32 %v941_v48, %v1914_v38 }
 0x165   :  { %1051 = vst [vmem:[%s2035_s3 + $0x34] sm:$0xf] %v1183_v16  ;;  %v928_v21 = vadd.f32 1.0, %v1959_v26  ;;  %1417 = vlog2.f32 %v919_v30  ;;  %vm1976_vm2 = vcmp.lt.f32.partialorder %v916_v54, 0.0004427343  ;;  %v915_v42 = vmul.f32 %v914_v28, %v1924_v55 }
 0x166   :  { %vm1980_vm3 = vcmp.lt.f32.partialorder %v952_v18, 0.0004427343  ;;  %1419 = vlog2.f32 %v955_v20  ;;  %v951_v49 = vmul.f32 %v950_v29, %v1926_v56  ;;  %v922_v44 = vmul.f32 -0.5, %v1954_v19 }
 0x167   :  { %v1410_v31 = vpop.eup %1409  ;;  %1421 = vlog2.f32 %v928_v21  ;;  %v958_v59 = vmul.f32 -0.5, %v1956_v23  ;;  %v931_v60 = vmul.f32 -0.5, %v1959_v26  ;;  %v900_v56 = vmax.f32 %v889_v24, 0.0 }
 0x168   :  { %v1412_v33 = vpop.eup %1411  ;;  %v903_v34 = vmul.f32 0.6931472, %v1410_v31  ;;  %v1180_v61 = vpack.c.bf16 %v1232_v27, %v1232_v27  ;;  %v891_v62 = vadd.f32 %v890_v10, %v1906_v22  ;;  %v923_v2 = vadd.f32 1.0, %v922_v44 }
 0x169   :  { %v939_v39 = vmul.f32 0.6931472, %v1412_v33  ;;  %v1414_v43 = vpop.eup %1413  ;;  %v964_v3 = vadd.f32 1.0, %v900_v56  ;;  %v925_v22 = vand.u32 2147483647, %v1954_v19  ;;  %v959_v4 = vadd.f32 1.0, %v958_v59 }
 0x16a   :  { %v909_v45 = vsel %vm908_vm0, %v906_v35, %v903_v34  ;;  %v1416_v37 = vpop.eup %1415  ;;  %v912_v52 = vmul.f32 0.6931472, %v1414_v43  ;;  %1048 = vst [vmem:[%s2035_s3 + $0x1c] sm:$0xf] %v1180_v61  ;;  %v1184_v5 = vpack.c.bf16 %v891_v62, %v891_v62  ;;  %v961_v6 = vand.u32 2147483647, %v1956_v23 }
 0x16b   :  { %v1169_v38 = vpack.c.bf16 %v909_v45, %v909_v45  ;;  %v945_v51 = vsel %vm1963_vm1, %v942_v36, %v939_v39  ;;  %v948_v58 = vmul.f32 0.6931472, %v1416_v37  ;;  %v932_v46 = vadd.f32 1.0, %v931_v60 }
 0x16c   :  { %v1173_v57 = vpack.c.bf16 %v945_v51, %v945_v51  ;;  %v918_v55 = vsel %vm1976_vm2, %v915_v42, %v912_v52  ;;  %1423 = vlog2.f32 %v964_v3  ;;  %v934_v7 = vand.u32 2147483647, %v1959_v26  ;;  %1052 = vst [vmem:[%s2035_s3 + $0x3c] sm:$0xf] %v1184_v5 }
 0x16d   :  { %1005 = vst [vmem:[%s2035_s3] sm:$0xf] %v1169_v38  ;;  %v1170_v63 = vpack.c.bf16 %v918_v55, %v918_v55  ;;  %v954_v0 = vsel %vm1980_vm3, %v951_v49, %v948_v58  ;;  %v924_v53 = vmul.f32 %v923_v2, %v1954_v19  ;;  %vm926_vm4 = vcmp.lt.f32.partialorder %v925_v22, 0.0004427343 }
 0x16e   :  { %1009 = vst [vmem:[%s2035_s3 + $0x20] sm:$0xf] %v1173_v57  ;;  %v1174_v1 = vpack.c.bf16 %v954_v0, %v954_v0  ;;  %v960_v11 = vmul.f32 %v959_v4, %v1956_v23  ;;  %v967_v12 = vmul.f32 -0.5, %v900_v56  ;;  %vm962_vm5 = vcmp.lt.f32.partialorder %v961_v6, 0.0004427343 }
 0x16f   :  { %1006 = vst [vmem:[%s2035_s3 + $0x8] sm:$0xf] %v1170_v63  ;;  %v1418_v47 = vpop.eup %1417  ;;  %v933_v54 = vmul.f32 %v932_v46, %v1959_v26  ;;  %vm935_vm6 = vcmp.lt.f32.partialorder %v934_v7, 0.0004427343  ;;  %v970_v23 = vand.u32 2147483647, %v900_v56 }
 0x170   :  { %1010 = vst [vmem:[%s2035_s3 + $0x28] sm:$0xf] %v1174_v1  ;;  %v1420_v8 = vpop.eup %1419  ;;  %v921_v48 = vmul.f32 0.6931472, %v1418_v47  ;;  %v968_v24 = vadd.f32 1.0, %v967_v12 }
 0x171   :  { %v1422_v9 = vpop.eup %1421  ;;  %v957_v10 = vmul.f32 0.6931472, %v1420_v8  ;;  %vm971_vm7 = vcmp.lt.f32.partialorder %v970_v23, 0.0004427343 }
 0x172   :  { %v927_v13 = vsel %vm926_vm4, %v924_v53, %v921_v48  ;;  %v930_v50 = vmul.f32 0.6931472, %v1422_v9  ;;  %v969_v26 = vmul.f32 %v968_v24, %v900_v56 }
 0x173   :  { %v1171_v14 = vpack.c.bf16 %v927_v13, %v927_v13  ;;  %v963_v15 = vsel %vm962_vm5, %v960_v11, %v957_v10 }
 0x174   :  { %v1175_v17 = vpack.c.bf16 %v963_v15, %v963_v15  ;;  %v936_v18 = vsel %vm935_vm6, %v933_v54, %v930_v50 }
 0x175   :  { %1007 = vst [vmem:[%s2035_s3 + $0x10] sm:$0xf] %v1171_v14  ;;  %v1172_v19 = vpack.c.bf16 %v936_v18, %v936_v18 }
 0x176   :  { %1011 = vst [vmem:[%s2035_s3 + $0x30] sm:$0xf] %v1175_v17  ;;  %v1424_v25 = vpop.eup %1423 }
 0x177   :  { %1008 = vst [vmem:[%s2035_s3 + $0x18] sm:$0xf] %v1172_v19  ;;  %v966_v16 = vmul.f32 0.6931472, %v1424_v25 }
 0x179   :  { %v972_v27 = vsel %vm971_vm7, %v969_v26, %v966_v16 }
 0x17a   :  { %v1176_v28 = vpack.c.bf16 %v972_v27, %v972_v27 }
 0x17c   :  { %1012 = vst [vmem:[%s2035_s3 + $0x38] sm:$0xf] %v1176_v28 }

// kernel: coil_forward.5
= control target key start
LH: loop header
LB: loop body
LE: loop exit
PB: predicated region body
PF: predicated region fallthrough
CT: control target
= control target key end

     0   :  { %v12576_v0 = vmov 0.0   ;;  %vm678_vm0 = vcmask 1041409   ;;  %vm681_vm1 = vcmask 1042434   ;;  %vm684_vm2 = vcmask 1043459   ;;  %s21356_s4 = inlined_call_operand.vmem [shape: bf16[128,16,128], index: 4, kind: input, shape index: {}]   ;;  %s21357_s0 = inlined_call_operand.vmem [shape: bf16[16,128], index: 0, kind: input, shape index: {}]   ;;  %s21358_s1 = inlined_call_operand.vmem [shape: s32[16,1], index: 1, kind: input, shape index: {}]   ;;  %s21359_s5 = inlined_call_operand.vmem [shape: s32[16,128], index: 5, kind: input, shape index: {}]   ;;  %s21360_s2 = inlined_call_operand.vmem [shape: f32[16,1], index: 2, kind: input, shape index: {}]   ;;  %s21361_s6 = inlined_call_operand.vmem [shape: bf16[128,128], index: 6, kind: input, shape index: {}]   ;;  %s21362_s3 = inlined_call_operand.vmem [shape: bf16[2,128], index: 3, kind: input, shape index: {}]   ;;  %s21363_s7 = inlined_call_operand.vmem [shape: f32[2,128], index: 7, kind: output, shape index: {}]  }
   0x1   :  { %11191 = vmatprep.subr.bf16.mxu0 %v12576_v0  ;;  %11211 = vmatprep.subr.bf16.mxu1 %v12576_v0  ;;  %v11536_v1 = vld [vmem:[%s21356_s4] ss:$0 sps:$4 sm:$0x11]   ;;  %v12627_v2 = vld [vmem:[%s21356_s4 + $0x8] ss:$0 sps:$4 sm:$0x11]  }
   0x2   :  { %v11538_v3 = vld [vmem:[%s21356_s4 + $0x10] ss:$0 sps:$4 sm:$0x11]   ;;  %v11539_v4 = vld [vmem:[%s21356_s4 + $0x18] ss:$0 sps:$4 sm:$0x11]   ;;  %v550_v10 = vunpack.c.l.b16 %v12627_v2  ;;  %v549_v18 = vunpack.c.l.b16 %v11536_v1 }
   0x3   :  { %v11540_v5 = vld [vmem:[%s21356_s4 + $0x20] ss:$0 sps:$4 sm:$0x11]   ;;  %vm687_vm3 = vcmask 1044484   ;;  %v551_v11 = vunpack.c.l.b16 %v11538_v3  ;;  %v552_v14 = vunpack.c.l.b16 %v11539_v4  ;;  %vm690_vm4 = vcmask 1045509  }
   0x4   :  { %v11541_v6 = vld [vmem:[%s21356_s4 + $0x28] ss:$0 sps:$4 sm:$0x11]   ;;  %v11542_v7 = vld [vmem:[%s21356_s4 + $0x30] ss:$0 sps:$4 sm:$0x11]   ;;  %v553_v15 = vunpack.c.l.b16 %v11540_v5 }
   0x5   :  { %v12647_v8 = vld [vmem:[%s21356_s4 + $0x38] ss:$0 sps:$4 sm:$0x11]   ;;  %v11544_v9 = vld [vmem:[%s21356_s4 + $0x40] ss:$0 sps:$4 sm:$0x11]   ;;  %v554_v19 = vunpack.c.l.b16 %v11541_v6  ;;  %v555_v20 = vunpack.c.l.b16 %v11542_v7 }
   0x6   :  { %v12656_v12 = vld [vmem:[%s21356_s4 + $0x48] ss:$0 sps:$4 sm:$0x11]   ;;  %v11546_v13 = vld [vmem:[%s21356_s4 + $0x50] ss:$0 sps:$4 sm:$0x11]   ;;  %v556_v23 = vunpack.c.l.b16 %v12647_v8  ;;  %v557_v24 = vunpack.c.l.b16 %v11544_v9 }
   0x7   :  { %v11547_v16 = vld [vmem:[%s21356_s4 + $0x58] ss:$0 sps:$4 sm:$0x11]   ;;  %v12667_v17 = vld [vmem:[%s21356_s4 + $0x60] ss:$0 sps:$4 sm:$0x11]   ;;  %v558_v25 = vunpack.c.l.b16 %v12656_v12  ;;  %v559_v26 = vunpack.c.l.b16 %v11546_v13 }
   0x8   :  { %v12672_v21 = vld [vmem:[%s21356_s4 + $0x68] ss:$0 sps:$4 sm:$0x11]   ;;  %v12677_v22 = vld [vmem:[%s21356_s4 + $0x70] ss:$0 sps:$4 sm:$0x11]   ;;  %v560_v28 = vunpack.c.l.b16 %v11547_v16  ;;  %v561_v29 = vunpack.c.l.b16 %v12667_v17 }
   0x9   :  { %v12684_v27 = vld [vmem:[%s21356_s4 + $0x78] ss:$0 sps:$4 sm:$0x11]   ;;  %v677_v30 = vrot.slane %v550_v10, 7  ;;  %v680_v31 = vrot.slane %v551_v11, 6  ;;  %v562_v32 = vunpack.c.l.b16 %v12672_v21  ;;  %v563_v33 = vunpack.c.l.b16 %v12677_v22 }
   0xa   :  { %v683_v34 = vrot.slane %v552_v14, 5  ;;  %v686_v35 = vrot.slane %v553_v15, 4  ;;  %v564_v36 = vunpack.c.l.b16 %v12684_v27  ;;  %v689_v38 = vrot.slane %v554_v19, 3  ;;  %v12735_v27 = vld [vmem:[%s21356_s4 + $0xa0] ss:$0 sps:$4 sm:$0x11]  }
   0xb   :  { %v679_v37 = vsel %vm678_vm0, %v677_v30, %v549_v18  ;;  %v692_v40 = vrot.slane %v555_v20, 2  ;;  %vm693_vm5 = vcmask 1046534   ;;  %v695_v41 = vrot.slane %v556_v23, 1 }
   0xc   :  { %v682_v39 = vsel %vm681_vm1, %v680_v31, %v679_v37  ;;  %vm696_vm6 = vcmask 1047559   ;;  %v698_v43 = vrot.slane %v558_v25, 7  ;;  %v700_v44 = vrot.slane %v559_v26, 6  ;;  %v12748_v31 = vld [vmem:[%s21356_s4 + $0xb0] ss:$0 sps:$4 sm:$0x11]  }
   0xd   :  { %v685_v42 = vsel %vm684_vm2, %v683_v34, %v682_v39  ;;  %v702_v46 = vrot.slane %v560_v28, 5  ;;  %v704_v47 = vrot.slane %v561_v29, 4  ;;  %v706_v48 = vrot.slane %v562_v32, 3  ;;  %v12759_v34 = vld [vmem:[%s21356_s4 + $0xc0] ss:$0 sps:$4 sm:$0x11]  }
   0xe   :  { %v688_v45 = vsel %vm687_vm3, %v686_v35, %v685_v42  ;;  %v699_v50 = vsel %vm678_vm0, %v698_v43, %v557_v24  ;;  %v708_v51 = vrot.slane %v563_v33, 2  ;;  %v710_v52 = vrot.slane %v564_v36, 1  ;;  %v12764_v35 = vld [vmem:[%s21356_s4 + $0xc8] ss:$0 sps:$4 sm:$0x11]  }
   0xf   :  { %v691_v49 = vsel %vm690_vm4, %v689_v38, %v688_v45  ;;  %v701_v54 = vsel %vm681_vm1, %v700_v44, %v699_v50  ;;  %v982_v55 = vrot.slane %v549_v18, 1  ;;  %v984_v56 = vrot.slane %v551_v11, 7  ;;  %v12772_v39 = vld [vmem:[%s21356_s4 + $0xd0] ss:$0 sps:$4 sm:$0x11]  }
  0x10   :  { %v694_v53 = vsel %vm693_vm5, %v692_v40, %v691_v49  ;;  %v703_v58 = vsel %vm684_vm2, %v702_v46, %v701_v54  ;;  %v986_v59 = vrot.slane %v552_v14, 6  ;;  %v988_v60 = vrot.slane %v553_v15, 5  ;;  %v12712_v14 = vld [vmem:[%s21356_s4 + $0x80] ss:$0 sps:$4 sm:$0x11]  }
  0x11   :  { %v697_v57 = vsel %vm696_vm6, %v695_v41, %v694_v53  ;;  %v705_v61 = vsel %vm687_vm3, %v704_v47, %v703_v58  ;;  %v983_v62 = vsel %vm678_vm0, %v550_v10, %v982_v55  ;;  %v990_v63 = vrot.slane %v554_v19, 4  ;;  %v12717_v15 = vld [vmem:[%s21356_s4 + $0x88] ss:$0 sps:$4 sm:$0x11]  }
  0x12   :  { %v992_v1 = vrot.slane %v555_v20, 3  ;;  %v707_v2 = vsel %vm690_vm4, %v706_v48, %v705_v61  ;;  %v985_v3 = vsel %vm681_vm1, %v984_v56, %v983_v62  ;;  %v994_v4 = vrot.slane %v556_v23, 2  ;;  %v12724_v20 = vld [vmem:[%s21356_s4 + $0x90] ss:$0 sps:$4 sm:$0x11]  }
  0x13   :  { %v996_v5 = vrot.slane %v557_v24, 1  ;;  %v709_v6 = vsel %vm693_vm5, %v708_v51, %v707_v2  ;;  %v987_v7 = vsel %vm684_vm2, %v986_v59, %v985_v3  ;;  %v998_v8 = vrot.slane %v559_v26, 7  ;;  %v12777_v40 = vld [vmem:[%s21356_s4 + $0xd8] ss:$0 sps:$4 sm:$0x11]  }
  0x14   :  { %v1000_v9 = vrot.slane %v560_v28, 6  ;;  %v711_v11 = vsel %vm696_vm6, %v710_v52, %v709_v6  ;;  %v989_v12 = vsel %vm687_vm3, %v988_v60, %v987_v7  ;;  %v1002_v13 = vrot.slane %v561_v29, 5  ;;  %v12740_v28 = vld [vmem:[%s21356_s4 + $0xa8] ss:$0 sps:$4 sm:$0x11]  }
  0x15   :  { %v997_v10 = vsel %vm678_vm0, %v558_v25, %v996_v5  ;;  %v908_v16 = vpack.c.b16 %v711_v11, %v697_v57  ;;  %v991_v17 = vsel %vm690_vm4, %v990_v63, %v989_v12  ;;  %v1004_v19 = vrot.slane %v562_v32, 4  ;;  %v11555_v25 = vld [vmem:[%s21356_s4 + $0x98] ss:$0 sps:$4 sm:$0x11]  }
  0x16   :  { %v999_v18 = vsel %vm681_vm1, %v998_v8, %v997_v10  ;;  %v993_v21 = vsel %vm693_vm5, %v992_v1, %v991_v17  ;;  %v1006_v23 = vrot.slane %v563_v33, 3  ;;  %v1008_v24 = vrot.slane %v564_v36, 2  ;;  %v12753_v32 = vld [vmem:[%s21356_s4 + $0xb8] ss:$0 sps:$4 sm:$0x11]  }
  0x17   :  { %v1001_v22 = vsel %vm684_vm2, %v1000_v9, %v999_v18  ;;  %11192 = vmatpush3.bf16.xpose.msra.mxu0 %v908_v16  ;;  %v995_v29 = vsel %vm696_vm6, %v994_v4, %v993_v21  ;;  %v566_v36 = vunpack.c.l.b16 %v12717_v15  ;;  %v567_v37 = vunpack.c.l.b16 %v12724_v20  ;;  %v12784_v45 = vld [vmem:[%s21356_s4 + $0xe0] ss:$0 sps:$4 sm:$0x11]   ;;  %v12789_v46 = vld [vmem:[%s21356_s4 + $0xe8] ss:$0 sps:$4 sm:$0x11]  }
  0x18   :  { %v1003_v26 = vsel %vm687_vm3, %v1002_v13, %v1001_v22  ;;  %11193 = vmatprep.subr.bf16.mxu0 %v12576_v0  ;;  %v565_v41 = vunpack.c.l.b16 %v12712_v14  ;;  %v568_v42 = vunpack.c.l.b16 %v11555_v25  ;;  %v569_v43 = vunpack.c.l.b16 %v12735_v27  ;;  %v12797_v50 = vld [vmem:[%s21356_s4 + $0xf0] ss:$0 sps:$4 sm:$0x11]   ;;  %v12802_v51 = vld [vmem:[%s21356_s4 + $0xf8] ss:$0 sps:$4 sm:$0x11]  }
  0x19   :  { %v1005_v30 = vsel %vm690_vm4, %v1004_v19, %v1003_v26  ;;  %v570_v47 = vunpack.c.l.b16 %v12740_v28  ;;  %v571_v48 = vunpack.c.l.b16 %v12748_v31  ;;  %v572_v49 = vunpack.c.l.b16 %v12753_v32 }
  0x1a   :  { %v1007_v33 = vsel %vm693_vm5, %v1006_v23, %v1005_v30  ;;  %v573_v52 = vunpack.c.l.b16 %v12759_v34  ;;  %v574_v53 = vunpack.c.l.b16 %v12764_v35  ;;  %v575_v54 = vunpack.c.l.b16 %v12772_v39  ;;  %v12836_v34 = vld [vmem:[%s21356_s4 + $0x108] ss:$0 sps:$4 sm:$0x11]   ;;  %v12843_v39 = vld [vmem:[%s21356_s4 + $0x110] ss:$0 sps:$4 sm:$0x11]  }
  0x1b   :  { %v1009_v38 = vsel %vm696_vm6, %v1008_v24, %v1007_v33  ;;  %v576_v55 = vunpack.c.l.b16 %v12777_v40  ;;  %v577_v56 = vunpack.c.l.b16 %v12784_v45  ;;  %v578_v57 = vunpack.c.l.b16 %v12789_v46  ;;  %v12831_v33 = vld [vmem:[%s21356_s4 + $0x100] ss:$0 sps:$4 sm:$0x11]  }
  0x1c   :  { %v1206_v44 = vpack.c.b16 %v1009_v38, %v995_v29  ;;  %v712_v58 = vrot.slane %v566_v36, 7  ;;  %v714_v59 = vrot.slane %v567_v37, 6  ;;  %v579_v60 = vunpack.c.l.b16 %v12797_v50 }
  0x1d   :  { %v580_v61 = vunpack.c.l.b16 %v12802_v51  ;;  %v716_v62 = vrot.slane %v568_v42, 5  ;;  %v718_v63 = vrot.slane %v569_v43, 4  ;;  %v720_v2 = vrot.slane %v570_v47, 3 }
  0x1e   :  { %11212 = vmatpush3.bf16.xpose.msra.mxu1 %v1206_v44  ;;  %v713_v1 = vsel %vm678_vm0, %v712_v58, %v565_v41  ;;  %v722_v3 = vrot.slane %v571_v48, 2  ;;  %v724_v4 = vrot.slane %v572_v49, 1  ;;  %v726_v6 = vrot.slane %v574_v53, 7  ;;  %v12850_v44 = vld [vmem:[%s21356_s4 + $0x118] ss:$0 sps:$4 sm:$0x11]  }
  0x1f   :  { %11213 = vmatprep.subr.bf16.mxu1 %v12576_v0  ;;  %v715_v5 = vsel %vm681_vm1, %v714_v59, %v713_v1  ;;  %v728_v7 = vrot.slane %v575_v54, 6  ;;  %v730_v8 = vrot.slane %v576_v55, 5  ;;  %v732_v11 = vrot.slane %v577_v56, 4  ;;  %v12882_v59 = vld [vmem:[%s21356_s4 + $0x140] ss:$0 sps:$4 sm:$0x11]  }
  0x20   :  { %v717_v9 = vsel %vm684_vm2, %v716_v62, %v715_v5  ;;  %v734_v12 = vrot.slane %v578_v57, 3  ;;  %v736_v10 = vrot.slane %v579_v60, 2  ;;  %v727_v14 = vsel %vm678_vm0, %v726_v6, %v573_v52 }
  0x21   :  { %v719_v13 = vsel %vm687_vm3, %v718_v63, %v717_v9  ;;  %v738_v15 = vrot.slane %v580_v61, 1  ;;  %v1010_v16 = vrot.slane %v565_v41, 1  ;;  %v729_v18 = vsel %vm681_vm1, %v728_v7, %v727_v14  ;;  %v12915_v9 = vld [vmem:[%s21356_s4 + $0x168] ss:$0 sps:$4 sm:$0x11]  }
  0x22   :  { %v721_v17 = vsel %vm690_vm4, %v720_v2, %v719_v13  ;;  %v1012_v19 = vrot.slane %v567_v37, 7  ;;  %v1014_v20 = vrot.slane %v568_v42, 6  ;;  %v731_v22 = vsel %vm684_vm2, %v730_v8, %v729_v18  ;;  %v12896_v2 = vld [vmem:[%s21356_s4 + $0x150] ss:$0 sps:$4 sm:$0x11]  }
  0x23   :  { %v723_v21 = vsel %vm693_vm5, %v722_v3, %v721_v17  ;;  %v1011_v23 = vsel %vm678_vm0, %v566_v36, %v1010_v16  ;;  %v1016_v24 = vrot.slane %v569_v43, 5  ;;  %v733_v26 = vsel %vm687_vm3, %v732_v11, %v731_v22  ;;  %v12901_v3 = vld [vmem:[%s21356_s4 + $0x158] ss:$0 sps:$4 sm:$0x11]  }
  0x24   :  { %v725_v25 = vsel %vm696_vm6, %v724_v4, %v723_v21  ;;  %v1013_v27 = vsel %vm681_vm1, %v1012_v19, %v1011_v23  ;;  %v1018_v28 = vrot.slane %v570_v47, 4  ;;  %v735_v29 = vsel %vm690_vm4, %v734_v12, %v733_v26  ;;  %v12910_v8 = vld [vmem:[%s21356_s4 + $0x160] ss:$0 sps:$4 sm:$0x11]  }
  0x25   :  { %v1015_v30 = vsel %vm684_vm2, %v1014_v20, %v1013_v27  ;;  %v1020_v31 = vrot.slane %v571_v48, 3  ;;  %v1022_v32 = vrot.slane %v572_v49, 2  ;;  %v737_v35 = vsel %vm693_vm5, %v736_v10, %v735_v29  ;;  %v12857_v49 = vld [vmem:[%s21356_s4 + $0x120] ss:$0 sps:$4 sm:$0x11]  }
  0x26   :  { %v1017_v36 = vsel %vm687_vm3, %v1016_v24, %v1015_v30  ;;  %v1024_v37 = vrot.slane %v573_v52, 1  ;;  %v1026_v38 = vrot.slane %v575_v54, 7  ;;  %v739_v40 = vsel %vm696_vm6, %v738_v15, %v737_v35  ;;  %v12863_v54 = vld [vmem:[%s21356_s4 + $0x128] ss:$0 sps:$4 sm:$0x11]  }
  0x27   :  { %v1019_v41 = vsel %vm690_vm4, %v1018_v28, %v1017_v36  ;;  %v1028_v42 = vrot.slane %v576_v55, 6  ;;  %v1030_v43 = vrot.slane %v577_v56, 5  ;;  %v909_v45 = vpack.c.b16 %v739_v40, %v725_v25  ;;  %v12870_v56 = vld [vmem:[%s21356_s4 + $0x130] ss:$0 sps:$4 sm:$0x11]  }
  0x28   :  { %v1021_v46 = vsel %vm693_vm5, %v1020_v31, %v1019_v41  ;;  %v1025_v47 = vsel %vm678_vm0, %v574_v53, %v1024_v37  ;;  %v1032_v48 = vrot.slane %v578_v57, 4  ;;  %v1034_v51 = vrot.slane %v579_v60, 3  ;;  %v12875_v57 = vld [vmem:[%s21356_s4 + $0x138] ss:$0 sps:$4 sm:$0x11]  }
  0x29   :  { %v1027_v50 = vsel %vm681_vm1, %v1026_v38, %v1025_v47  ;;  %v1036_v52 = vrot.slane %v580_v61, 2  ;;  %11194 = vmatpush3.bf16.xpose.msra.mxu0 %v909_v45  ;;  %v1023_v55 = vsel %vm696_vm6, %v1022_v32, %v1021_v46  ;;  %v12887_v60 = vld [vmem:[%s21356_s4 + $0x148] ss:$0 sps:$4 sm:$0x11]   ;;  %v581_v61 = vunpack.c.l.b16 %v12831_v33 }
  0x2a   :  { %v1029_v53 = vsel %vm684_vm2, %v1028_v42, %v1027_v50  ;;  %11195 = vmatprep.subr.bf16.mxu0 %v12576_v0  ;;  %v582_v62 = vunpack.c.l.b16 %v12836_v34  ;;  %v583_v63 = vunpack.c.l.b16 %v12843_v39  ;;  %v584_v4 = vunpack.c.l.b16 %v12850_v44  ;;  %v12924_v14 = vld [vmem:[%s21356_s4 + $0x170] ss:$0 sps:$4 sm:$0x11]   ;;  %v12929_v15 = vld [vmem:[%s21356_s4 + $0x178] ss:$0 sps:$4 sm:$0x11]  }
  0x2b   :  { %v1031_v58 = vsel %vm687_vm3, %v1030_v43, %v1029_v53  ;;  %v585_v5 = vunpack.c.l.b16 %v12857_v49  ;;  %v586_v6 = vunpack.c.l.b16 %v12863_v54  ;;  %v587_v11 = vunpack.c.l.b16 %v12870_v56 }
  0x2c   :  { %v1033_v1 = vsel %vm690_vm4, %v1032_v48, %v1031_v58  ;;  %v588_v12 = vunpack.c.l.b16 %v12875_v57  ;;  %v589_v10 = vunpack.c.l.b16 %v12882_v59  ;;  %v590_v16 = vunpack.c.l.b16 %v12887_v60  ;;  %v12956_v59 = vld [vmem:[%s21356_s4 + $0x180] ss:$0 sps:$4 sm:$0x11]   ;;  %v12961_v60 = vld [vmem:[%s21356_s4 + $0x188] ss:$0 sps:$4 sm:$0x11]  }
  0x2d   :  { %v1035_v7 = vsel %vm693_vm5, %v1034_v51, %v1033_v1  ;;  %v591_v17 = vunpack.c.l.b16 %v12896_v2  ;;  %v592_v18 = vunpack.c.l.b16 %v12901_v3  ;;  %v593_v20 = vunpack.c.l.b16 %v12910_v8  ;;  %v12968_v2 = vld [vmem:[%s21356_s4 + $0x190] ss:$0 sps:$4 sm:$0x11]  }
  0x2e   :  { %v1037_v13 = vsel %vm696_vm6, %v1036_v52, %v1035_v7  ;;  %v594_v21 = vunpack.c.l.b16 %v12915_v9  ;;  %v740_v22 = vrot.slane %v582_v62, 7  ;;  %v595_v23 = vunpack.c.l.b16 %v12924_v14  ;;  %v12975_v7 = vld [vmem:[%s21356_s4 + $0x198] ss:$0 sps:$4 sm:$0x11]  }
  0x2f   :  { %v1207_v19 = vpack.c.b16 %v1037_v13, %v1023_v55  ;;  %v596_v24 = vunpack.c.l.b16 %v12929_v15  ;;  %v742_v25 = vrot.slane %v583_v63, 6  ;;  %v744_v26 = vrot.slane %v584_v4, 5 }
  0x30   :  { %v741_v27 = vsel %vm678_vm0, %v740_v22, %v581_v61  ;;  %v746_v28 = vrot.slane %v585_v5, 4  ;;  %v748_v29 = vrot.slane %v586_v6, 3  ;;  %v750_v30 = vrot.slane %v587_v11, 2 }
  0x31   :  { %11214 = vmatpush3.bf16.xpose.msra.mxu1 %v1207_v19  ;;  %v743_v31 = vsel %vm681_vm1, %v742_v25, %v741_v27  ;;  %v752_v32 = vrot.slane %v588_v12, 1  ;;  %v754_v33 = vrot.slane %v590_v16, 7  ;;  %v756_v34 = vrot.slane %v591_v17, 6 }
  0x32   :  { %11215 = vmatprep.subr.bf16.mxu1 %v12576_v0  ;;  %v745_v35 = vsel %vm684_vm2, %v744_v26, %v743_v31  ;;  %v758_v36 = vrot.slane %v592_v18, 5  ;;  %v760_v37 = vrot.slane %v593_v20, 4  ;;  %v762_v38 = vrot.slane %v594_v21, 3 }
  0x33   :  { %v747_v39 = vsel %vm687_vm3, %v746_v28, %v745_v35  ;;  %v755_v40 = vsel %vm678_vm0, %v754_v33, %v589_v10  ;;  %v764_v41 = vrot.slane %v595_v23, 2  ;;  %v766_v42 = vrot.slane %v596_v24, 1  ;;  %v11596_v35 = vld [vmem:[%s21356_s4 + $0x1e0] ss:$0 sps:$4 sm:$0x11]  }
  0x34   :  { %v749_v43 = vsel %vm690_vm4, %v748_v29, %v747_v39  ;;  %v757_v44 = vsel %vm681_vm1, %v756_v34, %v755_v40  ;;  %v1038_v45 = vrot.slane %v581_v61, 1  ;;  %v1040_v46 = vrot.slane %v583_v63, 7  ;;  %v13022_v29 = vld [vmem:[%s21356_s4 + $0x1d0] ss:$0 sps:$4 sm:$0x11]  }
  0x35   :  { %v751_v47 = vsel %vm693_vm5, %v750_v30, %v749_v43  ;;  %v759_v48 = vsel %vm684_vm2, %v758_v36, %v757_v44  ;;  %v1042_v49 = vrot.slane %v584_v4, 6  ;;  %v1044_v50 = vrot.slane %v585_v5, 5  ;;  %v13027_v30 = vld [vmem:[%s21356_s4 + $0x1d8] ss:$0 sps:$4 sm:$0x11]  }
  0x36   :  { %v753_v51 = vsel %vm696_vm6, %v752_v32, %v751_v47  ;;  %v761_v52 = vsel %vm687_vm3, %v760_v37, %v759_v48  ;;  %v1039_v54 = vsel %vm678_vm0, %v582_v62, %v1038_v45  ;;  %v1046_v55 = vrot.slane %v586_v6, 4  ;;  %v13039_v36 = vld [vmem:[%s21356_s4 + $0x1e8] ss:$0 sps:$4 sm:$0x11]  }
  0x37   :  { %v763_v53 = vsel %vm690_vm4, %v762_v38, %v761_v52  ;;  %v1041_v56 = vsel %vm681_vm1, %v1040_v46, %v1039_v54  ;;  %v1048_v57 = vrot.slane %v587_v11, 3  ;;  %v1050_v58 = vrot.slane %v588_v12, 2 }
  0x38   :  { %v765_v61 = vsel %vm693_vm5, %v764_v41, %v763_v53  ;;  %v1043_v62 = vsel %vm684_vm2, %v1042_v49, %v1041_v56  ;;  %v1052_v63 = vrot.slane %v589_v10, 1  ;;  %v1054_v1 = vrot.slane %v591_v17, 7  ;;  %v12982_v10 = vld [vmem:[%s21356_s4 + $0x1a0] ss:$0 sps:$4 sm:$0x11]  }
  0x39   :  { %v767_v3 = vsel %vm696_vm6, %v766_v42, %v765_v61  ;;  %v1045_v4 = vsel %vm687_vm3, %v1044_v50, %v1043_v62  ;;  %v1056_v5 = vrot.slane %v592_v18, 6  ;;  %v1058_v6 = vrot.slane %v593_v20, 5  ;;  %v12989_v18 = vld [vmem:[%s21356_s4 + $0x1a8] ss:$0 sps:$4 sm:$0x11]  }
  0x3a   :  { %v910_v8 = vpack.c.b16 %v767_v3, %v753_v51  ;;  %v1047_v9 = vsel %vm690_vm4, %v1046_v55, %v1045_v4  ;;  %v1053_v11 = vsel %vm678_vm0, %v590_v16, %v1052_v63  ;;  %v1060_v12 = vrot.slane %v594_v21, 4  ;;  %v12996_v20 = vld [vmem:[%s21356_s4 + $0x1b0] ss:$0 sps:$4 sm:$0x11]  }
  0x3b   :  { %v1049_v13 = vsel %vm693_vm5, %v1048_v57, %v1047_v9  ;;  %v1055_v14 = vsel %vm681_vm1, %v1054_v1, %v1053_v11  ;;  %v1062_v15 = vrot.slane %v595_v23, 3  ;;  %v1064_v17 = vrot.slane %v596_v24, 2  ;;  %v13001_v21 = vld [vmem:[%s21356_s4 + $0x1b8] ss:$0 sps:$4 sm:$0x11]  }
  0x3c   :  { %11196 = vmatpush3.bf16.xpose.msra.mxu0 %v910_v8  ;;  %v1051_v16 = vsel %vm696_vm6, %v1050_v58, %v1049_v13  ;;  %v1057_v19 = vsel %vm684_vm2, %v1056_v5, %v1055_v14  ;;  %v13008_v23 = vld [vmem:[%s21356_s4 + $0x1c0] ss:$0 sps:$4 sm:$0x11]   ;;  %v13013_v24 = vld [vmem:[%s21356_s4 + $0x1c8] ss:$0 sps:$4 sm:$0x11]   ;;  %v597_v25 = vunpack.c.l.b16 %v12956_v59  ;;  %v598_v26 = vunpack.c.l.b16 %v12961_v60 }
  0x3d   :  { %v1059_v22 = vsel %vm687_vm3, %v1058_v6, %v1057_v19  ;;  %11197 = vmatprep.subr.bf16.mxu0 %v12576_v0  ;;  %v599_v27 = vunpack.c.l.b16 %v12968_v2  ;;  %v600_v31 = vunpack.c.l.b16 %v12975_v7  ;;  %v601_v32 = vunpack.c.l.b16 %v12982_v10  ;;  %v13048_v41 = vld [vmem:[%s21356_s4 + $0x1f0] ss:$0 sps:$4 sm:$0x11]   ;;  %v13053_v42 = vld [vmem:[%s21356_s4 + $0x1f8] ss:$0 sps:$4 sm:$0x11]  }
  0x3e   :  { %v1061_v28 = vsel %vm690_vm4, %v1060_v12, %v1059_v22  ;;  %v602_v33 = vunpack.c.l.b16 %v12989_v18  ;;  %v603_v37 = vunpack.c.l.b16 %v12996_v20  ;;  %v604_v38 = vunpack.c.l.b16 %v13001_v21 }
  0x3f   :  { %v1063_v34 = vsel %vm693_vm5, %v1062_v15, %v1061_v28  ;;  %v605_v39 = vunpack.c.l.b16 %v13008_v23  ;;  %v606_v43 = vunpack.c.l.b16 %v13013_v24  ;;  %v607_v44 = vunpack.c.l.b16 %v13022_v29  ;;  %v13079_v23 = vld [vmem:[%s21356_s4 + $0x200] ss:$0 sps:$4 sm:$0x11]  }
  0x40   :  { %v1065_v40 = vsel %vm696_vm6, %v1064_v17, %v1063_v34  ;;  %v608_v45 = vunpack.c.l.b16 %v13027_v30  ;;  %v609_v47 = vunpack.c.l.b16 %v11596_v35  ;;  %v610_v48 = vunpack.c.l.b16 %v13039_v36 }
  0x41   :  { %v1208_v46 = vpack.c.b16 %v1065_v40, %v1051_v16  ;;  %v768_v49 = vrot.slane %v598_v26, 7  ;;  %v611_v50 = vunpack.c.l.b16 %v13048_v41  ;;  %v612_v51 = vunpack.c.l.b16 %v13053_v42 }
  0x42   :  { %v770_v52 = vrot.slane %v599_v27, 6  ;;  %v772_v54 = vrot.slane %v600_v31, 5  ;;  %v774_v53 = vrot.slane %v601_v32, 4  ;;  %v776_v56 = vrot.slane %v602_v33, 3 }
  0x43   :  { %11216 = vmatpush3.bf16.xpose.msra.mxu1 %v1208_v46  ;;  %v769_v55 = vsel %vm678_vm0, %v768_v49, %v597_v25  ;;  %v778_v57 = vrot.slane %v603_v37, 2  ;;  %v780_v59 = vrot.slane %v604_v38, 1  ;;  %v782_v60 = vrot.slane %v606_v43, 7  ;;  %v13118_v46 = vld [vmem:[%s21356_s4 + $0x230] ss:$0 sps:$4 sm:$0x11]  }
  0x44   :  { %v771_v58 = vsel %vm681_vm1, %v770_v52, %v769_v55  ;;  %v784_v61 = vrot.slane %v607_v44, 6  ;;  %11217 = vmatprep.subr.bf16.mxu1 %v12576_v0  ;;  %v786_v63 = vrot.slane %v608_v45, 5  ;;  %v788_v1 = vrot.slane %v609_v47, 4  ;;  %v13126_v49 = vld [vmem:[%s21356_s4 + $0x238] ss:$0 sps:$4 sm:$0x11]  }
  0x45   :  { %v773_v62 = vsel %vm684_vm2, %v772_v54, %v771_v58  ;;  %v790_v2 = vrot.slane %v610_v48, 3  ;;  %v783_v4 = vsel %vm678_vm0, %v782_v60, %v605_v39  ;;  %v792_v5 = vrot.slane %v611_v50, 2  ;;  %v13139_v55 = vld [vmem:[%s21356_s4 + $0x248] ss:$0 sps:$4 sm:$0x11]  }
  0x46   :  { %v775_v3 = vsel %vm687_vm3, %v774_v53, %v773_v62  ;;  %v794_v6 = vrot.slane %v612_v51, 1  ;;  %v785_v8 = vsel %vm681_vm1, %v784_v61, %v783_v4  ;;  %v1066_v9 = vrot.slane %v597_v25, 1  ;;  %v13144_v53 = vld [vmem:[%s21356_s4 + $0x250] ss:$0 sps:$4 sm:$0x11]  }
  0x47   :  { %v777_v7 = vsel %vm690_vm4, %v776_v56, %v775_v3  ;;  %v1068_v11 = vrot.slane %v599_v27, 7  ;;  %v787_v10 = vsel %vm684_vm2, %v786_v63, %v785_v8  ;;  %v1070_v13 = vrot.slane %v600_v31, 6  ;;  %v13153_v60 = vld [vmem:[%s21356_s4 + $0x258] ss:$0 sps:$4 sm:$0x11]  }
  0x48   :  { %v779_v12 = vsel %vm693_vm5, %v778_v57, %v777_v7  ;;  %v1072_v14 = vrot.slane %v601_v32, 5  ;;  %v789_v17 = vsel %vm687_vm3, %v788_v1, %v787_v10  ;;  %v1067_v18 = vsel %vm678_vm0, %v598_v26, %v1066_v9  ;;  %v13086_v26 = vld [vmem:[%s21356_s4 + $0x208] ss:$0 sps:$4 sm:$0x11]  }
  0x49   :  { %v781_v15 = vsel %vm696_vm6, %v780_v59, %v779_v12  ;;  %v1074_v16 = vrot.slane %v602_v33, 4  ;;  %v791_v19 = vsel %vm690_vm4, %v790_v2, %v789_v17  ;;  %v1069_v20 = vsel %vm681_vm1, %v1068_v11, %v1067_v18  ;;  %v13093_v33 = vld [vmem:[%s21356_s4 + $0x210] ss:$0 sps:$4 sm:$0x11]  }
  0x4a   :  { %v1076_v21 = vrot.slane %v603_v37, 3  ;;  %v1078_v22 = vrot.slane %v604_v38, 2  ;;  %v793_v24 = vsel %vm693_vm5, %v792_v5, %v791_v19  ;;  %v1071_v25 = vsel %vm684_vm2, %v1070_v13, %v1069_v20  ;;  %v13100_v38 = vld [vmem:[%s21356_s4 + $0x218] ss:$0 sps:$4 sm:$0x11]  }
  0x4b   :  { %v1080_v27 = vrot.slane %v605_v39, 1  ;;  %v1082_v28 = vrot.slane %v607_v44, 7  ;;  %v795_v29 = vsel %vm696_vm6, %v794_v6, %v793_v24  ;;  %v1073_v30 = vsel %vm687_vm3, %v1072_v14, %v1071_v25  ;;  %v13107_v44 = vld [vmem:[%s21356_s4 + $0x220] ss:$0 sps:$4 sm:$0x11]  }
  0x4c   :  { %v1084_v31 = vrot.slane %v608_v45, 6  ;;  %v1086_v32 = vrot.slane %v609_v47, 5  ;;  %v911_v34 = vpack.c.b16 %v795_v29, %v781_v15  ;;  %v1075_v35 = vsel %vm690_vm4, %v1074_v16, %v1073_v30  ;;  %v13113_v45 = vld [vmem:[%s21356_s4 + $0x228] ss:$0 sps:$4 sm:$0x11]  }
  0x4d   :  { %v1081_v36 = vsel %vm678_vm0, %v606_v43, %v1080_v27  ;;  %v1088_v37 = vrot.slane %v610_v48, 4  ;;  %v1077_v39 = vsel %vm693_vm5, %v1076_v21, %v1075_v35  ;;  %v1090_v41 = vrot.slane %v611_v50, 3  ;;  %v13131_v50 = vld [vmem:[%s21356_s4 + $0x240] ss:$0 sps:$4 sm:$0x11]  }
  0x4e   :  { %v1083_v40 = vsel %vm681_vm1, %v1082_v28, %v1081_v36  ;;  %v1092_v42 = vrot.slane %v612_v51, 2  ;;  %11198 = vmatpush3.bf16.xpose.msra.mxu0 %v911_v34  ;;  %v1079_v47 = vsel %vm696_vm6, %v1078_v22, %v1077_v39  ;;  %v613_v51 = vunpack.c.l.b16 %v13079_v23  ;;  %v13158_v61 = vld [vmem:[%s21356_s4 + $0x260] ss:$0 sps:$4 sm:$0x11]  }
  0x4f   :  { %v1085_v43 = vsel %vm684_vm2, %v1084_v31, %v1083_v40  ;;  %11199 = vmatprep.subr.bf16.mxu0 %v12576_v0  ;;  %v614_v52 = vunpack.c.l.b16 %v13086_v26  ;;  %v615_v56 = vunpack.c.l.b16 %v13093_v33  ;;  %v616_v57 = vunpack.c.l.b16 %v13100_v38  ;;  %v13167_v3 = vld [vmem:[%s21356_s4 + $0x268] ss:$0 sps:$4 sm:$0x11]   ;;  %v13172_v4 = vld [vmem:[%s21356_s4 + $0x270] ss:$0 sps:$4 sm:$0x11]  }
  0x50   :  { %v1087_v48 = vsel %vm687_vm3, %v1086_v32, %v1085_v43  ;;  %v617_v58 = vunpack.c.l.b16 %v13107_v44  ;;  %v618_v62 = vunpack.c.l.b16 %v13113_v45  ;;  %v619_v63 = vunpack.c.l.b16 %v13118_v46  ;;  %v13180_v9 = vld [vmem:[%s21356_s4 + $0x278] ss:$0 sps:$4 sm:$0x11]  }
  0x51   :  { %v1089_v54 = vsel %vm690_vm4, %v1088_v37, %v1087_v48  ;;  %v620_v1 = vunpack.c.l.b16 %v13126_v49  ;;  %v621_v5 = vunpack.c.l.b16 %v13131_v50  ;;  %v622_v6 = vunpack.c.l.b16 %v13139_v55  ;;  %v13207_v55 = vld [vmem:[%s21356_s4 + $0x280] ss:$0 sps:$4 sm:$0x11]  }
  0x52   :  { %v1091_v59 = vsel %vm693_vm5, %v1090_v41, %v1089_v54  ;;  %v623_v7 = vunpack.c.l.b16 %v13144_v53  ;;  %v624_v11 = vunpack.c.l.b16 %v13153_v60  ;;  %v625_v12 = vunpack.c.l.b16 %v13158_v61 }
  0x53   :  { %v1093_v2 = vsel %vm696_vm6, %v1092_v42, %v1091_v59  ;;  %v796_v10 = vrot.slane %v614_v52, 7  ;;  %v626_v13 = vunpack.c.l.b16 %v13167_v3  ;;  %v627_v14 = vunpack.c.l.b16 %v13172_v4  ;;  %v13219_v59 = vld [vmem:[%s21356_s4 + $0x290] ss:$0 sps:$4 sm:$0x11]  }
  0x54   :  { %v1209_v8 = vpack.c.b16 %v1093_v2, %v1079_v47  ;;  %v798_v15 = vrot.slane %v615_v56, 6  ;;  %v800_v17 = vrot.slane %v616_v57, 5  ;;  %v628_v18 = vunpack.c.l.b16 %v13180_v9  ;;  %v13239_v9 = vld [vmem:[%s21356_s4 + $0x2a8] ss:$0 sps:$4 sm:$0x11]  }
  0x55   :  { %v797_v16 = vsel %vm678_vm0, %v796_v10, %v613_v51  ;;  %v802_v19 = vrot.slane %v617_v58, 4  ;;  %v804_v20 = vrot.slane %v618_v62, 3  ;;  %v806_v22 = vrot.slane %v619_v63, 2  ;;  %v13247_v10 = vld [vmem:[%s21356_s4 + $0x2b0] ss:$0 sps:$4 sm:$0x11]  }
  0x56   :  { %11218 = vmatpush3.bf16.xpose.msra.mxu1 %v1209_v8  ;;  %v799_v21 = vsel %vm681_vm1, %v798_v15, %v797_v16  ;;  %v808_v23 = vrot.slane %v620_v1, 1  ;;  %v810_v24 = vrot.slane %v622_v6, 7  ;;  %v812_v27 = vrot.slane %v623_v7, 6  ;;  %v13258_v15 = vld [vmem:[%s21356_s4 + $0x2c0] ss:$0 sps:$4 sm:$0x11]  }
  0x57   :  { %11219 = vmatprep.subr.bf16.mxu1 %v12576_v0  ;;  %v801_v25 = vsel %vm684_vm2, %v800_v17, %v799_v21  ;;  %v814_v28 = vrot.slane %v624_v11, 5  ;;  %v816_v26 = vrot.slane %v625_v12, 4  ;;  %v818_v31 = vrot.slane %v626_v13, 3  ;;  %v13263_v17 = vld [vmem:[%s21356_s4 + $0x2c8] ss:$0 sps:$4 sm:$0x11]  }
  0x58   :  { %v803_v29 = vsel %vm687_vm3, %v802_v19, %v801_v25  ;;  %v811_v30 = vsel %vm678_vm0, %v810_v24, %v621_v5  ;;  %v820_v32 = vrot.slane %v627_v14, 2  ;;  %v822_v35 = vrot.slane %v628_v18, 1  ;;  %v13272_v21 = vld [vmem:[%s21356_s4 + $0x2d0] ss:$0 sps:$4 sm:$0x11]  }
  0x59   :  { %v805_v33 = vsel %vm690_vm4, %v804_v20, %v803_v29  ;;  %v813_v34 = vsel %vm681_vm1, %v812_v27, %v811_v30  ;;  %v1094_v36 = vrot.slane %v613_v51, 1  ;;  %v1096_v39 = vrot.slane %v615_v56, 7 }
  0x5a   :  { %v807_v37 = vsel %vm693_vm5, %v806_v22, %v805_v33  ;;  %v815_v38 = vsel %vm684_vm2, %v814_v28, %v813_v34  ;;  %v1098_v40 = vrot.slane %v616_v57, 6  ;;  %v1100_v43 = vrot.slane %v617_v58, 5  ;;  %v13277_v22 = vld [vmem:[%s21356_s4 + $0x2d8] ss:$0 sps:$4 sm:$0x11]  }
  0x5b   :  { %v809_v41 = vsel %vm696_vm6, %v808_v23, %v807_v37  ;;  %v817_v42 = vsel %vm687_vm3, %v816_v26, %v815_v38  ;;  %v1095_v44 = vsel %vm678_vm0, %v614_v52, %v1094_v36  ;;  %v1102_v47 = vrot.slane %v618_v62, 4  ;;  %v13212_v52 = vld [vmem:[%s21356_s4 + $0x288] ss:$0 sps:$4 sm:$0x11]  }
  0x5c   :  { %v819_v45 = vsel %vm690_vm4, %v818_v31, %v817_v42  ;;  %v1097_v46 = vsel %vm681_vm1, %v1096_v39, %v1095_v44  ;;  %v1104_v48 = vrot.slane %v619_v63, 3  ;;  %v1106_v51 = vrot.slane %v620_v1, 2  ;;  %v13226_v1 = vld [vmem:[%s21356_s4 + $0x298] ss:$0 sps:$4 sm:$0x11]  }
  0x5d   :  { %v821_v49 = vsel %vm693_vm5, %v820_v32, %v819_v45  ;;  %v1099_v50 = vsel %vm684_vm2, %v1098_v40, %v1097_v46  ;;  %v1108_v54 = vrot.slane %v621_v5, 1  ;;  %v1110_v57 = vrot.slane %v623_v7, 7  ;;  %v13233_v7 = vld [vmem:[%s21356_s4 + $0x2a0] ss:$0 sps:$4 sm:$0x11]  }
  0x5e   :  { %v823_v53 = vsel %vm696_vm6, %v822_v35, %v821_v49  ;;  %v1101_v56 = vsel %vm687_vm3, %v1100_v43, %v1099_v50  ;;  %v1112_v58 = vrot.slane %v624_v11, 6  ;;  %v1114_v63 = vrot.slane %v625_v12, 5  ;;  %v13286_v28 = vld [vmem:[%s21356_s4 + $0x2e0] ss:$0 sps:$4 sm:$0x11]  }
  0x5f   :  { %v912_v60 = vpack.c.b16 %v823_v53, %v809_v41  ;;  %v1103_v61 = vsel %vm690_vm4, %v1102_v47, %v1101_v56  ;;  %v1109_v62 = vsel %vm678_vm0, %v622_v6, %v1108_v54  ;;  %v1116_v4 = vrot.slane %v626_v13, 4  ;;  %v13252_v13 = vld [vmem:[%s21356_s4 + $0x2b8] ss:$0 sps:$4 sm:$0x11]  }
  0x60   :  { %v1105_v2 = vsel %vm693_vm5, %v1104_v48, %v1103_v61  ;;  %v1111_v3 = vsel %vm681_vm1, %v1110_v57, %v1109_v62  ;;  %v1118_v5 = vrot.slane %v627_v14, 3  ;;  %v1120_v8 = vrot.slane %v628_v18, 2  ;;  %v13291_v26 = vld [vmem:[%s21356_s4 + $0x2e8] ss:$0 sps:$4 sm:$0x11]  }
  0x61   :  { %11200 = vmatpush3.bf16.xpose.msra.mxu0 %v912_v60  ;;  %v1113_v6 = vsel %vm684_vm2, %v1112_v58, %v1111_v3  ;;  %v1107_v11 = vsel %vm696_vm6, %v1106_v51, %v1105_v2  ;;  %v629_v18 = vunpack.c.l.b16 %v13207_v55  ;;  %v630_v16 = vunpack.c.l.b16 %v13212_v52  ;;  %v13299_v33 = vld [vmem:[%s21356_s4 + $0x2f0] ss:$0 sps:$4 sm:$0x11]   ;;  %v13304_v34 = vld [vmem:[%s21356_s4 + $0x2f8] ss:$0 sps:$4 sm:$0x11]  }
  0x62   :  { %v1115_v12 = vsel %vm687_vm3, %v1114_v63, %v1113_v6  ;;  %11201 = vmatprep.subr.bf16.mxu0 %v12576_v0  ;;  %v631_v19 = vunpack.c.l.b16 %v13219_v59  ;;  %v632_v23 = vunpack.c.l.b16 %v13226_v1  ;;  %v633_v24 = vunpack.c.l.b16 %v13233_v7 }
  0x63   :  { %v1117_v14 = vsel %vm690_vm4, %v1116_v4, %v1115_v12  ;;  %v634_v25 = vunpack.c.l.b16 %v13239_v9  ;;  %v635_v29 = vunpack.c.l.b16 %v13247_v10  ;;  %v636_v30 = vunpack.c.l.b16 %v13252_v13 }
  0x64   :  { %v1119_v20 = vsel %vm693_vm5, %v1118_v5, %v1117_v14  ;;  %v637_v31 = vunpack.c.l.b16 %v13258_v15  ;;  %v638_v35 = vunpack.c.l.b16 %v13263_v17  ;;  %v639_v36 = vunpack.c.l.b16 %v13272_v21  ;;  %v13332_v15 = vld [vmem:[%s21356_s4 + $0x300] ss:$0 sps:$4 sm:$0x11]   ;;  %v13337_v17 = vld [vmem:[%s21356_s4 + $0x308] ss:$0 sps:$4 sm:$0x11]  }
  0x65   :  { %v1121_v27 = vsel %vm696_vm6, %v1120_v8, %v1119_v20  ;;  %v640_v37 = vunpack.c.l.b16 %v13277_v22  ;;  %v641_v38 = vunpack.c.l.b16 %v13286_v28  ;;  %v642_v39 = vunpack.c.l.b16 %v13291_v26  ;;  %v13344_v21 = vld [vmem:[%s21356_s4 + $0x310] ss:$0 sps:$4 sm:$0x11]  }
  0x66   :  { %v1210_v32 = vpack.c.b16 %v1121_v27, %v1107_v11  ;;  %v824_v40 = vrot.slane %v630_v16, 7  ;;  %v826_v41 = vrot.slane %v631_v19, 6  ;;  %v643_v42 = vunpack.c.l.b16 %v13299_v33  ;;  %v13351_v27 = vld [vmem:[%s21356_s4 + $0x318] ss:$0 sps:$4 sm:$0x11]  }
  0x67   :  { %v644_v44 = vunpack.c.l.b16 %v13304_v34  ;;  %v828_v43 = vrot.slane %v632_v23, 5  ;;  %v830_v45 = vrot.slane %v633_v24, 4  ;;  %v832_v47 = vrot.slane %v634_v25, 3 }
  0x68   :  { %11220 = vmatpush3.bf16.xpose.msra.mxu1 %v1210_v32  ;;  %v825_v46 = vsel %vm678_vm0, %v824_v40, %v629_v18  ;;  %v834_v48 = vrot.slane %v635_v29, 2  ;;  %v836_v49 = vrot.slane %v636_v30, 1  ;;  %v838_v51 = vrot.slane %v638_v35, 7 }
  0x69   :  { %11221 = vmatprep.subr.bf16.mxu1 %v12576_v0  ;;  %v827_v50 = vsel %vm681_vm1, %v826_v41, %v825_v46  ;;  %v840_v54 = vrot.slane %v639_v36, 6  ;;  %v842_v55 = vrot.slane %v640_v37, 5  ;;  %v844_v53 = vrot.slane %v641_v38, 4  ;;  %v13383_v41 = vld [vmem:[%s21356_s4 + $0x340] ss:$0 sps:$4 sm:$0x11]  }
  0x6a   :  { %v829_v52 = vsel %vm684_vm2, %v828_v43, %v827_v50  ;;  %v846_v56 = vrot.slane %v642_v39, 3  ;;  %v848_v57 = vrot.slane %v643_v42, 2  ;;  %v839_v59 = vsel %vm678_vm0, %v838_v51, %v637_v31 }
  0x6b   :  { %v831_v58 = vsel %vm687_vm3, %v830_v45, %v829_v52  ;;  %v850_v60 = vrot.slane %v644_v44, 1  ;;  %v1122_v61 = vrot.slane %v629_v18, 1  ;;  %v841_v63 = vsel %vm681_vm1, %v840_v54, %v839_v59  ;;  %v13414_v52 = vld [vmem:[%s21356_s4 + $0x368] ss:$0 sps:$4 sm:$0x11]  }
  0x6c   :  { %v833_v62 = vsel %vm690_vm4, %v832_v47, %v831_v58  ;;  %v1124_v1 = vrot.slane %v631_v19, 7  ;;  %v1126_v2 = vrot.slane %v632_v23, 6  ;;  %v843_v4 = vsel %vm684_vm2, %v842_v55, %v841_v63  ;;  %v13397_v47 = vld [vmem:[%s21356_s4 + $0x350] ss:$0 sps:$4 sm:$0x11]  }
  0x6d   :  { %v835_v3 = vsel %vm693_vm5, %v834_v48, %v833_v62  ;;  %v1123_v5 = vsel %vm678_vm0, %v630_v16, %v1122_v61  ;;  %v1128_v7 = vrot.slane %v633_v24, 5  ;;  %v845_v8 = vsel %vm687_vm3, %v844_v53, %v843_v4  ;;  %v13402_v48 = vld [vmem:[%s21356_s4 + $0x358] ss:$0 sps:$4 sm:$0x11]  }
  0x6e   :  { %v837_v6 = vsel %vm696_vm6, %v836_v49, %v835_v3  ;;  %v1125_v9 = vsel %vm681_vm1, %v1124_v1, %v1123_v5  ;;  %v1130_v11 = vrot.slane %v634_v25, 4  ;;  %v847_v12 = vsel %vm690_vm4, %v846_v56, %v845_v8  ;;  %v11644_v55 = vld [vmem:[%s21356_s4 + $0x360] ss:$0 sps:$4 sm:$0x11]  }
  0x6f   :  { %v1127_v10 = vsel %vm684_vm2, %v1126_v2, %v1125_v9  ;;  %v1132_v13 = vrot.slane %v635_v29, 3  ;;  %v1134_v14 = vrot.slane %v636_v30, 2  ;;  %v849_v18 = vsel %vm693_vm5, %v848_v57, %v847_v12  ;;  %v13423_v59 = vld [vmem:[%s21356_s4 + $0x370] ss:$0 sps:$4 sm:$0x11]  }
  0x70   :  { %v1129_v16 = vsel %vm687_vm3, %v1128_v7, %v1127_v10  ;;  %v1136_v19 = vrot.slane %v637_v31, 1  ;;  %v1138_v20 = vrot.slane %v639_v36, 7  ;;  %v851_v22 = vsel %vm696_vm6, %v850_v60, %v849_v18  ;;  %v13358_v31 = vld [vmem:[%s21356_s4 + $0x320] ss:$0 sps:$4 sm:$0x11]  }
  0x71   :  { %v1131_v23 = vsel %vm690_vm4, %v1130_v11, %v1129_v16  ;;  %v1140_v24 = vrot.slane %v640_v37, 6  ;;  %v1142_v25 = vrot.slane %v641_v38, 5  ;;  %v913_v28 = vpack.c.b16 %v851_v22, %v837_v6  ;;  %v13364_v36 = vld [vmem:[%s21356_s4 + $0x328] ss:$0 sps:$4 sm:$0x11]  }
  0x72   :  { %v1133_v26 = vsel %vm693_vm5, %v1132_v13, %v1131_v23  ;;  %v1137_v29 = vsel %vm678_vm0, %v638_v35, %v1136_v19  ;;  %v1144_v30 = vrot.slane %v642_v39, 4  ;;  %v1146_v33 = vrot.slane %v643_v42, 3  ;;  %v13371_v38 = vld [vmem:[%s21356_s4 + $0x330] ss:$0 sps:$4 sm:$0x11]  }
  0x73   :  { %v1139_v32 = vsel %vm681_vm1, %v1138_v20, %v1137_v29  ;;  %v1148_v34 = vrot.slane %v644_v44, 2  ;;  %11202 = vmatpush3.bf16.xpose.msra.mxu0 %v913_v28  ;;  %v1135_v37 = vsel %vm696_vm6, %v1134_v14, %v1133_v26  ;;  %v13376_v39 = vld [vmem:[%s21356_s4 + $0x338] ss:$0 sps:$4 sm:$0x11]   ;;  %v645_v44 = vunpack.c.l.b16 %v13332_v15 }
  0x74   :  { %v1141_v35 = vsel %vm684_vm2, %v1140_v24, %v1139_v32  ;;  %11203 = vmatprep.subr.bf16.mxu0 %v12576_v0  ;;  %v13388_v42 = vld [vmem:[%s21356_s4 + $0x348] ss:$0 sps:$4 sm:$0x11]   ;;  %v646_v43 = vunpack.c.l.b16 %v13337_v17  ;;  %v647_v45 = vunpack.c.l.b16 %v13344_v21  ;;  %v648_v49 = vunpack.c.l.b16 %v13351_v27  ;;  %v13428_v60 = vld [vmem:[%s21356_s4 + $0x378] ss:$0 sps:$4 sm:$0x11]  }
  0x75   :  { %v1143_v40 = vsel %vm687_vm3, %v1142_v25, %v1141_v35  ;;  %v649_v50 = vunpack.c.l.b16 %v13358_v31  ;;  %v650_v51 = vunpack.c.l.b16 %v13364_v36  ;;  %v651_v53 = vunpack.c.l.b16 %v13371_v38 }
  0x76   :  { %v1145_v46 = vsel %vm690_vm4, %v1144_v30, %v1143_v40  ;;  %v652_v56 = vunpack.c.l.b16 %v13376_v39  ;;  %v653_v57 = vunpack.c.l.b16 %v13383_v41  ;;  %v654_v61 = vunpack.c.l.b16 %v13388_v42  ;;  %v13454_v41 = vld [vmem:[%s21356_s4 + $0x380] ss:$0 sps:$4 sm:$0x11]  }
  0x77   :  { %v1147_v54 = vsel %vm693_vm5, %v1146_v33, %v1145_v46  ;;  %v655_v62 = vunpack.c.l.b16 %v13397_v47  ;;  %v656_v63 = vunpack.c.l.b16 %v13402_v48  ;;  %v657_v2 = vunpack.c.l.b16 %v11644_v55 }
  0x78   :  { %v1149_v58 = vsel %vm696_vm6, %v1148_v34, %v1147_v54  ;;  %v658_v3 = vunpack.c.l.b16 %v13414_v52  ;;  %v852_v4 = vrot.slane %v646_v43, 7  ;;  %v659_v5 = vunpack.c.l.b16 %v13423_v59 }
  0x79   :  { %v1211_v1 = vpack.c.b16 %v1149_v58, %v1135_v37  ;;  %v660_v7 = vunpack.c.l.b16 %v13428_v60  ;;  %v854_v6 = vrot.slane %v647_v45, 6  ;;  %v856_v8 = vrot.slane %v648_v49, 5 }
  0x7a   :  { %v853_v9 = vsel %vm678_vm0, %v852_v4, %v645_v44  ;;  %v858_v11 = vrot.slane %v649_v50, 4  ;;  %v860_v12 = vrot.slane %v650_v51, 3  ;;  %v862_v10 = vrot.slane %v651_v53, 2  ;;  %v13501_v4 = vld [vmem:[%s21356_s4 + $0x3b8] ss:$0 sps:$4 sm:$0x11]  }
  0x7b   :  { %11222 = vmatpush3.bf16.xpose.msra.mxu1 %v1211_v1  ;;  %v855_v13 = vsel %vm681_vm1, %v854_v6, %v853_v9  ;;  %v864_v14 = vrot.slane %v652_v56, 1  ;;  %v866_v15 = vrot.slane %v654_v61, 7  ;;  %v868_v17 = vrot.slane %v655_v62, 6  ;;  %v13493_v1 = vld [vmem:[%s21356_s4 + $0x3b0] ss:$0 sps:$4 sm:$0x11]  }
  0x7c   :  { %11223 = vmatprep.subr.bf16.mxu1 %v12576_v0  ;;  %v857_v18 = vsel %vm684_vm2, %v856_v8, %v855_v13  ;;  %v870_v16 = vrot.slane %v656_v63, 5  ;;  %v872_v19 = vrot.slane %v657_v2, 4  ;;  %v874_v20 = vrot.slane %v658_v3, 3  ;;  %v13514_v9 = vld [vmem:[%s21356_s4 + $0x3c8] ss:$0 sps:$4 sm:$0x11]  }
  0x7d   :  { %v859_v21 = vsel %vm687_vm3, %v858_v11, %v857_v18  ;;  %v867_v22 = vsel %vm678_vm0, %v866_v15, %v653_v57  ;;  %v876_v23 = vrot.slane %v659_v5, 2  ;;  %v878_v24 = vrot.slane %v660_v7, 1  ;;  %v13519_v11 = vld [vmem:[%s21356_s4 + $0x3d0] ss:$0 sps:$4 sm:$0x11]  }
  0x7e   :  { %v861_v25 = vsel %vm690_vm4, %v860_v12, %v859_v21  ;;  %v869_v27 = vsel %vm681_vm1, %v868_v17, %v867_v22  ;;  %v1150_v28 = vrot.slane %v645_v44, 1  ;;  %v1152_v26 = vrot.slane %v647_v45, 7  ;;  %v11659_v15 = vld [vmem:[%s21356_s4 + $0x3d8] ss:$0 sps:$4 sm:$0x11]  }
  0x7f   :  { %v863_v29 = vsel %vm693_vm5, %v862_v10, %v861_v25  ;;  %v871_v30 = vsel %vm684_vm2, %v870_v16, %v869_v27  ;;  %v1154_v31 = vrot.slane %v648_v49, 6  ;;  %v1156_v32 = vrot.slane %v649_v50, 5  ;;  %v13531_v17 = vld [vmem:[%s21356_s4 + $0x3e0] ss:$0 sps:$4 sm:$0x11]  }
  0x80   :  { %v865_v33 = vsel %vm696_vm6, %v864_v14, %v863_v29  ;;  %v873_v34 = vsel %vm687_vm3, %v872_v19, %v871_v30  ;;  %v1151_v36 = vsel %vm678_vm0, %v646_v43, %v1150_v28  ;;  %v1158_v37 = vrot.slane %v650_v51, 4  ;;  %v13461_v43 = vld [vmem:[%s21356_s4 + $0x388] ss:$0 sps:$4 sm:$0x11]  }
  0x81   :  { %v875_v35 = vsel %vm690_vm4, %v874_v20, %v873_v34  ;;  %v1153_v38 = vsel %vm681_vm1, %v1152_v26, %v1151_v36  ;;  %v1160_v39 = vrot.slane %v651_v53, 3  ;;  %v1162_v40 = vrot.slane %v652_v56, 2  ;;  %v13468_v51 = vld [vmem:[%s21356_s4 + $0x390] ss:$0 sps:$4 sm:$0x11]  }
  0x82   :  { %v877_v42 = vsel %vm693_vm5, %v876_v23, %v875_v35  ;;  %v1155_v44 = vsel %vm684_vm2, %v1154_v31, %v1153_v38  ;;  %v1164_v45 = vrot.slane %v653_v57, 1  ;;  %v1166_v46 = vrot.slane %v655_v62, 7  ;;  %v13475_v56 = vld [vmem:[%s21356_s4 + $0x398] ss:$0 sps:$4 sm:$0x11]  }
  0x83   :  { %v879_v47 = vsel %vm696_vm6, %v878_v24, %v877_v42  ;;  %v1157_v48 = vsel %vm687_vm3, %v1156_v32, %v1155_v44  ;;  %v1168_v49 = vrot.slane %v656_v63, 6  ;;  %v1170_v50 = vrot.slane %v657_v2, 5  ;;  %v13482_v62 = vld [vmem:[%s21356_s4 + $0x3a0] ss:$0 sps:$4 sm:$0x11]  }
  0x84   :  { %v914_v54 = vpack.c.b16 %v879_v47, %v865_v33  ;;  %v1159_v55 = vsel %vm690_vm4, %v1158_v37, %v1157_v48  ;;  %v1165_v52 = vsel %vm678_vm0, %v654_v61, %v1164_v45  ;;  %v1172_v53 = vrot.slane %v658_v3, 4  ;;  %v13488_v63 = vld [vmem:[%s21356_s4 + $0x3a8] ss:$0 sps:$4 sm:$0x11]  }
  0x85   :  { %v1161_v57 = vsel %vm693_vm5, %v1160_v39, %v1159_v55  ;;  %v1167_v58 = vsel %vm681_vm1, %v1166_v46, %v1165_v52  ;;  %v1174_v59 = vrot.slane %v659_v5, 3  ;;  %v1176_v60 = vrot.slane %v660_v7, 2  ;;  %v13506_v5 = vld [vmem:[%s21356_s4 + $0x3c0] ss:$0 sps:$4 sm:$0x11]  }
  0x86   :  { %11204 = vmatpush3.bf16.xpose.msra.mxu0 %v914_v54  ;;  %v1169_v61 = vsel %vm684_vm2, %v1168_v49, %v1167_v58  ;;  %v1163_v2 = vsel %vm696_vm6, %v1162_v40, %v1161_v57  ;;  %v661_v7 = vunpack.c.l.b16 %v13454_v41  ;;  %v662_v6 = vunpack.c.l.b16 %v13461_v43  ;;  %v13540_v21 = vld [vmem:[%s21356_s4 + $0x3e8] ss:$0 sps:$4 sm:$0x11]   ;;  %v13545_v22 = vld [vmem:[%s21356_s4 + $0x3f0] ss:$0 sps:$4 sm:$0x11]  }
  0x87   :  { %v1171_v3 = vsel %vm687_vm3, %v1170_v50, %v1169_v61  ;;  %11205 = vmatprep.subr.bf16.mxu0 %v12576_v0  ;;  %v663_v12 = vunpack.c.l.b16 %v13468_v51  ;;  %v664_v10 = vunpack.c.l.b16 %v13475_v56  ;;  %v665_v13 = vunpack.c.l.b16 %v13482_v62  ;;  %v13553_v28 = vld [vmem:[%s21356_s4 + $0x3f8] ss:$0 sps:$4 sm:$0x11]  }
  0x88   :  { %v1173_v8 = vsel %vm690_vm4, %v1172_v53, %v1171_v3  ;;  %v666_v18 = vunpack.c.l.b16 %v13488_v63  ;;  %v667_v16 = vunpack.c.l.b16 %v13493_v1  ;;  %v668_v19 = vunpack.c.l.b16 %v13501_v4 }
  0x89   :  { %v1175_v14 = vsel %vm693_vm5, %v1174_v59, %v1173_v8  ;;  %v669_v23 = vunpack.c.l.b16 %v13506_v5  ;;  %v670_v24 = vunpack.c.l.b16 %v13514_v9  ;;  %v671_v25 = vunpack.c.l.b16 %v13519_v11  ;;  %v13579_v9 = vld [vmem:[%s21356_s4] ss:$0 sps:$4 sm:$0x22]  }
  0x8a   :  { %v1177_v20 = vsel %vm696_vm6, %v1176_v60, %v1175_v14  ;;  %v672_v26 = vunpack.c.l.b16 %v11659_v15  ;;  %v673_v29 = vunpack.c.l.b16 %v13531_v17  ;;  %v880_v30 = vrot.slane %v662_v6, 7 }
  0x8b   :  { %v1212_v27 = vpack.c.b16 %v1177_v20, %v1163_v2  ;;  %v674_v31 = vunpack.c.l.b16 %v13540_v21  ;;  %v675_v32 = vunpack.c.l.b16 %v13545_v22  ;;  %v882_v33 = vrot.slane %v663_v12, 6 }
  0x8c   :  { %v884_v34 = vrot.slane %v664_v10, 5  ;;  %v676_v36 = vunpack.c.l.b16 %v13553_v28  ;;  %v881_v37 = vsel %vm678_vm0, %v880_v30, %v661_v7  ;;  %v886_v35 = vrot.slane %v665_v13, 4  ;;  %v13625_v30 = vld [vmem:[%s21356_s4 + $0x30] ss:$0 sps:$4 sm:$0x22]  }
  0x8d   :  { %11224 = vmatpush3.bf16.xpose.msra.mxu1 %v1212_v27  ;;  %v888_v38 = vrot.slane %v666_v18, 3  ;;  %v883_v39 = vsel %vm681_vm1, %v882_v33, %v881_v37  ;;  %v890_v40 = vrot.slane %v667_v16, 2  ;;  %v892_v41 = vrot.slane %v668_v19, 1  ;;  %v13606_v27 = vld [vmem:[%s21356_s4 + $0x20] ss:$0 sps:$4 sm:$0x22]  }
  0x8e   :  { %v894_v42 = vrot.slane %v670_v24, 7  ;;  %11225 = vmatprep.subr.bf16.mxu1 %v12576_v0  ;;  %v885_v44 = vsel %vm684_vm2, %v884_v34, %v883_v39  ;;  %v896_v45 = vrot.slane %v671_v25, 6  ;;  %v898_v46 = vrot.slane %v672_v26, 5  ;;  %v13634_v33 = vld [vmem:[%s21356_s4 + $0x38] ss:$0 sps:$4 sm:$0x22]  }
  0x8f   :  { %v900_v43 = vrot.slane %v673_v29, 4  ;;  %v887_v47 = vsel %vm687_vm3, %v886_v35, %v885_v44  ;;  %v902_v49 = vrot.slane %v674_v31, 3  ;;  %v904_v50 = vrot.slane %v675_v32, 2  ;;  %v13639_v34 = vld [vmem:[%s21356_s4 + $0x40] ss:$0 sps:$4 sm:$0x22]  }
  0x90   :  { %v895_v48 = vsel %vm678_vm0, %v894_v42, %v669_v23  ;;  %v889_v51 = vsel %vm690_vm4, %v888_v38, %v887_v47  ;;  %v906_v55 = vrot.slane %v676_v36, 1  ;;  %v1178_v52 = vrot.slane %v661_v7, 1  ;;  %v13647_v38 = vld [vmem:[%s21356_s4 + $0x48] ss:$0 sps:$4 sm:$0x22]  }
  0x91   :  { %v897_v54 = vsel %vm681_vm1, %v896_v45, %v895_v48  ;;  %v891_v53 = vsel %vm693_vm5, %v890_v40, %v889_v51  ;;  %v1180_v57 = vrot.slane %v663_v12, 7  ;;  %v1182_v58 = vrot.slane %v664_v10, 6  ;;  %v13652_v39 = vld [vmem:[%s21356_s4 + $0x50] ss:$0 sps:$4 sm:$0x22]  }
  0x92   :  { %v899_v56 = vsel %vm684_vm2, %v898_v46, %v897_v54  ;;  %v893_v59 = vsel %vm696_vm6, %v892_v41, %v891_v53  ;;  %v1179_v62 = vsel %vm678_vm0, %v662_v6, %v1178_v52  ;;  %v1184_v61 = vrot.slane %v665_v13, 5  ;;  %v13586_v13 = vld [vmem:[%s21356_s4 + $0x8] ss:$0 sps:$4 sm:$0x22]  }
  0x93   :  { %v901_v60 = vsel %vm687_vm3, %v900_v43, %v899_v56  ;;  %v1181_v1 = vsel %vm681_vm1, %v1180_v57, %v1179_v62  ;;  %v1186_v2 = vrot.slane %v666_v18, 4  ;;  %v1188_v3 = vrot.slane %v667_v16, 3  ;;  %v13593_v16 = vld [vmem:[%s21356_s4 + $0x10] ss:$0 sps:$4 sm:$0x22]  }
  0x94   :  { %v903_v63 = vsel %vm690_vm4, %v902_v49, %v901_v60  ;;  %v1183_v5 = vsel %vm684_vm2, %v1182_v58, %v1181_v1  ;;  %v1190_v7 = vrot.slane %v668_v19, 2  ;;  %v1192_v8 = vrot.slane %v669_v23, 1  ;;  %v13600_v23 = vld [vmem:[%s21356_s4 + $0x18] ss:$0 sps:$4 sm:$0x22]  }
  0x95   :  { %v905_v4 = vsel %vm693_vm5, %v904_v50, %v903_v63  ;;  %v1185_v11 = vsel %vm687_vm3, %v1184_v61, %v1183_v5  ;;  %v1194_v12 = vrot.slane %v671_v25, 7  ;;  %v1196_v10 = vrot.slane %v672_v26, 6  ;;  %v13614_v26 = vld [vmem:[%s21357_s0] sm:$0xff]   ;;  %v13661_v45 = vld [vmem:[%s21356_s4 + $0x58] ss:$0 sps:$4 sm:$0x22]  }
  0x96   :  { %v907_v6 = vsel %vm696_vm6, %v906_v55, %v905_v4  ;;  %v1187_v15 = vsel %vm690_vm4, %v1186_v2, %v1185_v11  ;;  %v1193_v17 = vsel %vm678_vm0, %v670_v24, %v1192_v8  ;;  %v1198_v18 = vrot.slane %v673_v29, 5  ;;  %v13620_v29 = vld [vmem:[%s21356_s4 + $0x28] ss:$0 sps:$4 sm:$0x22]  }
  0x97   :  { %v915_v14 = vpack.c.b16 %v907_v6, %v893_v59  ;;  %v1189_v19 = vsel %vm693_vm5, %v1188_v3, %v1187_v15  ;;  %v1195_v20 = vsel %vm681_vm1, %v1194_v12, %v1193_v17  ;;  %v1200_v21 = vrot.slane %v674_v31, 4  ;;  %v13666_v46 = vld [vmem:[%s21356_s4 + $0x60] ss:$0 sps:$4 sm:$0x22]  }
  0x98   :  { %v1202_v22 = vrot.slane %v675_v32, 3  ;;  %v1197_v24 = vsel %vm684_vm2, %v1196_v10, %v1195_v20  ;;  %v1204_v25 = vrot.slane %v676_v36, 2  ;;  %vm12577_vm7 = vmmov 0   ;;  %v13674_v50 = vld [vmem:[%s21356_s4 + $0x68] ss:$0 sps:$4 sm:$0x22]  }
  0x99   :  { %11206 = vmatpush3.bf16.xpose.msra.mxu0 %v915_v14  ;;  %v1199_v28 = vsel %vm687_vm3, %v1198_v18, %v1197_v24  ;;  %11207 = vmatprep.mubr.msk.bf16.mxu0 %vm12577_vm7, %v12576_v0  ;;  %v1191_v31 = vsel %vm696_vm6, %v1190_v7, %v1189_v19  ;;  %v1786_v36 = vunpack.c.l.b16 %v13579_v9  ;;  %v1787_v37 = vunpack.c.l.b16 %v13586_v13  ;;  %v13679_v51 = vld [vmem:[%s21356_s4 + $0x70] ss:$0 sps:$4 sm:$0x22]   ;;  %v13687_v53 = vld [vmem:[%s21356_s4 + $0x78] ss:$0 sps:$4 sm:$0x22]  }
  0x9a   :  { %11231 = vmatprep.subr.bf16.mxu0 %v12576_v0  ;;  %v1201_v32 = vsel %vm690_vm4, %v1200_v21, %v1199_v28  ;;  %11227 = vmatprep.mubr.msk.bf16.mxu1 %vm12577_vm7, %v12576_v0  ;;  %v1788_v40 = vunpack.c.l.b16 %v13593_v16  ;;  %v1789_v41 = vunpack.c.l.b16 %v13600_v23  ;;  %v1790_v42 = vunpack.c.l.b16 %v13606_v27 }
  0x9b   :  { %v1203_v35 = vsel %vm693_vm5, %v1202_v22, %v1201_v32  ;;  %v1791_v43 = vunpack.c.l.b16 %v13620_v29  ;;  %v1792_v47 = vunpack.c.l.b16 %v13625_v30  ;;  %v1793_v48 = vunpack.c.l.b16 %v13634_v33 }
  0x9c   :  { %v1205_v44 = vsel %vm696_vm6, %v1204_v25, %v1203_v35  ;;  %v1794_v54 = vunpack.c.l.b16 %v13639_v34  ;;  %v1795_v55 = vunpack.c.l.b16 %v13647_v38  ;;  %v1796_v52 = vunpack.c.l.b16 %v13652_v39  ;;  %v13726_v38 = vld [vmem:[%s21356_s4 + $0x80] ss:$0 sps:$4 sm:$0x22]  }
  0x9d   :  { %v1213_v49 = vpack.c.b16 %v1205_v44, %v1191_v31  ;;  %v1797_v56 = vunpack.c.l.b16 %v13661_v45  ;;  %v1798_v57 = vunpack.c.l.b16 %v13666_v46  ;;  %v1914_v58 = vrot.slane %v1786_v36, 2  ;;  %v13733_v46 = vld [vmem:[%s21356_s4 + $0x88] ss:$0 sps:$4 sm:$0x22]  }
  0x9e   :  { %v1915_v59 = vrot.slane %v1787_v37, 1  ;;  %v1799_v60 = vunpack.c.l.b16 %v13674_v50  ;;  %v1800_v62 = vunpack.c.l.b16 %v13679_v51  ;;  %v1918_v61 = vrot.slane %v1789_v41, 7  ;;  %v13768_v45 = vld [vmem:[%s21356_s4 + $0xb0] ss:$0 sps:$4 sm:$0x22]  }
  0x9f   :  { %11226 = vmatpush3.bf16.xpose.msra.mxu1 %v1213_v49  ;;  %v1920_v63 = vrot.slane %v1790_v42, 6  ;;  %v1801_v1 = vunpack.c.l.b16 %v13687_v53  ;;  %v1922_v3 = vrot.slane %v1791_v43, 5  ;;  %v1924_v4 = vrot.slane %v1792_v47, 4  ;;  %v13755_v53 = vld [vmem:[%s21356_s4 + $0xa0] ss:$0 sps:$4 sm:$0x22]  }
  0xa0   :  { %11208 = vmatmul.mubr.bf16.vlgmr.msra.gmra.mrb[0].mxu0 %v13614_v26  ;;  %v1916_v2 = vsel %vm678_vm0, %v1915_v59, %v1914_v58  ;;  %11251 = vmatprep.subr.bf16.mxu1 %v12576_v0  ;;  %v1926_v7 = vrot.slane %v1793_v48, 3  ;;  %v1928_v8 = vrot.slane %v1794_v54, 2  ;;  %v1929_v9 = vrot.slane %v1795_v55, 1 }
  0xa1   :  { %11247 = vmatprep.mubr.msk.bf16.mxu0 %vm12577_vm7, %v12576_v0  ;;  %v1917_v5 = vsel %vm681_vm1, %v1788_v40, %v1916_v2  ;;  %v1932_v11 = vrot.slane %v1797_v56, 7  ;;  %v1934_v12 = vrot.slane %v1798_v57, 6  ;;  %v1936_v10 = vrot.slane %v1799_v60, 5 }
  0xa2   :  { %v1919_v6 = vsel %vm684_vm2, %v1918_v61, %v1917_v5  ;;  %v1930_v14 = vsel %vm678_vm0, %v1929_v9, %v1928_v8  ;;  %v1938_v15 = vrot.slane %v1800_v62, 4  ;;  %v1940_v17 = vrot.slane %v1801_v1, 3  ;;  %v13784_v61 = vld [vmem:[%s21356_s4 + $0xc8] ss:$0 sps:$4 sm:$0x22]  }
  0xa3   :  { %v1921_v13 = vsel %vm687_vm3, %v1920_v63, %v1919_v6  ;;  %v1931_v16 = vsel %vm681_vm1, %v1796_v52, %v1930_v14  ;;  %v2206_v19 = vrot.slane %v1786_v36, 3  ;;  %v2207_v20 = vrot.slane %v1787_v37, 2  ;;  %v13798_v5 = vld [vmem:[%s21356_s4 + $0xd8] ss:$0 sps:$4 sm:$0x22]  }
  0xa4   :  { %v1923_v18 = vsel %vm690_vm4, %v1922_v3, %v1921_v13  ;;  %v1933_v22 = vsel %vm684_vm2, %v1932_v11, %v1931_v16  ;;  %v2209_v24 = vrot.slane %v1788_v40, 1  ;;  %v2212_v25 = vrot.slane %v1790_v42, 7  ;;  %v13807_v11 = vld [vmem:[%s21356_s4 + $0xe0] ss:$0 sps:$4 sm:$0x22]  }
  0xa5   :  { %v1925_v21 = vsel %vm693_vm5, %v1924_v4, %v1923_v18  ;;  %v1935_v28 = vsel %vm687_vm3, %v1934_v12, %v1933_v22  ;;  %v2208_v29 = vsel %vm678_vm0, %v2207_v20, %v2206_v19  ;;  %v2214_v30 = vrot.slane %v1791_v43, 6  ;;  %v13793_v4 = vld [vmem:[%s21356_s4 + $0xd0] ss:$0 sps:$4 sm:$0x22]  }
  0xa6   :  { %v1927_v27 = vsel %vm696_vm6, %v1926_v7, %v1925_v21  ;;  %11228 = vmatmul.mubr.bf16.vlgmr.msra.gmra.mrb[0].mxu1 %v13614_v26  ;;  %v1937_v31 = vsel %vm690_vm4, %v1936_v10, %v1935_v28  ;;  %v2210_v32 = vsel %vm681_vm1, %v2209_v24, %v2208_v29  ;;  %v2216_v33 = vrot.slane %v1792_v47, 5  ;;  %v11694_v12 = vld [vmem:[%s21356_s4 + $0xe8] ss:$0 sps:$4 sm:$0x22]  }
  0xa7   :  { %v2218_v34 = vrot.slane %v1793_v48, 4  ;;  %11267 = vmatprep.mubr.msk.bf16.mxu1 %vm12577_vm7, %v12576_v0  ;;  %v1939_v36 = vsel %vm693_vm5, %v1938_v15, %v1937_v31  ;;  %v2211_v37 = vsel %vm684_vm2, %v1789_v41, %v2210_v32  ;;  %v2220_v35 = vrot.slane %v1794_v54, 3  ;;  %v13740_v48 = vld [vmem:[%s21356_s4 + $0x90] ss:$0 sps:$4 sm:$0x22]  }
  0xa8   :  { %v2221_v26 = vrot.slane %v1795_v55, 2  ;;  %v1941_v39 = vsel %vm696_vm6, %v1940_v17, %v1939_v36  ;;  %v2213_v40 = vsel %vm687_vm3, %v2212_v25, %v2211_v37  ;;  %v2223_v42 = vrot.slane %v1796_v52, 1  ;;  %v13747_v55 = vld [vmem:[%s21356_s4 + $0x98] ss:$0 sps:$4 sm:$0x22]  }
  0xa9   :  { %v2226_v44 = vrot.slane %v1798_v57, 7  ;;  %v2138_v23 = vpack.c.b16 %v1941_v39, %v1927_v27  ;;  %v2215_v41 = vsel %vm690_vm4, %v2214_v30, %v2213_v40  ;;  %v2228_v47 = vrot.slane %v1799_v60, 6  ;;  %v13760_v57 = vld [vmem:[%s21356_s4 + $0xa8] ss:$0 sps:$4 sm:$0x22]  }
  0xaa   :  { %v2222_v43 = vsel %vm678_vm0, %v2221_v26, %v2220_v35  ;;  %v2217_v49 = vsel %vm693_vm5, %v2216_v33, %v2215_v41  ;;  %v2230_v51 = vrot.slane %v1800_v62, 5  ;;  %v2232_v54 = vrot.slane %v1801_v1, 4  ;;  %v13779_v62 = vld [vmem:[%s21356_s4 + $0xc0] ss:$0 sps:$4 sm:$0x22]  }
  0xab   :  { %v2224_v50 = vsel %vm681_vm1, %v2223_v42, %v2222_v43  ;;  %11232 = vmatpush3.bf16.xpose.msra.mxu0 %v2138_v23  ;;  %v2219_v58 = vsel %vm696_vm6, %v2218_v34, %v2217_v49  ;;  %v1802_v63 = vunpack.c.l.b16 %v13726_v38  ;;  %v1803_v1 = vunpack.c.l.b16 %v13733_v46  ;;  %v13818_v17 = vld [vmem:[%s21356_s4 + $0xf0] ss:$0 sps:$4 sm:$0x22]   ;;  %v13823_v18 = vld [vmem:[%s21356_s4 + $0xf8] ss:$0 sps:$4 sm:$0x22]  }
  0xac   :  { %v2225_v52 = vsel %vm684_vm2, %v1797_v56, %v2224_v50  ;;  %11233 = vmatprep.subr.bf16.mxu0 %v12576_v0  ;;  %v13773_v56 = vld [vmem:[%s21356_s4 + $0xb8] ss:$0 sps:$4 sm:$0x22]   ;;  %v1804_v2 = vunpack.c.l.b16 %v13740_v48  ;;  %v1805_v7 = vunpack.c.l.b16 %v13747_v55  ;;  %v1806_v8 = vunpack.c.l.b16 %v13755_v53 }
  0xad   :  { %v2227_v59 = vsel %vm687_vm3, %v2226_v44, %v2225_v52  ;;  %v1807_v9 = vunpack.c.l.b16 %v13760_v57  ;;  %v1808_v10 = vunpack.c.l.b16 %v13768_v45  ;;  %v1809_v13 = vunpack.c.l.b16 %v13773_v56 }
  0xae   :  { %v2229_v60 = vsel %vm690_vm4, %v2228_v47, %v2227_v59  ;;  %v1810_v14 = vunpack.c.l.b16 %v13779_v62  ;;  %v1811_v16 = vunpack.c.l.b16 %v13784_v61  ;;  %v1812_v19 = vunpack.c.l.b16 %v13793_v4  ;;  %v13849_v59 = vld [vmem:[%s21356_s4 + $0x100] ss:$0 sps:$4 sm:$0x22]   ;;  %v13856_v61 = vld [vmem:[%s21356_s4 + $0x108] ss:$0 sps:$4 sm:$0x22]  }
  0xaf   :  { %v2231_v3 = vsel %vm693_vm5, %v2230_v51, %v2229_v60  ;;  %v1813_v20 = vunpack.c.l.b16 %v13798_v5  ;;  %v1814_v21 = vunpack.c.l.b16 %v13807_v11  ;;  %v1815_v22 = vunpack.c.l.b16 %v11694_v12  ;;  %v13863_v4 = vld [vmem:[%s21356_s4 + $0x110] ss:$0 sps:$4 sm:$0x22]   ;;  %v13870_v12 = vld [vmem:[%s21356_s4 + $0x118] ss:$0 sps:$4 sm:$0x22]  }
  0xb0   :  { %v2233_v6 = vsel %vm696_vm6, %v2232_v54, %v2231_v3  ;;  %v1942_v24 = vrot.slane %v1802_v63, 2  ;;  %v1943_v25 = vrot.slane %v1803_v1, 1  ;;  %v1816_v27 = vunpack.c.l.b16 %v13818_v17  ;;  %v13906_v5 = vld [vmem:[%s21356_s4 + $0x140] ss:$0 sps:$4 sm:$0x22]  }
  0xb1   :  { %v2430_v15 = vpack.c.b16 %v2233_v6, %v2219_v58  ;;  %v1817_v28 = vunpack.c.l.b16 %v13823_v18  ;;  %v1946_v29 = vrot.slane %v1805_v7, 7  ;;  %v1948_v30 = vrot.slane %v1806_v8, 6 }
  0xb2   :  { %v1944_v31 = vsel %vm678_vm0, %v1943_v25, %v1942_v24  ;;  %v1950_v32 = vrot.slane %v1807_v9, 5  ;;  %v1952_v33 = vrot.slane %v1808_v10, 4  ;;  %v1954_v34 = vrot.slane %v1809_v13, 3  ;;  %v13897_v24 = vld [vmem:[%s21356_s4 + $0x138] ss:$0 sps:$4 sm:$0x22]  }
  0xb3   :  { %11252 = vmatpush3.bf16.xpose.msra.mxu1 %v2430_v15  ;;  %v1945_v36 = vsel %vm681_vm1, %v1804_v2, %v1944_v31  ;;  %v1956_v37 = vrot.slane %v1810_v14, 2  ;;  %v1957_v35 = vrot.slane %v1811_v16, 1  ;;  %v1960_v26 = vrot.slane %v1813_v20, 7  ;;  %v13877_v15 = vld [vmem:[%s21356_s4 + $0x120] ss:$0 sps:$4 sm:$0x22]  }
  0xb4   :  { %11253 = vmatprep.subr.bf16.mxu1 %v12576_v0  ;;  %v1947_v38 = vsel %vm684_vm2, %v1946_v29, %v1945_v36  ;;  %v1962_v39 = vrot.slane %v1814_v21, 6  ;;  %v1964_v40 = vrot.slane %v1815_v22, 5  ;;  %v1966_v42 = vrot.slane %v1816_v27, 4 }
  0xb5   :  { %v1949_v44 = vsel %vm687_vm3, %v1948_v30, %v1947_v38  ;;  %v1958_v46 = vsel %vm678_vm0, %v1957_v35, %v1956_v37  ;;  %v1968_v23 = vrot.slane %v1817_v28, 3  ;;  %v2234_v41 = vrot.slane %v1802_v63, 3  ;;  %v13938_v38 = vld [vmem:[%s21356_s4 + $0x168] ss:$0 sps:$4 sm:$0x22]  }
  0xb6   :  { %v1951_v43 = vsel %vm690_vm4, %v1950_v32, %v1949_v44  ;;  %v1959_v47 = vsel %vm681_vm1, %v1812_v19, %v1958_v46  ;;  %v2235_v48 = vrot.slane %v1803_v1, 2  ;;  %v2237_v49 = vrot.slane %v1804_v2, 1  ;;  %v13919_v32 = vld [vmem:[%s21356_s4 + $0x150] ss:$0 sps:$4 sm:$0x22]  }
  0xb7   :  { %v1953_v50 = vsel %vm693_vm5, %v1952_v33, %v1951_v43  ;;  %v1961_v51 = vsel %vm684_vm2, %v1960_v26, %v1959_v47  ;;  %v2240_v54 = vrot.slane %v1806_v8, 7  ;;  %v2242_v55 = vrot.slane %v1807_v9, 6  ;;  %v13924_v33 = vld [vmem:[%s21356_s4 + $0x158] ss:$0 sps:$4 sm:$0x22]  }
  0xb8   :  { %v1955_v52 = vsel %vm696_vm6, %v1954_v34, %v1953_v50  ;;  %v1963_v53 = vsel %vm687_vm3, %v1962_v39, %v1961_v51  ;;  %v2236_v57 = vsel %vm678_vm0, %v2235_v48, %v2234_v41  ;;  %v2244_v58 = vrot.slane %v1808_v10, 5  ;;  %v13933_v26 = vld [vmem:[%s21356_s4 + $0x160] ss:$0 sps:$4 sm:$0x22]  }
  0xb9   :  { %v1965_v45 = vsel %vm690_vm4, %v1964_v40, %v1963_v53  ;;  %v2238_v56 = vsel %vm681_vm1, %v2237_v49, %v2236_v57  ;;  %v2246_v60 = vrot.slane %v1809_v13, 4  ;;  %v2248_v62 = vrot.slane %v1810_v14, 3  ;;  %v13947_v46 = vld [vmem:[%s21356_s4 + $0x170] ss:$0 sps:$4 sm:$0x22]  }
  0xba   :  { %v1967_v63 = vsel %vm693_vm5, %v1966_v42, %v1965_v45  ;;  %v2239_v1 = vsel %vm684_vm2, %v1805_v7, %v2238_v56  ;;  %v2249_v2 = vrot.slane %v1811_v16, 2  ;;  %v2251_v3 = vrot.slane %v1812_v19, 1  ;;  %v13884_v19 = vld [vmem:[%s21356_s4 + $0x128] ss:$0 sps:$4 sm:$0x22]  }
  0xbb   :  { %v1969_v8 = vsel %vm696_vm6, %v1968_v23, %v1967_v63  ;;  %v2241_v9 = vsel %vm687_vm3, %v2240_v54, %v2239_v1  ;;  %v2254_v6 = vrot.slane %v1814_v21, 7  ;;  %v2256_v11 = vrot.slane %v1815_v22, 6  ;;  %v13892_v22 = vld [vmem:[%s21356_s4 + $0x130] ss:$0 sps:$4 sm:$0x22]  }
  0xbc   :  { %v2139_v10 = vpack.c.b16 %v1969_v8, %v1955_v52  ;;  %v2243_v7 = vsel %vm690_vm4, %v2242_v55, %v2241_v9  ;;  %v2250_v13 = vsel %vm678_vm0, %v2249_v2, %v2248_v62  ;;  %v2258_v14 = vrot.slane %v1816_v27, 5  ;;  %v13952_v23 = vld [vmem:[%s21356_s4 + $0x178] ss:$0 sps:$4 sm:$0x22]  }
  0xbd   :  { %v2245_v17 = vsel %vm693_vm5, %v2244_v58, %v2243_v7  ;;  %v2252_v18 = vsel %vm681_vm1, %v2251_v3, %v2250_v13  ;;  %v2260_v16 = vrot.slane %v1817_v28, 4  ;;  %v1818_v25 = vunpack.c.l.b16 %v13849_v59 }
  0xbe   :  { %11234 = vmatpush3.bf16.xpose.msra.mxu0 %v2139_v10  ;;  %v2253_v21 = vsel %vm684_vm2, %v1813_v20, %v2252_v18  ;;  %v2247_v27 = vsel %vm696_vm6, %v2246_v60, %v2245_v17  ;;  %v13911_v20 = vld [vmem:[%s21356_s4 + $0x148] ss:$0 sps:$4 sm:$0x22]   ;;  %v1819_v29 = vunpack.c.l.b16 %v13856_v61  ;;  %v1820_v30 = vunpack.c.l.b16 %v13863_v4 }
  0xbf   :  { %v2255_v28 = vsel %vm687_vm3, %v2254_v6, %v2253_v21  ;;  %11235 = vmatprep.subr.bf16.mxu0 %v12576_v0  ;;  %v1821_v34 = vunpack.c.l.b16 %v13870_v12  ;;  %v1822_v36 = vunpack.c.l.b16 %v13877_v15  ;;  %v1823_v37 = vunpack.c.l.b16 %v13884_v19 }
  0xc0   :  { %v2257_v31 = vsel %vm690_vm4, %v2256_v11, %v2255_v28  ;;  %v1824_v39 = vunpack.c.l.b16 %v13892_v22  ;;  %v1825_v40 = vunpack.c.l.b16 %v13897_v24  ;;  %v1826_v42 = vunpack.c.l.b16 %v13906_v5  ;;  %v13981_v28 = vld [vmem:[%s21356_s4 + $0x180] ss:$0 sps:$4 sm:$0x22]   ;;  %v13986_v5 = vld [vmem:[%s21356_s4 + $0x188] ss:$0 sps:$4 sm:$0x22]  }
  0xc1   :  { %v2259_v35 = vsel %vm693_vm5, %v2258_v14, %v2257_v31  ;;  %v1827_v41 = vunpack.c.l.b16 %v13911_v20  ;;  %v1828_v43 = vunpack.c.l.b16 %v13919_v32  ;;  %v1829_v47 = vunpack.c.l.b16 %v13924_v33  ;;  %v13993_v32 = vld [vmem:[%s21356_s4 + $0x190] ss:$0 sps:$4 sm:$0x22]   ;;  %v14035_v33 = vld [vmem:[%s21356_s4 + $0x1c0] ss:$0 sps:$4 sm:$0x22]  }
  0xc2   :  { %v2261_v44 = vsel %vm696_vm6, %v2260_v16, %v2259_v35  ;;  %v1830_v49 = vunpack.c.l.b16 %v13933_v26  ;;  %v1831_v50 = vunpack.c.l.b16 %v13938_v38  ;;  %v1970_v51 = vrot.slane %v1818_v25, 2  ;;  %v14000_v38 = vld [vmem:[%s21356_s4 + $0x198] ss:$0 sps:$4 sm:$0x22]  }
  0xc3   :  { %v2431_v48 = vpack.c.b16 %v2261_v44, %v2247_v27  ;;  %v1832_v54 = vunpack.c.l.b16 %v13947_v46  ;;  %v1833_v55 = vunpack.c.l.b16 %v13952_v23  ;;  %v1971_v52 = vrot.slane %v1819_v29, 1  ;;  %v14007_v44 = vld [vmem:[%s21356_s4 + $0x1a0] ss:$0 sps:$4 sm:$0x22]  }
  0xc4   :  { %v1974_v53 = vrot.slane %v1821_v34, 7  ;;  %v1976_v57 = vrot.slane %v1822_v36, 6  ;;  %v1978_v58 = vrot.slane %v1823_v37, 5  ;;  %v1980_v59 = vrot.slane %v1824_v39, 4 }
  0xc5   :  { %11254 = vmatpush3.bf16.xpose.msra.mxu1 %v2431_v48  ;;  %v1982_v45 = vrot.slane %v1825_v40, 3  ;;  %v1972_v56 = vsel %vm678_vm0, %v1971_v52, %v1970_v51  ;;  %v1984_v60 = vrot.slane %v1826_v42, 2  ;;  %v1985_v62 = vrot.slane %v1827_v41, 1  ;;  %v14014_v48 = vld [vmem:[%s21356_s4 + $0x1a8] ss:$0 sps:$4 sm:$0x22]  }
  0xc6   :  { %v1988_v61 = vrot.slane %v1829_v47, 7  ;;  %11255 = vmatprep.subr.bf16.mxu1 %v12576_v0  ;;  %v1973_v63 = vsel %vm681_vm1, %v1820_v30, %v1972_v56  ;;  %v1990_v1 = vrot.slane %v1830_v49, 6  ;;  %v1992_v2 = vrot.slane %v1831_v50, 5  ;;  %v14023_v51 = vld [vmem:[%s21356_s4 + $0x1b0] ss:$0 sps:$4 sm:$0x22]  }
  0xc7   :  { %v1994_v3 = vrot.slane %v1832_v54, 4  ;;  %v1975_v4 = vsel %vm684_vm2, %v1974_v53, %v1973_v63  ;;  %v1986_v8 = vsel %vm678_vm0, %v1985_v62, %v1984_v60  ;;  %v1996_v9 = vrot.slane %v1833_v55, 3  ;;  %v14063_v63 = vld [vmem:[%s21356_s4 + $0x1e0] ss:$0 sps:$4 sm:$0x22]  }
  0xc8   :  { %v2262_v6 = vrot.slane %v1818_v25, 3  ;;  %v1977_v11 = vsel %vm687_vm3, %v1976_v57, %v1975_v4  ;;  %v1987_v12 = vsel %vm681_vm1, %v1828_v43, %v1986_v8  ;;  %v2263_v10 = vrot.slane %v1819_v29, 2 }
  0xc9   :  { %v2265_v7 = vrot.slane %v1820_v30, 1  ;;  %v1979_v13 = vsel %vm690_vm4, %v1978_v58, %v1977_v11  ;;  %v1989_v14 = vsel %vm684_vm2, %v1988_v61, %v1987_v12  ;;  %v2268_v15 = vrot.slane %v1822_v36, 7 }
  0xca   :  { %v2270_v17 = vrot.slane %v1823_v37, 6  ;;  %v1981_v18 = vsel %vm693_vm5, %v1980_v59, %v1979_v13  ;;  %v1991_v16 = vsel %vm687_vm3, %v1990_v1, %v1989_v14  ;;  %v2264_v19 = vsel %vm678_vm0, %v2263_v10, %v2262_v6  ;;  %v14049_v59 = vld [vmem:[%s21356_s4 + $0x1d0] ss:$0 sps:$4 sm:$0x22]  }
  0xcb   :  { %v2272_v21 = vrot.slane %v1824_v39, 5  ;;  %v1983_v22 = vsel %vm696_vm6, %v1982_v45, %v1981_v18  ;;  %v1993_v24 = vsel %vm690_vm4, %v1992_v2, %v1991_v16  ;;  %v2266_v25 = vsel %vm681_vm1, %v2265_v7, %v2264_v19  ;;  %v14054_v45 = vld [vmem:[%s21356_s4 + $0x1d8] ss:$0 sps:$4 sm:$0x22]  }
  0xcc   :  { %v2274_v27 = vrot.slane %v1825_v40, 4  ;;  %v1995_v20 = vsel %vm693_vm5, %v1994_v3, %v1993_v24  ;;  %v2267_v29 = vsel %vm684_vm2, %v1821_v34, %v2266_v25  ;;  %v2276_v30 = vrot.slane %v1826_v42, 3  ;;  %v14068_v1 = vld [vmem:[%s21356_s4 + $0x1e8] ss:$0 sps:$4 sm:$0x22]  }
  0xcd   :  { %v2277_v31 = vrot.slane %v1827_v41, 2  ;;  %v1997_v36 = vsel %vm696_vm6, %v1996_v9, %v1995_v20  ;;  %v2269_v37 = vsel %vm687_vm3, %v2268_v15, %v2267_v29  ;;  %v2279_v35 = vrot.slane %v1828_v43, 1  ;;  %v14077_v9 = vld [vmem:[%s21356_s4 + $0x1f0] ss:$0 sps:$4 sm:$0x22]  }
  0xce   :  { %v2282_v26 = vrot.slane %v1830_v49, 7  ;;  %v2140_v39 = vpack.c.b16 %v1997_v36, %v1983_v22  ;;  %v2271_v34 = vsel %vm690_vm4, %v2270_v17, %v2269_v37  ;;  %v2284_v42 = vrot.slane %v1831_v50, 6  ;;  %v14082_v6 = vld [vmem:[%s21356_s4 + $0x1f8] ss:$0 sps:$4 sm:$0x22]  }
  0xcf   :  { %v2278_v40 = vsel %vm678_vm0, %v2277_v31, %v2276_v30  ;;  %v2273_v46 = vsel %vm693_vm5, %v2272_v21, %v2271_v34  ;;  %v2286_v41 = vrot.slane %v1832_v54, 5  ;;  %v2288_v43 = vrot.slane %v1833_v55, 4  ;;  %v14028_v54 = vld [vmem:[%s21356_s4 + $0x1b8] ss:$0 sps:$4 sm:$0x22]  }
  0xd0   :  { %v2280_v23 = vsel %vm681_vm1, %v2279_v35, %v2278_v40  ;;  %11236 = vmatpush3.bf16.xpose.msra.mxu0 %v2140_v39  ;;  %v2275_v49 = vsel %vm696_vm6, %v2274_v27, %v2273_v46  ;;  %v1834_v52 = vunpack.c.l.b16 %v13981_v28  ;;  %v1835_v53 = vunpack.c.l.b16 %v13986_v5 }
  0xd1   :  { %v2281_v50 = vsel %vm684_vm2, %v1829_v47, %v2280_v23  ;;  %11237 = vmatprep.subr.bf16.mxu0 %v12576_v0  ;;  %v14040_v47 = vld [vmem:[%s21356_s4 + $0x1c8] ss:$0 sps:$4 sm:$0x22]   ;;  %v1836_v57 = vunpack.c.l.b16 %v13993_v32  ;;  %v1837_v56 = vunpack.c.l.b16 %v14000_v38  ;;  %v1838_v60 = vunpack.c.l.b16 %v14007_v44 }
  0xd2   :  { %v2283_v55 = vsel %vm687_vm3, %v2282_v26, %v2281_v50  ;;  %v1839_v62 = vunpack.c.l.b16 %v14014_v48  ;;  %v1840_v2 = vunpack.c.l.b16 %v14023_v51  ;;  %v1841_v3 = vunpack.c.l.b16 %v14028_v54 }
  0xd3   :  { %v2285_v58 = vsel %vm690_vm4, %v2284_v42, %v2283_v55  ;;  %v1842_v4 = vunpack.c.l.b16 %v14035_v33  ;;  %v1843_v11 = vunpack.c.l.b16 %v14040_v47  ;;  %v1844_v12 = vunpack.c.l.b16 %v14049_v59  ;;  %v14111_v33 = vld [vmem:[%s21356_s4 + $0x200] ss:$0 sps:$4 sm:$0x22]   ;;  %v14116_v47 = vld [vmem:[%s21356_s4 + $0x208] ss:$0 sps:$4 sm:$0x22]  }
  0xd4   :  { %v2287_v61 = vsel %vm693_vm5, %v2286_v41, %v2285_v58  ;;  %v1845_v10 = vunpack.c.l.b16 %v14054_v45  ;;  %v1846_v13 = vunpack.c.l.b16 %v14063_v63  ;;  %v1847_v14 = vunpack.c.l.b16 %v14068_v1  ;;  %v14123_v59 = vld [vmem:[%s21356_s4 + $0x210] ss:$0 sps:$4 sm:$0x22]   ;;  %v14130_v1 = vld [vmem:[%s21356_s4 + $0x218] ss:$0 sps:$4 sm:$0x22]  }
  0xd5   :  { %v2289_v8 = vsel %vm696_vm6, %v2288_v43, %v2287_v61  ;;  %v1998_v15 = vrot.slane %v1834_v52, 2  ;;  %v1848_v17 = vunpack.c.l.b16 %v14077_v9  ;;  %v1849_v18 = vunpack.c.l.b16 %v14082_v6  ;;  %v14165_v45 = vld [vmem:[%s21356_s4 + $0x240] ss:$0 sps:$4 sm:$0x22]  }
  0xd6   :  { %v2432_v7 = vpack.c.b16 %v2289_v8, %v2275_v49  ;;  %v1999_v16 = vrot.slane %v1835_v53, 1  ;;  %v2002_v19 = vrot.slane %v1837_v56, 7  ;;  %v2004_v21 = vrot.slane %v1838_v60, 6  ;;  %v14137_v8 = vld [vmem:[%s21356_s4 + $0x220] ss:$0 sps:$4 sm:$0x22]  }
  0xd7   :  { %v2006_v22 = vrot.slane %v1839_v62, 5  ;;  %v2008_v24 = vrot.slane %v1840_v2, 4  ;;  %v2010_v25 = vrot.slane %v1841_v3, 3  ;;  %v2012_v28 = vrot.slane %v1842_v4, 2 }
  0xd8   :  { %11256 = vmatpush3.bf16.xpose.msra.mxu1 %v2432_v7  ;;  %v2000_v27 = vsel %vm678_vm0, %v1999_v16, %v1998_v15  ;;  %v2013_v5 = vrot.slane %v1843_v11, 1  ;;  %v2016_v20 = vrot.slane %v1845_v10, 7  ;;  %v2018_v30 = vrot.slane %v1846_v13, 6  ;;  %v14144_v7 = vld [vmem:[%s21356_s4 + $0x228] ss:$0 sps:$4 sm:$0x22]  }
  0xd9   :  { %11257 = vmatprep.subr.bf16.mxu1 %v12576_v0  ;;  %v2001_v29 = vsel %vm681_vm1, %v1836_v57, %v2000_v27  ;;  %v2020_v31 = vrot.slane %v1847_v14, 5  ;;  %v2022_v32 = vrot.slane %v1848_v17, 4  ;;  %v2024_v35 = vrot.slane %v1849_v18, 3  ;;  %v14153_v15 = vld [vmem:[%s21356_s4 + $0x230] ss:$0 sps:$4 sm:$0x22]  }
  0xda   :  { %v2003_v36 = vsel %vm684_vm2, %v2002_v19, %v2001_v29  ;;  %v2014_v37 = vsel %vm678_vm0, %v2013_v5, %v2012_v28  ;;  %v2290_v26 = vrot.slane %v1834_v52, 3  ;;  %v2291_v34 = vrot.slane %v1835_v53, 2  ;;  %v14193_v29 = vld [vmem:[%s21356_s4 + $0x260] ss:$0 sps:$4 sm:$0x22]  }
  0xdb   :  { %v2005_v38 = vsel %vm687_vm3, %v2004_v21, %v2003_v36  ;;  %v2015_v39 = vsel %vm681_vm1, %v1844_v12, %v2014_v37  ;;  %v2293_v40 = vrot.slane %v1836_v57, 1  ;;  %v2296_v46 = vrot.slane %v1838_v60, 7 }
  0xdc   :  { %v2007_v42 = vsel %vm690_vm4, %v2006_v22, %v2005_v38  ;;  %v2017_v44 = vsel %vm684_vm2, %v2016_v20, %v2015_v39  ;;  %v2298_v23 = vrot.slane %v1839_v62, 6  ;;  %v2292_v48 = vsel %vm678_vm0, %v2291_v34, %v2290_v26  ;;  %v14212_v26 = vld [vmem:[%s21356_s4 + $0x278] ss:$0 sps:$4 sm:$0x22]  }
  0xdd   :  { %v2009_v41 = vsel %vm693_vm5, %v2008_v24, %v2007_v42  ;;  %v2019_v43 = vsel %vm687_vm3, %v2018_v30, %v2017_v44  ;;  %v2300_v49 = vrot.slane %v1840_v2, 5  ;;  %v2294_v54 = vsel %vm681_vm1, %v2293_v40, %v2292_v48  ;;  %v14179_v24 = vld [vmem:[%s21356_s4 + $0x250] ss:$0 sps:$4 sm:$0x22]  }
  0xde   :  { %v2011_v50 = vsel %vm696_vm6, %v2010_v25, %v2009_v41  ;;  %v2021_v51 = vsel %vm690_vm4, %v2020_v31, %v2019_v43  ;;  %v2302_v55 = vrot.slane %v1841_v3, 4  ;;  %v2295_v53 = vsel %vm684_vm2, %v1837_v56, %v2294_v54  ;;  %v14184_v25 = vld [vmem:[%s21356_s4 + $0x258] ss:$0 sps:$4 sm:$0x22]  }
  0xdf   :  { %v2023_v52 = vsel %vm693_vm5, %v2022_v32, %v2021_v51  ;;  %v2304_v57 = vrot.slane %v1842_v4, 3  ;;  %v2305_v58 = vrot.slane %v1843_v11, 2  ;;  %v2297_v62 = vsel %vm687_vm3, %v2296_v46, %v2295_v53  ;;  %v14198_v30 = vld [vmem:[%s21356_s4 + $0x268] ss:$0 sps:$4 sm:$0x22]  }
  0xe0   :  { %v2025_v60 = vsel %vm696_vm6, %v2024_v35, %v2023_v52  ;;  %v2307_v61 = vrot.slane %v1844_v12, 1  ;;  %v2310_v63 = vrot.slane %v1846_v13, 7  ;;  %v2299_v56 = vsel %vm690_vm4, %v2298_v23, %v2297_v62  ;;  %v14207_v35 = vld [vmem:[%s21356_s4 + $0x270] ss:$0 sps:$4 sm:$0x22]  }
  0xe1   :  { %v2141_v2 = vpack.c.b16 %v2025_v60, %v2011_v50  ;;  %v2306_v3 = vsel %vm678_vm0, %v2305_v58, %v2304_v57  ;;  %v2312_v4 = vrot.slane %v1847_v14, 6  ;;  %v2301_v9 = vsel %vm693_vm5, %v2300_v49, %v2299_v56 }
  0xe2   :  { %v2308_v6 = vsel %vm681_vm1, %v2307_v61, %v2306_v3  ;;  %v2314_v11 = vrot.slane %v1848_v17, 5  ;;  %v2316_v12 = vrot.slane %v1849_v18, 4  ;;  %v2303_v13 = vsel %vm696_vm6, %v2302_v55, %v2301_v9  ;;  %v14158_v17 = vld [vmem:[%s21356_s4 + $0x238] ss:$0 sps:$4 sm:$0x22]  }
  0xe3   :  { %11238 = vmatpush3.bf16.xpose.msra.mxu0 %v2141_v2  ;;  %v2309_v14 = vsel %vm684_vm2, %v1845_v10, %v2308_v6  ;;  %v14170_v10 = vld [vmem:[%s21356_s4 + $0x248] ss:$0 sps:$4 sm:$0x22]   ;;  %v1850_v16 = vunpack.c.l.b16 %v14111_v33  ;;  %v1851_v19 = vunpack.c.l.b16 %v14116_v47  ;;  %v1852_v21 = vunpack.c.l.b16 %v14123_v59 }
  0xe4   :  { %v2311_v18 = vsel %vm687_vm3, %v2310_v63, %v2309_v14  ;;  %11239 = vmatprep.subr.bf16.mxu0 %v12576_v0  ;;  %v1853_v27 = vunpack.c.l.b16 %v14130_v1  ;;  %v1854_v28 = vunpack.c.l.b16 %v14137_v8  ;;  %v1855_v5 = vunpack.c.l.b16 %v14144_v7 }
  0xe5   :  { %v2313_v22 = vsel %vm690_vm4, %v2312_v4, %v2311_v18  ;;  %v1856_v31 = vunpack.c.l.b16 %v14153_v15  ;;  %v1857_v32 = vunpack.c.l.b16 %v14158_v17  ;;  %v1858_v36 = vunpack.c.l.b16 %v14165_v45  ;;  %v14241_v45 = vld [vmem:[%s21356_s4 + $0x280] ss:$0 sps:$4 sm:$0x22]  }
  0xe6   :  { %v2315_v20 = vsel %vm693_vm5, %v2314_v11, %v2313_v22  ;;  %v1859_v38 = vunpack.c.l.b16 %v14170_v10  ;;  %v1860_v39 = vunpack.c.l.b16 %v14179_v24  ;;  %v1861_v34 = vunpack.c.l.b16 %v14184_v25  ;;  %v14246_v10 = vld [vmem:[%s21356_s4 + $0x288] ss:$0 sps:$4 sm:$0x22]   ;;  %v14253_v24 = vld [vmem:[%s21356_s4 + $0x290] ss:$0 sps:$4 sm:$0x22]  }
  0xe7   :  { %v2317_v37 = vsel %vm696_vm6, %v2316_v12, %v2315_v20  ;;  %v1862_v42 = vunpack.c.l.b16 %v14193_v29  ;;  %v1863_v44 = vunpack.c.l.b16 %v14198_v30  ;;  %v2026_v46 = vrot.slane %v1850_v16, 2  ;;  %v14260_v30 = vld [vmem:[%s21356_s4 + $0x298] ss:$0 sps:$4 sm:$0x22]  }
  0xe8   :  { %v2433_v40 = vpack.c.b16 %v2317_v37, %v2303_v13  ;;  %v1864_v23 = vunpack.c.l.b16 %v14207_v35  ;;  %v1865_v41 = vunpack.c.l.b16 %v14212_v26  ;;  %v2027_v43 = vrot.slane %v1851_v19, 1  ;;  %v14267_v37 = vld [vmem:[%s21356_s4 + $0x2a0] ss:$0 sps:$4 sm:$0x22]  }
  0xe9   :  { %v2030_v48 = vrot.slane %v1853_v27, 7  ;;  %v2032_v49 = vrot.slane %v1854_v28, 6  ;;  %v2034_v50 = vrot.slane %v1855_v5, 5  ;;  %v2036_v51 = vrot.slane %v1856_v31, 4 }
  0xea   :  { %11258 = vmatpush3.bf16.xpose.msra.mxu1 %v2433_v40  ;;  %v2038_v54 = vrot.slane %v1857_v32, 3  ;;  %v2028_v55 = vsel %vm678_vm0, %v2027_v43, %v2026_v46  ;;  %v2040_v33 = vrot.slane %v1858_v36, 2  ;;  %v2041_v47 = vrot.slane %v1859_v38, 1  ;;  %v14274_v40 = vld [vmem:[%s21356_s4 + $0x2a8] ss:$0 sps:$4 sm:$0x22]  }
  0xeb   :  { %v2044_v52 = vrot.slane %v1861_v34, 7  ;;  %11259 = vmatprep.subr.bf16.mxu1 %v12576_v0  ;;  %v2029_v53 = vsel %vm681_vm1, %v1852_v21, %v2028_v55  ;;  %v2046_v57 = vrot.slane %v1862_v42, 6  ;;  %v2048_v58 = vrot.slane %v1863_v44, 5  ;;  %v14283_v46 = vld [vmem:[%s21356_s4 + $0x2b0] ss:$0 sps:$4 sm:$0x22]  }
  0xec   :  { %v2050_v59 = vrot.slane %v1864_v23, 4  ;;  %v2031_v60 = vsel %vm684_vm2, %v2030_v48, %v2029_v53  ;;  %v2042_v62 = vsel %vm678_vm0, %v2041_v47, %v2040_v33  ;;  %v2052_v61 = vrot.slane %v1865_v41, 3  ;;  %v14295_v25 = vld [vmem:[%s21356_s4 + $0x2c0] ss:$0 sps:$4 sm:$0x22]  }
  0xed   :  { %v2318_v63 = vrot.slane %v1850_v16, 3  ;;  %v2033_v1 = vsel %vm687_vm3, %v2032_v49, %v2031_v60  ;;  %v2043_v2 = vsel %vm681_vm1, %v1860_v39, %v2042_v62  ;;  %v2319_v56 = vrot.slane %v1851_v19, 2  ;;  %v14323_v53 = vld [vmem:[%s21356_s4 + $0x2e0] ss:$0 sps:$4 sm:$0x22]  }
  0xee   :  { %v2321_v3 = vrot.slane %v1852_v21, 1  ;;  %v2035_v4 = vsel %vm690_vm4, %v2034_v50, %v2033_v1  ;;  %v2045_v8 = vsel %vm684_vm2, %v2044_v52, %v2043_v2  ;;  %v2324_v9 = vrot.slane %v1854_v28, 7 }
  0xef   :  { %v2326_v6 = vrot.slane %v1855_v5, 6  ;;  %v2037_v11 = vsel %vm693_vm5, %v2036_v51, %v2035_v4  ;;  %v2047_v12 = vsel %vm687_vm3, %v2046_v57, %v2045_v8  ;;  %v2320_v7 = vsel %vm678_vm0, %v2319_v56, %v2318_v63  ;;  %v14309_v51 = vld [vmem:[%s21356_s4 + $0x2d0] ss:$0 sps:$4 sm:$0x22]  }
  0xf0   :  { %v2328_v13 = vrot.slane %v1856_v31, 5  ;;  %v2039_v14 = vsel %vm696_vm6, %v2038_v54, %v2037_v11  ;;  %v2049_v15 = vsel %vm690_vm4, %v2048_v58, %v2047_v12  ;;  %v2322_v17 = vsel %vm681_vm1, %v2321_v3, %v2320_v7  ;;  %v14314_v54 = vld [vmem:[%s21356_s4 + $0x2d8] ss:$0 sps:$4 sm:$0x22]  }
  0xf1   :  { %v2330_v18 = vrot.slane %v1857_v32, 4  ;;  %v2051_v16 = vsel %vm693_vm5, %v2050_v59, %v2049_v15  ;;  %v2323_v19 = vsel %vm684_vm2, %v1853_v27, %v2322_v17  ;;  %v2332_v21 = vrot.slane %v1858_v36, 3  ;;  %v14328_v57 = vld [vmem:[%s21356_s4 + $0x2e8] ss:$0 sps:$4 sm:$0x22]  }
  0xf2   :  { %v2333_v22 = vrot.slane %v1859_v38, 2  ;;  %v2053_v28 = vsel %vm696_vm6, %v2052_v61, %v2051_v16  ;;  %v2325_v5 = vsel %vm687_vm3, %v2324_v9, %v2323_v19  ;;  %v2335_v20 = vrot.slane %v1860_v39, 1  ;;  %v14337_v61 = vld [vmem:[%s21356_s4 + $0x2f0] ss:$0 sps:$4 sm:$0x22]  }
  0xf3   :  { %v2338_v29 = vrot.slane %v1862_v42, 7  ;;  %v2142_v31 = vpack.c.b16 %v2053_v28, %v2039_v14  ;;  %v2327_v27 = vsel %vm690_vm4, %v2326_v6, %v2325_v5  ;;  %v2340_v36 = vrot.slane %v1863_v44, 6  ;;  %v14342_v63 = vld [vmem:[%s21356_s4 + $0x2f8] ss:$0 sps:$4 sm:$0x22]  }
  0xf4   :  { %v2334_v32 = vsel %vm678_vm0, %v2333_v22, %v2332_v21  ;;  %v2329_v35 = vsel %vm693_vm5, %v2328_v13, %v2327_v27  ;;  %v2342_v38 = vrot.slane %v1864_v23, 5  ;;  %v2344_v39 = vrot.slane %v1865_v41, 4  ;;  %v14288_v23 = vld [vmem:[%s21356_s4 + $0x2b8] ss:$0 sps:$4 sm:$0x22]  }
  0xf5   :  { %v2336_v26 = vsel %vm681_vm1, %v2335_v20, %v2334_v32  ;;  %11240 = vmatpush3.bf16.xpose.msra.mxu0 %v2142_v31  ;;  %v2331_v42 = vsel %vm696_vm6, %v2330_v18, %v2329_v35  ;;  %v1866_v43 = vunpack.c.l.b16 %v14241_v45  ;;  %v1867_v48 = vunpack.c.l.b16 %v14246_v10 }
  0xf6   :  { %v2337_v44 = vsel %vm684_vm2, %v1861_v34, %v2336_v26  ;;  %11241 = vmatprep.subr.bf16.mxu0 %v12576_v0  ;;  %v14300_v34 = vld [vmem:[%s21356_s4 + $0x2c8] ss:$0 sps:$4 sm:$0x22]   ;;  %v1868_v49 = vunpack.c.l.b16 %v14253_v24  ;;  %v1869_v55 = vunpack.c.l.b16 %v14260_v30  ;;  %v1870_v33 = vunpack.c.l.b16 %v14267_v37 }
  0xf7   :  { %v2339_v41 = vsel %vm687_vm3, %v2338_v29, %v2337_v44  ;;  %v1871_v47 = vunpack.c.l.b16 %v14274_v40  ;;  %v1872_v58 = vunpack.c.l.b16 %v14283_v46  ;;  %v1873_v59 = vunpack.c.l.b16 %v14288_v23 }
  0xf8   :  { %v2341_v50 = vsel %vm690_vm4, %v2340_v36, %v2339_v41  ;;  %v1874_v60 = vunpack.c.l.b16 %v14295_v25  ;;  %v1875_v1 = vunpack.c.l.b16 %v14300_v34  ;;  %v1876_v2 = vunpack.c.l.b16 %v14309_v51  ;;  %v14371_v25 = vld [vmem:[%s21356_s4 + $0x300] ss:$0 sps:$4 sm:$0x22]   ;;  %v14376_v34 = vld [vmem:[%s21356_s4 + $0x308] ss:$0 sps:$4 sm:$0x22]  }
  0xf9   :  { %v2343_v52 = vsel %vm693_vm5, %v2342_v38, %v2341_v50  ;;  %v1877_v56 = vunpack.c.l.b16 %v14314_v54  ;;  %v1878_v4 = vunpack.c.l.b16 %v14323_v53  ;;  %v1879_v8 = vunpack.c.l.b16 %v14328_v57  ;;  %v14383_v51 = vld [vmem:[%s21356_s4 + $0x310] ss:$0 sps:$4 sm:$0x22]   ;;  %v14390_v57 = vld [vmem:[%s21356_s4 + $0x318] ss:$0 sps:$4 sm:$0x22]  }
  0xfa   :  { %v2345_v62 = vsel %vm696_vm6, %v2344_v39, %v2343_v52  ;;  %v2054_v9 = vrot.slane %v1866_v43, 2  ;;  %v1880_v6 = vunpack.c.l.b16 %v14337_v61  ;;  %v1881_v11 = vunpack.c.l.b16 %v14342_v63  ;;  %v14425_v54 = vld [vmem:[%s21356_s4 + $0x340] ss:$0 sps:$4 sm:$0x22]  }
  0xfb   :  { %v2434_v3 = vpack.c.b16 %v2345_v62, %v2331_v42  ;;  %v2055_v12 = vrot.slane %v1867_v48, 1  ;;  %v2058_v7 = vrot.slane %v1869_v55, 7  ;;  %v2060_v13 = vrot.slane %v1870_v33, 6  ;;  %v14397_v62 = vld [vmem:[%s21356_s4 + $0x320] ss:$0 sps:$4 sm:$0x22]  }
  0xfc   :  { %v2062_v14 = vrot.slane %v1871_v47, 5  ;;  %v2064_v15 = vrot.slane %v1872_v58, 4  ;;  %v2066_v17 = vrot.slane %v1873_v59, 3  ;;  %v2068_v45 = vrot.slane %v1874_v60, 2 }
  0xfd   :  { %11260 = vmatpush3.bf16.xpose.msra.mxu1 %v2434_v3  ;;  %v2056_v18 = vsel %vm678_vm0, %v2055_v12, %v2054_v9  ;;  %v2069_v10 = vrot.slane %v1875_v1, 1  ;;  %v2072_v16 = vrot.slane %v1877_v56, 7  ;;  %v2074_v21 = vrot.slane %v1878_v4, 6  ;;  %v14404_v3 = vld [vmem:[%s21356_s4 + $0x328] ss:$0 sps:$4 sm:$0x22]  }
  0xfe   :  { %11261 = vmatprep.subr.bf16.mxu1 %v12576_v0  ;;  %v2057_v19 = vsel %vm681_vm1, %v1868_v49, %v2056_v18  ;;  %v2076_v22 = vrot.slane %v1879_v8, 5  ;;  %v2078_v24 = vrot.slane %v1880_v6, 4  ;;  %v2080_v20 = vrot.slane %v1881_v11, 3  ;;  %v14413_v9 = vld [vmem:[%s21356_s4 + $0x330] ss:$0 sps:$4 sm:$0x22]  }
  0xff   :  { %v2059_v28 = vsel %vm684_vm2, %v2058_v7, %v2057_v19  ;;  %v2070_v5 = vsel %vm678_vm0, %v2069_v10, %v2068_v45  ;;  %v2346_v29 = vrot.slane %v1866_v43, 3  ;;  %v2347_v27 = vrot.slane %v1867_v48, 2  ;;  %v14453_v19 = vld [vmem:[%s21356_s4 + $0x360] ss:$0 sps:$4 sm:$0x22]  }
 0x100   :  { %v2061_v30 = vsel %vm687_vm3, %v2060_v13, %v2059_v28  ;;  %v2071_v31 = vsel %vm681_vm1, %v1876_v2, %v2070_v5  ;;  %v2349_v32 = vrot.slane %v1868_v49, 1  ;;  %v2352_v35 = vrot.slane %v1870_v33, 7 }
 0x101   :  { %v2063_v36 = vsel %vm690_vm4, %v2062_v14, %v2061_v30  ;;  %v2073_v37 = vsel %vm684_vm2, %v2072_v16, %v2071_v31  ;;  %v2354_v26 = vrot.slane %v1871_v47, 6  ;;  %v2348_v40 = vsel %vm678_vm0, %v2347_v27, %v2346_v29  ;;  %v14472_v29 = vld [vmem:[%s21356_s4 + $0x378] ss:$0 sps:$4 sm:$0x22]  }
 0x102   :  { %v2065_v38 = vsel %vm693_vm5, %v2064_v15, %v2063_v36  ;;  %v2075_v39 = vsel %vm687_vm3, %v2074_v21, %v2073_v37  ;;  %v2356_v42 = vrot.slane %v1872_v58, 5  ;;  %v2350_v23 = vsel %vm681_vm1, %v2349_v32, %v2348_v40  ;;  %v14439_v15 = vld [vmem:[%s21356_s4 + $0x350] ss:$0 sps:$4 sm:$0x22]  }
 0x103   :  { %v2067_v44 = vsel %vm696_vm6, %v2066_v17, %v2065_v38  ;;  %v2077_v46 = vsel %vm690_vm4, %v2076_v22, %v2075_v39  ;;  %v2358_v41 = vrot.slane %v1873_v59, 4  ;;  %v2351_v48 = vsel %vm684_vm2, %v1869_v55, %v2350_v23  ;;  %v14444_v17 = vld [vmem:[%s21356_s4 + $0x358] ss:$0 sps:$4 sm:$0x22]  }
 0x104   :  { %v2079_v43 = vsel %vm693_vm5, %v2078_v24, %v2077_v46  ;;  %v2360_v49 = vrot.slane %v1874_v60, 3  ;;  %v2361_v50 = vrot.slane %v1875_v1, 2  ;;  %v2353_v47 = vsel %vm687_vm3, %v2352_v35, %v2351_v48  ;;  %v14458_v21 = vld [vmem:[%s21356_s4 + $0x368] ss:$0 sps:$4 sm:$0x22]  }
 0x105   :  { %v2081_v33 = vsel %vm696_vm6, %v2080_v20, %v2079_v43  ;;  %v2363_v52 = vrot.slane %v1876_v2, 1  ;;  %v2366_v53 = vrot.slane %v1878_v4, 7  ;;  %v2355_v55 = vsel %vm690_vm4, %v2354_v26, %v2353_v47  ;;  %v14467_v20 = vld [vmem:[%s21356_s4 + $0x370] ss:$0 sps:$4 sm:$0x22]  }
 0x106   :  { %v2143_v58 = vpack.c.b16 %v2081_v33, %v2067_v44  ;;  %v2362_v59 = vsel %vm678_vm0, %v2361_v50, %v2360_v49  ;;  %v2368_v60 = vrot.slane %v1879_v8, 6  ;;  %v2357_v61 = vsel %vm693_vm5, %v2356_v42, %v2355_v55 }
 0x107   :  { %v2364_v63 = vsel %vm681_vm1, %v2363_v52, %v2362_v59  ;;  %v2370_v1 = vrot.slane %v1880_v6, 5  ;;  %v2372_v2 = vrot.slane %v1881_v11, 4  ;;  %v2359_v4 = vsel %vm696_vm6, %v2358_v41, %v2357_v61  ;;  %v14418_v6 = vld [vmem:[%s21356_s4 + $0x338] ss:$0 sps:$4 sm:$0x22]  }
 0x108   :  { %11242 = vmatpush3.bf16.xpose.msra.mxu0 %v2143_v58  ;;  %v2365_v8 = vsel %vm684_vm2, %v1877_v56, %v2364_v63  ;;  %v14430_v56 = vld [vmem:[%s21356_s4 + $0x348] ss:$0 sps:$4 sm:$0x22]   ;;  %v1882_v12 = vunpack.c.l.b16 %v14371_v25  ;;  %v1883_v7 = vunpack.c.l.b16 %v14376_v34  ;;  %v1884_v13 = vunpack.c.l.b16 %v14383_v51 }
 0x109   :  { %v2367_v11 = vsel %vm687_vm3, %v2366_v53, %v2365_v8  ;;  %11243 = vmatprep.subr.bf16.mxu0 %v12576_v0  ;;  %v1885_v18 = vunpack.c.l.b16 %v14390_v57  ;;  %v1886_v45 = vunpack.c.l.b16 %v14397_v62  ;;  %v1887_v10 = vunpack.c.l.b16 %v14404_v3 }
 0x10a   :  { %v2369_v14 = vsel %vm690_vm4, %v2368_v60, %v2367_v11  ;;  %v1888_v22 = vunpack.c.l.b16 %v14413_v9  ;;  %v1889_v24 = vunpack.c.l.b16 %v14418_v6  ;;  %v1890_v28 = vunpack.c.l.b16 %v14425_v54  ;;  %v14501_v54 = vld [vmem:[%s21356_s4 + $0x380] ss:$0 sps:$4 sm:$0x22]  }
 0x10b   :  { %v2371_v16 = vsel %vm693_vm5, %v2370_v1, %v2369_v14  ;;  %v1891_v30 = vunpack.c.l.b16 %v14430_v56  ;;  %v1892_v31 = vunpack.c.l.b16 %v14439_v15  ;;  %v1893_v27 = vunpack.c.l.b16 %v14444_v17  ;;  %v14506_v56 = vld [vmem:[%s21356_s4 + $0x388] ss:$0 sps:$4 sm:$0x22]   ;;  %v14513_v15 = vld [vmem:[%s21356_s4 + $0x390] ss:$0 sps:$4 sm:$0x22]  }
 0x10c   :  { %v2373_v5 = vsel %vm696_vm6, %v2372_v2, %v2371_v16  ;;  %v1894_v36 = vunpack.c.l.b16 %v14453_v19  ;;  %v1895_v37 = vunpack.c.l.b16 %v14458_v21  ;;  %v2082_v35 = vrot.slane %v1882_v12, 2  ;;  %v14520_v21 = vld [vmem:[%s21356_s4 + $0x398] ss:$0 sps:$4 sm:$0x22]  }
 0x10d   :  { %v2435_v32 = vpack.c.b16 %v2373_v5, %v2359_v4  ;;  %v1896_v26 = vunpack.c.l.b16 %v14467_v20  ;;  %v1897_v38 = vunpack.c.l.b16 %v14472_v29  ;;  %v2083_v39 = vrot.slane %v1883_v7, 1  ;;  %v14527_v5 = vld [vmem:[%s21356_s4 + $0x3a0] ss:$0 sps:$4 sm:$0x22]  }
 0x10e   :  { %v2086_v40 = vrot.slane %v1885_v18, 7  ;;  %v2088_v42 = vrot.slane %v1886_v45, 6  ;;  %v2090_v44 = vrot.slane %v1887_v10, 5  ;;  %v2092_v46 = vrot.slane %v1888_v22, 4 }
 0x10f   :  { %11262 = vmatpush3.bf16.xpose.msra.mxu1 %v2435_v32  ;;  %v2094_v23 = vrot.slane %v1889_v24, 3  ;;  %v2084_v41 = vsel %vm678_vm0, %v2083_v39, %v2082_v35  ;;  %v2096_v25 = vrot.slane %v1890_v28, 2  ;;  %v2097_v34 = vrot.slane %v1891_v30, 1  ;;  %v14534_v32 = vld [vmem:[%s21356_s4 + $0x3a8] ss:$0 sps:$4 sm:$0x22]  }
 0x110   :  { %v2100_v43 = vrot.slane %v1893_v27, 7  ;;  %11263 = vmatprep.subr.bf16.mxu1 %v12576_v0  ;;  %v2085_v48 = vsel %vm681_vm1, %v1884_v13, %v2084_v41  ;;  %v2102_v49 = vrot.slane %v1894_v36, 6  ;;  %v2104_v50 = vrot.slane %v1895_v37, 5  ;;  %v14543_v35 = vld [vmem:[%s21356_s4 + $0x3b0] ss:$0 sps:$4 sm:$0x22]  }
 0x111   :  { %v2106_v51 = vrot.slane %v1896_v26, 4  ;;  %v2087_v33 = vsel %vm684_vm2, %v2086_v40, %v2085_v48  ;;  %v2098_v47 = vsel %vm678_vm0, %v2097_v34, %v2096_v25  ;;  %v2108_v52 = vrot.slane %v1897_v38, 3  ;;  %v14555_v17 = vld [vmem:[%s21356_s4 + $0x3c0] ss:$0 sps:$4 sm:$0x22]  }
 0x112   :  { %v2374_v53 = vrot.slane %v1882_v12, 3  ;;  %v2089_v57 = vsel %vm687_vm3, %v2088_v42, %v2087_v33  ;;  %v2099_v58 = vsel %vm681_vm1, %v1892_v31, %v2098_v47  ;;  %v2375_v55 = vrot.slane %v1883_v7, 2  ;;  %v14583_v48 = vld [vmem:[%s21356_s4 + $0x3e0] ss:$0 sps:$4 sm:$0x22]  }
 0x113   :  { %v2377_v59 = vrot.slane %v1884_v13, 1  ;;  %v2091_v60 = vsel %vm690_vm4, %v2090_v44, %v2089_v57  ;;  %v2101_v62 = vsel %vm684_vm2, %v2100_v43, %v2099_v58  ;;  %v2380_v61 = vrot.slane %v1886_v45, 7 }
 0x114   :  { %v2382_v63 = vrot.slane %v1887_v10, 6  ;;  %v2093_v1 = vsel %vm693_vm5, %v2092_v46, %v2091_v60  ;;  %v2103_v2 = vsel %vm687_vm3, %v2102_v49, %v2101_v62  ;;  %v2376_v3 = vsel %vm678_vm0, %v2375_v55, %v2374_v53  ;;  %v14569_v46 = vld [vmem:[%s21356_s4 + $0x3d0] ss:$0 sps:$4 sm:$0x22]  }
 0x115   :  { %v2384_v4 = vrot.slane %v1888_v22, 5  ;;  %v2095_v8 = vsel %vm696_vm6, %v2094_v23, %v2093_v1  ;;  %v2105_v9 = vsel %vm690_vm4, %v2104_v50, %v2103_v2  ;;  %v2378_v6 = vsel %vm681_vm1, %v2377_v59, %v2376_v3  ;;  %v14574_v23 = vld [vmem:[%s21356_s4 + $0x3d8] ss:$0 sps:$4 sm:$0x22]  }
 0x116   :  { %v2386_v11 = vrot.slane %v1889_v24, 4  ;;  %v2107_v12 = vsel %vm693_vm5, %v2106_v51, %v2105_v9  ;;  %v2379_v7 = vsel %vm684_vm2, %v1885_v18, %v2378_v6  ;;  %v2388_v13 = vrot.slane %v1890_v28, 3  ;;  %v14588_v49 = vld [vmem:[%s21356_s4 + $0x3e8] ss:$0 sps:$4 sm:$0x22]  }
 0x117   :  { %v2389_v14 = vrot.slane %v1891_v30, 2  ;;  %v2109_v45 = vsel %vm696_vm6, %v2108_v52, %v2107_v12  ;;  %v2381_v10 = vsel %vm687_vm3, %v2380_v61, %v2379_v7  ;;  %v2391_v16 = vrot.slane %v1892_v31, 1  ;;  %v14597_v52 = vld [vmem:[%s21356_s4 + $0x3f0] ss:$0 sps:$4 sm:$0x22]  }
 0x118   :  { %v2394_v19 = vrot.slane %v1894_v36, 7  ;;  %v2144_v22 = vpack.c.b16 %v2109_v45, %v2095_v8  ;;  %v2383_v18 = vsel %vm690_vm4, %v2382_v63, %v2381_v10  ;;  %v2396_v28 = vrot.slane %v1895_v37, 6  ;;  %v14602_v53 = vld [vmem:[%s21356_s4 + $0x3f8] ss:$0 sps:$4 sm:$0x22]  }
 0x119   :  { %v2390_v24 = vsel %vm678_vm0, %v2389_v14, %v2388_v13  ;;  %v2385_v20 = vsel %vm693_vm5, %v2384_v4, %v2383_v18  ;;  %v2398_v30 = vrot.slane %v1896_v26, 5  ;;  %v2400_v31 = vrot.slane %v1897_v38, 4  ;;  %v14548_v26 = vld [vmem:[%s21356_s4 + $0x3b8] ss:$0 sps:$4 sm:$0x22]  }
 0x11a   :  { %v2392_v29 = vsel %vm681_vm1, %v2391_v16, %v2390_v24  ;;  %11244 = vmatpush3.bf16.xpose.msra.mxu0 %v2144_v22  ;;  %v2387_v36 = vsel %vm696_vm6, %v2386_v11, %v2385_v20  ;;  %v1898_v39 = vunpack.c.l.b16 %v14501_v54  ;;  %v1899_v40 = vunpack.c.l.b16 %v14506_v56 }
 0x11b   :  { %v2393_v37 = vsel %vm684_vm2, %v1893_v27, %v2392_v29  ;;  %11245 = vmatprep.subr.bf16.mxu0 %v12576_v0  ;;  %v14560_v27 = vld [vmem:[%s21356_s4 + $0x3c8] ss:$0 sps:$4 sm:$0x22]   ;;  %v1900_v42 = vunpack.c.l.b16 %v14513_v15  ;;  %v1901_v41 = vunpack.c.l.b16 %v14520_v21  ;;  %v1902_v25 = vunpack.c.l.b16 %v14527_v5 }
 0x11c   :  { %v2395_v38 = vsel %vm687_vm3, %v2394_v19, %v2393_v37  ;;  %v1903_v34 = vunpack.c.l.b16 %v14534_v32  ;;  %v1904_v50 = vunpack.c.l.b16 %v14543_v35  ;;  %v1905_v51 = vunpack.c.l.b16 %v14548_v26 }
 0x11d   :  { %v2397_v44 = vsel %vm690_vm4, %v2396_v28, %v2395_v38  ;;  %v1906_v33 = vunpack.c.l.b16 %v14555_v17  ;;  %v1907_v57 = vunpack.c.l.b16 %v14560_v27  ;;  %v1908_v58 = vunpack.c.l.b16 %v14569_v46  ;;  %v14631_v17 = vld [vmem:[%s21356_s4] ss:$0 sps:$4 sm:$0x44]   ;;  %v14636_v27 = vld [vmem:[%s21356_s4 + $0x8] ss:$0 sps:$4 sm:$0x44]  }
 0x11e   :  { %v2399_v43 = vsel %vm693_vm5, %v2398_v30, %v2397_v44  ;;  %v1909_v55 = vunpack.c.l.b16 %v14574_v23  ;;  %v1910_v60 = vunpack.c.l.b16 %v14583_v48  ;;  %v1911_v62 = vunpack.c.l.b16 %v14588_v49  ;;  %v14643_v46 = vld [vmem:[%s21356_s4 + $0x10] ss:$0 sps:$4 sm:$0x44]   ;;  %v14650_v49 = vld [vmem:[%s21356_s4 + $0x18] ss:$0 sps:$4 sm:$0x44]  }
 0x11f   :  { %v2401_v47 = vsel %vm696_vm6, %v2400_v31, %v2399_v43  ;;  %v2110_v61 = vrot.slane %v1898_v39, 2  ;;  %v1912_v63 = vunpack.c.l.b16 %v14597_v52  ;;  %v1913_v1 = vunpack.c.l.b16 %v14602_v53  ;;  %v14685_v23 = vld [vmem:[%s21356_s4 + $0x40] ss:$0 sps:$4 sm:$0x44]  }
 0x120   :  { %v2436_v59 = vpack.c.b16 %v2401_v47, %v2387_v36  ;;  %v2111_v2 = vrot.slane %v1899_v40, 1  ;;  %v2114_v3 = vrot.slane %v1901_v41, 7  ;;  %v2116_v4 = vrot.slane %v1902_v25, 6  ;;  %v14657_v47 = vld [vmem:[%s21356_s4 + $0x20] ss:$0 sps:$4 sm:$0x44]  }
 0x121   :  { %v2118_v8 = vrot.slane %v1903_v34, 5  ;;  %v2120_v9 = vrot.slane %v1904_v50, 4  ;;  %v2122_v6 = vrot.slane %v1905_v51, 3  ;;  %v2124_v54 = vrot.slane %v1906_v33, 2 }
 0x122   :  { %11264 = vmatpush3.bf16.xpose.msra.mxu1 %v2436_v59  ;;  %v2112_v11 = vsel %vm678_vm0, %v2111_v2, %v2110_v61  ;;  %v2125_v56 = vrot.slane %v1907_v57, 1  ;;  %v2128_v12 = vrot.slane %v1909_v55, 7  ;;  %v2130_v13 = vrot.slane %v1910_v60, 6  ;;  %v14664_v59 = vld [vmem:[%s21356_s4 + $0x28] ss:$0 sps:$4 sm:$0x44]  }
 0x123   :  { %11265 = vmatprep.subr.bf16.mxu1 %v12576_v0  ;;  %v2113_v7 = vsel %vm681_vm1, %v1900_v42, %v2112_v11  ;;  %v2132_v14 = vrot.slane %v1911_v62, 5  ;;  %v2134_v15 = vrot.slane %v1912_v63, 4  ;;  %v2136_v16 = vrot.slane %v1913_v1, 3  ;;  %v14673_v61 = vld [vmem:[%s21356_s4 + $0x30] ss:$0 sps:$4 sm:$0x44]  }
 0x124   :  { %v2115_v45 = vsel %vm684_vm2, %v2114_v3, %v2113_v7  ;;  %v2126_v10 = vsel %vm678_vm0, %v2125_v56, %v2124_v54  ;;  %v2402_v19 = vrot.slane %v1898_v39, 3  ;;  %v2403_v18 = vrot.slane %v1899_v40, 2  ;;  %v14713_v7 = vld [vmem:[%s21356_s4 + $0x60] ss:$0 sps:$4 sm:$0x44]  }
 0x125   :  { %v2117_v21 = vsel %vm687_vm3, %v2116_v4, %v2115_v45  ;;  %v2127_v22 = vsel %vm681_vm1, %v1908_v58, %v2126_v10  ;;  %v2405_v24 = vrot.slane %v1900_v42, 1  ;;  %v2408_v20 = vrot.slane %v1902_v25, 7 }
 0x126   :  { %v2119_v28 = vsel %vm690_vm4, %v2118_v8, %v2117_v21  ;;  %v2129_v5 = vsel %vm684_vm2, %v2128_v12, %v2127_v22  ;;  %v2410_v29 = vrot.slane %v1903_v34, 6  ;;  %v2404_v32 = vsel %vm678_vm0, %v2403_v18, %v2402_v19  ;;  %v14732_v19 = vld [vmem:[%s21356_s4 + $0x78] ss:$0 sps:$4 sm:$0x44]  }
 0x127   :  { %v2121_v30 = vsel %vm693_vm5, %v2120_v9, %v2119_v28  ;;  %v2131_v31 = vsel %vm687_vm3, %v2130_v13, %v2129_v5  ;;  %v2412_v36 = vrot.slane %v1904_v50, 5  ;;  %v2406_v26 = vsel %vm681_vm1, %v2405_v24, %v2404_v32  ;;  %v14699_v9 = vld [vmem:[%s21356_s4 + $0x50] ss:$0 sps:$4 sm:$0x44]  }
 0x128   :  { %v2123_v37 = vsel %vm696_vm6, %v2122_v6, %v2121_v30  ;;  %v2133_v35 = vsel %vm690_vm4, %v2132_v14, %v2131_v31  ;;  %v2414_v38 = vrot.slane %v1905_v51, 4  ;;  %v2407_v40 = vsel %vm684_vm2, %v1901_v41, %v2406_v26  ;;  %v14704_v6 = vld [vmem:[%s21356_s4 + $0x58] ss:$0 sps:$4 sm:$0x44]  }
 0x129   :  { %v2135_v39 = vsel %vm693_vm5, %v2134_v15, %v2133_v35  ;;  %v2416_v42 = vrot.slane %v1906_v33, 3  ;;  %v2417_v44 = vrot.slane %v1907_v57, 2  ;;  %v2409_v34 = vsel %vm687_vm3, %v2408_v20, %v2407_v40  ;;  %v14718_v13 = vld [vmem:[%s21356_s4 + $0x68] ss:$0 sps:$4 sm:$0x44]  }
 0x12a   :  { %v2137_v25 = vsel %vm696_vm6, %v2136_v16, %v2135_v39  ;;  %v2419_v43 = vrot.slane %v1908_v58, 1  ;;  %v2422_v48 = vrot.slane %v1910_v60, 7  ;;  %v2411_v41 = vsel %vm690_vm4, %v2410_v29, %v2409_v34  ;;  %v14727_v16 = vld [vmem:[%s21356_s4 + $0x70] ss:$0 sps:$4 sm:$0x44]  }
 0x12b   :  { %v2145_v50 = vpack.c.b16 %v2137_v25, %v2123_v37  ;;  %v2418_v51 = vsel %vm678_vm0, %v2417_v44, %v2416_v42  ;;  %v2424_v33 = vrot.slane %v1911_v62, 6  ;;  %v2413_v52 = vsel %vm693_vm5, %v2412_v36, %v2411_v41  ;;  %v12569_v36 = vld [vmem:[%s21357_s0] sm:$0xff]  }
 0x12c   :  { %v2420_v53 = vsel %vm681_vm1, %v2419_v43, %v2418_v51  ;;  %v2426_v57 = vrot.slane %v1912_v63, 5  ;;  %v2428_v58 = vrot.slane %v1913_v1, 4  ;;  %v2415_v60 = vsel %vm696_vm6, %v2414_v38, %v2413_v52  ;;  %v14678_v63 = vld [vmem:[%s21356_s4 + $0x38] ss:$0 sps:$4 sm:$0x44]  }
 0x12d   :  { %11246 = vmatpush3.bf16.xpose.msra.mxu0 %v2145_v50  ;;  %v2421_v62 = vsel %vm684_vm2, %v1909_v55, %v2420_v53  ;;  %v14690_v55 = vld [vmem:[%s21356_s4 + $0x48] ss:$0 sps:$4 sm:$0x44]   ;;  %v3010_v2 = vunpack.c.l.b16 %v14631_v17  ;;  %v3011_v3 = vunpack.c.l.b16 %v14636_v27  ;;  %v3012_v4 = vunpack.c.l.b16 %v14643_v46 }
 0x12e   :  { %v2423_v1 = vsel %vm687_vm3, %v2422_v48, %v2421_v62  ;;  %11271 = vmatprep.subr.bf16.mxu0 %v12576_v0  ;;  %v3013_v11 = vunpack.c.l.b16 %v14650_v49  ;;  %v3014_v54 = vunpack.c.l.b16 %v14657_v47  ;;  %v3015_v56 = vunpack.c.l.b16 %v14664_v59  ;;  %v14809_v59 = vld [vmem:[%s21356_s4 + $0xa8] ss:$0 sps:$4 sm:$0x44]  }
 0x12f   :  { %v2425_v8 = vsel %vm690_vm4, %v2424_v33, %v2423_v1  ;;  %v3016_v14 = vunpack.c.l.b16 %v14673_v61  ;;  %v3017_v15 = vunpack.c.l.b16 %v14678_v63  ;;  %v3018_v45 = vunpack.c.l.b16 %v14685_v23 }
 0x130   :  { %v2427_v12 = vsel %vm693_vm5, %v2426_v57, %v2425_v8  ;;  %v3019_v21 = vunpack.c.l.b16 %v14690_v55  ;;  %v3020_v22 = vunpack.c.l.b16 %v14699_v9  ;;  %v3021_v18 = vunpack.c.l.b16 %v14704_v6 }
 0x131   :  { %v2429_v10 = vsel %vm696_vm6, %v2428_v58, %v2427_v12  ;;  %v3022_v28 = vunpack.c.l.b16 %v14713_v7  ;;  %v3023_v5 = vunpack.c.l.b16 %v14718_v13  ;;  %v3138_v20 = vrot.slane %v3010_v2, 4 }
 0x132   :  { %v2437_v24 = vpack.c.b16 %v2429_v10, %v2415_v60  ;;  %v3024_v29 = vunpack.c.l.b16 %v14727_v16  ;;  %v3025_v30 = vunpack.c.l.b16 %v14732_v19  ;;  %v3139_v31 = vrot.slane %v3011_v3, 3  ;;  %v14821_v16 = vld [vmem:[%s21356_s4 + $0xb8] ss:$0 sps:$4 sm:$0x44]  }
 0x133   :  { %v3141_v32 = vrot.slane %v3012_v4, 2  ;;  %v3143_v37 = vrot.slane %v3013_v11, 1  ;;  %v3146_v35 = vrot.slane %v3015_v56, 7  ;;  %v3148_v26 = vrot.slane %v3016_v14, 6 }
 0x134   :  { %11266 = vmatpush3.bf16.xpose.msra.mxu1 %v2437_v24  ;;  %11248 = vmatmul.mubr.bf16.vlgmr.msra.gmra.mrb[4].mxu0 %v12569_v36  ;;  %v3150_v38 = vrot.slane %v3017_v15, 5  ;;  %v3140_v17 = vsel %vm678_vm0, %v3139_v31, %v3138_v20  ;;  %v3152_v27 = vrot.slane %v3018_v45, 4  ;;  %v3153_v39 = vrot.slane %v3019_v21, 3  ;;  %v14800_v24 = vld [vmem:[%s21356_s4 + $0xa0] ss:$0 sps:$4 sm:$0x44]  }
 0x135   :  { %v3155_v40 = vrot.slane %v3020_v22, 2  ;;  %11291 = vmatprep.subr.bf16.mxu1 %v12576_v0  ;;  %11287 = vmatprep.mubr.msk.bf16.mxu0 %vm12577_vm7, %v12576_v0  ;;  %v3142_v42 = vsel %vm681_vm1, %v3141_v32, %v3140_v17  ;;  %v3157_v44 = vrot.slane %v3021_v18, 1  ;;  %v3160_v46 = vrot.slane %v3023_v5, 7  ;;  %v14816_v32 = vld [vmem:[%s21356_s4 + $0xb0] ss:$0 sps:$4 sm:$0x44]  }
 0x136   :  { %v3162_v25 = vrot.slane %v3024_v29, 6  ;;  %v3144_v34 = vsel %vm684_vm2, %v3143_v37, %v3142_v42  ;;  %v3154_v43 = vsel %vm678_vm0, %v3153_v39, %v3152_v27  ;;  %v3164_v48 = vrot.slane %v3025_v30, 5  ;;  %v14844_v17 = vld [vmem:[%s21356_s4 + $0xd0] ss:$0 sps:$4 sm:$0x44]  }
 0x137   :  { %v3430_v49 = vrot.slane %v3010_v2, 5  ;;  %v3145_v50 = vsel %vm687_vm3, %v3014_v54, %v3144_v34  ;;  %v3156_v41 = vsel %vm681_vm1, %v3155_v40, %v3154_v43  ;;  %v3431_v51 = vrot.slane %v3011_v3, 4  ;;  %v14770_v2 = vld [vmem:[%s21356_s4 + $0x80] ss:$0 sps:$4 sm:$0x44]  }
 0x138   :  { %v3433_v33 = vrot.slane %v3012_v4, 3  ;;  %v3147_v47 = vsel %vm690_vm4, %v3146_v35, %v3145_v50  ;;  %v3158_v52 = vsel %vm684_vm2, %v3157_v44, %v3156_v41  ;;  %v3435_v53 = vrot.slane %v3013_v11, 2  ;;  %v14775_v3 = vld [vmem:[%s21356_s4 + $0x88] ss:$0 sps:$4 sm:$0x44]  }
 0x139   :  { %v3437_v57 = vrot.slane %v3014_v54, 1  ;;  %v3149_v58 = vsel %vm693_vm5, %v3148_v26, %v3147_v47  ;;  %v3159_v60 = vsel %vm687_vm3, %v3022_v28, %v3158_v52  ;;  %v3432_v62 = vsel %vm678_vm0, %v3431_v51, %v3430_v49  ;;  %v14782_v11 = vld [vmem:[%s21356_s4 + $0x90] ss:$0 sps:$4 sm:$0x44]  }
 0x13a   :  { %v3440_v61 = vrot.slane %v3016_v14, 7  ;;  %v3151_v63 = vsel %vm696_vm6, %v3150_v38, %v3149_v58  ;;  %v3161_v1 = vsel %vm690_vm4, %v3160_v46, %v3159_v60  ;;  %v3434_v23 = vsel %vm681_vm1, %v3433_v33, %v3432_v62  ;;  %v14849_v27 = vld [vmem:[%s21356_s4 + $0xd8] ss:$0 sps:$4 sm:$0x44]  }
 0x13b   :  { %11268 = vmatmul.mubr.bf16.vlgmr.msra.gmra.mrb[4].mxu1 %v12569_v36  ;;  %v3442_v55 = vrot.slane %v3017_v15, 6  ;;  %v3163_v4 = vsel %vm693_vm5, %v3162_v25, %v3161_v1  ;;  %v3436_v8 = vsel %vm684_vm2, %v3435_v53, %v3434_v23  ;;  %v3444_v9 = vrot.slane %v3018_v45, 5  ;;  %v14791_v15 = vld [vmem:[%s21356_s4 + $0x98] ss:$0 sps:$4 sm:$0x44]  }
 0x13c   :  { %v3445_v6 = vrot.slane %v3019_v21, 4  ;;  %11307 = vmatprep.mubr.msk.bf16.mxu1 %vm12577_vm7, %v12576_v0  ;;  %v3165_v54 = vsel %vm696_vm6, %v3164_v48, %v3163_v4  ;;  %v3438_v12 = vsel %vm687_vm3, %v3437_v57, %v3436_v8  ;;  %v3447_v7 = vrot.slane %v3020_v22, 3  ;;  %v14833_v36 = vld [vmem:[%s21356_s4 + $0xc8] ss:$0 sps:$4 sm:$0x44]  }
 0x13d   :  { %v3449_v14 = vrot.slane %v3021_v18, 2  ;;  %v3362_v45 = vpack.c.b16 %v3165_v54, %v3151_v63  ;;  %v3439_v10 = vsel %vm690_vm4, %v3015_v56, %v3438_v12  ;;  %v3451_v21 = vrot.slane %v3022_v28, 1  ;;  %v14863_v44 = vld [vmem:[%s21356_s4 + $0xe8] ss:$0 sps:$4 sm:$0x44]  }
 0x13e   :  { %v3446_v19 = vsel %vm678_vm0, %v3445_v6, %v3444_v9  ;;  %v3441_v22 = vsel %vm693_vm5, %v3440_v61, %v3439_v10  ;;  %v3454_v20 = vrot.slane %v3024_v29, 7  ;;  %v3456_v31 = vrot.slane %v3025_v30, 6  ;;  %v14828_v30 = vld [vmem:[%s21356_s4 + $0xc0] ss:$0 sps:$4 sm:$0x44]  }
 0x13f   :  { %v3448_v18 = vsel %vm681_vm1, %v3447_v7, %v3446_v19  ;;  %11272 = vmatpush3.bf16.xpose.msra.mxu0 %v3362_v45  ;;  %v3443_v56 = vsel %vm696_vm6, %v3442_v55, %v3441_v22  ;;  %v3026_v37 = vunpack.c.l.b16 %v14770_v2  ;;  %v3027_v35 = vunpack.c.l.b16 %v14775_v3  ;;  %v14872_v48 = vld [vmem:[%s21356_s4 + $0xf0] ss:$0 sps:$4 sm:$0x44]   ;;  %v14877_v49 = vld [vmem:[%s21356_s4 + $0xf8] ss:$0 sps:$4 sm:$0x44]  }
 0x140   :  { %v3450_v28 = vsel %vm684_vm2, %v3449_v14, %v3448_v18  ;;  %11273 = vmatprep.subr.bf16.mxu0 %v12576_v0  ;;  %v3028_v26 = vunpack.c.l.b16 %v14782_v11  ;;  %v3029_v39 = vunpack.c.l.b16 %v14791_v15  ;;  %v3030_v40 = vunpack.c.l.b16 %v14800_v24 }
 0x141   :  { %v3452_v29 = vsel %vm687_vm3, %v3451_v21, %v3450_v28  ;;  %v3031_v42 = vunpack.c.l.b16 %v14809_v59  ;;  %v3032_v46 = vunpack.c.l.b16 %v14816_v32  ;;  %v3033_v25 = vunpack.c.l.b16 %v14821_v16  ;;  %v30_v59 = vld [vmem:[%s21358_s1 + $0x8] sm:$0xff] }
 0x142   :  { %v3453_v38 = vsel %vm690_vm4, %v3023_v5, %v3452_v29  ;;  %v14858_v5 = vld [vmem:[%s21356_s4 + $0xe0] ss:$0 sps:$4 sm:$0x44]   ;;  %v3034_v34 = vunpack.c.l.b16 %v14828_v30  ;;  %v3035_v50 = vunpack.c.l.b16 %v14833_v36  ;;  %v3036_v41 = vunpack.c.l.b16 %v14844_v17 }
 0x143   :  { %v3455_v13 = vsel %vm693_vm5, %v3454_v20, %v3453_v38  ;;  %v3037_v51 = vunpack.c.l.b16 %v14849_v27  ;;  %v3038_v47 = vunpack.c.l.b16 %v14858_v5  ;;  %v3039_v52 = vunpack.c.l.b16 %v14863_v44  ;;  %v14908_v36 = vld [vmem:[%s21356_s4 + $0x100] ss:$0 sps:$4 sm:$0x44]   ;;  %v14920_v27 = vld [vmem:[%s21356_s4 + $0x110] ss:$0 sps:$4 sm:$0x44]  }
 0x144   :  { %v3457_v43 = vsel %vm696_vm6, %v3456_v31, %v3455_v13  ;;  %v3166_v53 = vrot.slane %v3026_v37, 4  ;;  %v3040_v57 = vunpack.c.l.b16 %v14872_v48  ;;  %v3041_v58 = vunpack.c.l.b16 %v14877_v49  ;;  %v14936_v49 = vld [vmem:[%s21356_s4 + $0x120] ss:$0 sps:$4 sm:$0x44]  }
 0x145   :  { %v3654_v33 = vpack.c.b16 %v3457_v43, %v3443_v56  ;;  %v3167_v60 = vrot.slane %v3027_v35, 3  ;;  %v3169_v62 = vrot.slane %v3028_v26, 2  ;;  %v3171_v61 = vrot.slane %v3029_v39, 1 }
 0x146   :  { %v3174_v63 = vrot.slane %v3031_v42, 7  ;;  %v3176_v1 = vrot.slane %v3032_v46, 6  ;;  %v3178_v23 = vrot.slane %v3033_v25, 5  ;;  %v3180_v2 = vrot.slane %v3034_v34, 4 }
 0x147   :  { %11292 = vmatpush3.bf16.xpose.msra.mxu1 %v3654_v33  ;;  %v3168_v55 = vsel %vm678_vm0, %v3167_v60, %v3166_v53  ;;  %v3181_v3 = vrot.slane %v3035_v50, 3  ;;  %v3183_v4 = vrot.slane %v3036_v41, 2  ;;  %v3185_v9 = vrot.slane %v3037_v51, 1  ;;  %v14952_v53 = vld [vmem:[%s21356_s4 + $0x130] ss:$0 sps:$4 sm:$0x44]  }
 0x148   :  { %11293 = vmatprep.subr.bf16.mxu1 %v12576_v0  ;;  %v3170_v8 = vsel %vm681_vm1, %v3169_v62, %v3168_v55  ;;  %v3188_v6 = vrot.slane %v3039_v52, 7  ;;  %v3190_v11 = vrot.slane %v3040_v57, 6  ;;  %v3192_v7 = vrot.slane %v3041_v58, 5  ;;  %v14960_v62 = vld [vmem:[%s21356_s4 + $0x138] ss:$0 sps:$4 sm:$0x44]  }
 0x149   :  { %v3172_v54 = vsel %vm684_vm2, %v3171_v61, %v3170_v8  ;;  %v3182_v12 = vsel %vm678_vm0, %v3181_v3, %v3180_v2  ;;  %v3458_v14 = vrot.slane %v3026_v37, 5  ;;  %v3459_v10 = vrot.slane %v3027_v35, 4  ;;  %v14913_v37 = vld [vmem:[%s21356_s4 + $0x108] ss:$0 sps:$4 sm:$0x44]  }
 0x14a   :  { %v3173_v15 = vsel %vm687_vm3, %v3030_v40, %v3172_v54  ;;  %v3184_v45 = vsel %vm681_vm1, %v3183_v4, %v3182_v12  ;;  %v3461_v19 = vrot.slane %v3028_v26, 3  ;;  %v3463_v22 = vrot.slane %v3029_v39, 2  ;;  %v14965_v61 = vld [vmem:[%s21356_s4 + $0x140] ss:$0 sps:$4 sm:$0x44]  }
 0x14b   :  { %v3175_v21 = vsel %vm690_vm4, %v3174_v63, %v3173_v15  ;;  %v3186_v24 = vsel %vm684_vm2, %v3185_v9, %v3184_v45  ;;  %v3465_v18 = vrot.slane %v3030_v40, 1  ;;  %v3460_v56 = vsel %vm678_vm0, %v3459_v10, %v3458_v14  ;;  %v14978_v2 = vld [vmem:[%s21356_s4 + $0x148] ss:$0 sps:$4 sm:$0x44]  }
 0x14c   :  { %v3177_v20 = vsel %vm693_vm5, %v3176_v1, %v3175_v21  ;;  %v3187_v31 = vsel %vm687_vm3, %v3038_v47, %v3186_v24  ;;  %v3468_v28 = vrot.slane %v3032_v46, 7  ;;  %v3462_v29 = vsel %vm681_vm1, %v3461_v19, %v3460_v56  ;;  %v14927_v46 = vld [vmem:[%s21356_s4 + $0x118] ss:$0 sps:$4 sm:$0x44]  }
 0x14d   :  { %v3179_v32 = vsel %vm696_vm6, %v3178_v23, %v3177_v20  ;;  %v3189_v16 = vsel %vm690_vm4, %v3188_v6, %v3187_v31  ;;  %v3470_v30 = vrot.slane %v3033_v25, 6  ;;  %v3464_v26 = vsel %vm684_vm2, %v3463_v22, %v3462_v29  ;;  %v29_v23 = vld [vmem:[%s21358_s1] sm:$0xff]  ;;  %v14983_v3 = vld [vmem:[%s21356_s4 + $0x150] ss:$0 sps:$4 sm:$0x44]  }
 0x14e   :  { %v3191_v35 = vsel %vm693_vm5, %v3190_v11, %v3189_v16  ;;  %v3472_v38 = vrot.slane %v3034_v34, 5  ;;  %v3473_v17 = vrot.slane %v3035_v50, 4  ;;  %v3466_v40 = vsel %vm687_vm3, %v3465_v18, %v3464_v26  ;;  %v14997_v6 = vld [vmem:[%s21356_s4 + $0x160] ss:$0 sps:$4 sm:$0x44]  }
 0x14f   :  { %v3193_v39 = vsel %vm696_vm6, %v3192_v7, %v3191_v35  ;;  %v3475_v13 = vrot.slane %v3036_v41, 3  ;;  %v3477_v5 = vrot.slane %v3037_v51, 2  ;;  %v3467_v34 = vsel %vm690_vm4, %v3031_v42, %v3466_v40  ;;  %v14946_v42 = vld [vmem:[%s21356_s4 + $0x128] ss:$0 sps:$4 sm:$0x44]  }
 0x150   :  { %v3363_v25 = vpack.c.b16 %v3193_v39, %v3179_v32  ;;  %v3474_v43 = vsel %vm678_vm0, %v3473_v17, %v3472_v38  ;;  %v3479_v48 = vrot.slane %v3038_v47, 1  ;;  %v3469_v50 = vsel %vm693_vm5, %v3468_v28, %v3467_v34  ;;  %v15006_v14 = vld [vmem:[%s21356_s4 + $0x168] ss:$0 sps:$4 sm:$0x44]  }
 0x151   :  { %v3476_v41 = vsel %vm681_vm1, %v3475_v13, %v3474_v43  ;;  %v3482_v51 = vrot.slane %v3040_v57, 7  ;;  %v3484_v33 = vrot.slane %v3041_v58, 6  ;;  %v3471_v57 = vsel %vm696_vm6, %v3470_v30, %v3469_v50  ;;  %v15011_v15 = vld [vmem:[%s21356_s4 + $0x170] ss:$0 sps:$4 sm:$0x44]  }
 0x152   :  { %11274 = vmatpush3.bf16.xpose.msra.mxu0 %v3363_v25  ;;  %v3478_v47 = vsel %vm684_vm2, %v3477_v5, %v3476_v41  ;;  %v12578_v60 = vmov 0   ;;  %v3042_v63 = vunpack.c.l.b16 %v14908_v36  ;;  %v3043_v1 = vunpack.c.l.b16 %v14913_v37  ;;  %v15019_v24 = vld [vmem:[%s21356_s4 + $0x178] ss:$0 sps:$4 sm:$0x44]  }
 0x153   :  { %v3480_v58 = vsel %vm687_vm3, %v3479_v48, %v3478_v47  ;;  %11534 = vset.pattern.permute.xlu0 %v12578_v60  ;;  %11275 = vmatprep.subr.bf16.mxu0 %v12576_v0  ;;  %v3044_v4 = vunpack.c.l.b16 %v14920_v27  ;;  %v3045_v8 = vunpack.c.l.b16 %v14927_v46  ;;  %v3046_v9 = vunpack.c.l.b16 %v14936_v49 }
 0x154   :  { %v3481_v55 = vsel %vm690_vm4, %v3039_v52, %v3480_v58  ;;  %970 = vperm.xlu0 %11534, %v30_v59   ;;  %11535 = vset.pattern.permute.xlu1 %v12578_v60  ;;  %v14992_v52 = vld [vmem:[%s21356_s4 + $0x158] ss:$0 sps:$4 sm:$0x44]   ;;  %v3047_v11 = vunpack.c.l.b16 %v14946_v42  ;;  %v3048_v54 = vunpack.c.l.b16 %v14952_v53  ;;  %v3049_v12 = vunpack.c.l.b16 %v14960_v62 }
 0x155   :  { %v3483_v44 = vsel %vm693_vm5, %v3482_v51, %v3481_v55  ;;  %v3050_v45 = vunpack.c.l.b16 %v14965_v61  ;;  %v3051_v10 = vunpack.c.l.b16 %v14978_v2  ;;  %v3052_v19 = vunpack.c.l.b16 %v14983_v3 }
 0x156   :  { %v3485_v7 = vsel %vm696_vm6, %v3484_v33, %v3483_v44  ;;  %v3053_v22 = vunpack.c.l.b16 %v14992_v52  ;;  %v3054_v18 = vunpack.c.l.b16 %v14997_v6  ;;  %v3194_v20 = vrot.slane %v3042_v63, 4  ;;  %v15067_v6 = vld [vmem:[%s21356_s4 + $0x198] ss:$0 sps:$4 sm:$0x44]  }
 0x157   :  { %v3655_v21 = vpack.c.b16 %v3485_v7, %v3471_v57  ;;  %v3055_v31 = vunpack.c.l.b16 %v15006_v14  ;;  %v3056_v56 = vunpack.c.l.b16 %v15011_v15  ;;  %v3195_v28 = vrot.slane %v3043_v1, 3 }
 0x158   :  { %v3197_v32 = vrot.slane %v3044_v4, 2  ;;  %967 = vperm.xlu0 %11534, %v29_v23   ;;  %v3057_v16 = vunpack.c.l.b16 %v15019_v24  ;;  %v3199_v29 = vrot.slane %v3045_v8, 1  ;;  %v3202_v30 = vrot.slane %v3047_v11, 7 }
 0x159   :  { %11294 = vmatpush3.bf16.xpose.msra.mxu1 %v3655_v21  ;;  %v3204_v36 = vrot.slane %v3048_v54, 6  ;;  %v3196_v37 = vsel %vm678_vm0, %v3195_v28, %v3194_v20  ;;  %v3206_v35 = vrot.slane %v3049_v12, 5  ;;  %v3208_v26 = vrot.slane %v3050_v45, 4  ;;  %v15082_v20 = vld [vmem:[%s21356_s4 + $0x1a8] ss:$0 sps:$4 sm:$0x44]  }
 0x15a   :  { %v3209_v38 = vrot.slane %v3051_v10, 3  ;;  %11295 = vmatprep.subr.bf16.mxu1 %v12576_v0  ;;  %v3198_v17 = vsel %vm681_vm1, %v3197_v32, %v3196_v37  ;;  %v3211_v27 = vrot.slane %v3052_v19, 2  ;;  %v3213_v39 = vrot.slane %v3053_v22, 1  ;;  %v15101_v28 = vld [vmem:[%s21356_s4 + $0x1c0] ss:$0 sps:$4 sm:$0x44]  }
 0x15b   :  { %v3216_v40 = vrot.slane %v3055_v31, 7  ;;  %v3200_v13 = vsel %vm684_vm2, %v3199_v29, %v3198_v17  ;;  %v3218_v46 = vrot.slane %v3056_v56, 6  ;;  %v3220_v25 = vrot.slane %v3057_v16, 5  ;;  %v15106_v32 = vld [vmem:[%s21356_s4 + $0x1c8] ss:$0 sps:$4 sm:$0x44]  }
 0x15c   :  { %v3210_v5 = vsel %vm678_vm0, %v3209_v38, %v3208_v26  ;;  %v3201_v34 = vsel %vm687_vm3, %v3046_v9, %v3200_v13  ;;  %v3486_v48 = vrot.slane %v3042_v63, 5  ;;  %v3487_v49 = vrot.slane %v3043_v1, 4  ;;  %v15048_v63 = vld [vmem:[%s21356_s4 + $0x180] ss:$0 sps:$4 sm:$0x44]  }
 0x15d   :  { %v3212_v43 = vsel %vm681_vm1, %v3211_v27, %v3210_v5  ;;  %v3203_v50 = vsel %vm690_vm4, %v3202_v30, %v3201_v34  ;;  %v3489_v51 = vrot.slane %v3044_v4, 3  ;;  %v3491_v33 = vrot.slane %v3045_v8, 2  ;;  %v15053_v1 = vld [vmem:[%s21356_s4 + $0x188] ss:$0 sps:$4 sm:$0x44]  }
 0x15e   :  { %v3214_v41 = vsel %vm684_vm2, %v3213_v39, %v3212_v43  ;;  %v3205_v59 = vsel %vm693_vm5, %v3204_v36, %v3203_v50  ;;  %v3488_v53 = vsel %vm678_vm0, %v3487_v49, %v3486_v48  ;;  %v3493_v57 = vrot.slane %v3046_v9, 1  ;;  %v15060_v4 = vld [vmem:[%s21356_s4 + $0x190] ss:$0 sps:$4 sm:$0x44]  }
 0x15f   :  { %v3215_v47 = vsel %vm687_vm3, %v3054_v18, %v3214_v41  ;;  %v3207_v58 = vsel %vm696_vm6, %v3206_v35, %v3205_v59  ;;  %v3490_v62 = vsel %vm681_vm1, %v3489_v51, %v3488_v53  ;;  %v3496_v61 = vrot.slane %v3048_v54, 7  ;;  %v15115_v37 = vld [vmem:[%s21356_s4 + $0x1d0] ss:$0 sps:$4 sm:$0x44]  }
 0x160   :  { %v3217_v60 = vsel %vm690_vm4, %v3216_v40, %v3215_v47  ;;  %v3492_v55 = vsel %vm684_vm2, %v3491_v33, %v3490_v62  ;;  %v3498_v2 = vrot.slane %v3049_v12, 6  ;;  %v3500_v3 = vrot.slane %v3050_v45, 5  ;;  %v15075_v45 = vld [vmem:[%s21356_s4 + $0x1a0] ss:$0 sps:$4 sm:$0x44]  }
 0x161   :  { %v3219_v23 = vsel %vm693_vm5, %v3218_v46, %v3217_v60  ;;  %v3494_v9 = vsel %vm687_vm3, %v3493_v57, %v3492_v55  ;;  %v3501_v44 = vrot.slane %v3051_v10, 4  ;;  %v3503_v52 = vrot.slane %v3052_v19, 3  ;;  %v15120_v35 = vld [vmem:[%s21356_s4 + $0x1d8] ss:$0 sps:$4 sm:$0x44]  }
 0x162   :  { %v3221_v8 = vsel %vm696_vm6, %v3220_v25, %v3219_v23  ;;  %v3495_v12 = vsel %vm690_vm4, %v3047_v11, %v3494_v9  ;;  %v3505_v7 = vrot.slane %v3053_v22, 2  ;;  %v3507_v15 = vrot.slane %v3054_v18, 1  ;;  %v15089_v22 = vld [vmem:[%s21356_s4 + $0x1b0] ss:$0 sps:$4 sm:$0x44]  }
 0x163   :  { %v3364_v54 = vpack.c.b16 %v3221_v8, %v3207_v58  ;;  %v3497_v10 = vsel %vm693_vm5, %v3496_v61, %v3495_v12  ;;  %v3502_v19 = vsel %vm678_vm0, %v3501_v44, %v3500_v3  ;;  %v3510_v21 = vrot.slane %v3056_v56, 7  ;;  %v15094_v18 = vld [vmem:[%s21356_s4 + $0x1b8] ss:$0 sps:$4 sm:$0x44]  }
 0x164   :  { %v3512_v24 = vrot.slane %v3057_v16, 6  ;;  %v3499_v42 = vsel %vm696_vm6, %v3498_v2, %v3497_v10  ;;  %v3504_v11 = vsel %vm681_vm1, %v3503_v52, %v3502_v19  ;;  %v3058_v16 = vunpack.c.l.b16 %v15048_v63  ;;  %v15131_v39 = vld [vmem:[%s21356_s4 + $0x1e0] ss:$0 sps:$4 sm:$0x44]  }
 0x165   :  { %11276 = vmatpush3.bf16.xpose.msra.mxu0 %v3364_v54  ;;  %v3506_v56 = vsel %vm684_vm2, %v3505_v7, %v3504_v11  ;;  %v3059_v29 = vunpack.c.l.b16 %v15053_v1  ;;  %v3060_v30 = vunpack.c.l.b16 %v15060_v4  ;;  %v3061_v26 = vunpack.c.l.b16 %v15067_v6  ;;  %v15136_v40 = vld [vmem:[%s21356_s4 + $0x1e8] ss:$0 sps:$4 sm:$0x44]   ;;  %v15150_v25 = vld [vmem:[%s21356_s4 + $0x1f8] ss:$0 sps:$4 sm:$0x44]  }
 0x166   :  { %11277 = vmatprep.subr.bf16.mxu0 %v12576_v0  ;;  %v3508_v36 = vsel %vm687_vm3, %v3507_v15, %v3506_v56  ;;  %v3062_v38 = vunpack.c.l.b16 %v15075_v45  ;;  %v3063_v17 = vunpack.c.l.b16 %v15082_v20  ;;  %v3064_v13 = vunpack.c.l.b16 %v15089_v22 }
 0x167   :  { %v3509_v27 = vsel %vm690_vm4, %v3055_v31, %v3508_v36  ;;  %v3065_v5 = vunpack.c.l.b16 %v15094_v18  ;;  %v3066_v46 = vunpack.c.l.b16 %v15101_v28  ;;  %v15145_v31 = vld [vmem:[%s21356_s4 + $0x1f0] ss:$0 sps:$4 sm:$0x44]   ;;  %v3067_v34 = vunpack.c.l.b16 %v15106_v32  ;;  %v15182_v32 = vld [vmem:[%s21356_s4 + $0x200] ss:$0 sps:$4 sm:$0x44]  }
 0x168   :  { %v3511_v14 = vsel %vm693_vm5, %v3510_v21, %v3509_v27  ;;  %v3068_v43 = vunpack.c.l.b16 %v15115_v37  ;;  %v3069_v48 = vunpack.c.l.b16 %v15120_v35  ;;  %v3070_v50 = vunpack.c.l.b16 %v15131_v39  ;;  %v15189_v37 = vld [vmem:[%s21356_s4 + $0x208] ss:$0 sps:$4 sm:$0x44]   ;;  %v15196_v39 = vld [vmem:[%s21356_s4 + $0x210] ss:$0 sps:$4 sm:$0x44]  }
 0x169   :  { %v3513_v49 = vsel %vm696_vm6, %v3512_v24, %v3511_v14  ;;  %v3071_v41 = vunpack.c.l.b16 %v15136_v40  ;;  %v3222_v51 = vrot.slane %v3058_v16, 4  ;;  %v3072_v59 = vunpack.c.l.b16 %v15145_v31  ;;  %v15204_v31 = vld [vmem:[%s21356_s4 + $0x218] ss:$0 sps:$4 sm:$0x44]  }
 0x16a   :  { %v3656_v33 = vpack.c.b16 %v3513_v49, %v3499_v42  ;;  %v3073_v47 = vunpack.c.l.b16 %v15150_v25  ;;  %v3223_v53 = vrot.slane %v3059_v29, 3  ;;  %v3225_v57 = vrot.slane %v3060_v30, 2 }
 0x16b   :  { %v3227_v58 = vrot.slane %v3061_v26, 1  ;;  %v3230_v60 = vrot.slane %v3063_v17, 7  ;;  %v3232_v62 = vrot.slane %v3064_v13, 6  ;;  %v3234_v63 = vrot.slane %v3065_v5, 5 }
 0x16c   :  { %11296 = vmatpush3.bf16.xpose.msra.mxu1 %v3656_v33  ;;  %v3224_v61 = vsel %vm678_vm0, %v3223_v53, %v3222_v51  ;;  %v3236_v1 = vrot.slane %v3066_v46, 4  ;;  %v3237_v23 = vrot.slane %v3067_v34, 3  ;;  %v3239_v2 = vrot.slane %v3068_v43, 2  ;;  %v15211_v51 = vld [vmem:[%s21356_s4 + $0x220] ss:$0 sps:$4 sm:$0x44]  }
 0x16d   :  { %v3226_v55 = vsel %vm681_vm1, %v3225_v57, %v3224_v61  ;;  %v3241_v3 = vrot.slane %v3069_v48, 1  ;;  %v3244_v4 = vrot.slane %v3071_v41, 7  ;;  %11297 = vmatprep.subr.bf16.mxu1 %v12576_v0  ;;  %v3246_v44 = vrot.slane %v3072_v59, 6 }
 0x16e   :  { %v3228_v8 = vsel %vm684_vm2, %v3227_v58, %v3226_v55  ;;  %v3238_v9 = vsel %vm678_vm0, %v3237_v23, %v3236_v1  ;;  %v3248_v52 = vrot.slane %v3073_v47, 5  ;;  %v3514_v12 = vrot.slane %v3058_v16, 5  ;;  %v15259_v55 = vld [vmem:[%s21356_s4 + $0x258] ss:$0 sps:$4 sm:$0x44]  }
 0x16f   :  { %v3229_v6 = vsel %vm687_vm3, %v3062_v38, %v3228_v8  ;;  %v3240_v54 = vsel %vm681_vm1, %v3239_v2, %v3238_v9  ;;  %v3515_v7 = vrot.slane %v3059_v29, 4  ;;  %v3517_v10 = vrot.slane %v3060_v30, 3  ;;  %v15264_v2 = vld [vmem:[%s21356_s4 + $0x260] ss:$0 sps:$4 sm:$0x44]  }
 0x170   :  { %v3231_v15 = vsel %vm690_vm4, %v3230_v60, %v3229_v6  ;;  %v3242_v45 = vsel %vm684_vm2, %v3241_v3, %v3240_v54  ;;  %v3519_v19 = vrot.slane %v3061_v26, 2  ;;  %v3521_v11 = vrot.slane %v3062_v38, 1  ;;  %v15243_v60 = vld [vmem:[%s21356_s4 + $0x248] ss:$0 sps:$4 sm:$0x44]  }
 0x171   :  { %v3233_v21 = vsel %vm693_vm5, %v3232_v62, %v3231_v15  ;;  %v3243_v24 = vsel %vm687_vm3, %v3070_v50, %v3242_v45  ;;  %v3516_v42 = vsel %vm678_vm0, %v3515_v7, %v3514_v12  ;;  %v3524_v28 = vrot.slane %v3064_v13, 7  ;;  %v15248_v62 = vld [vmem:[%s21356_s4 + $0x250] ss:$0 sps:$4 sm:$0x44]  }
 0x172   :  { %v3235_v22 = vsel %vm696_vm6, %v3234_v63, %v3233_v21  ;;  %v3245_v18 = vsel %vm690_vm4, %v3244_v4, %v3243_v24  ;;  %v3518_v56 = vsel %vm681_vm1, %v3517_v10, %v3516_v42  ;;  %v3526_v30 = vrot.slane %v3065_v5, 6  ;;  %v15278_v9 = vld [vmem:[%s21356_s4 + $0x270] ss:$0 sps:$4 sm:$0x44]  }
 0x173   :  { %v3247_v16 = vsel %vm693_vm5, %v3246_v44, %v3245_v18  ;;  %v3520_v29 = vsel %vm684_vm2, %v3519_v19, %v3518_v56  ;;  %v3528_v36 = vrot.slane %v3066_v46, 5  ;;  %v3529_v38 = vrot.slane %v3067_v34, 4  ;;  %v15287_v12 = vld [vmem:[%s21356_s4 + $0x278] ss:$0 sps:$4 sm:$0x44]  }
 0x174   :  { %v3249_v35 = vsel %vm696_vm6, %v3248_v52, %v3247_v16  ;;  %v3522_v26 = vsel %vm687_vm3, %v3521_v11, %v3520_v29  ;;  %v3531_v27 = vrot.slane %v3068_v43, 3  ;;  %v3533_v46 = vrot.slane %v3069_v48, 2  ;;  %v15222_v48 = vld [vmem:[%s21356_s4 + $0x230] ss:$0 sps:$4 sm:$0x44]  }
 0x175   :  { %v3365_v13 = vpack.c.b16 %v3249_v35, %v3235_v22  ;;  %v3523_v5 = vsel %vm690_vm4, %v3063_v17, %v3522_v26  ;;  %v3535_v14 = vrot.slane %v3070_v50, 1  ;;  %v3530_v34 = vsel %vm678_vm0, %v3529_v38, %v3528_v36  ;;  %v15217_v17 = vld [vmem:[%s21356_s4 + $0x228] ss:$0 sps:$4 sm:$0x44]  }
 0x176   :  { %v3525_v25 = vsel %vm693_vm5, %v3524_v28, %v3523_v5  ;;  %v3538_v43 = vrot.slane %v3072_v59, 7  ;;  %v3540_v49 = vrot.slane %v3073_v47, 6  ;;  %v3532_v20 = vsel %vm681_vm1, %v3531_v27, %v3530_v34  ;;  %v15230_v59 = vld [vmem:[%s21356_s4 + $0x238] ss:$0 sps:$4 sm:$0x44]  }
 0x177   :  { %11278 = vmatpush3.bf16.xpose.msra.mxu0 %v3365_v13  ;;  %v3527_v50 = vsel %vm696_vm6, %v3526_v30, %v3525_v25  ;;  %v3534_v33 = vsel %vm684_vm2, %v3533_v46, %v3532_v20  ;;  %v15235_v47 = vld [vmem:[%s21356_s4 + $0x240] ss:$0 sps:$4 sm:$0x44]   ;;  %v3074_v53 = vunpack.c.l.b16 %v15182_v32  ;;  %v3075_v57 = vunpack.c.l.b16 %v15189_v37 }
 0x178   :  { %11279 = vmatprep.subr.bf16.mxu0 %v12576_v0  ;;  %v3536_v58 = vsel %vm687_vm3, %v3535_v14, %v3534_v33  ;;  %v3076_v61 = vunpack.c.l.b16 %v15196_v39  ;;  %v3077_v63 = vunpack.c.l.b16 %v15204_v31  ;;  %v3078_v1 = vunpack.c.l.b16 %v15211_v51 }
 0x179   :  { %v3537_v23 = vsel %vm690_vm4, %v3071_v41, %v3536_v58  ;;  %v3079_v3 = vunpack.c.l.b16 %v15217_v17  ;;  %v3080_v4 = vunpack.c.l.b16 %v15222_v48  ;;  %v3081_v8 = vunpack.c.l.b16 %v15230_v59  ;;  %v15273_v41 = vld [vmem:[%s21356_s4 + $0x268] ss:$0 sps:$4 sm:$0x44]  }
 0x17a   :  { %v3539_v40 = vsel %vm693_vm5, %v3538_v43, %v3537_v23  ;;  %v3082_v44 = vunpack.c.l.b16 %v15235_v47  ;;  %v3083_v52 = vunpack.c.l.b16 %v15243_v60  ;;  %v3084_v6 = vunpack.c.l.b16 %v15248_v62  ;;  %v15317_v60 = vld [vmem:[%s21356_s4 + $0x280] ss:$0 sps:$4 sm:$0x44]   ;;  %v15324_v23 = vld [vmem:[%s21356_s4 + $0x288] ss:$0 sps:$4 sm:$0x44]  }
 0x17b   :  { %v3541_v54 = vsel %vm696_vm6, %v3540_v49, %v3539_v40  ;;  %v3085_v7 = vunpack.c.l.b16 %v15259_v55  ;;  %v3086_v15 = vunpack.c.l.b16 %v15264_v2  ;;  %v3250_v45 = vrot.slane %v3074_v53, 4  ;;  %v15333_v40 = vld [vmem:[%s21356_s4 + $0x290] ss:$0 sps:$4 sm:$0x44]  }
 0x17c   :  { %v3657_v10 = vpack.c.b16 %v3541_v54, %v3527_v50  ;;  %v3087_v19 = vunpack.c.l.b16 %v15273_v41  ;;  %v3088_v21 = vunpack.c.l.b16 %v15278_v9  ;;  %v3251_v24 = vrot.slane %v3075_v57, 3  ;;  %v15340_v54 = vld [vmem:[%s21356_s4 + $0x298] ss:$0 sps:$4 sm:$0x44]  }
 0x17d   :  { %v3089_v42 = vunpack.c.l.b16 %v15287_v12  ;;  %v3253_v11 = vrot.slane %v3076_v61, 2  ;;  %v3255_v22 = vrot.slane %v3077_v63, 1  ;;  %v3258_v18 = vrot.slane %v3079_v3, 7  ;;  %v15346_v12 = vld [vmem:[%s21356_s4 + $0x2a0] ss:$0 sps:$4 sm:$0x44]  }
 0x17e   :  { %11298 = vmatpush3.bf16.xpose.msra.mxu1 %v3657_v10  ;;  %v3252_v56 = vsel %vm678_vm0, %v3251_v24, %v3250_v45  ;;  %v3260_v28 = vrot.slane %v3080_v4, 6  ;;  %v3262_v32 = vrot.slane %v3081_v8, 5  ;;  %v3264_v16 = vrot.slane %v3082_v44, 4  ;;  %v15357_v45 = vld [vmem:[%s21356_s4 + $0x2b0] ss:$0 sps:$4 sm:$0x44]  }
 0x17f   :  { %v3254_v29 = vsel %vm681_vm1, %v3253_v11, %v3252_v56  ;;  %v3265_v30 = vrot.slane %v3083_v52, 3  ;;  %v3267_v36 = vrot.slane %v3084_v6, 2  ;;  %v3269_v37 = vrot.slane %v3085_v7, 1  ;;  %11299 = vmatprep.subr.bf16.mxu1 %v12576_v0  ;;  %v15365_v24 = vld [vmem:[%s21356_s4 + $0x2b8] ss:$0 sps:$4 sm:$0x44]  }
 0x180   :  { %v3256_v35 = vsel %vm684_vm2, %v3255_v22, %v3254_v29  ;;  %v3272_v26 = vrot.slane %v3087_v19, 7  ;;  %v3274_v38 = vrot.slane %v3088_v21, 6  ;;  %v3276_v27 = vrot.slane %v3089_v42, 5  ;;  %v15380_v56 = vld [vmem:[%s21356_s4 + $0x2c8] ss:$0 sps:$4 sm:$0x44]  }
 0x181   :  { %v3257_v39 = vsel %vm687_vm3, %v3078_v1, %v3256_v35  ;;  %v3266_v13 = vsel %vm678_vm0, %v3265_v30, %v3264_v16  ;;  %v3542_v5 = vrot.slane %v3074_v53, 5  ;;  %v3543_v46 = vrot.slane %v3075_v57, 4  ;;  %v15399_v30 = vld [vmem:[%s21356_s4 + $0x2e0] ss:$0 sps:$4 sm:$0x44]  }
 0x182   :  { %v3259_v14 = vsel %vm690_vm4, %v3258_v18, %v3257_v39  ;;  %v3268_v31 = vsel %vm681_vm1, %v3267_v36, %v3266_v13  ;;  %v3545_v25 = vrot.slane %v3076_v61, 3  ;;  %v3547_v34 = vrot.slane %v3077_v63, 2 }
 0x183   :  { %v3261_v43 = vsel %vm693_vm5, %v3260_v28, %v3259_v14  ;;  %v3270_v49 = vsel %vm684_vm2, %v3269_v37, %v3268_v31  ;;  %v3544_v51 = vsel %vm678_vm0, %v3543_v46, %v3542_v5  ;;  %v3549_v20 = vrot.slane %v3078_v1, 1  ;;  %v15385_v28 = vld [vmem:[%s21356_s4 + $0x2d0] ss:$0 sps:$4 sm:$0x44]  }
 0x184   :  { %v3263_v48 = vsel %vm696_vm6, %v3262_v32, %v3261_v43  ;;  %v3271_v50 = vsel %vm687_vm3, %v3086_v15, %v3270_v49  ;;  %v3546_v33 = vsel %vm681_vm1, %v3545_v25, %v3544_v51  ;;  %v3552_v59 = vrot.slane %v3080_v4, 7  ;;  %v11888_v14 = vld [vmem:[%s21356_s4 + $0x2f8] ss:$0 sps:$4 sm:$0x44]  }
 0x185   :  { %v3273_v47 = vsel %vm690_vm4, %v3272_v26, %v3271_v50  ;;  %v3548_v53 = vsel %vm684_vm2, %v3547_v34, %v3546_v33  ;;  %v3554_v57 = vrot.slane %v3081_v8, 6  ;;  %v3556_v58 = vrot.slane %v3082_v44, 5 }
 0x186   :  { %v3275_v62 = vsel %vm693_vm5, %v3274_v38, %v3273_v47  ;;  %v3550_v61 = vsel %vm687_vm3, %v3549_v20, %v3548_v53  ;;  %v3557_v63 = vrot.slane %v3083_v52, 4  ;;  %v3559_v1 = vrot.slane %v3084_v6, 3  ;;  %v15408_v38 = vld [vmem:[%s21356_s4 + $0x2e8] ss:$0 sps:$4 sm:$0x44]  }
 0x187   :  { %v3277_v55 = vsel %vm696_vm6, %v3276_v27, %v3275_v62  ;;  %v3551_v2 = vsel %vm690_vm4, %v3079_v3, %v3550_v61  ;;  %v3561_v4 = vrot.slane %v3085_v7, 2  ;;  %v3563_v8 = vrot.slane %v3086_v15, 1  ;;  %v15352_v15 = vld [vmem:[%s21356_s4 + $0x2a8] ss:$0 sps:$4 sm:$0x44]  }
 0x188   :  { %v3366_v9 = vpack.c.b16 %v3277_v55, %v3263_v48  ;;  %v3553_v44 = vsel %vm693_vm5, %v3552_v59, %v3551_v2  ;;  %v3558_v52 = vsel %vm678_vm0, %v3557_v63, %v3556_v58  ;;  %v3566_v6 = vrot.slane %v3088_v21, 7  ;;  %v15413_v27 = vld [vmem:[%s21356_s4 + $0x2f0] ss:$0 sps:$4 sm:$0x44]  }
 0x189   :  { %v3560_v17 = vsel %vm681_vm1, %v3559_v1, %v3558_v52  ;;  %v3568_v3 = vrot.slane %v3089_v42, 6  ;;  %v3555_v10 = vsel %vm696_vm6, %v3554_v57, %v3553_v44  ;;  %v15370_v42 = vld [vmem:[%s21356_s4 + $0x2c0] ss:$0 sps:$4 sm:$0x44]   ;;  %v3090_v11 = vunpack.c.l.b16 %v15317_v60 }
 0x18a   :  { %11280 = vmatpush3.bf16.xpose.msra.mxu0 %v3366_v9  ;;  %v3562_v7 = vsel %vm684_vm2, %v3561_v4, %v3560_v17  ;;  %v3091_v22 = vunpack.c.l.b16 %v15324_v23  ;;  %v3092_v32 = vunpack.c.l.b16 %v15333_v40  ;;  %v3093_v16 = vunpack.c.l.b16 %v15340_v54 }
 0x18b   :  { %v3564_v21 = vsel %vm687_vm3, %v3563_v8, %v3562_v7  ;;  %11281 = vmatprep.subr.bf16.mxu0 %v12576_v0  ;;  %v3094_v29 = vunpack.c.l.b16 %v15346_v12  ;;  %v3095_v36 = vunpack.c.l.b16 %v15352_v15  ;;  %v3096_v37 = vunpack.c.l.b16 %v15357_v45 }
 0x18c   :  { %v3565_v18 = vsel %vm690_vm4, %v3087_v19, %v3564_v21  ;;  %v15394_v19 = vld [vmem:[%s21356_s4 + $0x2d8] ss:$0 sps:$4 sm:$0x44]   ;;  %v3097_v35 = vunpack.c.l.b16 %v15365_v24  ;;  %v3098_v39 = vunpack.c.l.b16 %v15370_v42  ;;  %v3099_v13 = vunpack.c.l.b16 %v15380_v56  ;;  %v15447_v42 = vld [vmem:[%s21356_s4 + $0x300] ss:$0 sps:$4 sm:$0x44]  }
 0x18d   :  { %v3567_v41 = vsel %vm693_vm5, %v3566_v6, %v3565_v18  ;;  %v3100_v5 = vunpack.c.l.b16 %v15385_v28  ;;  %v3101_v31 = vunpack.c.l.b16 %v15394_v19  ;;  %v3102_v25 = vunpack.c.l.b16 %v15399_v30  ;;  %v15454_v28 = vld [vmem:[%s21356_s4 + $0x308] ss:$0 sps:$4 sm:$0x44]   ;;  %v15461_v19 = vld [vmem:[%s21356_s4 + $0x310] ss:$0 sps:$4 sm:$0x44]  }
 0x18e   :  { %v3569_v26 = vsel %vm696_vm6, %v3568_v3, %v3567_v41  ;;  %v3278_v34 = vrot.slane %v3090_v11, 4  ;;  %v3103_v43 = vunpack.c.l.b16 %v15408_v38  ;;  %v3104_v49 = vunpack.c.l.b16 %v15413_v27  ;;  %v15469_v27 = vld [vmem:[%s21356_s4 + $0x318] ss:$0 sps:$4 sm:$0x44]  }
 0x18f   :  { %v3658_v46 = vpack.c.b16 %v3569_v26, %v3555_v10  ;;  %v3279_v51 = vrot.slane %v3091_v22, 3  ;;  %v3281_v20 = vrot.slane %v3092_v32, 2  ;;  %v3105_v48 = vunpack.c.l.b16 %v11888_v14  ;;  %v15476_v14 = vld [vmem:[%s21356_s4 + $0x320] ss:$0 sps:$4 sm:$0x44]  }
 0x190   :  { %v3283_v50 = vrot.slane %v3093_v16, 1  ;;  %v3286_v33 = vrot.slane %v3095_v36, 7  ;;  %v3288_v59 = vrot.slane %v3096_v37, 6  ;;  %v3290_v53 = vrot.slane %v3097_v35, 5 }
 0x191   :  { %11300 = vmatpush3.bf16.xpose.msra.mxu1 %v3658_v46  ;;  %v3280_v47 = vsel %vm678_vm0, %v3279_v51, %v3278_v34  ;;  %v3292_v57 = vrot.slane %v3098_v39, 4  ;;  %v3293_v58 = vrot.slane %v3099_v13, 3  ;;  %v3295_v62 = vrot.slane %v3100_v5, 2  ;;  %v15500_v51 = vld [vmem:[%s21356_s4 + $0x340] ss:$0 sps:$4 sm:$0x44]  }
 0x192   :  { %11301 = vmatprep.subr.bf16.mxu1 %v12576_v0  ;;  %v3282_v60 = vsel %vm681_vm1, %v3281_v20, %v3280_v47  ;;  %v3297_v61 = vrot.slane %v3101_v31, 1  ;;  %v3300_v63 = vrot.slane %v3103_v43, 7  ;;  %v3302_v55 = vrot.slane %v3104_v49, 6 }
 0x193   :  { %v3284_v1 = vsel %vm684_vm2, %v3283_v50, %v3282_v60  ;;  %v3294_v23 = vsel %vm678_vm0, %v3293_v58, %v3292_v57  ;;  %v3304_v2 = vrot.slane %v3105_v48, 5  ;;  %v3570_v40 = vrot.slane %v3090_v11, 5  ;;  %v15524_v60 = vld [vmem:[%s21356_s4 + $0x358] ss:$0 sps:$4 sm:$0x44]  }
 0x194   :  { %v3285_v4 = vsel %vm687_vm3, %v3094_v29, %v3284_v1  ;;  %v3296_v8 = vsel %vm681_vm1, %v3295_v62, %v3294_v23  ;;  %v3571_v9 = vrot.slane %v3091_v22, 4  ;;  %v3573_v6 = vrot.slane %v3092_v32, 3  ;;  %v15529_v62 = vld [vmem:[%s21356_s4 + $0x360] ss:$0 sps:$4 sm:$0x44]  }
 0x195   :  { %v3287_v44 = vsel %vm690_vm4, %v3286_v33, %v3285_v4  ;;  %v3298_v52 = vsel %vm684_vm2, %v3297_v61, %v3296_v8  ;;  %v3575_v54 = vrot.slane %v3093_v16, 2  ;;  %v3577_v7 = vrot.slane %v3094_v29, 1  ;;  %v15508_v33 = vld [vmem:[%s21356_s4 + $0x348] ss:$0 sps:$4 sm:$0x44]  }
 0x196   :  { %v3289_v17 = vsel %vm693_vm5, %v3288_v59, %v3287_v44  ;;  %v3299_v3 = vsel %vm687_vm3, %v3102_v25, %v3298_v52  ;;  %v3572_v12 = vsel %vm678_vm0, %v3571_v9, %v3570_v40  ;;  %v3580_v24 = vrot.slane %v3096_v37, 7  ;;  %v15513_v59 = vld [vmem:[%s21356_s4 + $0x350] ss:$0 sps:$4 sm:$0x44]  }
 0x197   :  { %v3291_v45 = vsel %vm696_vm6, %v3290_v53, %v3289_v17  ;;  %v3301_v10 = vsel %vm690_vm4, %v3300_v63, %v3299_v3  ;;  %v3574_v21 = vsel %vm681_vm1, %v3573_v6, %v3572_v12  ;;  %v3582_v18 = vrot.slane %v3097_v35, 6  ;;  %v15543_v23 = vld [vmem:[%s21356_s4 + $0x370] ss:$0 sps:$4 sm:$0x44]  }
 0x198   :  { %v3303_v11 = vsel %vm693_vm5, %v3302_v55, %v3301_v10  ;;  %v3576_v22 = vsel %vm684_vm2, %v3575_v54, %v3574_v21  ;;  %v3584_v56 = vrot.slane %v3098_v39, 5  ;;  %v3585_v29 = vrot.slane %v3099_v13, 4  ;;  %v15552_v40 = vld [vmem:[%s21356_s4 + $0x378] ss:$0 sps:$4 sm:$0x44]  }
 0x199   :  { %v3305_v32 = vsel %vm696_vm6, %v3304_v2, %v3303_v11  ;;  %v3578_v16 = vsel %vm687_vm3, %v3577_v7, %v3576_v22  ;;  %v3587_v41 = vrot.slane %v3100_v5, 3  ;;  %v3589_v35 = vrot.slane %v3101_v31, 2  ;;  %v15487_v31 = vld [vmem:[%s21356_s4 + $0x330] ss:$0 sps:$4 sm:$0x44]  }
 0x19a   :  { %v3367_v30 = vpack.c.b16 %v3305_v32, %v3291_v45  ;;  %v3579_v37 = vsel %vm690_vm4, %v3095_v36, %v3578_v16  ;;  %v3591_v26 = vrot.slane %v3102_v25, 1  ;;  %v3586_v13 = vsel %vm678_vm0, %v3585_v29, %v3584_v56  ;;  %v15482_v36 = vld [vmem:[%s21356_s4 + $0x328] ss:$0 sps:$4 sm:$0x44]  }
 0x19b   :  { %v3581_v39 = vsel %vm693_vm5, %v3580_v24, %v3579_v37  ;;  %v3594_v5 = vrot.slane %v3104_v49, 7  ;;  %v3596_v46 = vrot.slane %v3105_v48, 6  ;;  %v3588_v15 = vsel %vm681_vm1, %v3587_v41, %v3586_v13  ;;  %v15495_v49 = vld [vmem:[%s21356_s4 + $0x338] ss:$0 sps:$4 sm:$0x44]  }
 0x19c   :  { %11282 = vmatpush3.bf16.xpose.msra.mxu0 %v3367_v30  ;;  %v3583_v25 = vsel %vm696_vm6, %v3582_v18, %v3581_v39  ;;  %v3590_v34 = vsel %vm684_vm2, %v3589_v35, %v3588_v15  ;;  %v3106_v20 = vunpack.c.l.b16 %v15447_v42  ;;  %v3107_v48 = vunpack.c.l.b16 %v15454_v28 }
 0x19d   :  { %11283 = vmatprep.subr.bf16.mxu0 %v12576_v0  ;;  %v3592_v50 = vsel %vm687_vm3, %v3591_v26, %v3590_v34  ;;  %v3108_v47 = vunpack.c.l.b16 %v15461_v19  ;;  %v3109_v53 = vunpack.c.l.b16 %v15469_v27  ;;  %v3110_v57 = vunpack.c.l.b16 %v15476_v14 }
 0x19e   :  { %v3593_v58 = vsel %vm690_vm4, %v3103_v43, %v3592_v50  ;;  %v3111_v61 = vunpack.c.l.b16 %v15482_v36  ;;  %v3112_v63 = vunpack.c.l.b16 %v15487_v31  ;;  %v3113_v1 = vunpack.c.l.b16 %v15495_v49  ;;  %v15538_v43 = vld [vmem:[%s21356_s4 + $0x368] ss:$0 sps:$4 sm:$0x44]  }
 0x19f   :  { %v3595_v38 = vsel %vm693_vm5, %v3594_v5, %v3593_v58  ;;  %v3114_v55 = vunpack.c.l.b16 %v15500_v51  ;;  %v3115_v2 = vunpack.c.l.b16 %v15508_v33  ;;  %v3116_v4 = vunpack.c.l.b16 %v15513_v59  ;;  %v15582_v33 = vld [vmem:[%s21356_s4 + $0x380] ss:$0 sps:$4 sm:$0x44]   ;;  %v15589_v58 = vld [vmem:[%s21356_s4 + $0x388] ss:$0 sps:$4 sm:$0x44]  }
 0x1a0   :  { %v3597_v8 = vsel %vm696_vm6, %v3596_v46, %v3595_v38  ;;  %v3117_v9 = vunpack.c.l.b16 %v15524_v60  ;;  %v3118_v44 = vunpack.c.l.b16 %v15529_v62  ;;  %v3306_v52 = vrot.slane %v3106_v20, 4  ;;  %v15598_v38 = vld [vmem:[%s21356_s4 + $0x390] ss:$0 sps:$4 sm:$0x44]  }
 0x1a1   :  { %v3659_v6 = vpack.c.b16 %v3597_v8, %v3583_v25  ;;  %v3119_v54 = vunpack.c.l.b16 %v15538_v43  ;;  %v3120_v17 = vunpack.c.l.b16 %v15543_v23  ;;  %v3307_v3 = vrot.slane %v3107_v48, 3  ;;  %v15605_v8 = vld [vmem:[%s21356_s4 + $0x398] ss:$0 sps:$4 sm:$0x44]  }
 0x1a2   :  { %v3121_v12 = vunpack.c.l.b16 %v15552_v40  ;;  %v3309_v7 = vrot.slane %v3108_v47, 2  ;;  %v3311_v45 = vrot.slane %v3109_v53, 1  ;;  %v3314_v10 = vrot.slane %v3111_v61, 7  ;;  %v15611_v40 = vld [vmem:[%s21356_s4 + $0x3a0] ss:$0 sps:$4 sm:$0x44]  }
 0x1a3   :  { %11302 = vmatpush3.bf16.xpose.msra.mxu1 %v3659_v6  ;;  %v3308_v21 = vsel %vm678_vm0, %v3307_v3, %v3306_v52  ;;  %v3316_v24 = vrot.slane %v3112_v63, 6  ;;  %v3318_v42 = vrot.slane %v3113_v1, 5  ;;  %v3320_v11 = vrot.slane %v3114_v55, 4  ;;  %v15622_v52 = vld [vmem:[%s21356_s4 + $0x3b0] ss:$0 sps:$4 sm:$0x44]  }
 0x1a4   :  { %v3310_v22 = vsel %vm681_vm1, %v3309_v7, %v3308_v21  ;;  %v3321_v18 = vrot.slane %v3115_v2, 3  ;;  %v3323_v56 = vrot.slane %v3116_v4, 2  ;;  %v3325_v28 = vrot.slane %v3117_v9, 1  ;;  %11303 = vmatprep.subr.bf16.mxu1 %v12576_v0  ;;  %v15630_v3 = vld [vmem:[%s21356_s4 + $0x3b8] ss:$0 sps:$4 sm:$0x44]  }
 0x1a5   :  { %v3312_v32 = vsel %vm684_vm2, %v3311_v45, %v3310_v22  ;;  %v3328_v16 = vrot.slane %v3119_v54, 7  ;;  %v3330_v29 = vrot.slane %v3120_v17, 6  ;;  %v3332_v41 = vrot.slane %v3121_v12, 5  ;;  %v15645_v21 = vld [vmem:[%s21356_s4 + $0x3c8] ss:$0 sps:$4 sm:$0x44]  }
 0x1a6   :  { %v3313_v19 = vsel %vm687_vm3, %v3110_v57, %v3312_v32  ;;  %v3322_v30 = vsel %vm678_vm0, %v3321_v18, %v3320_v11  ;;  %v3598_v37 = vrot.slane %v3106_v20, 5  ;;  %v3599_v35 = vrot.slane %v3107_v48, 4  ;;  %v15664_v18 = vld [vmem:[%s21356_s4 + $0x3e0] ss:$0 sps:$4 sm:$0x44]  }
 0x1a7   :  { %v3315_v26 = vsel %vm690_vm4, %v3314_v10, %v3313_v19  ;;  %v3324_v27 = vsel %vm681_vm1, %v3323_v56, %v3322_v30  ;;  %v3601_v39 = vrot.slane %v3108_v47, 3  ;;  %v3603_v13 = vrot.slane %v3109_v53, 2 }
 0x1a8   :  { %v3317_v5 = vsel %vm693_vm5, %v3316_v24, %v3315_v26  ;;  %v3326_v46 = vsel %vm684_vm2, %v3325_v28, %v3324_v27  ;;  %v3600_v14 = vsel %vm678_vm0, %v3599_v35, %v3598_v37  ;;  %v3605_v15 = vrot.slane %v3110_v57, 1  ;;  %v15650_v24 = vld [vmem:[%s21356_s4 + $0x3d0] ss:$0 sps:$4 sm:$0x44]  }
 0x1a9   :  { %v3319_v31 = vsel %vm696_vm6, %v3318_v42, %v3317_v5  ;;  %v3327_v25 = vsel %vm687_vm3, %v3118_v44, %v3326_v46  ;;  %v3602_v34 = vsel %vm681_vm1, %v3601_v39, %v3600_v14  ;;  %v3608_v49 = vrot.slane %v3112_v63, 7  ;;  %v11920_v26 = vld [vmem:[%s21356_s4 + $0x3f8] ss:$0 sps:$4 sm:$0x44]  }
 0x1aa   :  { %v3329_v51 = vsel %vm690_vm4, %v3328_v16, %v3327_v25  ;;  %v3604_v20 = vsel %vm684_vm2, %v3603_v13, %v3602_v34  ;;  %v3610_v48 = vrot.slane %v3113_v1, 6  ;;  %v3612_v50 = vrot.slane %v3114_v55, 5 }
 0x1ab   :  { %v3331_v59 = vsel %vm693_vm5, %v3330_v29, %v3329_v51  ;;  %v3606_v47 = vsel %vm687_vm3, %v3605_v15, %v3604_v20  ;;  %v3613_v53 = vrot.slane %v3115_v2, 4  ;;  %v3615_v57 = vrot.slane %v3116_v4, 3  ;;  %v15673_v29 = vld [vmem:[%s21356_s4 + $0x3e8] ss:$0 sps:$4 sm:$0x44]  }
 0x1ac   :  { %v3333_v60 = vsel %vm696_vm6, %v3332_v41, %v3331_v59  ;;  %v3607_v62 = vsel %vm690_vm4, %v3111_v61, %v3606_v47  ;;  %v3617_v63 = vrot.slane %v3117_v9, 2  ;;  %v3619_v1 = vrot.slane %v3118_v44, 1  ;;  %v15617_v44 = vld [vmem:[%s21356_s4 + $0x3a8] ss:$0 sps:$4 sm:$0x44]  }
 0x1ad   :  { %v3368_v23 = vpack.c.b16 %v3333_v60, %v3319_v31  ;;  %v3609_v55 = vsel %vm693_vm5, %v3608_v49, %v3607_v62  ;;  %v3614_v2 = vsel %vm678_vm0, %v3613_v53, %v3612_v50  ;;  %v3622_v4 = vrot.slane %v3120_v17, 7  ;;  %v15678_v41 = vld [vmem:[%s21356_s4 + $0x3f0] ss:$0 sps:$4 sm:$0x44]  }
 0x1ae   :  { %v3616_v36 = vsel %vm681_vm1, %v3615_v57, %v3614_v2  ;;  %v3624_v61 = vrot.slane %v3121_v12, 6  ;;  %v3611_v6 = vsel %vm696_vm6, %v3610_v48, %v3609_v55  ;;  %v15635_v12 = vld [vmem:[%s21356_s4 + $0x3c0] ss:$0 sps:$4 sm:$0x44]   ;;  %v3122_v7 = vunpack.c.l.b16 %v15582_v33 }
 0x1af   :  { %11284 = vmatpush3.bf16.xpose.msra.mxu0 %v3368_v23  ;;  %v3618_v9 = vsel %vm684_vm2, %v3617_v63, %v3616_v36  ;;  %v3123_v45 = vunpack.c.l.b16 %v15589_v58  ;;  %v3124_v42 = vunpack.c.l.b16 %v15598_v38  ;;  %v3125_v11 = vunpack.c.l.b16 %v15605_v8 }
 0x1b0   :  { %v3620_v17 = vsel %vm687_vm3, %v3619_v1, %v3618_v9  ;;  %11285 = vmatprep.subr.bf16.mxu0 %v12576_v0  ;;  %v3126_v22 = vunpack.c.l.b16 %v15611_v40  ;;  %v3127_v56 = vunpack.c.l.b16 %v15617_v44  ;;  %v3128_v28 = vunpack.c.l.b16 %v15622_v52 }
 0x1b1   :  { %v3621_v10 = vsel %vm690_vm4, %v3119_v54, %v3620_v17  ;;  %v15659_v54 = vld [vmem:[%s21356_s4 + $0x3d8] ss:$0 sps:$4 sm:$0x44]   ;;  %v3129_v32 = vunpack.c.l.b16 %v15630_v3  ;;  %v3130_v19 = vunpack.c.l.b16 %v15635_v12  ;;  %v3131_v30 = vunpack.c.l.b16 %v15645_v21  ;;  %v15712_v12 = vld [vmem:[%s21356_s4] ss:$0 sps:$4 sm:$0x88]  }
 0x1b2   :  { %v3623_v43 = vsel %vm693_vm5, %v3622_v4, %v3621_v10  ;;  %v3132_v37 = vunpack.c.l.b16 %v15650_v24  ;;  %v3133_v27 = vunpack.c.l.b16 %v15659_v54  ;;  %v3134_v39 = vunpack.c.l.b16 %v15664_v18  ;;  %v15719_v24 = vld [vmem:[%s21356_s4 + $0x8] ss:$0 sps:$4 sm:$0x88]   ;;  %v15726_v54 = vld [vmem:[%s21356_s4 + $0x10] ss:$0 sps:$4 sm:$0x88]  }
 0x1b3   :  { %v3625_v16 = vsel %vm696_vm6, %v3624_v61, %v3623_v43  ;;  %v3334_v13 = vrot.slane %v3122_v7, 4  ;;  %v3135_v5 = vunpack.c.l.b16 %v15673_v29  ;;  %v3136_v46 = vunpack.c.l.b16 %v15678_v41  ;;  %v15734_v41 = vld [vmem:[%s21356_s4 + $0x18] ss:$0 sps:$4 sm:$0x88]  }
 0x1b4   :  { %v3660_v35 = vpack.c.b16 %v3625_v16, %v3611_v6  ;;  %v3335_v14 = vrot.slane %v3123_v45, 3  ;;  %v3337_v15 = vrot.slane %v3124_v42, 2  ;;  %v3137_v31 = vunpack.c.l.b16 %v11920_v26  ;;  %v15741_v26 = vld [vmem:[%s21356_s4 + $0x20] ss:$0 sps:$4 sm:$0x88]  }
 0x1b5   :  { %v3339_v25 = vrot.slane %v3125_v11, 1  ;;  %v3342_v34 = vrot.slane %v3127_v56, 7  ;;  %v3344_v49 = vrot.slane %v3128_v28, 6  ;;  %v3346_v20 = vrot.slane %v3129_v32, 5 }
 0x1b6   :  { %11304 = vmatpush3.bf16.xpose.msra.mxu1 %v3660_v35  ;;  %v3336_v51 = vsel %vm678_vm0, %v3335_v14, %v3334_v13  ;;  %v3348_v48 = vrot.slane %v3130_v19, 4  ;;  %v3349_v50 = vrot.slane %v3131_v30, 3  ;;  %v3351_v59 = vrot.slane %v3132_v37, 2  ;;  %v15765_v14 = vld [vmem:[%s21356_s4 + $0x40] ss:$0 sps:$4 sm:$0x88]  }
 0x1b7   :  { %11305 = vmatprep.subr.bf16.mxu1 %v12576_v0  ;;  %v3338_v33 = vsel %vm681_vm1, %v3337_v15, %v3336_v51  ;;  %v3353_v47 = vrot.slane %v3133_v27, 1  ;;  %v3356_v53 = vrot.slane %v3135_v5, 7  ;;  %v3358_v60 = vrot.slane %v3136_v46, 6 }
 0x1b8   :  { %v3340_v57 = vsel %vm684_vm2, %v3339_v25, %v3338_v33  ;;  %v3350_v58 = vsel %vm678_vm0, %v3349_v50, %v3348_v48  ;;  %v3360_v62 = vrot.slane %v3137_v31, 5  ;;  %v3626_v38 = vrot.slane %v3122_v7, 5  ;;  %v15789_v33 = vld [vmem:[%s21356_s4 + $0x58] ss:$0 sps:$4 sm:$0x88]  }
 0x1b9   :  { %v3341_v63 = vsel %vm687_vm3, %v3126_v22, %v3340_v57  ;;  %v3352_v1 = vsel %vm681_vm1, %v3351_v59, %v3350_v58  ;;  %v3627_v23 = vrot.slane %v3123_v45, 4  ;;  %v3629_v4 = vrot.slane %v3124_v42, 3  ;;  %v15794_v59 = vld [vmem:[%s21356_s4 + $0x60] ss:$0 sps:$4 sm:$0x88]  }
 0x1ba   :  { %v3343_v55 = vsel %vm690_vm4, %v3342_v34, %v3341_v63  ;;  %v3354_v2 = vsel %vm684_vm2, %v3353_v47, %v3352_v1  ;;  %v3631_v8 = vrot.slane %v3125_v11, 2  ;;  %v3633_v9 = vrot.slane %v3126_v22, 1  ;;  %v15773_v34 = vld [vmem:[%s21356_s4 + $0x48] ss:$0 sps:$4 sm:$0x88]  }
 0x1bb   :  { %v3345_v36 = vsel %vm693_vm5, %v3344_v49, %v3343_v55  ;;  %v3355_v61 = vsel %vm687_vm3, %v3134_v39, %v3354_v2  ;;  %v3628_v40 = vsel %vm678_vm0, %v3627_v23, %v3626_v38  ;;  %v3636_v3 = vrot.slane %v3128_v28, 7  ;;  %v15778_v49 = vld [vmem:[%s21356_s4 + $0x50] ss:$0 sps:$4 sm:$0x88]  }
 0x1bc   :  { %v3347_v52 = vsel %vm696_vm6, %v3346_v20, %v3345_v36  ;;  %v3357_v6 = vsel %vm690_vm4, %v3356_v53, %v3355_v61  ;;  %v3630_v17 = vsel %vm681_vm1, %v3629_v4, %v3628_v40  ;;  %v3638_v10 = vrot.slane %v3129_v32, 6  ;;  %v15808_v58 = vld [vmem:[%s21356_s4 + $0x70] ss:$0 sps:$4 sm:$0x88]   ;;  %v12570_v40 = vld [vmem:[%s21357_s0] sm:$0xff]  }
 0x1bd   :  { %v3359_v7 = vsel %vm693_vm5, %v3358_v60, %v3357_v6  ;;  %v3632_v45 = vsel %vm684_vm2, %v3631_v8, %v3630_v17  ;;  %v3640_v21 = vrot.slane %v3130_v19, 5  ;;  %v3641_v22 = vrot.slane %v3131_v30, 4  ;;  %v15817_v38 = vld [vmem:[%s21356_s4 + $0x78] ss:$0 sps:$4 sm:$0x88]  }
 0x1be   :  { %v3361_v42 = vsel %vm696_vm6, %v3360_v62, %v3359_v7  ;;  %v3634_v11 = vsel %vm687_vm3, %v3633_v9, %v3632_v45  ;;  %v3643_v43 = vrot.slane %v3132_v37, 3  ;;  %v3645_v32 = vrot.slane %v3133_v27, 2  ;;  %v15752_v27 = vld [vmem:[%s21356_s4 + $0x30] ss:$0 sps:$4 sm:$0x88]  }
 0x1bf   :  { %v3369_v18 = vpack.c.b16 %v3361_v42, %v3347_v52  ;;  %v3635_v28 = vsel %vm690_vm4, %v3127_v56, %v3634_v11  ;;  %v3647_v16 = vrot.slane %v3134_v39, 1  ;;  %v3642_v30 = vsel %vm678_vm0, %v3641_v22, %v3640_v21  ;;  %v15747_v56 = vld [vmem:[%s21356_s4 + $0x28] ss:$0 sps:$4 sm:$0x88]  }
 0x1c0   :  { %v3637_v19 = vsel %vm693_vm5, %v3636_v3, %v3635_v28  ;;  %v3650_v37 = vrot.slane %v3136_v46, 7  ;;  %v3652_v35 = vrot.slane %v3137_v31, 6  ;;  %v3644_v44 = vsel %vm681_vm1, %v3643_v43, %v3642_v30  ;;  %v15760_v46 = vld [vmem:[%s21356_s4 + $0x38] ss:$0 sps:$4 sm:$0x88]  }
 0x1c1   :  { %11286 = vmatpush3.bf16.xpose.msra.mxu0 %v3369_v18  ;;  %v3639_v39 = vsel %vm696_vm6, %v3638_v10, %v3637_v19  ;;  %v3646_v13 = vsel %vm684_vm2, %v3645_v32, %v3644_v44  ;;  %v4234_v15 = vunpack.c.l.b16 %v15712_v12  ;;  %v4235_v31 = vunpack.c.l.b16 %v15719_v24 }
 0x1c2   :  { %11311 = vmatprep.subr.bf16.mxu0 %v12576_v0  ;;  %v3648_v25 = vsel %vm687_vm3, %v3647_v16, %v3646_v13  ;;  %v4236_v51 = vunpack.c.l.b16 %v15726_v54  ;;  %v4237_v20 = vunpack.c.l.b16 %v15734_v41  ;;  %v4238_v48 = vunpack.c.l.b16 %v15741_v26 }
 0x1c3   :  { %v3649_v50 = vsel %vm690_vm4, %v3135_v5, %v3648_v25  ;;  %v4239_v47 = vunpack.c.l.b16 %v15747_v56  ;;  %v4240_v53 = vunpack.c.l.b16 %v15752_v27  ;;  %v4241_v57 = vunpack.c.l.b16 %v15760_v46  ;;  %v15803_v5 = vld [vmem:[%s21356_s4 + $0x68] ss:$0 sps:$4 sm:$0x88]  }
 0x1c4   :  { %v3651_v29 = vsel %vm693_vm5, %v3650_v37, %v3649_v50  ;;  %v4242_v60 = vunpack.c.l.b16 %v15765_v14  ;;  %v4243_v62 = vunpack.c.l.b16 %v15773_v34  ;;  %v4244_v63 = vunpack.c.l.b16 %v15778_v49  ;;  %v15852_v49 = vld [vmem:[%s21356_s4 + $0x80] ss:$0 sps:$4 sm:$0x88]  }
 0x1c5   :  { %v3653_v1 = vsel %vm696_vm6, %v3652_v35, %v3651_v29  ;;  %v4245_v23 = vunpack.c.l.b16 %v15789_v33  ;;  %v4246_v55 = vunpack.c.l.b16 %v15794_v59  ;;  %v4362_v2 = vrot.slane %v4234_v15, 6  ;;  %v15861_v33 = vld [vmem:[%s21356_s4 + $0x88] ss:$0 sps:$4 sm:$0x88]  }
 0x1c6   :  { %v3661_v4 = vpack.c.b16 %v3653_v1, %v3639_v39  ;;  %v4247_v8 = vunpack.c.l.b16 %v15803_v5  ;;  %v4248_v36 = vunpack.c.l.b16 %v15808_v58  ;;  %v4363_v61 = vrot.slane %v4235_v31, 5  ;;  %v15870_v5 = vld [vmem:[%s21356_s4 + $0x90] ss:$0 sps:$4 sm:$0x88]  }
 0x1c7   :  { %v4249_v9 = vunpack.c.l.b16 %v15817_v38  ;;  %v4365_v52 = vrot.slane %v4236_v51, 4  ;;  %v4367_v6 = vrot.slane %v4237_v20, 3  ;;  %v4369_v17 = vrot.slane %v4238_v48, 2  ;;  %v15962_v38 = vld [vmem:[%s21356_s4 + $0xf8] ss:$0 sps:$4 sm:$0x88]  }
 0x1c8   :  { %11288 = vmatmul.mubr.bf16.vlgmr.msra.gmra.mrb[8].mxu0 %v12570_v40  ;;  %11306 = vmatpush3.bf16.xpose.msra.mxu1 %v3661_v4  ;;  %v4364_v3 = vsel %vm678_vm0, %v4363_v61, %v4362_v2  ;;  %v4371_v12 = vrot.slane %v4239_v47, 1  ;;  %v4374_v7 = vrot.slane %v4241_v57, 7  ;;  %v4376_v45 = vrot.slane %v4242_v60, 6  ;;  %v15877_v2 = vld [vmem:[%s21356_s4 + $0x98] ss:$0 sps:$4 sm:$0x88]  }
 0x1c9   :  { %11327 = vmatprep.mubr.msk.bf16.mxu0 %vm12577_vm7, %v12576_v0  ;;  %v4366_v10 = vsel %vm681_vm1, %v4365_v52, %v4364_v3  ;;  %v4377_v21 = vrot.slane %v4243_v62, 5  ;;  %v4379_v24 = vrot.slane %v4244_v63, 4  ;;  %v4381_v42 = vrot.slane %v4245_v23, 3  ;;  %11331 = vmatprep.subr.bf16.mxu1 %v12576_v0  ;;  %v15906_v52 = vld [vmem:[%s21356_s4 + $0xb8] ss:$0 sps:$4 sm:$0x88]  }
 0x1ca   :  { %v4368_v11 = vsel %vm684_vm2, %v4367_v6, %v4366_v10  ;;  %v4383_v22 = vrot.slane %v4246_v55, 2  ;;  %v4385_v43 = vrot.slane %v4247_v8, 1  ;;  %v4388_v54 = vrot.slane %v4249_v9, 7  ;;  %v15911_v6 = vld [vmem:[%s21356_s4 + $0xc0] ss:$0 sps:$4 sm:$0x88]  }
 0x1cb   :  { %v4370_v18 = vsel %vm687_vm3, %v4369_v17, %v4368_v11  ;;  %v4378_v28 = vsel %vm678_vm0, %v4377_v21, %v4376_v45  ;;  %v4654_v32 = vrot.slane %v4234_v15, 7  ;;  %v4655_v16 = vrot.slane %v4235_v31, 6  ;;  %v15919_v3 = vld [vmem:[%s21356_s4 + $0xc8] ss:$0 sps:$4 sm:$0x88]  }
 0x1cc   :  { %v4372_v41 = vsel %vm690_vm4, %v4371_v12, %v4370_v18  ;;  %v4380_v19 = vsel %vm681_vm1, %v4379_v24, %v4378_v28  ;;  %v4657_v30 = vrot.slane %v4236_v51, 5  ;;  %v4659_v37 = vrot.slane %v4237_v20, 4  ;;  %v15924_v12 = vld [vmem:[%s21356_s4 + $0xd0] ss:$0 sps:$4 sm:$0x88]  }
 0x1cd   :  { %v4373_v35 = vsel %vm693_vm5, %v4240_v53, %v4372_v41  ;;  %v4382_v26 = vsel %vm684_vm2, %v4381_v42, %v4380_v19  ;;  %v4656_v44 = vsel %vm678_vm0, %v4655_v16, %v4654_v32  ;;  %v4661_v56 = vrot.slane %v4238_v48, 3  ;;  %v15933_v24 = vld [vmem:[%s21356_s4 + $0xd8] ss:$0 sps:$4 sm:$0x88]  }
 0x1ce   :  { %v4375_v27 = vsel %vm696_vm6, %v4374_v7, %v4373_v35  ;;  %v4384_v39 = vsel %vm687_vm3, %v4383_v22, %v4382_v26  ;;  %v4658_v13 = vsel %vm681_vm1, %v4657_v30, %v4656_v44  ;;  %v4663_v14 = vrot.slane %v4239_v47, 2  ;;  %v15938_v42 = vld [vmem:[%s21356_s4 + $0xe0] ss:$0 sps:$4 sm:$0x88]  }
 0x1cf   :  { %v4386_v15 = vsel %vm690_vm4, %v4385_v43, %v4384_v39  ;;  %11308 = vmatmul.mubr.bf16.vlgmr.msra.gmra.mrb[8].mxu1 %v12570_v40  ;;  %v4660_v31 = vsel %vm684_vm2, %v4659_v37, %v4658_v13  ;;  %v4665_v25 = vrot.slane %v4240_v53, 1  ;;  %v4668_v34 = vrot.slane %v4242_v60, 7  ;;  %v15896_v40 = vld [vmem:[%s21356_s4 + $0xb0] ss:$0 sps:$4 sm:$0x88]  }
 0x1d0   :  { %v4387_v51 = vsel %vm693_vm5, %v4248_v36, %v4386_v15  ;;  %v4662_v20 = vsel %vm687_vm3, %v4661_v56, %v4660_v31  ;;  %v4669_v48 = vrot.slane %v4243_v62, 6  ;;  %v4671_v50 = vrot.slane %v4244_v63, 5  ;;  %11347 = vmatprep.mubr.msk.bf16.mxu1 %vm12577_vm7, %v12576_v0  ;;  %v15949_v18 = vld [vmem:[%s21356_s4 + $0xe8] ss:$0 sps:$4 sm:$0x88]  }
 0x1d1   :  { %v4389_v59 = vsel %vm696_vm6, %v4388_v54, %v4387_v51  ;;  %v4664_v47 = vsel %vm690_vm4, %v4663_v14, %v4662_v20  ;;  %v4673_v53 = vrot.slane %v4245_v23, 4  ;;  %v4675_v29 = vrot.slane %v4246_v55, 3  ;;  %v15885_v55 = vld [vmem:[%s21356_s4 + $0xa0] ss:$0 sps:$4 sm:$0x88]  }
 0x1d2   :  { %v4586_v60 = vpack.c.b16 %v4389_v59, %v4375_v27  ;;  %v4666_v62 = vsel %vm693_vm5, %v4665_v25, %v4664_v47  ;;  %v4670_v63 = vsel %vm678_vm0, %v4669_v48, %v4668_v34  ;;  %v4677_v1 = vrot.slane %v4247_v8, 2  ;;  %v15891_v8 = vld [vmem:[%s21356_s4 + $0xa8] ss:$0 sps:$4 sm:$0x88]  }
 0x1d3   :  { %v4672_v4 = vsel %vm681_vm1, %v4671_v50, %v4670_v63  ;;  %v4679_v23 = vrot.slane %v4248_v36, 1  ;;  %v4667_v58 = vsel %vm696_vm6, %v4241_v57, %v4666_v62  ;;  %v4250_v17 = vunpack.c.l.b16 %v15852_v49  ;;  %v15954_v28 = vld [vmem:[%s21356_s4 + $0xf0] ss:$0 sps:$4 sm:$0x88]  }
 0x1d4   :  { %11312 = vmatpush3.bf16.xpose.msra.mxu0 %v4586_v60  ;;  %v4674_v61 = vsel %vm684_vm2, %v4673_v53, %v4672_v4  ;;  %v4251_v46 = vunpack.c.l.b16 %v15861_v33  ;;  %v4252_v7 = vunpack.c.l.b16 %v15870_v5  ;;  %v4253_v45 = vunpack.c.l.b16 %v15877_v2 }
 0x1d5   :  { %v4676_v36 = vsel %vm687_vm3, %v4675_v29, %v4674_v61  ;;  %11313 = vmatprep.subr.bf16.mxu0 %v12576_v0  ;;  %v4254_v10 = vunpack.c.l.b16 %v15885_v55  ;;  %v4255_v11 = vunpack.c.l.b16 %v15891_v8  ;;  %v4256_v22 = vunpack.c.l.b16 %v15896_v40 }
 0x1d6   :  { %v4678_v57 = vsel %vm690_vm4, %v4677_v1, %v4676_v36  ;;  %v4257_v43 = vunpack.c.l.b16 %v15906_v52  ;;  %v4258_v32 = vunpack.c.l.b16 %v15911_v6  ;;  %v4259_v16 = vunpack.c.l.b16 %v15919_v3  ;;  %v15991_v6 = vld [vmem:[%s21356_s4 + $0x100] ss:$0 sps:$4 sm:$0x88]  }
 0x1d7   :  { %v4680_v21 = vsel %vm693_vm5, %v4679_v23, %v4678_v57  ;;  %v4260_v41 = vunpack.c.l.b16 %v15924_v12  ;;  %v4262_v30 = vunpack.c.l.b16 %v15938_v42  ;;  %v4390_v37 = vrot.slane %v4250_v17, 6  ;;  %v15998_v12 = vld [vmem:[%s21356_s4 + $0x108] ss:$0 sps:$4 sm:$0x88]  }
 0x1d8   :  { %v4681_v54 = vsel %vm696_vm6, %v4249_v9, %v4680_v21  ;;  %v4261_v9 = vunpack.c.l.b16 %v15933_v24  ;;  %v4263_v35 = vunpack.c.l.b16 %v15949_v18  ;;  %v4264_v26 = vunpack.c.l.b16 %v15954_v28  ;;  %v16005_v24 = vld [vmem:[%s21356_s4 + $0x110] ss:$0 sps:$4 sm:$0x88]   ;;  %v16011_v18 = vld [vmem:[%s21356_s4 + $0x118] ss:$0 sps:$4 sm:$0x88]  }
 0x1d9   :  { %v4878_v19 = vpack.c.b16 %v4681_v54, %v4667_v58  ;;  %v4391_v44 = vrot.slane %v4251_v46, 5  ;;  %v4393_v56 = vrot.slane %v4252_v7, 4  ;;  %v4265_v27 = vunpack.c.l.b16 %v15962_v38 }
 0x1da   :  { %v4395_v39 = vrot.slane %v4253_v45, 3  ;;  %v4397_v13 = vrot.slane %v4254_v10, 2  ;;  %v4399_v14 = vrot.slane %v4255_v11, 1  ;;  %v4402_v31 = vrot.slane %v4257_v43, 7 }
 0x1db   :  { %11332 = vmatpush3.bf16.xpose.msra.mxu1 %v4878_v19  ;;  %v4392_v15 = vsel %vm678_vm0, %v4391_v44, %v4390_v37  ;;  %v4404_v25 = vrot.slane %v4258_v32, 6  ;;  %v4405_v34 = vrot.slane %v4259_v16, 5  ;;  %v4407_v51 = vrot.slane %v4260_v41, 4  ;;  %v16018_v19 = vld [vmem:[%s21356_s4 + $0x120] ss:$0 sps:$4 sm:$0x88]  }
 0x1dc   :  { %11333 = vmatprep.subr.bf16.mxu1 %v12576_v0  ;;  %v4394_v49 = vsel %vm681_vm1, %v4393_v56, %v4392_v15  ;;  %v4409_v20 = vrot.slane %v4261_v9, 3  ;;  %v4411_v48 = vrot.slane %v4262_v30, 2  ;;  %v4413_v59 = vrot.slane %v4263_v35, 1  ;;  %v16029_v37 = vld [vmem:[%s21356_s4 + $0x130] ss:$0 sps:$4 sm:$0x88]  }
 0x1dd   :  { %v4396_v50 = vsel %vm684_vm2, %v4395_v39, %v4394_v49  ;;  %v4406_v33 = vsel %vm678_vm0, %v4405_v34, %v4404_v25  ;;  %v4416_v47 = vrot.slane %v4265_v27, 7  ;;  %v4682_v5 = vrot.slane %v4250_v17, 7  ;;  %v16039_v44 = vld [vmem:[%s21356_s4 + $0x138] ss:$0 sps:$4 sm:$0x88]  }
 0x1de   :  { %v4398_v53 = vsel %vm687_vm3, %v4397_v13, %v4396_v50  ;;  %v4408_v29 = vsel %vm681_vm1, %v4407_v51, %v4406_v33  ;;  %v4683_v60 = vrot.slane %v4251_v46, 6  ;;  %v4685_v1 = vrot.slane %v4252_v7, 5  ;;  %v16044_v56 = vld [vmem:[%s21356_s4 + $0x140] ss:$0 sps:$4 sm:$0x88]  }
 0x1df   :  { %v4400_v62 = vsel %vm690_vm4, %v4399_v14, %v4398_v53  ;;  %v4410_v63 = vsel %vm684_vm2, %v4409_v20, %v4408_v29  ;;  %v4687_v2 = vrot.slane %v4253_v45, 4  ;;  %v4689_v61 = vrot.slane %v4254_v10, 3  ;;  %v16052_v13 = vld [vmem:[%s21356_s4 + $0x148] ss:$0 sps:$4 sm:$0x88]  }
 0x1e0   :  { %v4401_v4 = vsel %vm693_vm5, %v4256_v22, %v4400_v62  ;;  %v4412_v23 = vsel %vm687_vm3, %v4411_v48, %v4410_v63  ;;  %v4684_v55 = vsel %vm678_vm0, %v4683_v60, %v4682_v5  ;;  %v4691_v36 = vrot.slane %v4255_v11, 2  ;;  %v16057_v14 = vld [vmem:[%s21356_s4 + $0x150] ss:$0 sps:$4 sm:$0x88]  }
 0x1e1   :  { %v4403_v8 = vsel %vm696_vm6, %v4402_v31, %v4401_v4  ;;  %v4414_v40 = vsel %vm690_vm4, %v4413_v59, %v4412_v23  ;;  %v4686_v58 = vsel %vm681_vm1, %v4685_v1, %v4684_v55  ;;  %v4693_v57 = vrot.slane %v4256_v22, 1  ;;  %v16066_v49 = vld [vmem:[%s21356_s4 + $0x158] ss:$0 sps:$4 sm:$0x88]  }
 0x1e2   :  { %v4415_v17 = vsel %vm693_vm5, %v4264_v26, %v4414_v40  ;;  %v4688_v46 = vsel %vm684_vm2, %v4687_v2, %v4686_v58  ;;  %v4696_v3 = vrot.slane %v4258_v32, 7  ;;  %v4697_v10 = vrot.slane %v4259_v16, 6  ;;  %v16071_v51 = vld [vmem:[%s21356_s4 + $0x160] ss:$0 sps:$4 sm:$0x88]  }
 0x1e3   :  { %v4417_v7 = vsel %vm696_vm6, %v4416_v47, %v4415_v17  ;;  %v4690_v45 = vsel %vm687_vm3, %v4689_v61, %v4688_v46  ;;  %v4699_v21 = vrot.slane %v4260_v41, 5  ;;  %v4701_v22 = vrot.slane %v4261_v9, 4  ;;  %v16080_v59 = vld [vmem:[%s21356_s4 + $0x168] ss:$0 sps:$4 sm:$0x88]  }
 0x1e4   :  { %v4587_v42 = vpack.c.b16 %v4417_v7, %v4403_v8  ;;  %v4692_v11 = vsel %vm690_vm4, %v4691_v36, %v4690_v45  ;;  %v4703_v54 = vrot.slane %v4262_v30, 3  ;;  %v4698_v32 = vsel %vm678_vm0, %v4697_v10, %v4696_v3  ;;  %v16024_v30 = vld [vmem:[%s21356_s4 + $0x128] ss:$0 sps:$4 sm:$0x88]  }
 0x1e5   :  { %v4694_v28 = vsel %vm693_vm5, %v4693_v57, %v4692_v11  ;;  %v4705_v16 = vrot.slane %v4263_v35, 2  ;;  %v4707_v41 = vrot.slane %v4264_v26, 1  ;;  %v4700_v9 = vsel %vm681_vm1, %v4699_v21, %v4698_v32  ;;  %v16085_v47 = vld [vmem:[%s21356_s4 + $0x170] ss:$0 sps:$4 sm:$0x88]  }
 0x1e6   :  { %11314 = vmatpush3.bf16.xpose.msra.mxu0 %v4587_v42  ;;  %v4695_v35 = vsel %vm696_vm6, %v4257_v43, %v4694_v28  ;;  %v4702_v26 = vsel %vm684_vm2, %v4701_v22, %v4700_v9  ;;  %v4266_v39 = vunpack.c.l.b16 %v15991_v6  ;;  %v4267_v52 = vunpack.c.l.b16 %v15998_v12  ;;  %v16096_v62 = vld [vmem:[%s21356_s4 + $0x178] ss:$0 sps:$4 sm:$0x88]  }
 0x1e7   :  { %11315 = vmatprep.subr.bf16.mxu0 %v12576_v0  ;;  %v4704_v43 = vsel %vm687_vm3, %v4703_v54, %v4702_v26  ;;  %v4268_v15 = vunpack.c.l.b16 %v16005_v24  ;;  %v4269_v31 = vunpack.c.l.b16 %v16011_v18  ;;  %v4270_v25 = vunpack.c.l.b16 %v16018_v19 }
 0x1e8   :  { %v4706_v34 = vsel %vm690_vm4, %v4705_v16, %v4704_v43  ;;  %v4271_v20 = vunpack.c.l.b16 %v16024_v30  ;;  %v4272_v48 = vunpack.c.l.b16 %v16029_v37  ;;  %v4273_v50 = vunpack.c.l.b16 %v16039_v44 }
 0x1e9   :  { %v4708_v33 = vsel %vm693_vm5, %v4707_v41, %v4706_v34  ;;  %v4274_v53 = vunpack.c.l.b16 %v16044_v56  ;;  %v4275_v29 = vunpack.c.l.b16 %v16052_v13  ;;  %v4276_v5 = vunpack.c.l.b16 %v16057_v14  ;;  %v16126_v13 = vld [vmem:[%s21356_s4 + $0x180] ss:$0 sps:$4 sm:$0x88]   ;;  %v16133_v34 = vld [vmem:[%s21356_s4 + $0x188] ss:$0 sps:$4 sm:$0x88]  }
 0x1ea   :  { %v4709_v60 = vsel %vm696_vm6, %v4265_v27, %v4708_v33  ;;  %v4277_v63 = vunpack.c.l.b16 %v16066_v49  ;;  %v4278_v1 = vunpack.c.l.b16 %v16071_v51  ;;  %v4418_v2 = vrot.slane %v4266_v39, 6  ;;  %v16140_v33 = vld [vmem:[%s21356_s4 + $0x190] ss:$0 sps:$4 sm:$0x88]  }
 0x1eb   :  { %v4879_v4 = vpack.c.b16 %v4709_v60, %v4695_v35  ;;  %v4279_v23 = vunpack.c.l.b16 %v16080_v59  ;;  %v4280_v55 = vunpack.c.l.b16 %v16085_v47  ;;  %v4419_v61 = vrot.slane %v4267_v52, 5 }
 0x1ec   :  { %v4281_v38 = vunpack.c.l.b16 %v16096_v62  ;;  %v4421_v8 = vrot.slane %v4268_v15, 4  ;;  %v4423_v27 = vrot.slane %v4269_v31, 3  ;;  %v4425_v40 = vrot.slane %v4270_v25, 2  ;;  %v16230_v62 = vld [vmem:[%s21356_s4 + $0x1f8] ss:$0 sps:$4 sm:$0x88]  }
 0x1ed   :  { %11334 = vmatpush3.bf16.xpose.msra.mxu1 %v4879_v4  ;;  %v4420_v58 = vsel %vm678_vm0, %v4419_v61, %v4418_v2  ;;  %v4427_v36 = vrot.slane %v4271_v20, 1  ;;  %v4430_v6 = vrot.slane %v4273_v50, 7  ;;  %v4432_v17 = vrot.slane %v4274_v53, 6  ;;  %v16159_v4 = vld [vmem:[%s21356_s4 + $0x1a8] ss:$0 sps:$4 sm:$0x88]  }
 0x1ee   :  { %v4422_v46 = vsel %vm681_vm1, %v4421_v8, %v4420_v58  ;;  %v4433_v57 = vrot.slane %v4275_v29, 5  ;;  %v4435_v3 = vrot.slane %v4276_v5, 4  ;;  %v4437_v12 = vrot.slane %v4277_v63, 3  ;;  %11335 = vmatprep.subr.bf16.mxu1 %v12576_v0  ;;  %v16174_v8 = vld [vmem:[%s21356_s4 + $0x1b8] ss:$0 sps:$4 sm:$0x88]  }
 0x1ef   :  { %v4424_v7 = vsel %vm684_vm2, %v4423_v27, %v4422_v46  ;;  %v4439_v45 = vrot.slane %v4278_v1, 2  ;;  %v4441_v10 = vrot.slane %v4279_v23, 1  ;;  %v4444_v21 = vrot.slane %v4281_v38, 7  ;;  %v16179_v27 = vld [vmem:[%s21356_s4 + $0x1c0] ss:$0 sps:$4 sm:$0x88]  }
 0x1f0   :  { %v4426_v24 = vsel %vm687_vm3, %v4425_v40, %v4424_v7  ;;  %v4434_v42 = vsel %vm678_vm0, %v4433_v57, %v4432_v17  ;;  %v4710_v11 = vrot.slane %v4266_v39, 7  ;;  %v4711_v22 = vrot.slane %v4267_v52, 6  ;;  %v16187_v58 = vld [vmem:[%s21356_s4 + $0x1c8] ss:$0 sps:$4 sm:$0x88]  }
 0x1f1   :  { %v4428_v54 = vsel %vm690_vm4, %v4427_v36, %v4426_v24  ;;  %v4436_v18 = vsel %vm681_vm1, %v4435_v3, %v4434_v42  ;;  %v4713_v28 = vrot.slane %v4268_v15, 5  ;;  %v4715_v32 = vrot.slane %v4269_v31, 4  ;;  %v16192_v36 = vld [vmem:[%s21356_s4 + $0x1d0] ss:$0 sps:$4 sm:$0x88]  }
 0x1f2   :  { %v4429_v16 = vsel %vm693_vm5, %v4272_v48, %v4428_v54  ;;  %v4438_v41 = vsel %vm684_vm2, %v4437_v12, %v4436_v18  ;;  %v4712_v19 = vsel %vm678_vm0, %v4711_v22, %v4710_v11  ;;  %v4717_v9 = vrot.slane %v4270_v25, 3  ;;  %v16201_v3 = vld [vmem:[%s21356_s4 + $0x1d8] ss:$0 sps:$4 sm:$0x88]  }
 0x1f3   :  { %v4431_v30 = vsel %vm696_vm6, %v4430_v6, %v4429_v16  ;;  %v4440_v37 = vsel %vm687_vm3, %v4439_v45, %v4438_v41  ;;  %v4714_v35 = vsel %vm681_vm1, %v4713_v28, %v4712_v19  ;;  %v4719_v26 = vrot.slane %v4271_v20, 2  ;;  %v16206_v12 = vld [vmem:[%s21356_s4 + $0x1e0] ss:$0 sps:$4 sm:$0x88]  }
 0x1f4   :  { %v4442_v56 = vsel %vm690_vm4, %v4441_v10, %v4440_v37  ;;  %v4716_v39 = vsel %vm684_vm2, %v4715_v32, %v4714_v35  ;;  %v4721_v52 = vrot.slane %v4272_v48, 1  ;;  %v4724_v43 = vrot.slane %v4274_v53, 7  ;;  %v16217_v24 = vld [vmem:[%s21356_s4 + $0x1e8] ss:$0 sps:$4 sm:$0x88]  }
 0x1f5   :  { %v4443_v14 = vsel %vm693_vm5, %v4280_v55, %v4442_v56  ;;  %v4718_v15 = vsel %vm687_vm3, %v4717_v9, %v4716_v39  ;;  %v4725_v31 = vrot.slane %v4275_v29, 6  ;;  %v4727_v25 = vrot.slane %v4276_v5, 5  ;;  %v16147_v5 = vld [vmem:[%s21356_s4 + $0x198] ss:$0 sps:$4 sm:$0x88]  }
 0x1f6   :  { %v4445_v49 = vsel %vm696_vm6, %v4444_v21, %v4443_v14  ;;  %v4720_v51 = vsel %vm690_vm4, %v4719_v26, %v4718_v15  ;;  %v4729_v20 = vrot.slane %v4277_v63, 4  ;;  %v4731_v48 = vrot.slane %v4278_v1, 3  ;;  %v16153_v1 = vld [vmem:[%s21356_s4 + $0x1a0] ss:$0 sps:$4 sm:$0x88]  }
 0x1f7   :  { %v4588_v59 = vpack.c.b16 %v4445_v49, %v4431_v30  ;;  %v4722_v47 = vsel %vm693_vm5, %v4721_v52, %v4720_v51  ;;  %v4726_v53 = vsel %vm678_vm0, %v4725_v31, %v4724_v43  ;;  %v4733_v29 = vrot.slane %v4279_v23, 2  ;;  %v16164_v23 = vld [vmem:[%s21356_s4 + $0x1b0] ss:$0 sps:$4 sm:$0x88]  }
 0x1f8   :  { %v4728_v60 = vsel %vm681_vm1, %v4727_v25, %v4726_v53  ;;  %v4735_v63 = vrot.slane %v4280_v55, 1  ;;  %v4723_v55 = vsel %vm696_vm6, %v4273_v50, %v4722_v47  ;;  %v4282_v40 = vunpack.c.l.b16 %v16126_v13  ;;  %v16222_v42 = vld [vmem:[%s21356_s4 + $0x1f0] ss:$0 sps:$4 sm:$0x88]  }
 0x1f9   :  { %11316 = vmatpush3.bf16.xpose.msra.mxu0 %v4588_v59  ;;  %v4730_v2 = vsel %vm684_vm2, %v4729_v20, %v4728_v60  ;;  %v4283_v44 = vunpack.c.l.b16 %v16133_v34  ;;  %v4284_v6 = vunpack.c.l.b16 %v16140_v33  ;;  %v4285_v17 = vunpack.c.l.b16 %v16147_v5 }
 0x1fa   :  { %v4732_v61 = vsel %vm687_vm3, %v4731_v48, %v4730_v2  ;;  %11317 = vmatprep.subr.bf16.mxu0 %v12576_v0  ;;  %v4286_v46 = vunpack.c.l.b16 %v16153_v1  ;;  %v4287_v7 = vunpack.c.l.b16 %v16159_v4  ;;  %v4288_v45 = vunpack.c.l.b16 %v16164_v23 }
 0x1fb   :  { %v4734_v50 = vsel %vm690_vm4, %v4733_v29, %v4732_v61  ;;  %v4289_v10 = vunpack.c.l.b16 %v16174_v8  ;;  %v4290_v11 = vunpack.c.l.b16 %v16179_v27  ;;  %v4291_v22 = vunpack.c.l.b16 %v16187_v58  ;;  %v16259_v27 = vld [vmem:[%s21356_s4 + $0x200] ss:$0 sps:$4 sm:$0x88]  }
 0x1fc   :  { %v4736_v57 = vsel %vm693_vm5, %v4735_v63, %v4734_v50  ;;  %v4292_v54 = vunpack.c.l.b16 %v16192_v36  ;;  %v4294_v28 = vunpack.c.l.b16 %v16206_v12  ;;  %v4446_v32 = vrot.slane %v4282_v40, 6  ;;  %v16266_v36 = vld [vmem:[%s21356_s4 + $0x208] ss:$0 sps:$4 sm:$0x88]  }
 0x1fd   :  { %v4737_v21 = vsel %vm696_vm6, %v4281_v38, %v4736_v57  ;;  %v4293_v38 = vunpack.c.l.b16 %v16201_v3  ;;  %v4295_v16 = vunpack.c.l.b16 %v16217_v24  ;;  %v4296_v41 = vunpack.c.l.b16 %v16222_v42  ;;  %v16273_v3 = vld [vmem:[%s21356_s4 + $0x210] ss:$0 sps:$4 sm:$0x88]   ;;  %v16279_v24 = vld [vmem:[%s21356_s4 + $0x218] ss:$0 sps:$4 sm:$0x88]  }
 0x1fe   :  { %v4880_v18 = vpack.c.b16 %v4737_v21, %v4723_v55  ;;  %v4447_v19 = vrot.slane %v4283_v44, 5  ;;  %v4449_v9 = vrot.slane %v4284_v6, 4  ;;  %v4297_v30 = vunpack.c.l.b16 %v16230_v62 }
 0x1ff   :  { %v4451_v37 = vrot.slane %v4285_v17, 3  ;;  %v4453_v35 = vrot.slane %v4286_v46, 2  ;;  %v4455_v26 = vrot.slane %v4287_v7, 1  ;;  %v4458_v39 = vrot.slane %v4289_v10, 7 }
 0x200   :  { %11336 = vmatpush3.bf16.xpose.msra.mxu1 %v4880_v18  ;;  %v4448_v56 = vsel %vm678_vm0, %v4447_v19, %v4446_v32  ;;  %v4460_v52 = vrot.slane %v4290_v11, 6  ;;  %v4461_v43 = vrot.slane %v4291_v22, 5  ;;  %v4463_v14 = vrot.slane %v4292_v54, 4  ;;  %v16286_v18 = vld [vmem:[%s21356_s4 + $0x220] ss:$0 sps:$4 sm:$0x88]  }
 0x201   :  { %11337 = vmatprep.subr.bf16.mxu1 %v12576_v0  ;;  %v4450_v13 = vsel %vm681_vm1, %v4449_v9, %v4448_v56  ;;  %v4465_v15 = vrot.slane %v4293_v38, 3  ;;  %v4467_v31 = vrot.slane %v4294_v28, 2  ;;  %v4469_v49 = vrot.slane %v4295_v16, 1  ;;  %v16297_v32 = vld [vmem:[%s21356_s4 + $0x230] ss:$0 sps:$4 sm:$0x88]  }
 0x202   :  { %v4452_v25 = vsel %vm684_vm2, %v4451_v37, %v4450_v13  ;;  %v4462_v34 = vsel %vm678_vm0, %v4461_v43, %v4460_v52  ;;  %v4472_v51 = vrot.slane %v4297_v30, 7  ;;  %v4738_v33 = vrot.slane %v4282_v40, 7  ;;  %v16307_v19 = vld [vmem:[%s21356_s4 + $0x238] ss:$0 sps:$4 sm:$0x88]  }
 0x203   :  { %v4454_v20 = vsel %vm687_vm3, %v4453_v35, %v4452_v25  ;;  %v4464_v48 = vsel %vm681_vm1, %v4463_v14, %v4462_v34  ;;  %v4739_v59 = vrot.slane %v4283_v44, 6  ;;  %v4741_v29 = vrot.slane %v4284_v6, 5  ;;  %v16312_v9 = vld [vmem:[%s21356_s4 + $0x240] ss:$0 sps:$4 sm:$0x88]  }
 0x204   :  { %v4456_v47 = vsel %vm690_vm4, %v4455_v26, %v4454_v20  ;;  %v4466_v53 = vsel %vm684_vm2, %v4465_v15, %v4464_v48  ;;  %v4743_v5 = vrot.slane %v4285_v17, 4  ;;  %v4745_v2 = vrot.slane %v4286_v46, 3  ;;  %v16320_v35 = vld [vmem:[%s21356_s4 + $0x248] ss:$0 sps:$4 sm:$0x88]  }
 0x205   :  { %v4457_v60 = vsel %vm693_vm5, %v4288_v45, %v4456_v47  ;;  %v4468_v63 = vsel %vm687_vm3, %v4467_v31, %v4466_v53  ;;  %v4740_v1 = vsel %vm678_vm0, %v4739_v59, %v4738_v33  ;;  %v4747_v61 = vrot.slane %v4287_v7, 2  ;;  %v16325_v26 = vld [vmem:[%s21356_s4 + $0x250] ss:$0 sps:$4 sm:$0x88]  }
 0x206   :  { %v4459_v4 = vsel %vm696_vm6, %v4458_v39, %v4457_v60  ;;  %v4470_v23 = vsel %vm690_vm4, %v4469_v49, %v4468_v63  ;;  %v4742_v55 = vsel %vm681_vm1, %v4741_v29, %v4740_v1  ;;  %v4749_v50 = vrot.slane %v4288_v45, 1  ;;  %v16334_v13 = vld [vmem:[%s21356_s4 + $0x258] ss:$0 sps:$4 sm:$0x88]  }
 0x207   :  { %v4471_v40 = vsel %vm693_vm5, %v4296_v41, %v4470_v23  ;;  %v4744_v44 = vsel %vm684_vm2, %v4743_v5, %v4742_v55  ;;  %v4752_v58 = vrot.slane %v4290_v11, 7  ;;  %v4753_v46 = vrot.slane %v4291_v22, 6  ;;  %v16339_v14 = vld [vmem:[%s21356_s4 + $0x260] ss:$0 sps:$4 sm:$0x88]  }
 0x208   :  { %v4473_v6 = vsel %vm696_vm6, %v4472_v51, %v4471_v40  ;;  %v4746_v17 = vsel %vm687_vm3, %v4745_v2, %v4744_v44  ;;  %v4755_v57 = vrot.slane %v4292_v54, 5  ;;  %v4757_v45 = vrot.slane %v4293_v38, 4  ;;  %v16348_v49 = vld [vmem:[%s21356_s4 + $0x268] ss:$0 sps:$4 sm:$0x88]   ;;  %v16374_v44 = vpop.f32.mrb[0].mxu0 }
 0x209   :  { %v4589_v12 = vpack.c.b16 %v4473_v6, %v4459_v4  ;;  %v4748_v7 = vsel %vm690_vm4, %v4747_v61, %v4746_v17  ;;  %v4759_v21 = vrot.slane %v4294_v28, 3  ;;  %v4754_v11 = vsel %vm678_vm0, %v4753_v46, %v4752_v58  ;;  %v16292_v28 = vld [vmem:[%s21356_s4 + $0x228] ss:$0 sps:$4 sm:$0x88]   ;;  %v11209_v17 = vpop.f32.mrb[1].mxu0 }
 0x20a   :  { %v4750_v42 = vsel %vm693_vm5, %v4749_v50, %v4748_v7  ;;  %v4761_v22 = vrot.slane %v4295_v16, 2  ;;  %v4763_v54 = vrot.slane %v4296_v41, 1  ;;  %v4756_v38 = vsel %vm681_vm1, %v4755_v57, %v4754_v11  ;;  %v16353_v51 = vld [vmem:[%s21356_s4 + $0x270] ss:$0 sps:$4 sm:$0x88]  }
 0x20b   :  { %11318 = vmatpush3.bf16.xpose.msra.mxu0 %v4589_v12  ;;  %v4751_v16 = vsel %vm696_vm6, %v4289_v10, %v4750_v42  ;;  %v4758_v41 = vsel %vm684_vm2, %v4757_v45, %v4756_v38  ;;  %v4298_v37 = vunpack.c.l.b16 %v16259_v27  ;;  %v4299_v8 = vunpack.c.l.b16 %v16266_v36  ;;  %v16364_v47 = vld [vmem:[%s21356_s4 + $0x278] ss:$0 sps:$4 sm:$0x88]  }
 0x20c   :  { %11319 = vmatprep.subr.bf16.mxu0 %v12576_v0  ;;  %v4760_v10 = vsel %vm687_vm3, %v4759_v21, %v4758_v41  ;;  %v4300_v56 = vunpack.c.l.b16 %v16273_v3  ;;  %v4301_v39 = vunpack.c.l.b16 %v16279_v24  ;;  %v4302_v52 = vunpack.c.l.b16 %v16286_v18 }
 0x20d   :  { %v4762_v43 = vsel %vm690_vm4, %v4761_v22, %v4760_v10  ;;  %v4303_v15 = vunpack.c.l.b16 %v16292_v28  ;;  %v4304_v31 = vunpack.c.l.b16 %v16297_v32  ;;  %v4305_v25 = vunpack.c.l.b16 %v16307_v19 }
 0x20e   :  { %v4764_v34 = vsel %vm693_vm5, %v4763_v54, %v4762_v43  ;;  %v4306_v20 = vunpack.c.l.b16 %v16312_v9  ;;  %v4307_v48 = vunpack.c.l.b16 %v16320_v35  ;;  %v4308_v33 = vunpack.c.l.b16 %v16325_v26 }
 0x20f   :  { %v4765_v59 = vsel %vm696_vm6, %v4297_v30, %v4764_v34  ;;  %v4309_v53 = vunpack.c.l.b16 %v16334_v13  ;;  %v4310_v29 = vunpack.c.l.b16 %v16339_v14  ;;  %v4474_v5 = vrot.slane %v4298_v37, 6  ;;  %v16403_v14 = vld [vmem:[%s21356_s4 + $0x288] ss:$0 sps:$4 sm:$0x88]  }
 0x210   :  { %v4881_v60 = vpack.c.b16 %v4765_v59, %v4751_v16  ;;  %v4311_v63 = vunpack.c.l.b16 %v16348_v49  ;;  %v4312_v1 = vunpack.c.l.b16 %v16353_v51  ;;  %v4475_v2 = vrot.slane %v4299_v8, 5 }
 0x211   :  { %v4313_v62 = vunpack.c.l.b16 %v16364_v47  ;;  %v4477_v4 = vrot.slane %v4300_v56, 4  ;;  %v4479_v30 = vrot.slane %v4301_v39, 3  ;;  %v4481_v23 = vrot.slane %v4302_v52, 2  ;;  %v16504_v47 = vld [vmem:[%s21356_s4 + $0x2f8] ss:$0 sps:$4 sm:$0x88]  }
 0x212   :  { %11338 = vmatpush3.bf16.xpose.msra.mxu1 %v4881_v60  ;;  %v4476_v55 = vsel %vm678_vm0, %v4475_v2, %v4474_v5  ;;  %v4483_v61 = vrot.slane %v4303_v15, 1  ;;  %v4486_v27 = vrot.slane %v4305_v25, 7  ;;  %v4488_v40 = vrot.slane %v4306_v20, 6  ;;  %v16421_v2 = vld [vmem:[%s21356_s4 + $0x298] ss:$0 sps:$4 sm:$0x88]  }
 0x213   :  { %v4478_v50 = vsel %vm681_vm1, %v4477_v4, %v4476_v55  ;;  %v4489_v58 = vrot.slane %v4307_v48, 5  ;;  %v4491_v36 = vrot.slane %v4308_v33, 4  ;;  %v4493_v6 = vrot.slane %v4309_v53, 3  ;;  %11339 = vmatprep.subr.bf16.mxu1 %v12576_v0  ;;  %v16427_v4 = vld [vmem:[%s21356_s4 + $0x2a0] ss:$0 sps:$4 sm:$0x88]  }
 0x214   :  { %v4480_v46 = vsel %vm684_vm2, %v4479_v30, %v4478_v50  ;;  %v4495_v57 = vrot.slane %v4310_v29, 2  ;;  %v4497_v3 = vrot.slane %v4311_v63, 1  ;;  %v4500_v12 = vrot.slane %v4313_v62, 7  ;;  %v16461_v50 = vld [vmem:[%s21356_s4 + $0x2c8] ss:$0 sps:$4 sm:$0x88]  }
 0x215   :  { %v4482_v7 = vsel %vm687_vm3, %v4481_v23, %v4480_v46  ;;  %v4490_v45 = vsel %vm678_vm0, %v4489_v58, %v4488_v40  ;;  %v4766_v21 = vrot.slane %v4298_v37, 7  ;;  %v4767_v24 = vrot.slane %v4299_v8, 6  ;;  %v16438_v23 = vld [vmem:[%s21356_s4 + $0x2b0] ss:$0 sps:$4 sm:$0x88]  }
 0x216   :  { %v4484_v42 = vsel %vm690_vm4, %v4483_v61, %v4482_v7  ;;  %v4492_v11 = vsel %vm681_vm1, %v4491_v36, %v4490_v45  ;;  %v4769_v22 = vrot.slane %v4300_v56, 5  ;;  %v4771_v54 = vrot.slane %v4301_v39, 4  ;;  %v16396_v56 = vld [vmem:[%s21356_s4 + $0x280] ss:$0 sps:$4 sm:$0x88]  }
 0x217   :  { %v4485_v18 = vsel %vm693_vm5, %v4304_v31, %v4484_v42  ;;  %v4494_v38 = vsel %vm684_vm2, %v4493_v6, %v4492_v11  ;;  %v4768_v28 = vsel %vm678_vm0, %v4767_v24, %v4766_v21  ;;  %v4773_v32 = vrot.slane %v4302_v52, 3  ;;  %v16448_v61 = vld [vmem:[%s21356_s4 + $0x2b8] ss:$0 sps:$4 sm:$0x88]  }
 0x218   :  { %v4487_v16 = vsel %vm696_vm6, %v4486_v27, %v4485_v18  ;;  %v4496_v41 = vsel %vm687_vm3, %v4495_v57, %v4494_v38  ;;  %v4770_v9 = vsel %vm681_vm1, %v4769_v22, %v4768_v28  ;;  %v4775_v37 = vrot.slane %v4303_v15, 2  ;;  %v16405_v15 = vpop.f32.mrb[2].mxu0  ;;  %v16453_v27 = vld [vmem:[%s21356_s4 + $0x2c0] ss:$0 sps:$4 sm:$0x88]  }
 0x219   :  { %v4498_v8 = vsel %vm690_vm4, %v4497_v3, %v4496_v41  ;;  %v4772_v10 = vsel %vm684_vm2, %v4771_v54, %v4770_v9  ;;  %v4777_v35 = vrot.slane %v4304_v31, 1  ;;  %v4780_v26 = vrot.slane %v4306_v20, 7  ;;  %v16412_v20 = vld [vmem:[%s21356_s4 + $0x290] ss:$0 sps:$4 sm:$0x88]  }
 0x21a   :  { %v4499_v39 = vsel %vm693_vm5, %v4312_v1, %v4498_v8  ;;  %v4774_v52 = vsel %vm687_vm3, %v4773_v32, %v4772_v10  ;;  %v4781_v43 = vrot.slane %v4307_v48, 6  ;;  %v4783_v13 = vrot.slane %v4308_v33, 5  ;;  %v16414_v48 = vpop.f32.mrb[0].mxu1  ;;  %v16466_v58 = vld [vmem:[%s21356_s4 + $0x2d0] ss:$0 sps:$4 sm:$0x88]  }
 0x21b   :  { %v4501_v31 = vsel %vm696_vm6, %v4500_v12, %v4499_v39  ;;  %v4776_v34 = vsel %vm690_vm4, %v4775_v37, %v4774_v52  ;;  %v4785_v49 = vrot.slane %v4309_v53, 4  ;;  %v4787_v51 = vrot.slane %v4310_v29, 3  ;;  %v16475_v57 = vld [vmem:[%s21356_s4 + $0x2d8] ss:$0 sps:$4 sm:$0x88]  }
 0x21c   :  { %v4590_v33 = vpack.c.b16 %v4501_v31, %v4487_v16  ;;  %v4778_v59 = vsel %vm693_vm5, %v4777_v35, %v4776_v34  ;;  %v4782_v5 = vsel %vm678_vm0, %v4781_v43, %v4780_v26  ;;  %v4789_v60 = vrot.slane %v4311_v63, 2  ;;  %v16433_v63 = vld [vmem:[%s21356_s4 + $0x2a8] ss:$0 sps:$4 sm:$0x88]   ;;  %v11210_v26 = vpop.f32.mrb[3].mxu0 }
 0x21d   :  { %v4784_v53 = vsel %vm681_vm1, %v4783_v13, %v4782_v5  ;;  %v4791_v29 = vrot.slane %v4312_v1, 1  ;;  %v4779_v1 = vsel %vm696_vm6, %v4305_v25, %v4778_v59  ;;  %v4314_v40 = vunpack.c.l.b16 %v16396_v56  ;;  %v16480_v3 = vld [vmem:[%s21356_s4 + $0x2e0] ss:$0 sps:$4 sm:$0x88]   ;;  %v11229_v13 = vpop.f32.mrb[1].mxu1 }
 0x21e   :  { %11320 = vmatpush3.bf16.xpose.msra.mxu0 %v4590_v33  ;;  %v4786_v30 = vsel %vm684_vm2, %v4785_v49, %v4784_v53  ;;  %v4315_v19 = vunpack.c.l.b16 %v16403_v14  ;;  %v4316_v36 = vunpack.c.l.b16 %v16412_v20  ;;  %v4317_v6 = vunpack.c.l.b16 %v16421_v2  ;;  %v16491_v24 = vld [vmem:[%s21356_s4 + $0x2e8] ss:$0 sps:$4 sm:$0x88]   ;;  %v16496_v42 = vld [vmem:[%s21356_s4 + $0x2f0] ss:$0 sps:$4 sm:$0x88]  }
 0x21f   :  { %v4788_v55 = vsel %vm687_vm3, %v4787_v51, %v4786_v30  ;;  %11321 = vmatprep.subr.bf16.mxu0 %v12576_v0  ;;  %v4318_v17 = vunpack.c.l.b16 %v16427_v4  ;;  %v4319_v12 = vunpack.c.l.b16 %v16433_v63  ;;  %v4320_v7 = vunpack.c.l.b16 %v16438_v23  ;;  %v16516_v51 = vpop.f32.mrb[2].mxu1  ;;  %v16562_v26 = vld [vmem:[%s21356_s4 + $0x320] ss:$0 sps:$4 sm:$0x88]  }
 0x220   :  { %v4790_v25 = vsel %vm690_vm4, %v4789_v60, %v4788_v55  ;;  %v4321_v45 = vunpack.c.l.b16 %v16448_v61  ;;  %v4322_v11 = vunpack.c.l.b16 %v16453_v27  ;;  %v4323_v22 = vunpack.c.l.b16 %v16461_v50  ;;  %v11230_v50 = vpop.f32.mrb[3].mxu1  ;;  %v16596_v13 = vld [vmem:[%s21356_s4 + $0x348] ss:$0 sps:$4 sm:$0x88]  }
 0x221   :  { %v4792_v46 = vsel %vm693_vm5, %v4791_v29, %v4790_v25  ;;  %v4324_v54 = vunpack.c.l.b16 %v16466_v58  ;;  %v4326_v38 = vunpack.c.l.b16 %v16480_v3  ;;  %v4502_v28 = vrot.slane %v4314_v40, 6 }
 0x222   :  { %v4793_v21 = vsel %vm696_vm6, %v4313_v62, %v4792_v46  ;;  %v4325_v62 = vunpack.c.l.b16 %v16475_v57  ;;  %v4327_v32 = vunpack.c.l.b16 %v16491_v24  ;;  %v4328_v16 = vunpack.c.l.b16 %v16496_v42 }
 0x223   :  { %v4882_v18 = vpack.c.b16 %v4793_v21, %v4779_v1  ;;  %v4503_v41 = vrot.slane %v4315_v19, 5  ;;  %v4505_v9 = vrot.slane %v4316_v36, 4  ;;  %v4329_v37 = vunpack.c.l.b16 %v16504_v47 }
 0x224   :  { %v4507_v8 = vrot.slane %v4317_v6, 3  ;;  %v4509_v10 = vrot.slane %v4318_v17, 2  ;;  %v4511_v35 = vrot.slane %v4319_v12, 1  ;;  %v4514_v39 = vrot.slane %v4321_v45, 7 }
 0x225   :  { %11340 = vmatpush3.bf16.xpose.msra.mxu1 %v4882_v18  ;;  %v4504_v56 = vsel %vm678_vm0, %v4503_v41, %v4502_v28  ;;  %v4516_v52 = vrot.slane %v4322_v11, 6  ;;  %v4517_v43 = vrot.slane %v4323_v22, 5  ;;  %v4519_v31 = vrot.slane %v4324_v54, 4  ;;  %v16549_v28 = vld [vmem:[%s21356_s4 + $0x310] ss:$0 sps:$4 sm:$0x88]  }
 0x226   :  { %11341 = vmatprep.subr.bf16.mxu1 %v12576_v0  ;;  %v4506_v14 = vsel %vm681_vm1, %v4505_v9, %v4504_v56  ;;  %v4521_v34 = vrot.slane %v4325_v62, 3  ;;  %v4523_v49 = vrot.slane %v4326_v38, 2  ;;  %v4525_v59 = vrot.slane %v4327_v32, 1  ;;  %v16573_v56 = vld [vmem:[%s21356_s4 + $0x330] ss:$0 sps:$4 sm:$0x88]  }
 0x227   :  { %v4508_v20 = vsel %vm684_vm2, %v4507_v8, %v4506_v14  ;;  %v4518_v33 = vsel %vm678_vm0, %v4517_v43, %v4516_v52  ;;  %v4528_v5 = vrot.slane %v4329_v37, 7  ;;  %v4794_v53 = vrot.slane %v4314_v40, 7  ;;  %v16555_v8 = vld [vmem:[%s21356_s4 + $0x318] ss:$0 sps:$4 sm:$0x88]  }
 0x228   :  { %v4510_v60 = vsel %vm687_vm3, %v4509_v10, %v4508_v20  ;;  %v4520_v2 = vsel %vm681_vm1, %v4519_v31, %v4518_v33  ;;  %v4795_v29 = vrot.slane %v4315_v19, 6  ;;  %v4797_v63 = vrot.slane %v4316_v36, 5  ;;  %v16535_v36 = vld [vmem:[%s21356_s4 + $0x300] ss:$0 sps:$4 sm:$0x88]  }
 0x229   :  { %v4512_v4 = vsel %vm690_vm4, %v4511_v35, %v4510_v60  ;;  %v4522_v30 = vsel %vm684_vm2, %v4521_v34, %v4520_v2  ;;  %v4799_v23 = vrot.slane %v4317_v6, 4  ;;  %v4801_v25 = vrot.slane %v4318_v17, 3  ;;  %v16542_v17 = vld [vmem:[%s21356_s4 + $0x308] ss:$0 sps:$4 sm:$0x88]  }
 0x22a   :  { %v4513_v1 = vsel %vm693_vm5, %v4320_v7, %v4512_v4  ;;  %v4524_v55 = vsel %vm687_vm3, %v4523_v49, %v4522_v30  ;;  %v4796_v27 = vsel %vm678_vm0, %v4795_v29, %v4794_v53  ;;  %v4803_v19 = vrot.slane %v4319_v12, 2  ;;  %v16588_v52 = vld [vmem:[%s21356_s4 + $0x340] ss:$0 sps:$4 sm:$0x88]  }
 0x22b   :  { %v4515_v58 = vsel %vm696_vm6, %v4514_v39, %v4513_v1  ;;  %v4526_v46 = vsel %vm690_vm4, %v4525_v59, %v4524_v55  ;;  %v4798_v40 = vsel %vm681_vm1, %v4797_v63, %v4796_v27  ;;  %v4805_v3 = vrot.slane %v4320_v7, 1  ;;  %v16583_v39 = vld [vmem:[%s21356_s4 + $0x338] ss:$0 sps:$4 sm:$0x88]  }
 0x22c   :  { %v4527_v6 = vsel %vm693_vm5, %v4328_v16, %v4526_v46  ;;  %v4800_v57 = vsel %vm684_vm2, %v4799_v23, %v4798_v40  ;;  %v4808_v21 = vrot.slane %v4322_v11, 7  ;;  %v4809_v42 = vrot.slane %v4323_v22, 6  ;;  %v16601_v14 = vld [vmem:[%s21356_s4 + $0x350] ss:$0 sps:$4 sm:$0x88]  }
 0x22d   :  { %v4529_v24 = vsel %vm696_vm6, %v4528_v5, %v4527_v6  ;;  %v4802_v12 = vsel %vm687_vm3, %v4801_v25, %v4800_v57  ;;  %v4811_v18 = vrot.slane %v4324_v54, 5  ;;  %v4813_v11 = vrot.slane %v4325_v62, 4  ;;  %v16610_v33 = vld [vmem:[%s21356_s4 + $0x358] ss:$0 sps:$4 sm:$0x88]  }
 0x22e   :  { %v4591_v41 = vpack.c.b16 %v4529_v24, %v4515_v58  ;;  %v4804_v7 = vsel %vm690_vm4, %v4803_v19, %v4802_v12  ;;  %v4815_v9 = vrot.slane %v4326_v38, 3  ;;  %v4810_v22 = vsel %vm678_vm0, %v4809_v42, %v4808_v21  ;;  %v16568_v38 = vld [vmem:[%s21356_s4 + $0x328] ss:$0 sps:$4 sm:$0x88]  }
 0x22f   :  { %v4806_v10 = vsel %vm693_vm5, %v4805_v3, %v4804_v7  ;;  %v4817_v54 = vrot.slane %v4327_v32, 2  ;;  %v4819_v35 = vrot.slane %v4328_v16, 1  ;;  %v4812_v62 = vsel %vm681_vm1, %v4811_v18, %v4810_v22  ;;  %v16615_v59 = vld [vmem:[%s21356_s4 + $0x360] ss:$0 sps:$4 sm:$0x88]  }
 0x230   :  { %11322 = vmatpush3.bf16.xpose.msra.mxu0 %v4591_v41  ;;  %v4807_v32 = vsel %vm696_vm6, %v4321_v45, %v4806_v10  ;;  %v4814_v16 = vsel %vm684_vm2, %v4813_v11, %v4812_v62  ;;  %v4330_v43 = vunpack.c.l.b16 %v16535_v36  ;;  %v4331_v61 = vunpack.c.l.b16 %v16542_v17  ;;  %v16624_v29 = vld [vmem:[%s21356_s4 + $0x368] ss:$0 sps:$4 sm:$0x88]   ;;  %v16629_v4 = vld [vmem:[%s21356_s4 + $0x370] ss:$0 sps:$4 sm:$0x88]  }
 0x231   :  { %11323 = vmatprep.subr.bf16.mxu0 %v12576_v0  ;;  %v4816_v45 = vsel %vm687_vm3, %v4815_v9, %v4814_v16  ;;  %v4332_v31 = vunpack.c.l.b16 %v16549_v28  ;;  %v4333_v34 = vunpack.c.l.b16 %v16555_v8  ;;  %v4334_v49 = vunpack.c.l.b16 %v16562_v26  ;;  %v16640_v55 = vld [vmem:[%s21356_s4 + $0x378] ss:$0 sps:$4 sm:$0x88]  }
 0x232   :  { %v4818_v20 = vsel %vm690_vm4, %v4817_v54, %v4816_v45  ;;  %v4335_v5 = vunpack.c.l.b16 %v16568_v38  ;;  %v4336_v60 = vunpack.c.l.b16 %v16573_v56  ;;  %v4337_v2 = vunpack.c.l.b16 %v16583_v39 }
 0x233   :  { %v4820_v53 = vsel %vm693_vm5, %v4819_v35, %v4818_v20  ;;  %v4338_v30 = vunpack.c.l.b16 %v16588_v52  ;;  %v4339_v63 = vunpack.c.l.b16 %v16596_v13  ;;  %v4340_v23 = vunpack.c.l.b16 %v16601_v14  ;;  %v16670_v20 = vld [vmem:[%s21356_s4 + $0x380] ss:$0 sps:$4 sm:$0x88]  }
 0x234   :  { %v4821_v1 = vsel %vm696_vm6, %v4329_v37, %v4820_v53  ;;  %v4341_v27 = vunpack.c.l.b16 %v16610_v33  ;;  %v4342_v25 = vunpack.c.l.b16 %v16615_v59  ;;  %v4530_v50 = vrot.slane %v4330_v43, 6 }
 0x235   :  { %v4883_v58 = vpack.c.b16 %v4821_v1, %v4807_v32  ;;  %v4343_v46 = vunpack.c.l.b16 %v16624_v29  ;;  %v4344_v40 = vunpack.c.l.b16 %v16629_v4  ;;  %v4531_v19 = vrot.slane %v4331_v61, 5  ;;  %v16684_v1 = vld [vmem:[%s21356_s4 + $0x390] ss:$0 sps:$4 sm:$0x88]  }
 0x236   :  { %v4345_v47 = vunpack.c.l.b16 %v16640_v55  ;;  %v4533_v36 = vrot.slane %v4332_v31, 4  ;;  %v4535_v37 = vrot.slane %v4333_v34, 3  ;;  %v4537_v6 = vrot.slane %v4334_v49, 2  ;;  %v16774_v55 = vld [vmem:[%s21356_s4 + $0x3f8] ss:$0 sps:$4 sm:$0x88]  }
 0x237   :  { %11342 = vmatpush3.bf16.xpose.msra.mxu1 %v4883_v58  ;;  %v4532_v57 = vsel %vm678_vm0, %v4531_v19, %v4530_v50  ;;  %v4539_v3 = vrot.slane %v4335_v5, 1  ;;  %v4542_v21 = vrot.slane %v4337_v2, 7  ;;  %v4544_v17 = vrot.slane %v4338_v30, 6  ;;  %v16691_v19 = vld [vmem:[%s21356_s4 + $0x398] ss:$0 sps:$4 sm:$0x88]  }
 0x238   :  { %v4534_v24 = vsel %vm681_vm1, %v4533_v36, %v4532_v57  ;;  %v4545_v12 = vrot.slane %v4339_v63, 5  ;;  %v4547_v42 = vrot.slane %v4340_v23, 4  ;;  %v4549_v18 = vrot.slane %v4341_v27, 3  ;;  %11343 = vmatprep.subr.bf16.mxu1 %v12576_v0 }
 0x239   :  { %v4536_v28 = vsel %vm684_vm2, %v4535_v37, %v4534_v24  ;;  %v4551_v41 = vrot.slane %v4342_v25, 2  ;;  %v4553_v7 = vrot.slane %v4343_v46, 1  ;;  %v4556_v11 = vrot.slane %v4345_v47, 7  ;;  %v16731_v24 = vld [vmem:[%s21356_s4 + $0x3c8] ss:$0 sps:$4 sm:$0x88]  }
 0x23a   :  { %v4538_v9 = vsel %vm687_vm3, %v4537_v6, %v4536_v28  ;;  %v4546_v8 = vsel %vm678_vm0, %v4545_v12, %v4544_v17  ;;  %v4822_v10 = vrot.slane %v4330_v43, 7  ;;  %v4823_v22 = vrot.slane %v4331_v61, 6  ;;  %v16708_v6 = vld [vmem:[%s21356_s4 + $0x3b0] ss:$0 sps:$4 sm:$0x88]  }
 0x23b   :  { %v4540_v54 = vsel %vm690_vm4, %v4539_v3, %v4538_v9  ;;  %v4548_v35 = vsel %vm681_vm1, %v4547_v42, %v4546_v8  ;;  %v4825_v26 = vrot.slane %v4332_v31, 5  ;;  %v4827_v62 = vrot.slane %v4333_v34, 4  ;;  %v16718_v3 = vld [vmem:[%s21356_s4 + $0x3b8] ss:$0 sps:$4 sm:$0x88]  }
 0x23c   :  { %v4541_v38 = vsel %vm693_vm5, %v4336_v60, %v4540_v54  ;;  %v4550_v56 = vsel %vm684_vm2, %v4549_v18, %v4548_v35  ;;  %v4824_v32 = vsel %vm678_vm0, %v4823_v22, %v4822_v10  ;;  %v4829_v16 = vrot.slane %v4334_v49, 3  ;;  %v16736_v12 = vld [vmem:[%s21356_s4 + $0x3d0] ss:$0 sps:$4 sm:$0x88]  }
 0x23d   :  { %v4543_v52 = vsel %vm696_vm6, %v4542_v21, %v4541_v38  ;;  %v4552_v45 = vsel %vm687_vm3, %v4551_v41, %v4550_v56  ;;  %v4826_v43 = vsel %vm681_vm1, %v4825_v26, %v4824_v32  ;;  %v4831_v61 = vrot.slane %v4335_v5, 2  ;;  %v16677_v5 = vld [vmem:[%s21356_s4 + $0x388] ss:$0 sps:$4 sm:$0x88]  }
 0x23e   :  { %v4554_v13 = vsel %vm690_vm4, %v4553_v7, %v4552_v45  ;;  %v4828_v14 = vsel %vm684_vm2, %v4827_v62, %v4826_v43  ;;  %v4833_v31 = vrot.slane %v4336_v60, 1  ;;  %v4836_v34 = vrot.slane %v4338_v30, 7  ;;  %v16723_v21 = vld [vmem:[%s21356_s4 + $0x3c0] ss:$0 sps:$4 sm:$0x88]  }
 0x23f   :  { %v4555_v49 = vsel %vm693_vm5, %v4344_v40, %v4554_v13  ;;  %v4830_v33 = vsel %vm687_vm3, %v4829_v16, %v4828_v14  ;;  %v4837_v59 = vrot.slane %v4339_v63, 6  ;;  %v4839_v53 = vrot.slane %v4340_v23, 5  ;;  %v16745_v7 = vld [vmem:[%s21356_s4 + $0x3d8] ss:$0 sps:$4 sm:$0x88]  }
 0x240   :  { %v4557_v29 = vsel %vm696_vm6, %v4556_v11, %v4555_v49  ;;  %v4832_v60 = vsel %vm690_vm4, %v4831_v61, %v4830_v33  ;;  %v4841_v4 = vrot.slane %v4341_v27, 4  ;;  %v4843_v30 = vrot.slane %v4342_v25, 3  ;;  %v16697_v25 = vld [vmem:[%s21356_s4 + $0x3a0] ss:$0 sps:$4 sm:$0x88]  }
 0x241   :  { %v4592_v50 = vpack.c.b16 %v4557_v29, %v4543_v52  ;;  %v4834_v63 = vsel %vm693_vm5, %v4833_v31, %v4832_v60  ;;  %v4838_v23 = vsel %vm678_vm0, %v4837_v59, %v4836_v34  ;;  %v4845_v58 = vrot.slane %v4343_v46, 2  ;;  %v16703_v46 = vld [vmem:[%s21356_s4 + $0x3a8] ss:$0 sps:$4 sm:$0x88]  }
 0x242   :  { %v4840_v36 = vsel %vm681_vm1, %v4839_v53, %v4838_v23  ;;  %v4847_v27 = vrot.slane %v4344_v40, 1  ;;  %v4835_v40 = vsel %vm696_vm6, %v4337_v2, %v4834_v63  ;;  %v4346_v17 = vunpack.c.l.b16 %v16670_v20  ;;  %v16750_v11 = vld [vmem:[%s21356_s4 + $0x3e0] ss:$0 sps:$4 sm:$0x88]  }
 0x243   :  { %11324 = vmatpush3.bf16.xpose.msra.mxu0 %v4592_v50  ;;  %v4842_v37 = vsel %vm684_vm2, %v4841_v4, %v4840_v36  ;;  %v4347_v39 = vunpack.c.l.b16 %v16677_v5  ;;  %v4348_v42 = vunpack.c.l.b16 %v16684_v1  ;;  %v4349_v18 = vunpack.c.l.b16 %v16691_v19  ;;  %v16761_v54 = vld [vmem:[%s21356_s4 + $0x3e8] ss:$0 sps:$4 sm:$0x88]   ;;  %v16766_v35 = vld [vmem:[%s21356_s4 + $0x3f0] ss:$0 sps:$4 sm:$0x88]  }
 0x244   :  { %v4844_v57 = vsel %vm687_vm3, %v4843_v30, %v4842_v37  ;;  %11325 = vmatprep.subr.bf16.mxu0 %v12576_v0  ;;  %v4350_v28 = vunpack.c.l.b16 %v16697_v25  ;;  %v4351_v9 = vunpack.c.l.b16 %v16703_v46  ;;  %v4352_v8 = vunpack.c.l.b16 %v16708_v6 }
 0x245   :  { %v4846_v2 = vsel %vm690_vm4, %v4845_v58, %v4844_v57  ;;  %v4353_v10 = vunpack.c.l.b16 %v16718_v3  ;;  %v4354_v26 = vunpack.c.l.b16 %v16723_v21  ;;  %v4355_v62 = vunpack.c.l.b16 %v16731_v24  ;;  %v16803_v24 = vld [vmem:[%s21356_s4 + $0x4] ss:$0 sps:$4 sm:$0x11]  }
 0x246   :  { %v4848_v41 = vsel %vm693_vm5, %v4847_v27, %v4846_v2  ;;  %v4356_v38 = vunpack.c.l.b16 %v16736_v12  ;;  %v4358_v32 = vunpack.c.l.b16 %v16750_v11  ;;  %v4558_v16 = vrot.slane %v4346_v17, 6 }
 0x247   :  { %v4849_v22 = vsel %vm696_vm6, %v4345_v47, %v4848_v41  ;;  %v4357_v47 = vunpack.c.l.b16 %v16745_v7  ;;  %v4359_v52 = vunpack.c.l.b16 %v16761_v54  ;;  %v4360_v45 = vunpack.c.l.b16 %v16766_v35  ;;  %v16817_v54 = vld [vmem:[%s21356_s4 + $0x14] ss:$0 sps:$4 sm:$0x11]  }
 0x248   :  { %v4884_v56 = vpack.c.b16 %v4849_v22, %v4835_v40  ;;  %v4559_v43 = vrot.slane %v4347_v39, 5  ;;  %v4561_v61 = vrot.slane %v4348_v42, 4  ;;  %v4361_v13 = vunpack.c.l.b16 %v16774_v55  ;;  %v12571_v55 = vld [vmem:[%s21357_s0] sm:$0xff]  }
 0x249   :  { %v4563_v14 = vrot.slane %v4349_v18, 3  ;;  %v4565_v31 = vrot.slane %v4350_v28, 2  ;;  %v4567_v34 = vrot.slane %v4351_v9, 1  ;;  %v4570_v49 = vrot.slane %v4353_v10, 7 }
 0x24a   :  { %11344 = vmatpush3.bf16.xpose.msra.mxu1 %v4884_v56  ;;  %v4560_v20 = vsel %vm678_vm0, %v4559_v43, %v4558_v16  ;;  %v4572_v33 = vrot.slane %v4354_v26, 6  ;;  %v4573_v59 = vrot.slane %v4355_v62, 5  ;;  %v4575_v5 = vrot.slane %v4356_v38, 4  ;;  %v16823_v16 = vld [vmem:[%s21356_s4 + $0x1c] ss:$0 sps:$4 sm:$0x11]  }
 0x24b   :  { %11345 = vmatprep.subr.bf16.mxu1 %v12576_v0  ;;  %v4562_v53 = vsel %vm681_vm1, %v4561_v61, %v4560_v20  ;;  %v4577_v29 = vrot.slane %v4357_v47, 3  ;;  %v4579_v60 = vrot.slane %v4358_v32, 2  ;;  %v4581_v1 = vrot.slane %v4359_v52, 1  ;;  %v16856_v20 = vld [vmem:[%s21356_s4 + $0x44] ss:$0 sps:$4 sm:$0x11]  }
 0x24c   :  { %v4564_v4 = vsel %vm684_vm2, %v4563_v14, %v4562_v53  ;;  %v4574_v30 = vsel %vm678_vm0, %v4573_v59, %v4572_v33  ;;  %v4584_v50 = vrot.slane %v4361_v13, 7  ;;  %v4850_v58 = vrot.slane %v4346_v17, 7  ;;  %v16830_v14 = vld [vmem:[%s21356_s4 + $0x24] ss:$0 sps:$4 sm:$0x11]  }
 0x24d   :  { %v4566_v63 = vsel %vm687_vm3, %v4565_v31, %v4564_v4  ;;  %v4576_v23 = vsel %vm681_vm1, %v4575_v5, %v4574_v30  ;;  %v4851_v19 = vrot.slane %v4347_v39, 6  ;;  %v4853_v25 = vrot.slane %v4348_v42, 5  ;;  %v16841_v31 = vld [vmem:[%s21356_s4 + $0x34] ss:$0 sps:$4 sm:$0x11]  }
 0x24e   :  { %v4568_v36 = vsel %vm690_vm4, %v4567_v34, %v4566_v63  ;;  %v4578_v27 = vsel %vm684_vm2, %v4577_v29, %v4576_v23  ;;  %v4855_v37 = vrot.slane %v4349_v18, 4  ;;  %v4857_v57 = vrot.slane %v4350_v28, 3  ;;  %v16810_v28 = vld [vmem:[%s21356_s4 + $0xc] ss:$0 sps:$4 sm:$0x11]  }
 0x24f   :  { %v4569_v46 = vsel %vm693_vm5, %v4352_v8, %v4568_v36  ;;  %v4580_v6 = vsel %vm687_vm3, %v4579_v60, %v4578_v27  ;;  %v4852_v40 = vsel %vm678_vm0, %v4851_v19, %v4850_v58  ;;  %v4859_v39 = vrot.slane %v4351_v9, 2  ;;  %v16851_v34 = vld [vmem:[%s21356_s4 + $0x3c] ss:$0 sps:$4 sm:$0x11]  }
 0x250   :  { %v4571_v21 = vsel %vm696_vm6, %v4570_v49, %v4569_v46  ;;  %v4582_v2 = vsel %vm690_vm4, %v4581_v1, %v4580_v6  ;;  %v4854_v17 = vsel %vm681_vm1, %v4853_v25, %v4852_v40  ;;  %v4861_v18 = vrot.slane %v4352_v8, 1  ;;  %v16864_v33 = vld [vmem:[%s21356_s4 + $0x4c] ss:$0 sps:$4 sm:$0x11]  }
 0x251   :  { %v4583_v12 = vsel %vm693_vm5, %v4360_v45, %v4582_v2  ;;  %v4856_v42 = vsel %vm684_vm2, %v4855_v37, %v4854_v17  ;;  %v4864_v41 = vrot.slane %v4354_v26, 7  ;;  %v4865_v9 = vrot.slane %v4355_v62, 6  ;;  %v16869_v59 = vld [vmem:[%s21356_s4 + $0x54] ss:$0 sps:$4 sm:$0x11]  }
 0x252   :  { %v4585_v7 = vsel %vm696_vm6, %v4584_v50, %v4583_v12  ;;  %v4858_v11 = vsel %vm687_vm3, %v4857_v57, %v4856_v42  ;;  %v4867_v22 = vrot.slane %v4356_v38, 5  ;;  %v4869_v26 = vrot.slane %v4357_v47, 4  ;;  %v16878_v4 = vld [vmem:[%s21356_s4 + $0x5c] ss:$0 sps:$4 sm:$0x11]  }
 0x253   :  { %v4593_v35 = vpack.c.b16 %v4585_v7, %v4571_v21  ;;  %v4860_v8 = vsel %vm690_vm4, %v4859_v39, %v4858_v11  ;;  %v4871_v56 = vrot.slane %v4358_v32, 3  ;;  %v4866_v62 = vsel %vm678_vm0, %v4865_v9, %v4864_v41  ;;  %v16836_v32 = vld [vmem:[%s21356_s4 + $0x2c] ss:$0 sps:$4 sm:$0x11]  }
 0x254   :  { %v4862_v43 = vsel %vm693_vm5, %v4861_v18, %v4860_v8  ;;  %v4873_v38 = vrot.slane %v4359_v52, 2  ;;  %v4875_v61 = vrot.slane %v4360_v45, 1  ;;  %v4868_v47 = vsel %vm681_vm1, %v4867_v22, %v4866_v62  ;;  %v16883_v30 = vld [vmem:[%s21356_s4 + $0x64] ss:$0 sps:$4 sm:$0x11]  }
 0x255   :  { %11326 = vmatpush3.bf16.xpose.msra.mxu0 %v4593_v35  ;;  %v4863_v52 = vsel %vm696_vm6, %v4353_v10, %v4862_v43  ;;  %v4870_v45 = vsel %vm684_vm2, %v4869_v26, %v4868_v47  ;;  %v5458_v49 = vunpack.c.l.b16 %v16803_v24  ;;  %v5459_v3 = vunpack.c.l.b16 %v16810_v28  ;;  %v16892_v58 = vld [vmem:[%s21356_s4 + $0x6c] ss:$0 sps:$4 sm:$0x11]   ;;  %v16897_v19 = vld [vmem:[%s21356_s4 + $0x74] ss:$0 sps:$4 sm:$0x11]  }
 0x256   :  { %11351 = vmatprep.subr.bf16.mxu0 %v12576_v0  ;;  %v4872_v10 = vsel %vm687_vm3, %v4871_v56, %v4870_v45  ;;  %v5460_v53 = vunpack.c.l.b16 %v16817_v54  ;;  %v5461_v5 = vunpack.c.l.b16 %v16823_v16  ;;  %v5462_v29 = vunpack.c.l.b16 %v16830_v14  ;;  %v16908_v46 = vld [vmem:[%s21356_s4 + $0x7c] ss:$0 sps:$4 sm:$0x11]  }
 0x257   :  { %v4874_v60 = vsel %vm690_vm4, %v4873_v38, %v4872_v10  ;;  %v5463_v1 = vunpack.c.l.b16 %v16836_v32  ;;  %v5464_v50 = vunpack.c.l.b16 %v16841_v31  ;;  %v5465_v63 = vunpack.c.l.b16 %v16851_v34 }
 0x258   :  { %v4876_v23 = vsel %vm693_vm5, %v4875_v61, %v4874_v60  ;;  %v5466_v36 = vunpack.c.l.b16 %v16856_v20  ;;  %v5467_v27 = vunpack.c.l.b16 %v16864_v33  ;;  %v5468_v25 = vunpack.c.l.b16 %v16869_v59 }
 0x259   :  { %v4877_v37 = vsel %vm696_vm6, %v4361_v13, %v4876_v23  ;;  %v5469_v6 = vunpack.c.l.b16 %v16878_v4  ;;  %v5470_v40 = vunpack.c.l.b16 %v16883_v30  ;;  %v5586_v57 = vrot.slane %v5459_v3, 7 }
 0x25a   :  { %v4885_v21 = vpack.c.b16 %v4877_v37, %v4863_v52  ;;  %v5471_v2 = vunpack.c.l.b16 %v16892_v58  ;;  %v5472_v17 = vunpack.c.l.b16 %v16897_v19  ;;  %v5588_v39 = vrot.slane %v5460_v53, 6  ;;  %v16962_v37 = vld [vmem:[%s21356_s4 + $0x94] ss:$0 sps:$4 sm:$0x11]  }
 0x25b   :  { %v5473_v13 = vunpack.c.l.b16 %v16908_v46  ;;  %v5587_v24 = vsel %vm678_vm0, %v5586_v57, %v5458_v49  ;;  %v5590_v12 = vrot.slane %v5461_v5, 5  ;;  %v5592_v42 = vrot.slane %v5462_v29, 4 }
 0x25c   :  { %11328 = vmatmul.mubr.bf16.vlgmr.msra.gmra.mrb[12].mxu0 %v12571_v55  ;;  %11346 = vmatpush3.bf16.xpose.msra.mxu1 %v4885_v21  ;;  %v5589_v18 = vsel %vm681_vm1, %v5588_v39, %v5587_v24  ;;  %v5594_v41 = vrot.slane %v5463_v1, 3  ;;  %v5596_v28 = vrot.slane %v5464_v50, 2  ;;  %v5598_v7 = vrot.slane %v5465_v63, 1  ;;  %v16969_v39 = vld [vmem:[%s21356_s4 + $0x9c] ss:$0 sps:$4 sm:$0x11]  }
 0x25d   :  { %11367 = vmatprep.mubr.msk.bf16.mxu0 %vm12577_vm7, %v12576_v0  ;;  %v5591_v11 = vsel %vm684_vm2, %v5590_v12, %v5589_v18  ;;  %v5600_v9 = vrot.slane %v5467_v27, 7  ;;  %v5602_v22 = vrot.slane %v5468_v25, 6  ;;  %v5604_v54 = vrot.slane %v5469_v6, 5  ;;  %11371 = vmatprep.subr.bf16.mxu1 %v12576_v0  ;;  %v16988_v12 = vld [vmem:[%s21356_s4 + $0xb4] ss:$0 sps:$4 sm:$0x11]  }
 0x25e   :  { %v5593_v35 = vsel %vm687_vm3, %v5592_v42, %v5591_v11  ;;  %v5606_v8 = vrot.slane %v5470_v40, 4  ;;  %v5608_v26 = vrot.slane %v5471_v2, 3  ;;  %v5610_v56 = vrot.slane %v5472_v17, 2  ;;  %v17001_v42 = vld [vmem:[%s21356_s4 + $0xc4] ss:$0 sps:$4 sm:$0x11]  }
 0x25f   :  { %v5595_v16 = vsel %vm690_vm4, %v5594_v41, %v5593_v35  ;;  %v5601_v43 = vsel %vm678_vm0, %v5600_v9, %v5466_v36  ;;  %v5612_v62 = vrot.slane %v5473_v13, 1  ;;  %v5878_v38 = vrot.slane %v5458_v49, 1  ;;  %v17014_v11 = vld [vmem:[%s21356_s4 + $0xd4] ss:$0 sps:$4 sm:$0x11]  }
 0x260   :  { %v5597_v61 = vsel %vm693_vm5, %v5596_v28, %v5595_v16  ;;  %v5603_v14 = vsel %vm681_vm1, %v5602_v22, %v5601_v43  ;;  %v5880_v47 = vrot.slane %v5460_v53, 7  ;;  %v5882_v32 = vrot.slane %v5461_v5, 6 }
 0x261   :  { %v5599_v31 = vsel %vm696_vm6, %v5598_v7, %v5597_v61  ;;  %v5605_v52 = vsel %vm684_vm2, %v5604_v54, %v5603_v14  ;;  %v5879_v45 = vsel %vm678_vm0, %v5459_v3, %v5878_v38  ;;  %v5884_v34 = vrot.slane %v5462_v29, 5  ;;  %v16945_v29 = vld [vmem:[%s21356_s4 + $0x84] ss:$0 sps:$4 sm:$0x11]  }
 0x262   :  { %v5607_v20 = vsel %vm687_vm3, %v5606_v8, %v5605_v52  ;;  %v5881_v10 = vsel %vm681_vm1, %v5880_v47, %v5879_v45  ;;  %v5886_v59 = vrot.slane %v5463_v1, 4  ;;  %v5888_v60 = vrot.slane %v5464_v50, 3  ;;  %v16950_v1 = vld [vmem:[%s21356_s4 + $0x8c] ss:$0 sps:$4 sm:$0x11]  }
 0x263   :  { %v5609_v49 = vsel %vm690_vm4, %v5608_v26, %v5607_v20  ;;  %11348 = vmatmul.mubr.bf16.vlgmr.msra.gmra.mrb[12].mxu1 %v12571_v55  ;;  %v5883_v4 = vsel %vm684_vm2, %v5882_v32, %v5881_v10  ;;  %v5890_v53 = vrot.slane %v5465_v63, 2  ;;  %v5892_v5 = vrot.slane %v5466_v36, 1  ;;  %v16977_v55 = vld [vmem:[%s21356_s4 + $0xa4] ss:$0 sps:$4 sm:$0x11]  }
 0x264   :  { %v5611_v30 = vsel %vm693_vm5, %v5610_v56, %v5609_v49  ;;  %v5885_v23 = vsel %vm687_vm3, %v5884_v34, %v5883_v4  ;;  %v5894_v58 = vrot.slane %v5468_v25, 7  ;;  %v5896_v3 = vrot.slane %v5469_v6, 6  ;;  %11387 = vmatprep.mubr.msk.bf16.mxu1 %vm12577_vm7, %v12576_v0  ;;  %v17009_v7 = vld [vmem:[%s21356_s4 + $0xcc] ss:$0 sps:$4 sm:$0x11]  }
 0x265   :  { %v5613_v50 = vsel %vm696_vm6, %v5612_v62, %v5611_v30  ;;  %v5887_v63 = vsel %vm690_vm4, %v5886_v59, %v5885_v23  ;;  %v5893_v36 = vsel %vm678_vm0, %v5467_v27, %v5892_v5  ;;  %v5898_v25 = vrot.slane %v5470_v40, 5  ;;  %v17023_v8 = vld [vmem:[%s21356_s4 + $0xdc] ss:$0 sps:$4 sm:$0x11]  }
 0x266   :  { %v5810_v46 = vpack.c.b16 %v5613_v50, %v5599_v31  ;;  %v5889_v6 = vsel %vm693_vm5, %v5888_v60, %v5887_v63  ;;  %v5895_v57 = vsel %vm681_vm1, %v5894_v58, %v5893_v36  ;;  %v5900_v21 = vrot.slane %v5471_v2, 4  ;;  %v16983_v2 = vld [vmem:[%s21356_s4 + $0xac] ss:$0 sps:$4 sm:$0x11]  }
 0x267   :  { %v5897_v33 = vsel %vm684_vm2, %v5896_v3, %v5895_v57  ;;  %v5902_v27 = vrot.slane %v5472_v17, 3  ;;  %v5904_v40 = vrot.slane %v5473_v13, 2  ;;  %v5891_v19 = vsel %vm696_vm6, %v5890_v53, %v5889_v6  ;;  %v16996_v13 = vld [vmem:[%s21356_s4 + $0xbc] ss:$0 sps:$4 sm:$0x11]  }
 0x268   :  { %11352 = vmatpush3.bf16.xpose.msra.mxu0 %v5810_v46  ;;  %v5899_v24 = vsel %vm687_vm3, %v5898_v25, %v5897_v33  ;;  %v5475_v18 = vunpack.c.l.b16 %v16950_v1  ;;  %v5476_v41 = vunpack.c.l.b16 %v16962_v37  ;;  %v5474_v9 = vunpack.c.l.b16 %v16945_v29  ;;  %v17028_v26 = vld [vmem:[%s21356_s4 + $0xe4] ss:$0 sps:$4 sm:$0x11]   ;;  %v17036_v38 = vld [vmem:[%s21356_s4 + $0xec] ss:$0 sps:$4 sm:$0x11]  }
 0x269   :  { %v5901_v17 = vsel %vm690_vm4, %v5900_v21, %v5899_v24  ;;  %11353 = vmatprep.subr.bf16.mxu0 %v12576_v0  ;;  %v5477_v22 = vunpack.c.l.b16 %v16969_v39  ;;  %v5478_v54 = vunpack.c.l.b16 %v16977_v55  ;;  %v5479_v56 = vunpack.c.l.b16 %v16983_v2  ;;  %v17041_v61 = vld [vmem:[%s21356_s4 + $0xf4] ss:$0 sps:$4 sm:$0x11]   ;;  %v17049_v31 = vld [vmem:[%s21356_s4 + $0xfc] ss:$0 sps:$4 sm:$0x11]  }
 0x26a   :  { %v5903_v28 = vsel %vm693_vm5, %v5902_v27, %v5901_v17  ;;  %v5480_v16 = vunpack.c.l.b16 %v16988_v12  ;;  %v5481_v43 = vunpack.c.l.b16 %v16996_v13  ;;  %v5482_v14 = vunpack.c.l.b16 %v17001_v42  ;;  %v17072_v13 = vld [vmem:[%s21356_s4 + $0x104] ss:$0 sps:$4 sm:$0x11]  }
 0x26b   :  { %v5905_v35 = vsel %vm696_vm6, %v5904_v40, %v5903_v28  ;;  %v5483_v47 = vunpack.c.l.b16 %v17009_v7  ;;  %v5484_v32 = vunpack.c.l.b16 %v17014_v11  ;;  %v5485_v52 = vunpack.c.l.b16 %v17023_v8  ;;  %v17076_v11 = vpop.permute.xlu0 %970  ;;  %v17088_v8 = vld [vmem:[%s21356_s4 + $0x114] ss:$0 sps:$4 sm:$0x11]  }
 0x26c   :  { %v6102_v62 = vpack.c.b16 %v5905_v35, %v5891_v19  ;;  %v5486_v45 = vunpack.c.l.b16 %v17028_v26  ;;  %v5614_v34 = vrot.slane %v5475_v18, 7  ;;  %v5616_v20 = vrot.slane %v5476_v41, 6 }
 0x26d   :  { %v5487_v10 = vunpack.c.l.b16 %v17036_v38  ;;  %v5488_v59 = vunpack.c.l.b16 %v17041_v61  ;;  %v5618_v60 = vrot.slane %v5477_v22, 5  ;;  %v5620_v49 = vrot.slane %v5478_v54, 4 }
 0x26e   :  { %11372 = vmatpush3.bf16.xpose.msra.mxu1 %v6102_v62  ;;  %v5489_v4 = vunpack.c.l.b16 %v17049_v31  ;;  %v5615_v53 = vsel %vm678_vm0, %v5614_v34, %v5474_v9  ;;  %v5622_v5 = vrot.slane %v5479_v56, 3  ;;  %v5624_v30 = vrot.slane %v5480_v16, 2  ;;  %v17095_v62 = vld [vmem:[%s21356_s4 + $0x11c] ss:$0 sps:$4 sm:$0x11]  }
 0x26f   :  { %11373 = vmatprep.subr.bf16.mxu1 %v12576_v0  ;;  %v5617_v23 = vsel %vm681_vm1, %v5616_v20, %v5615_v53  ;;  %v5626_v58 = vrot.slane %v5481_v43, 1  ;;  %v5628_v3 = vrot.slane %v5483_v47, 7  ;;  %v5630_v29 = vrot.slane %v5484_v32, 6  ;;  %v17102_v31 = vld [vmem:[%s21356_s4 + $0x124] ss:$0 sps:$4 sm:$0x11]  }
 0x270   :  { %v5619_v1 = vsel %vm684_vm2, %v5618_v60, %v5617_v23  ;;  %v5632_v50 = vrot.slane %v5485_v52, 5  ;;  %v5634_v63 = vrot.slane %v5486_v45, 4  ;;  %v5636_v36 = vrot.slane %v5487_v10, 3  ;;  %v17109_v60 = vld [vmem:[%s21356_s4 + $0x12c] ss:$0 sps:$4 sm:$0x11]  }
 0x271   :  { %v5621_v25 = vsel %vm687_vm3, %v5620_v49, %v5619_v1  ;;  %v5629_v37 = vsel %vm678_vm0, %v5628_v3, %v5482_v14  ;;  %v5638_v46 = vrot.slane %v5488_v59, 2  ;;  %v5640_v6 = vrot.slane %v5489_v4, 1  ;;  %v17139_v23 = vld [vmem:[%s21356_s4 + $0x14c] ss:$0 sps:$4 sm:$0x11]   ;;  %v17144_v1 = vpop.permute.xlu0 %967 }
 0x272   :  { %v5623_v57 = vsel %vm690_vm4, %v5622_v5, %v5621_v25  ;;  %v5631_v21 = vsel %vm681_vm1, %v5630_v29, %v5629_v37  ;;  %v5906_v39 = vrot.slane %v5474_v9, 1  ;;  %v5908_v33 = vrot.slane %v5476_v41, 7  ;;  %v17081_v9 = vld [vmem:[%s21356_s4 + $0x10c] ss:$0 sps:$4 sm:$0x11]  }
 0x273   :  { %v5625_v27 = vsel %vm693_vm5, %v5624_v30, %v5623_v57  ;;  %v5633_v40 = vsel %vm684_vm2, %v5632_v50, %v5631_v21  ;;  %v5910_v55 = vrot.slane %v5477_v22, 6  ;;  %v5912_v24 = vrot.slane %v5478_v54, 5  ;;  %v17134_v30 = vld [vmem:[%s21356_s4 + $0x144] ss:$0 sps:$4 sm:$0x11]  }
 0x274   :  { %v5627_v2 = vsel %vm696_vm6, %v5626_v58, %v5625_v27  ;;  %v5635_v12 = vsel %vm687_vm3, %v5634_v63, %v5633_v40  ;;  %v5907_v19 = vsel %vm678_vm0, %v5475_v18, %v5906_v39  ;;  %v5914_v17 = vrot.slane %v5479_v56, 4  ;;  %v17150_v63 = vld [vmem:[%s21356_s4 + $0x154] ss:$0 sps:$4 sm:$0x11]  }
 0x275   :  { %v5637_v42 = vsel %vm690_vm4, %v5636_v36, %v5635_v12  ;;  %v5909_v41 = vsel %vm681_vm1, %v5908_v33, %v5907_v19  ;;  %v5916_v28 = vrot.slane %v5480_v16, 3  ;;  %v5918_v7 = vrot.slane %v5481_v43, 2  ;;  %v17155_v36 = vld [vmem:[%s21356_s4 + $0x15c] ss:$0 sps:$4 sm:$0x11]  }
 0x276   :  { %v5639_v18 = vsel %vm693_vm5, %v5638_v46, %v5637_v42  ;;  %v5911_v22 = vsel %vm684_vm2, %v5910_v55, %v5909_v41  ;;  %v5920_v54 = vrot.slane %v5482_v14, 1  ;;  %v5922_v35 = vrot.slane %v5484_v32, 7  ;;  %v17164_v57 = vld [vmem:[%s21356_s4 + $0x164] ss:$0 sps:$4 sm:$0x11]  }
 0x277   :  { %v5641_v26 = vsel %vm696_vm6, %v5640_v6, %v5639_v18  ;;  %v5913_v56 = vsel %vm687_vm3, %v5912_v24, %v5911_v22  ;;  %v5924_v16 = vrot.slane %v5485_v52, 6  ;;  %v5926_v43 = vrot.slane %v5486_v45, 5  ;;  %v17169_v21 = vld [vmem:[%s21356_s4 + $0x16c] ss:$0 sps:$4 sm:$0x11]  }
 0x278   :  { %v5811_v38 = vpack.c.b16 %v5641_v26, %v5627_v2  ;;  %v5915_v61 = vsel %vm690_vm4, %v5914_v17, %v5913_v56  ;;  %v5921_v14 = vsel %vm678_vm0, %v5483_v47, %v5920_v54  ;;  %v5928_v32 = vrot.slane %v5487_v10, 4  ;;  %v17114_v47 = vld [vmem:[%s21359_s5] ss:$0 sm:$0xff]  ;;  %v17178_v55 = vld [vmem:[%s21356_s4 + $0x174] ss:$0 sps:$4 sm:$0x11]  }
 0x279   :  { %v5917_v34 = vsel %vm693_vm5, %v5916_v28, %v5915_v61  ;;  %v5923_v52 = vsel %vm681_vm1, %v5922_v35, %v5921_v14  ;;  %v5930_v45 = vrot.slane %v5488_v59, 3  ;;  %v5932_v20 = vrot.slane %v5489_v4, 2  ;;  %v17121_v59 = vld [vmem:[%s21356_s4 + $0x134] ss:$0 sps:$4 sm:$0x11]  }
 0x27a   :  { %11354 = vmatpush3.bf16.xpose.msra.mxu0 %v5811_v38  ;;  %v5919_v10 = vsel %vm696_vm6, %v5918_v7, %v5917_v34  ;;  %v5925_v49 = vsel %vm684_vm2, %v5924_v16, %v5923_v52  ;;  %v17126_v4 = vld [vmem:[%s21356_s4 + $0x13c] ss:$0 sps:$4 sm:$0x11]   ;;  %v5490_v53 = vunpack.c.l.b16 %v17072_v13  ;;  %v5491_v58 = vunpack.c.l.b16 %v17081_v9 }
 0x27b   :  { %v5927_v5 = vsel %vm687_vm3, %v5926_v43, %v5925_v49  ;;  %11355 = vmatprep.subr.bf16.mxu0 %v12576_v0  ;;  %v5492_v3 = vunpack.c.l.b16 %v17088_v8  ;;  %v5493_v29 = vunpack.c.l.b16 %v17095_v62  ;;  %v5494_v25 = vunpack.c.l.b16 %v17102_v31  ;;  %v17183_v24 = vld [vmem:[%s21356_s4 + $0x17c] ss:$0 sps:$4 sm:$0x11]  }
 0x27c   :  { %v5929_v50 = vsel %vm690_vm4, %v5928_v32, %v5927_v5  ;;  %v5495_v37 = vunpack.c.l.b16 %v17109_v60  ;;  %v5496_v46 = vunpack.c.l.b16 %v17121_v59  ;;  %v5497_v39 = vunpack.c.l.b16 %v17126_v4 }
 0x27d   :  { %v5931_v6 = vsel %vm693_vm5, %v5930_v45, %v5929_v50  ;;  %v5498_v33 = vunpack.c.l.b16 %v17134_v30  ;;  %v5499_v27 = vunpack.c.l.b16 %v17139_v23  ;;  %v5500_v2 = vunpack.c.l.b16 %v17150_v63 }
 0x27e   :  { %v5933_v40 = vsel %vm696_vm6, %v5932_v20, %v5931_v6  ;;  %v5501_v12 = vunpack.c.l.b16 %v17155_v36  ;;  %vm976_vm8 = vcmp.eq.s32.totalorder %v17144_v1, %v17114_v47  ;;  %v5502_v17 = vunpack.c.l.b16 %v17164_v57 }
 0x27f   :  { %v6103_v19 = vpack.c.b16 %v5933_v40, %v5919_v10  ;;  %v5503_v13 = vunpack.c.l.b16 %v17169_v21  ;;  %v5642_v42 = vrot.slane %v5491_v58, 7  ;;  %v5504_v41 = vunpack.c.l.b16 %v17178_v55 }
 0x280   :  { %v5505_v28 = vunpack.c.l.b16 %v17183_v24  ;;  %v5644_v7 = vrot.slane %v5492_v3, 6  ;;  %v5646_v9 = vrot.slane %v5493_v29, 5  ;;  %v5648_v22 = vrot.slane %v5494_v25, 4  ;;  %v17270_v24 = vld [vmem:[%s21356_s4 + $0x1ac] ss:$0 sps:$4 sm:$0x11]  }
 0x281   :  { %11374 = vmatpush3.bf16.xpose.msra.mxu1 %v6103_v19  ;;  %v5643_v18 = vsel %vm678_vm0, %v5642_v42, %v5490_v53  ;;  %v5650_v54 = vrot.slane %v5495_v37, 3  ;;  %v5652_v35 = vrot.slane %v5496_v46, 2  ;;  %v5654_v26 = vrot.slane %v5497_v39, 1 }
 0x282   :  { %v5645_v8 = vsel %vm681_vm1, %v5644_v7, %v5643_v18  ;;  %v5656_v56 = vrot.slane %v5499_v27, 7  ;;  %v5658_v16 = vrot.slane %v5500_v2, 6  ;;  %11375 = vmatprep.subr.bf16.mxu1 %v12576_v0  ;;  %vm977_vm9 = vcmp.eq.s32.totalorder %v17076_v11, %v17114_v47  ;;  %v17239_v18 = vld [vmem:[%s21356_s4 + $0x194] ss:$0 sps:$4 sm:$0x11]  }
 0x283   :  { %v5647_v43 = vsel %vm684_vm2, %v5646_v9, %v5645_v8  ;;  %v5660_v62 = vrot.slane %v5501_v12, 5  ;;  %v5662_v38 = vrot.slane %v5502_v17, 4  ;;  %v5664_v61 = vrot.slane %v5503_v13, 3 }
 0x284   :  { %v5649_v14 = vsel %vm687_vm3, %v5648_v22, %v5647_v43  ;;  %v5657_v32 = vsel %vm678_vm0, %v5656_v56, %v5498_v33  ;;  %v5666_v31 = vrot.slane %v5504_v41, 2  ;;  %v5668_v34 = vrot.slane %v5505_v28, 1 }
 0x285   :  { %v5651_v52 = vsel %vm690_vm4, %v5650_v54, %v5649_v14  ;;  %v5659_v45 = vsel %vm681_vm1, %v5658_v16, %v5657_v32  ;;  %v978_v20 = vsel %vm976_vm8, %v16374_v44, 0.0  ;;  %v5934_v60 = vrot.slane %v5490_v53, 1  ;;  %v17301_v14 = vld [vmem:[%s21356_s4 + $0x1cc] ss:$0 sps:$4 sm:$0x11]  }
 0x286   :  { %v5653_v10 = vsel %vm693_vm5, %v5652_v35, %v5651_v52  ;;  %v5661_v49 = vsel %vm684_vm2, %v5660_v62, %v5659_v45  ;;  %v980_v59 = vmax.f32 %v978_v20, 0.0  ;;  %v5936_v4 = vrot.slane %v5492_v3, 7  ;;  %v10119_v3 = vld [vmem:[%s21359_s5 + $0x1] ss:$0 sm:$0xff] }
 0x287   :  { %v5655_v5 = vsel %vm696_vm6, %v5654_v26, %v5653_v10  ;;  %v5663_v30 = vsel %vm687_vm3, %v5662_v38, %v5661_v49  ;;  %v5935_v50 = vsel %vm678_vm0, %v5491_v58, %v5934_v60  ;;  %v5938_v63 = vrot.slane %v5493_v29, 6  ;;  %v17226_v58 = vld [vmem:[%s21356_s4 + $0x184] ss:$0 sps:$4 sm:$0x11]  }
 0x288   :  { %v5665_v36 = vsel %vm690_vm4, %v5664_v61, %v5663_v30  ;;  %v5937_v6 = vsel %vm681_vm1, %v5936_v4, %v5935_v50  ;;  %v5940_v57 = vrot.slane %v5494_v25, 5  ;;  %v5942_v44 = vrot.slane %v5495_v37, 4  ;;  %v17248_v35 = vld [vmem:[%s21356_s4 + $0x19c] ss:$0 sps:$4 sm:$0x11]  }
 0x289   :  { %v5667_v53 = vsel %vm693_vm5, %v5666_v31, %v5665_v36  ;;  %v5939_v21 = vsel %vm684_vm2, %v5938_v63, %v5937_v6  ;;  %v5944_v40 = vrot.slane %v5496_v46, 3  ;;  %v5946_v55 = vrot.slane %v5497_v39, 2  ;;  %v17233_v46 = vld [vmem:[%s21356_s4 + $0x18c] ss:$0 sps:$4 sm:$0x11]  }
 0x28a   :  { %v5669_v29 = vsel %vm696_vm6, %v5668_v34, %v5667_v53  ;;  %v5941_v25 = vsel %vm687_vm3, %v5940_v57, %v5939_v21  ;;  %v5948_v37 = vrot.slane %v5498_v33, 1  ;;  %v5950_v19 = vrot.slane %v5500_v2, 7  ;;  %v17278_v26 = vld [vmem:[%s21356_s4 + $0x1b4] ss:$0 sps:$4 sm:$0x11]  }
 0x28b   :  { %v5812_v39 = vpack.c.b16 %v5669_v29, %v5655_v5  ;;  %v5943_v42 = vsel %vm690_vm4, %v5942_v44, %v5941_v25  ;;  %v5952_v7 = vrot.slane %v5501_v12, 6  ;;  %v5954_v9 = vrot.slane %v5502_v17, 5  ;;  %v17289_v38 = vld [vmem:[%s21356_s4 + $0x1bc] ss:$0 sps:$4 sm:$0x11]  }
 0x28c   :  { %v5945_v22 = vsel %vm693_vm5, %v5944_v40, %v5943_v42  ;;  %v5949_v33 = vsel %vm678_vm0, %v5499_v27, %v5948_v37  ;;  %v5956_v2 = vrot.slane %v5503_v13, 4  ;;  %v5958_v54 = vrot.slane %v5504_v41, 3  ;;  %v17261_v27 = vld [vmem:[%s21356_s4 + $0x1a4] ss:$0 sps:$4 sm:$0x11]  }
 0x28d   :  { %11356 = vmatpush3.bf16.xpose.msra.mxu0 %v5812_v39  ;;  %v5947_v12 = vsel %vm696_vm6, %v5946_v55, %v5945_v22  ;;  %v5951_v17 = vsel %vm681_vm1, %v5950_v19, %v5949_v33  ;;  %v5960_v8 = vrot.slane %v5505_v28, 2  ;;  %v979_v23 = vsel %vm977_vm9, %v16405_v15, 0.0  ;;  %v12107_v32 = vld [vmem:[%s21356_s4 + $0x1d4] ss:$0 sps:$4 sm:$0x11]  }
 0x28e   :  { %v5953_v13 = vsel %vm684_vm2, %v5952_v7, %v5951_v17  ;;  %v981_v41 = vmax.f32 %v979_v23, 0.0  ;;  %vm1268_vm10 = vcmp.eq.s32.totalorder %v17144_v1, %v10119_v3  ;;  %vm1269_vm11 = vcmp.eq.s32.totalorder %v17076_v11, %v10119_v3  ;;  %11357 = vmatprep.subr.bf16.mxu0 %v12576_v0  ;;  %v12108_v20 = vld [vmem:[%s21356_s4 + $0x1dc] ss:$0 sps:$4 sm:$0x11]  }
 0x28f   :  { %v5955_v15 = vsel %vm687_vm3, %v5954_v9, %v5953_v13  ;;  %v1270_v47 = vsel %vm1268_vm10, %v16414_v48, 0.0  ;;  %v1271_v28 = vsel %vm1269_vm11, %v16516_v51, 0.0  ;;  %v5506_v56 = vunpack.c.l.b16 %v17226_v58  ;;  %v17294_v48 = vld [vmem:[%s21356_s4 + $0x1c4] ss:$0 sps:$4 sm:$0x11]  }
 0x290   :  { %v5957_v16 = vsel %vm690_vm4, %v5956_v2, %v5955_v15  ;;  %v17282_v43 = vmax.f32 %v980_v59, %v1270_v47  ;;  %v17284_v62 = vmax.f32 %v981_v41, %v1271_v28  ;;  %v5507_v51 = vunpack.c.l.b16 %v17233_v46  ;;  %v12109_v60 = vld [vmem:[%s21356_s4 + $0x1e4] ss:$0 sps:$4 sm:$0x11]   ;;  %v12110_v5 = vld [vmem:[%s21356_s4 + $0x1ec] ss:$0 sps:$4 sm:$0x11]  }
 0x291   :  { %v5959_v61 = vsel %vm693_vm5, %v5958_v54, %v5957_v16  ;;  %v5508_v31 = vunpack.c.l.b16 %v17239_v18  ;;  %v5509_v34 = vunpack.c.l.b16 %v17248_v35  ;;  %v5510_v52 = vunpack.c.l.b16 %v17261_v27  ;;  %v17325_v30 = vld [vmem:[%s21356_s4 + $0x1f4] ss:$0 sps:$4 sm:$0x11]   ;;  %v12112_v6 = vld [vmem:[%s21356_s4 + $0x1fc] ss:$0 sps:$4 sm:$0x11]  }
 0x292   :  { %v5961_v45 = vsel %vm696_vm6, %v5960_v8, %v5959_v61  ;;  %v5511_v10 = vunpack.c.l.b16 %v17270_v24  ;;  %v5512_v49 = vunpack.c.l.b16 %v17278_v26  ;;  %v5513_v59 = vunpack.c.l.b16 %v17289_v38 }
 0x293   :  { %v6104_v4 = vpack.c.b16 %v5961_v45, %v5947_v12  ;;  %v5514_v50 = vunpack.c.l.b16 %v17294_v48  ;;  %v5515_v63 = vunpack.c.l.b16 %v17301_v14  ;;  %v5516_v36 = vunpack.c.l.b16 %v12107_v32 }
 0x294   :  { %v5517_v57 = vunpack.c.l.b16 %v12108_v20  ;;  %v5518_v44 = vunpack.c.l.b16 %v12109_v60  ;;  %v5670_v53 = vrot.slane %v5507_v51, 7  ;;  %v5672_v21 = vrot.slane %v5508_v31, 6 }
 0x295   :  { %11376 = vmatpush3.bf16.xpose.msra.mxu1 %v6104_v4  ;;  %v5519_v40 = vunpack.c.l.b16 %v12110_v5  ;;  %v5520_v55 = vunpack.c.l.b16 %v17325_v30  ;;  %v5674_v3 = vrot.slane %v5509_v34, 5  ;;  %v5676_v58 = vrot.slane %v5510_v52, 4  ;;  %v17367_v30 = vld [vmem:[%s21356_s4 + $0x214] ss:$0 sps:$4 sm:$0x11]  }
 0x296   :  { %v5521_v29 = vunpack.c.l.b16 %v12112_v6  ;;  %v5671_v25 = vsel %vm678_vm0, %v5670_v53, %v5506_v56  ;;  %v5678_v37 = vrot.slane %v5511_v10, 3  ;;  %v5680_v19 = vrot.slane %v5512_v49, 2  ;;  %11377 = vmatprep.subr.bf16.mxu1 %v12576_v0  ;;  %v17380_v53 = vld [vmem:[%s21356_s4 + $0x224] ss:$0 sps:$4 sm:$0x11]  }
 0x297   :  { %v5673_v46 = vsel %vm681_vm1, %v5672_v21, %v5671_v25  ;;  %v5682_v39 = vrot.slane %v5513_v59, 1  ;;  %v5684_v42 = vrot.slane %v5515_v63, 7  ;;  %v5686_v7 = vrot.slane %v5516_v36, 6  ;;  %v17385_v21 = vld [vmem:[%s21356_s4 + $0x22c] ss:$0 sps:$4 sm:$0x11]  }
 0x298   :  { %v5675_v9 = vsel %vm684_vm2, %v5674_v3, %v5673_v46  ;;  %v5688_v18 = vrot.slane %v5517_v57, 5  ;;  %v5690_v22 = vrot.slane %v5518_v44, 4  ;;  %v5692_v33 = vrot.slane %v5519_v40, 3  ;;  %v17393_v3 = vld [vmem:[%s21356_s4 + $0x234] ss:$0 sps:$4 sm:$0x11]  }
 0x299   :  { %v5677_v2 = vsel %vm687_vm3, %v5676_v58, %v5675_v9  ;;  %v5685_v54 = vsel %vm678_vm0, %v5684_v42, %v5514_v50  ;;  %v5694_v35 = vrot.slane %v5520_v55, 2  ;;  %v5696_v12 = vrot.slane %v5521_v29, 1  ;;  %v17398_v58 = vld [vmem:[%s21356_s4 + $0x23c] ss:$0 sps:$4 sm:$0x11]  }
 0x29a   :  { %v5679_v17 = vsel %vm690_vm4, %v5678_v37, %v5677_v2  ;;  %v5687_v8 = vsel %vm681_vm1, %v5686_v7, %v5685_v54  ;;  %v5962_v23 = vrot.slane %v5506_v56, 1  ;;  %v5964_v27 = vrot.slane %v5508_v31, 7  ;;  %v17404_v25 = vld [vmem:[%s21356_s4 + $0x244] ss:$0 sps:$4 sm:$0x11]  }
 0x29b   :  { %v5681_v13 = vsel %vm693_vm5, %v5680_v19, %v5679_v17  ;;  %v5689_v41 = vsel %vm684_vm2, %v5688_v18, %v5687_v8  ;;  %v5966_v24 = vrot.slane %v5509_v34, 6  ;;  %v5968_v15 = vrot.slane %v5510_v52, 5  ;;  %v17353_v52 = vld [vmem:[%s21356_s4 + $0x204] ss:$0 sps:$4 sm:$0x11]  }
 0x29c   :  { %v5683_v47 = vsel %vm696_vm6, %v5682_v39, %v5681_v13  ;;  %v5691_v28 = vsel %vm687_vm3, %v5690_v22, %v5689_v41  ;;  %v5963_v26 = vsel %vm678_vm0, %v5507_v51, %v5962_v23  ;;  %v5970_v16 = vrot.slane %v5511_v10, 4  ;;  %v17360_v10 = vld [vmem:[%s21356_s4 + $0x20c] ss:$0 sps:$4 sm:$0x11]  }
 0x29d   :  { %v5693_v38 = vsel %vm690_vm4, %v5692_v33, %v5691_v28  ;;  %v5965_v48 = vsel %vm681_vm1, %v5964_v27, %v5963_v26  ;;  %v5972_v61 = vrot.slane %v5512_v49, 3  ;;  %v5974_v56 = vrot.slane %v5513_v59, 2  ;;  %v17409_v37 = vld [vmem:[%s21356_s4 + $0x24c] ss:$0 sps:$4 sm:$0x11]  }
 0x29e   :  { %v5695_v14 = vsel %vm693_vm5, %v5694_v35, %v5693_v38  ;;  %v5967_v32 = vsel %vm684_vm2, %v5966_v24, %v5965_v48  ;;  %v5976_v31 = vrot.slane %v5514_v50, 1  ;;  %v5978_v34 = vrot.slane %v5516_v36, 7  ;;  %v17418_v7 = vld [vmem:[%s21356_s4 + $0x254] ss:$0 sps:$4 sm:$0x11]  }
 0x29f   :  { %v5697_v51 = vsel %vm696_vm6, %v5696_v12, %v5695_v14  ;;  %v5969_v45 = vsel %vm687_vm3, %v5968_v15, %v5967_v32  ;;  %v5980_v20 = vrot.slane %v5517_v57, 6  ;;  %v5982_v60 = vrot.slane %v5518_v44, 5  ;;  %v17374_v44 = vld [vmem:[%s21356_s4 + $0x21c] ss:$0 sps:$4 sm:$0x11]  }
 0x2a0   :  { %v5813_v49 = vpack.c.b16 %v5697_v51, %v5683_v47  ;;  %v5971_v59 = vsel %vm690_vm4, %v5970_v16, %v5969_v45  ;;  %v5977_v4 = vsel %vm678_vm0, %v5515_v63, %v5976_v31  ;;  %v5984_v5 = vrot.slane %v5519_v40, 4  ;;  %v17423_v9 = vld [vmem:[%s21356_s4 + $0x25c] ss:$0 sps:$4 sm:$0x11]  }
 0x2a1   :  { %v5973_v50 = vsel %vm693_vm5, %v5972_v61, %v5971_v59  ;;  %v5979_v36 = vsel %vm681_vm1, %v5978_v34, %v5977_v4  ;;  %v5986_v6 = vrot.slane %v5520_v55, 3  ;;  %v5988_v57 = vrot.slane %v5521_v29, 2  ;;  %v17432_v54 = vld [vmem:[%s21356_s4 + $0x264] ss:$0 sps:$4 sm:$0x11]  }
 0x2a2   :  { %11358 = vmatpush3.bf16.xpose.msra.mxu0 %v5813_v49  ;;  %v5981_v63 = vsel %vm684_vm2, %v5980_v20, %v5979_v36  ;;  %v5975_v40 = vsel %vm696_vm6, %v5974_v56, %v5973_v50  ;;  %v5522_v19 = vunpack.c.l.b16 %v17353_v52  ;;  %v5523_v46 = vunpack.c.l.b16 %v17360_v10  ;;  %v17437_v35 = vld [vmem:[%s21356_s4 + $0x26c] ss:$0 sps:$4 sm:$0x11]   ;;  %v17445_v27 = vld [vmem:[%s21356_s4 + $0x274] ss:$0 sps:$4 sm:$0x11]  }
 0x2a3   :  { %v5983_v55 = vsel %vm687_vm3, %v5982_v60, %v5981_v63  ;;  %11359 = vmatprep.subr.bf16.mxu0 %v12576_v0  ;;  %v5524_v39 = vunpack.c.l.b16 %v17367_v30  ;;  %v5525_v18 = vunpack.c.l.b16 %v17374_v44  ;;  %v5526_v22 = vunpack.c.l.b16 %v17380_v53  ;;  %v17450_v13 = vld [vmem:[%s21356_s4 + $0x27c] ss:$0 sps:$4 sm:$0x11]   ;;  %v17461_v52 = vpop.f32.mrb[4].mxu0 }
 0x2a4   :  { %v5985_v29 = vsel %vm690_vm4, %v5984_v5, %v5983_v55  ;;  %v5527_v33 = vunpack.c.l.b16 %v17385_v21  ;;  %v5528_v12 = vunpack.c.l.b16 %v17393_v3  ;;  %v5529_v17 = vunpack.c.l.b16 %v17398_v58  ;;  %v11249_v10 = vpop.f32.mrb[5].mxu0 }
 0x2a5   :  { %v5987_v42 = vsel %vm693_vm5, %v5986_v6, %v5985_v29  ;;  %v5530_v8 = vunpack.c.l.b16 %v17404_v25  ;;  %v5531_v41 = vunpack.c.l.b16 %v17409_v37  ;;  %v5532_v24 = vunpack.c.l.b16 %v17418_v7 }
 0x2a6   :  { %v5989_v2 = vsel %vm696_vm6, %v5988_v57, %v5987_v42  ;;  %v5533_v15 = vunpack.c.l.b16 %v17423_v9  ;;  %v5534_v47 = vunpack.c.l.b16 %v17432_v54  ;;  %v5535_v28 = vunpack.c.l.b16 %v17437_v35 }
 0x2a7   :  { %v6105_v23 = vpack.c.b16 %v5989_v2, %v5975_v40  ;;  %v5698_v26 = vrot.slane %v5523_v46, 7  ;;  %v5700_v16 = vrot.slane %v5524_v39, 6  ;;  %v5536_v38 = vunpack.c.l.b16 %v17445_v27 }
 0x2a8   :  { %v5537_v48 = vunpack.c.l.b16 %v17450_v13  ;;  %v5702_v61 = vrot.slane %v5525_v18, 5  ;;  %v5704_v56 = vrot.slane %v5526_v22, 4  ;;  %v5706_v32 = vrot.slane %v5527_v33, 3 }
 0x2a9   :  { %11378 = vmatpush3.bf16.xpose.msra.mxu1 %v6105_v23  ;;  %v5699_v14 = vsel %vm678_vm0, %v5698_v26, %v5522_v19  ;;  %v5708_v31 = vrot.slane %v5528_v12, 2  ;;  %v5710_v34 = vrot.slane %v5529_v17, 1  ;;  %v5712_v45 = vrot.slane %v5531_v41, 7 }
 0x2aa   :  { %11379 = vmatprep.subr.bf16.mxu1 %v12576_v0  ;;  %v5701_v51 = vsel %vm681_vm1, %v5700_v16, %v5699_v14  ;;  %v5714_v20 = vrot.slane %v5532_v24, 6  ;;  %v5716_v60 = vrot.slane %v5533_v15, 5  ;;  %v5718_v59 = vrot.slane %v5534_v47, 4  ;;  %v17505_v16 = vld [vmem:[%s21356_s4 + $0x29c] ss:$0 sps:$4 sm:$0x11]  }
 0x2ab   :  { %v5703_v49 = vsel %vm684_vm2, %v5702_v61, %v5701_v51  ;;  %v5720_v4 = vrot.slane %v5535_v28, 3  ;;  %v5722_v5 = vrot.slane %v5536_v38, 2  ;;  %v5713_v50 = vsel %vm678_vm0, %v5712_v45, %v5530_v8  ;;  %v17539_v45 = vld [vmem:[%s21356_s4 + $0x2c4] ss:$0 sps:$4 sm:$0x11]  }
 0x2ac   :  { %v5705_v30 = vsel %vm687_vm3, %v5704_v56, %v5703_v49  ;;  %v5724_v36 = vrot.slane %v5537_v48, 1  ;;  %v5990_v6 = vrot.slane %v5522_v19, 1  ;;  %v5715_v44 = vsel %vm681_vm1, %v5714_v20, %v5713_v50  ;;  %v17544_v20 = vld [vmem:[%s21356_s4 + $0x2cc] ss:$0 sps:$4 sm:$0x11]  }
 0x2ad   :  { %v5707_v57 = vsel %vm690_vm4, %v5706_v32, %v5705_v30  ;;  %v5992_v63 = vrot.slane %v5524_v39, 7  ;;  %v5994_v53 = vrot.slane %v5525_v18, 6  ;;  %v5717_v40 = vsel %vm684_vm2, %v5716_v60, %v5715_v44  ;;  %v17482_v18 = vld [vmem:[%s21356_s4 + $0x284] ss:$0 sps:$4 sm:$0x11]  }
 0x2ae   :  { %v5709_v21 = vsel %vm693_vm5, %v5708_v31, %v5707_v57  ;;  %v5991_v55 = vsel %vm678_vm0, %v5523_v46, %v5990_v6  ;;  %v5996_v3 = vrot.slane %v5526_v22, 5  ;;  %v5719_v29 = vsel %vm687_vm3, %v5718_v59, %v5717_v40  ;;  %v17487_v46 = vld [vmem:[%s21356_s4 + $0x28c] ss:$0 sps:$4 sm:$0x11]   ;;  %v17489_v22 = vpop.f32.mrb[6].mxu0 }
 0x2af   :  { %v5711_v58 = vsel %vm696_vm6, %v5710_v34, %v5709_v21  ;;  %v5993_v25 = vsel %vm681_vm1, %v5992_v63, %v5991_v55  ;;  %v5998_v19 = vrot.slane %v5527_v33, 4  ;;  %v5721_v42 = vsel %vm690_vm4, %v5720_v4, %v5719_v29  ;;  %v17514_v32 = vld [vmem:[%s21356_s4 + $0x2a4] ss:$0 sps:$4 sm:$0x11]  }
 0x2b0   :  { %v5995_v7 = vsel %vm684_vm2, %v5994_v53, %v5993_v25  ;;  %v6000_v39 = vrot.slane %v5528_v12, 3  ;;  %v6002_v9 = vrot.slane %v5529_v17, 2  ;;  %v5723_v33 = vsel %vm693_vm5, %v5722_v5, %v5721_v42  ;;  %v17496_v12 = vld [vmem:[%s21356_s4 + $0x294] ss:$0 sps:$4 sm:$0x11]   ;;  %v17498_v17 = vpop.f32.mrb[4].mxu1 }
 0x2b1   :  { %v5997_v2 = vsel %vm687_vm3, %v5996_v3, %v5995_v7  ;;  %v6004_v54 = vrot.slane %v5530_v8, 1  ;;  %v6006_v35 = vrot.slane %v5532_v24, 7  ;;  %v5725_v23 = vsel %vm696_vm6, %v5724_v36, %v5723_v33  ;;  %v11250_v8 = vpop.f32.mrb[7].mxu0  ;;  %v17520_v34 = vld [vmem:[%s21356_s4 + $0x2ac] ss:$0 sps:$4 sm:$0x11]  }
 0x2b2   :  { %v5999_v27 = vsel %vm690_vm4, %v5998_v19, %v5997_v2  ;;  %v6008_v13 = vrot.slane %v5533_v15, 6  ;;  %v6010_v26 = vrot.slane %v5534_v47, 5  ;;  %v5814_v24 = vpack.c.b16 %v5725_v23, %v5711_v58  ;;  %v11269_v51 = vpop.f32.mrb[5].mxu1  ;;  %v17553_v4 = vld [vmem:[%s21356_s4 + $0x2d4] ss:$0 sps:$4 sm:$0x11]  }
 0x2b3   :  { %v6001_v61 = vsel %vm693_vm5, %v6000_v39, %v5999_v27  ;;  %v6005_v56 = vsel %vm678_vm0, %v5531_v41, %v6004_v54  ;;  %v6012_v14 = vrot.slane %v5535_v28, 4  ;;  %v6014_v47 = vrot.slane %v5536_v38, 3  ;;  %v17527_v28 = vld [vmem:[%s21356_s4 + $0x2b4] ss:$0 sps:$4 sm:$0x11]  }
 0x2b4   :  { %v6007_v15 = vsel %vm681_vm1, %v6006_v35, %v6005_v56  ;;  %v6016_v31 = vrot.slane %v5537_v48, 2  ;;  %11360 = vmatpush3.bf16.xpose.msra.mxu0 %v5814_v24  ;;  %v6003_v37 = vsel %vm696_vm6, %v6002_v9, %v6001_v61  ;;  %v17532_v38 = vld [vmem:[%s21356_s4 + $0x2bc] ss:$0 sps:$4 sm:$0x11]   ;;  %v5538_v60 = vunpack.c.l.b16 %v17482_v18  ;;  %v17593_v9 = vpop.f32.mrb[6].mxu1 }
 0x2b5   :  { %v6009_v41 = vsel %vm684_vm2, %v6008_v13, %v6007_v15  ;;  %11361 = vmatprep.subr.bf16.mxu0 %v12576_v0  ;;  %v5539_v10 = vunpack.c.l.b16 %v17487_v46  ;;  %v5540_v49 = vunpack.c.l.b16 %v17496_v12  ;;  %v17558_v5 = vld [vmem:[%s21356_s4 + $0x2dc] ss:$0 sps:$4 sm:$0x11]   ;;  %v5541_v30 = vunpack.c.l.b16 %v17505_v16  ;;  %v17567_v57 = vld [vmem:[%s21356_s4 + $0x2e4] ss:$0 sps:$4 sm:$0x11]  }
 0x2b6   :  { %v6011_v48 = vsel %vm687_vm3, %v6010_v26, %v6009_v41  ;;  %v5542_v50 = vunpack.c.l.b16 %v17514_v32  ;;  %v5543_v36 = vunpack.c.l.b16 %v17520_v34  ;;  %v17572_v44 = vld [vmem:[%s21356_s4 + $0x2ec] ss:$0 sps:$4 sm:$0x11]   ;;  %v5544_v63 = vunpack.c.l.b16 %v17527_v28  ;;  %v17581_v55 = vld [vmem:[%s21356_s4 + $0x2f4] ss:$0 sps:$4 sm:$0x11]  }
 0x2b7   :  { %v6013_v59 = vsel %vm690_vm4, %v6012_v14, %v6011_v48  ;;  %v5545_v53 = vunpack.c.l.b16 %v17532_v38  ;;  %v5546_v21 = vunpack.c.l.b16 %v17539_v45  ;;  %v17586_v3 = vld [vmem:[%s21356_s4 + $0x2fc] ss:$0 sps:$4 sm:$0x11]   ;;  %v5547_v58 = vunpack.c.l.b16 %v17544_v20  ;;  %v11270_v27 = vpop.f32.mrb[7].mxu1 }
 0x2b8   :  { %v6015_v6 = vsel %vm693_vm5, %v6014_v47, %v6013_v59  ;;  %v5548_v29 = vunpack.c.l.b16 %v17553_v4  ;;  %v5549_v25 = vunpack.c.l.b16 %v17558_v5  ;;  %v5550_v42 = vunpack.c.l.b16 %v17567_v57  ;;  %v17662_v27 = vld [vmem:[%s21356_s4 + $0x33c] ss:$0 sps:$4 sm:$0x11]  }
 0x2b9   :  { %v6017_v40 = vsel %vm696_vm6, %v6016_v31, %v6015_v6  ;;  %v5551_v7 = vunpack.c.l.b16 %v17572_v44  ;;  %v5726_v39 = vrot.slane %v5539_v10, 7  ;;  %v5552_v18 = vunpack.c.l.b16 %v17581_v55 }
 0x2ba   :  { %v6106_v19 = vpack.c.b16 %v6017_v40, %v6003_v37  ;;  %v5553_v46 = vunpack.c.l.b16 %v17586_v3  ;;  %v5728_v33 = vrot.slane %v5540_v49, 6  ;;  %v5730_v2 = vrot.slane %v5541_v30, 5 }
 0x2bb   :  { %v5727_v54 = vsel %vm678_vm0, %v5726_v39, %v5538_v60  ;;  %v5732_v35 = vrot.slane %v5542_v50, 4  ;;  %v5734_v12 = vrot.slane %v5543_v36, 3  ;;  %v5736_v23 = vrot.slane %v5544_v63, 2 }
 0x2bc   :  { %11380 = vmatpush3.bf16.xpose.msra.mxu1 %v6106_v19  ;;  %v5729_v13 = vsel %vm681_vm1, %v5728_v33, %v5727_v54  ;;  %v5738_v26 = vrot.slane %v5545_v53, 1  ;;  %v5740_v16 = vrot.slane %v5547_v58, 7  ;;  %v5742_v8 = vrot.slane %v5548_v29, 6  ;;  %v17629_v19 = vld [vmem:[%s21356_s4 + $0x314] ss:$0 sps:$4 sm:$0x11]  }
 0x2bd   :  { %11381 = vmatprep.subr.bf16.mxu1 %v12576_v0  ;;  %v5731_v24 = vsel %vm684_vm2, %v5730_v2, %v5729_v13  ;;  %v5744_v61 = vrot.slane %v5549_v25, 5  ;;  %v5746_v56 = vrot.slane %v5550_v42, 4  ;;  %v5748_v14 = vrot.slane %v5551_v7, 3  ;;  %v17636_v2 = vld [vmem:[%s21356_s4 + $0x31c] ss:$0 sps:$4 sm:$0x11]  }
 0x2be   :  { %v5733_v32 = vsel %vm687_vm3, %v5732_v35, %v5731_v24  ;;  %v5741_v15 = vsel %vm678_vm0, %v5740_v16, %v5546_v21  ;;  %v5750_v47 = vrot.slane %v5552_v18, 2  ;;  %v5752_v31 = vrot.slane %v5553_v46, 1  ;;  %v17667_v13 = vld [vmem:[%s21356_s4 + $0x344] ss:$0 sps:$4 sm:$0x11]  }
 0x2bf   :  { %v5735_v34 = vsel %vm690_vm4, %v5734_v12, %v5733_v32  ;;  %v5743_v51 = vsel %vm681_vm1, %v5742_v8, %v5741_v15  ;;  %v6018_v37 = vrot.slane %v5538_v60, 1  ;;  %v6020_v41 = vrot.slane %v5540_v49, 7  ;;  %v17615_v49 = vld [vmem:[%s21356_s4 + $0x304] ss:$0 sps:$4 sm:$0x11]  }
 0x2c0   :  { %v5737_v28 = vsel %vm693_vm5, %v5736_v23, %v5735_v34  ;;  %v5745_v38 = vsel %vm684_vm2, %v5744_v61, %v5743_v51  ;;  %v6022_v48 = vrot.slane %v5541_v30, 6  ;;  %v6024_v45 = vrot.slane %v5542_v50, 5  ;;  %v17643_v12 = vld [vmem:[%s21356_s4 + $0x324] ss:$0 sps:$4 sm:$0x11]  }
 0x2c1   :  { %v5739_v20 = vsel %vm696_vm6, %v5738_v26, %v5737_v28  ;;  %v5747_v59 = vsel %vm687_vm3, %v5746_v56, %v5745_v38  ;;  %v6019_v4 = vsel %vm678_vm0, %v5539_v10, %v6018_v37  ;;  %v6026_v5 = vrot.slane %v5543_v36, 4  ;;  %v17622_v10 = vld [vmem:[%s21356_s4 + $0x30c] ss:$0 sps:$4 sm:$0x11]  }
 0x2c2   :  { %v5749_v6 = vsel %vm690_vm4, %v5748_v14, %v5747_v59  ;;  %v6021_v57 = vsel %vm681_vm1, %v6020_v41, %v6019_v4  ;;  %v6028_v44 = vrot.slane %v5544_v63, 3  ;;  %v6030_v60 = vrot.slane %v5545_v53, 2  ;;  %v17654_v23 = vld [vmem:[%s21356_s4 + $0x334] ss:$0 sps:$4 sm:$0x11]  }
 0x2c3   :  { %v5751_v30 = vsel %vm693_vm5, %v5750_v47, %v5749_v6  ;;  %v6023_v50 = vsel %vm684_vm2, %v6022_v48, %v6021_v57  ;;  %v6032_v40 = vrot.slane %v5546_v21, 1  ;;  %v6034_v55 = vrot.slane %v5548_v29, 7  ;;  %v17675_v24 = vld [vmem:[%s21356_s4 + $0x34c] ss:$0 sps:$4 sm:$0x11]  }
 0x2c4   :  { %v5753_v36 = vsel %vm696_vm6, %v5752_v31, %v5751_v30  ;;  %v6025_v63 = vsel %vm687_vm3, %v6024_v45, %v6023_v50  ;;  %v6036_v53 = vrot.slane %v5549_v25, 6  ;;  %v6038_v3 = vrot.slane %v5550_v42, 5  ;;  %v17680_v61 = vld [vmem:[%s21356_s4 + $0x354] ss:$0 sps:$4 sm:$0x11]  }
 0x2c5   :  { %v5815_v39 = vpack.c.b16 %v5753_v36, %v5739_v20  ;;  %v6027_v21 = vsel %vm690_vm4, %v6026_v5, %v6025_v63  ;;  %v6033_v29 = vsel %vm678_vm0, %v5547_v58, %v6032_v40  ;;  %v6040_v33 = vrot.slane %v5551_v7, 4  ;;  %v17649_v7 = vld [vmem:[%s21356_s4 + $0x32c] ss:$0 sps:$4 sm:$0x11]  }
 0x2c6   :  { %v6029_v54 = vsel %vm693_vm5, %v6028_v44, %v6027_v21  ;;  %v6035_v25 = vsel %vm681_vm1, %v6034_v55, %v6033_v29  ;;  %v6042_v42 = vrot.slane %v5552_v18, 3  ;;  %v6044_v35 = vrot.slane %v5553_v46, 2  ;;  %v17689_v47 = vld [vmem:[%s21356_s4 + $0x35c] ss:$0 sps:$4 sm:$0x11]  }
 0x2c7   :  { %11362 = vmatpush3.bf16.xpose.msra.mxu0 %v5815_v39  ;;  %v6037_v58 = vsel %vm684_vm2, %v6036_v53, %v6035_v25  ;;  %v6031_v18 = vsel %vm696_vm6, %v6030_v60, %v6029_v54  ;;  %v5554_v26 = vunpack.c.l.b16 %v17615_v49  ;;  %v5555_v16 = vunpack.c.l.b16 %v17622_v10  ;;  %v17694_v31 = vld [vmem:[%s21356_s4 + $0x364] ss:$0 sps:$4 sm:$0x11]   ;;  %v17703_v28 = vld [vmem:[%s21356_s4 + $0x36c] ss:$0 sps:$4 sm:$0x11]  }
 0x2c8   :  { %v6039_v46 = vsel %vm687_vm3, %v6038_v3, %v6037_v58  ;;  %11363 = vmatprep.subr.bf16.mxu0 %v12576_v0  ;;  %v5556_v56 = vunpack.c.l.b16 %v17629_v19  ;;  %v5557_v14 = vunpack.c.l.b16 %v17636_v2  ;;  %v5558_v32 = vunpack.c.l.b16 %v17643_v12  ;;  %v17708_v38 = vld [vmem:[%s21356_s4 + $0x374] ss:$0 sps:$4 sm:$0x11]   ;;  %v17716_v4 = vld [vmem:[%s21356_s4 + $0x37c] ss:$0 sps:$4 sm:$0x11]  }
 0x2c9   :  { %v6041_v8 = vsel %vm690_vm4, %v6040_v33, %v6039_v46  ;;  %v5559_v34 = vunpack.c.l.b16 %v17649_v7  ;;  %v5560_v51 = vunpack.c.l.b16 %v17654_v23  ;;  %v5561_v37 = vunpack.c.l.b16 %v17662_v27 }
 0x2ca   :  { %v6043_v15 = vsel %vm693_vm5, %v6042_v42, %v6041_v8  ;;  %v5562_v48 = vunpack.c.l.b16 %v17667_v13  ;;  %v5563_v45 = vunpack.c.l.b16 %v17675_v24  ;;  %v5564_v20 = vunpack.c.l.b16 %v17680_v61 }
 0x2cb   :  { %v6045_v41 = vsel %vm696_vm6, %v6044_v35, %v6043_v15  ;;  %v5565_v5 = vunpack.c.l.b16 %v17689_v47  ;;  %v5566_v6 = vunpack.c.l.b16 %v17694_v31  ;;  %v5754_v57 = vrot.slane %v5555_v16, 7 }
 0x2cc   :  { %v6107_v59 = vpack.c.b16 %v6045_v41, %v6031_v18  ;;  %v5567_v44 = vunpack.c.l.b16 %v17703_v28  ;;  %v5568_v60 = vunpack.c.l.b16 %v17708_v38  ;;  %v5756_v49 = vrot.slane %v5556_v56, 6 }
 0x2cd   :  { %v5758_v30 = vrot.slane %v5557_v14, 5  ;;  %v5569_v50 = vunpack.c.l.b16 %v17716_v4  ;;  %v5755_v40 = vsel %vm678_vm0, %v5754_v57, %v5554_v26  ;;  %v5760_v55 = vrot.slane %v5558_v32, 4 }
 0x2ce   :  { %11382 = vmatpush3.bf16.xpose.msra.mxu1 %v6107_v59  ;;  %v5762_v10 = vrot.slane %v5559_v34, 3  ;;  %v5757_v36 = vsel %vm681_vm1, %v5756_v49, %v5755_v40  ;;  %v5764_v63 = vrot.slane %v5560_v51, 2  ;;  %v5766_v53 = vrot.slane %v5561_v37, 1  ;;  %v17762_v49 = vld [vmem:[%s21356_s4 + $0x39c] ss:$0 sps:$4 sm:$0x11]  }
 0x2cf   :  { %v5768_v3 = vrot.slane %v5563_v45, 7  ;;  %11383 = vmatprep.subr.bf16.mxu1 %v12576_v0  ;;  %v5759_v19 = vsel %vm684_vm2, %v5758_v30, %v5757_v36  ;;  %v5770_v39 = vrot.slane %v5564_v20, 6  ;;  %v5772_v21 = vrot.slane %v5565_v5, 5 }
 0x2d0   :  { %v5774_v29 = vrot.slane %v5566_v6, 4  ;;  %v5761_v33 = vsel %vm687_vm3, %v5760_v55, %v5759_v19  ;;  %v5776_v54 = vrot.slane %v5567_v44, 3  ;;  %v5778_v25 = vrot.slane %v5568_v60, 2  ;;  %v17769_v55 = vld [vmem:[%s21356_s4 + $0x3a4] ss:$0 sps:$4 sm:$0x11]  }
 0x2d1   :  { %v5769_v2 = vsel %vm678_vm0, %v5768_v3, %v5562_v48  ;;  %v5763_v42 = vsel %vm690_vm4, %v5762_v10, %v5761_v33  ;;  %v5780_v12 = vrot.slane %v5569_v50, 1  ;;  %v6046_v58 = vrot.slane %v5554_v26, 1  ;;  %v17775_v10 = vld [vmem:[%s21356_s4 + $0x3ac] ss:$0 sps:$4 sm:$0x11]  }
 0x2d2   :  { %v5771_v35 = vsel %vm681_vm1, %v5770_v39, %v5769_v2  ;;  %v5765_v7 = vsel %vm693_vm5, %v5764_v63, %v5763_v42  ;;  %v6048_v18 = vrot.slane %v5556_v56, 7  ;;  %v6050_v46 = vrot.slane %v5557_v14, 6  ;;  %v17743_v14 = vld [vmem:[%s21356_s4 + $0x384] ss:$0 sps:$4 sm:$0x11]  }
 0x2d3   :  { %v5773_v23 = vsel %vm684_vm2, %v5772_v21, %v5771_v35  ;;  %v5767_v27 = vsel %vm696_vm6, %v5766_v53, %v5765_v7  ;;  %v6047_v8 = vsel %vm678_vm0, %v5555_v16, %v6046_v58  ;;  %v6052_v24 = vrot.slane %v5558_v32, 5  ;;  %v17748_v16 = vld [vmem:[%s21356_s4 + $0x38c] ss:$0 sps:$4 sm:$0x11]  }
 0x2d4   :  { %v5775_v13 = vsel %vm687_vm3, %v5774_v29, %v5773_v23  ;;  %v6049_v15 = vsel %vm681_vm1, %v6048_v18, %v6047_v8  ;;  %v6054_v47 = vrot.slane %v5559_v34, 4  ;;  %v6056_v31 = vrot.slane %v5560_v51, 3  ;;  %v17794_v53 = vld [vmem:[%s21356_s4 + $0x3c4] ss:$0 sps:$4 sm:$0x11]  }
 0x2d5   :  { %v5777_v61 = vsel %vm690_vm4, %v5776_v54, %v5775_v13  ;;  %v6051_v41 = vsel %vm684_vm2, %v6050_v46, %v6049_v15  ;;  %v6058_v28 = vrot.slane %v5561_v37, 2  ;;  %v6060_v56 = vrot.slane %v5562_v48, 1  ;;  %v17755_v37 = vld [vmem:[%s21356_s4 + $0x394] ss:$0 sps:$4 sm:$0x11]  }
 0x2d6   :  { %v5779_v26 = vsel %vm693_vm5, %v5778_v25, %v5777_v61  ;;  %v6053_v34 = vsel %vm687_vm3, %v6052_v24, %v6051_v41  ;;  %v6062_v51 = vrot.slane %v5564_v20, 7  ;;  %v6064_v38 = vrot.slane %v5565_v5, 6  ;;  %v17799_v3 = vld [vmem:[%s21356_s4 + $0x3cc] ss:$0 sps:$4 sm:$0x11]  }
 0x2d7   :  { %v5781_v32 = vsel %vm696_vm6, %v5780_v12, %v5779_v26  ;;  %v6055_v59 = vsel %vm690_vm4, %v6054_v47, %v6053_v34  ;;  %v6061_v4 = vsel %vm678_vm0, %v5563_v45, %v6060_v56  ;;  %v6066_v57 = vrot.slane %v5566_v6, 5  ;;  %v17808_v33 = vld [vmem:[%s21356_s4 + $0x3d4] ss:$0 sps:$4 sm:$0x11]  }
 0x2d8   :  { %v5816_v48 = vpack.c.b16 %v5781_v32, %v5767_v27  ;;  %v6057_v30 = vsel %vm693_vm5, %v6056_v31, %v6055_v59  ;;  %v6063_v20 = vsel %vm681_vm1, %v6062_v51, %v6061_v4  ;;  %v6068_v5 = vrot.slane %v5567_v44, 4  ;;  %v17783_v44 = vld [vmem:[%s21356_s4 + $0x3b4] ss:$0 sps:$4 sm:$0x11]  }
 0x2d9   :  { %v6070_v40 = vrot.slane %v5568_v60, 3  ;;  %v6065_v45 = vsel %vm684_vm2, %v6064_v38, %v6063_v20  ;;  %v6072_v6 = vrot.slane %v5569_v50, 2  ;;  %v6059_v36 = vsel %vm696_vm6, %v6058_v28, %v6057_v30  ;;  %v17788_v60 = vld [vmem:[%s21356_s4 + $0x3bc] ss:$0 sps:$4 sm:$0x11]  }
 0x2da   :  { %11364 = vmatpush3.bf16.xpose.msra.mxu0 %v5816_v48  ;;  %v6067_v63 = vsel %vm687_vm3, %v6066_v57, %v6065_v45  ;;  %v5570_v19 = vunpack.c.l.b16 %v17743_v14  ;;  %v5571_v39 = vunpack.c.l.b16 %v17748_v16  ;;  %v5572_v21 = vunpack.c.l.b16 %v17755_v37  ;;  %v17813_v2 = vld [vmem:[%s21356_s4 + $0x3dc] ss:$0 sps:$4 sm:$0x11]   ;;  %v17822_v12 = vld [vmem:[%s21356_s4 + $0x3e4] ss:$0 sps:$4 sm:$0x11]  }
 0x2db   :  { %11365 = vmatprep.subr.bf16.mxu0 %v12576_v0  ;;  %v6069_v50 = vsel %vm690_vm4, %v6068_v5, %v6067_v63  ;;  %v5573_v54 = vunpack.c.l.b16 %v17762_v49  ;;  %v5574_v25 = vunpack.c.l.b16 %v17769_v55  ;;  %v5575_v42 = vunpack.c.l.b16 %v17775_v10  ;;  %v17827_v58 = vld [vmem:[%s21356_s4 + $0x3ec] ss:$0 sps:$4 sm:$0x11]   ;;  %v17835_v27 = vld [vmem:[%s21356_s4 + $0x3f4] ss:$0 sps:$4 sm:$0x11]  }
 0x2dc   :  { %v6071_v29 = vsel %vm693_vm5, %v6070_v40, %v6069_v50  ;;  %v5576_v7 = vunpack.c.l.b16 %v17783_v44  ;;  %v5577_v23 = vunpack.c.l.b16 %v17788_v60  ;;  %v5578_v18 = vunpack.c.l.b16 %v17794_v53  ;;  %v17840_v13 = vld [vmem:[%s21356_s4 + $0x3fc] ss:$0 sps:$4 sm:$0x11]  }
 0x2dd   :  { %v6073_v35 = vsel %vm696_vm6, %v6072_v6, %v6071_v29  ;;  %v5579_v8 = vunpack.c.l.b16 %v17799_v3  ;;  %v5580_v24 = vunpack.c.l.b16 %v17808_v33  ;;  %v5581_v61 = vunpack.c.l.b16 %v17813_v2 }
 0x2de   :  { %v6108_v46 = vpack.c.b16 %v6073_v35, %v6059_v36  ;;  %v5582_v15 = vunpack.c.l.b16 %v17822_v12  ;;  %v5583_v47 = vunpack.c.l.b16 %v17827_v58  ;;  %v5782_v31 = vrot.slane %v5571_v39, 7  ;;  %v17868_v35 = vld [vmem:[%s21356_s4 + $0x4] ss:$0 sps:$4 sm:$0x22]  }
 0x2df   :  { %v5784_v26 = vrot.slane %v5572_v21, 6  ;;  %v5584_v41 = vunpack.c.l.b16 %v17835_v27  ;;  %v5585_v28 = vunpack.c.l.b16 %v17840_v13  ;;  %v5786_v56 = vrot.slane %v5573_v54, 5 }
 0x2e0   :  { %11384 = vmatpush3.bf16.xpose.msra.mxu1 %v6108_v46  ;;  %v5788_v14 = vrot.slane %v5574_v25, 4  ;;  %v5783_v16 = vsel %vm678_vm0, %v5782_v31, %v5570_v19  ;;  %v5790_v32 = vrot.slane %v5575_v42, 3  ;;  %v5792_v34 = vrot.slane %v5576_v7, 2  ;;  %v17887_v31 = vld [vmem:[%s21356_s4 + $0x1c] ss:$0 sps:$4 sm:$0x22]  }
 0x2e1   :  { %v5794_v51 = vrot.slane %v5577_v23, 1  ;;  %11385 = vmatprep.subr.bf16.mxu1 %v12576_v0  ;;  %v5785_v38 = vsel %vm681_vm1, %v5784_v26, %v5783_v16  ;;  %v5796_v37 = vrot.slane %v5579_v8, 7  ;;  %v5798_v48 = vrot.slane %v5580_v24, 6 }
 0x2e2   :  { %v5800_v59 = vrot.slane %v5581_v61, 5  ;;  %v5787_v4 = vsel %vm684_vm2, %v5786_v56, %v5785_v38  ;;  %v5802_v57 = vrot.slane %v5582_v15, 4  ;;  %v5804_v49 = vrot.slane %v5583_v47, 3  ;;  %v17924_v38 = vld [vmem:[%s21356_s4 + $0x4c] ss:$0 sps:$4 sm:$0x22]  }
 0x2e3   :  { %v5806_v30 = vrot.slane %v5584_v41, 2  ;;  %v5789_v20 = vsel %vm687_vm3, %v5788_v14, %v5787_v4  ;;  %v5797_v5 = vsel %vm678_vm0, %v5796_v37, %v5578_v18  ;;  %v5808_v40 = vrot.slane %v5585_v28, 1  ;;  %v17894_v14 = vld [vmem:[%s21356_s4 + $0x24] ss:$0 sps:$4 sm:$0x22]  }
 0x2e4   :  { %v6074_v55 = vrot.slane %v5570_v19, 1  ;;  %v5791_v45 = vsel %vm690_vm4, %v5790_v32, %v5789_v20  ;;  %v5799_v6 = vsel %vm681_vm1, %v5798_v48, %v5797_v5  ;;  %v6076_v10 = vrot.slane %v5572_v21, 7  ;;  %v17900_v32 = vld [vmem:[%s21356_s4 + $0x2c] ss:$0 sps:$4 sm:$0x22]  }
 0x2e5   :  { %v6078_v36 = vrot.slane %v5573_v54, 6  ;;  %v5793_v63 = vsel %vm693_vm5, %v5792_v34, %v5791_v45  ;;  %v5801_v44 = vsel %vm684_vm2, %v5800_v59, %v5799_v6  ;;  %v6080_v50 = vrot.slane %v5574_v25, 5  ;;  %v17952_v45 = vld [vmem:[%s21356_s4 + $0x6c] ss:$0 sps:$4 sm:$0x22]  }
 0x2e6   :  { %v6075_v60 = vsel %vm678_vm0, %v5571_v39, %v6074_v55  ;;  %v5795_v53 = vsel %vm696_vm6, %v5794_v51, %v5793_v63  ;;  %v5803_v3 = vsel %vm687_vm3, %v5802_v57, %v5801_v44  ;;  %v6082_v19 = vrot.slane %v5575_v42, 4  ;;  %v17873_v39 = vld [vmem:[%s21356_s4 + $0xc] ss:$0 sps:$4 sm:$0x22]  }
 0x2e7   :  { %v6077_v29 = vsel %vm681_vm1, %v6076_v10, %v6075_v60  ;;  %v5805_v33 = vsel %vm690_vm4, %v5804_v49, %v5803_v3  ;;  %v6084_v21 = vrot.slane %v5576_v7, 3  ;;  %v6086_v54 = vrot.slane %v5577_v23, 2  ;;  %v17880_v7 = vld [vmem:[%s21356_s4 + $0x14] ss:$0 sps:$4 sm:$0x22]  }
 0x2e8   :  { %v6079_v2 = vsel %vm684_vm2, %v6078_v36, %v6077_v29  ;;  %v5807_v25 = vsel %vm693_vm5, %v5806_v30, %v5805_v33  ;;  %v6088_v12 = vrot.slane %v5578_v18, 1  ;;  %v6090_v58 = vrot.slane %v5580_v24, 7  ;;  %v17919_v51 = vld [vmem:[%s21356_s4 + $0x44] ss:$0 sps:$4 sm:$0x22]  }
 0x2e9   :  { %v6081_v42 = vsel %vm687_vm3, %v6080_v50, %v6079_v2  ;;  %v5809_v23 = vsel %vm696_vm6, %v5808_v40, %v5807_v25  ;;  %v6092_v27 = vrot.slane %v5581_v61, 6  ;;  %v6094_v13 = vrot.slane %v5582_v15, 5  ;;  %v17933_v57 = vld [vmem:[%s21356_s4 + $0x54] ss:$0 sps:$4 sm:$0x22]   ;;  %v12572_v25 = vld [vmem:[%s21357_s0] sm:$0xff]  }
 0x2ea   :  { %v6083_v46 = vsel %vm690_vm4, %v6082_v19, %v6081_v42  ;;  %v5817_v26 = vpack.c.b16 %v5809_v23, %v5795_v53  ;;  %v6089_v24 = vsel %vm678_vm0, %v5579_v8, %v6088_v12  ;;  %v6096_v56 = vrot.slane %v5583_v47, 4  ;;  %v17907_v47 = vld [vmem:[%s21356_s4 + $0x34] ss:$0 sps:$4 sm:$0x22]  }
 0x2eb   :  { %v6085_v18 = vsel %vm693_vm5, %v6084_v21, %v6083_v46  ;;  %v6091_v16 = vsel %vm681_vm1, %v6090_v58, %v6089_v24  ;;  %v6098_v61 = vrot.slane %v5584_v41, 3  ;;  %v6100_v15 = vrot.slane %v5585_v28, 2  ;;  %v17912_v41 = vld [vmem:[%s21356_s4 + $0x3c] ss:$0 sps:$4 sm:$0x22]  }
 0x2ec   :  { %11366 = vmatpush3.bf16.xpose.msra.mxu0 %v5817_v26  ;;  %v6087_v34 = vsel %vm696_vm6, %v6086_v54, %v6085_v18  ;;  %v6093_v8 = vsel %vm684_vm2, %v6092_v27, %v6091_v16  ;;  %v6682_v37 = vunpack.c.l.b16 %v17868_v35  ;;  %v6683_v48 = vunpack.c.l.b16 %v17873_v39  ;;  %v17938_v49 = vld [vmem:[%s21356_s4 + $0x5c] ss:$0 sps:$4 sm:$0x22]   ;;  %v17947_v55 = vld [vmem:[%s21356_s4 + $0x64] ss:$0 sps:$4 sm:$0x22]  }
 0x2ed   :  { %v6095_v28 = vsel %vm687_vm3, %v6094_v13, %v6093_v8  ;;  %11391 = vmatprep.subr.bf16.mxu0 %v12576_v0  ;;  %v6684_v59 = vunpack.c.l.b16 %v17880_v7  ;;  %v6685_v30 = vunpack.c.l.b16 %v17887_v31  ;;  %v6686_v20 = vunpack.c.l.b16 %v17894_v14  ;;  %v17961_v44 = vld [vmem:[%s21356_s4 + $0x74] ss:$0 sps:$4 sm:$0x22]   ;;  %v17966_v60 = vld [vmem:[%s21356_s4 + $0x7c] ss:$0 sps:$4 sm:$0x22]  }
 0x2ee   :  { %v6097_v4 = vsel %vm690_vm4, %v6096_v56, %v6095_v28  ;;  %v6687_v5 = vunpack.c.l.b16 %v17900_v32  ;;  %v6688_v6 = vunpack.c.l.b16 %v17907_v47  ;;  %v6689_v10 = vunpack.c.l.b16 %v17912_v41  ;;  %v18020_v31 = vld [vmem:[%s21356_s4 + $0x94] ss:$0 sps:$4 sm:$0x22]  }
 0x2ef   :  { %v6099_v40 = vsel %vm693_vm5, %v6098_v61, %v6097_v4  ;;  %v6690_v36 = vunpack.c.l.b16 %v17919_v51  ;;  %v6691_v50 = vunpack.c.l.b16 %v17924_v38  ;;  %v6692_v53 = vunpack.c.l.b16 %v17933_v57 }
 0x2f0   :  { %v6101_v63 = vsel %vm696_vm6, %v6100_v15, %v6099_v40  ;;  %v6693_v3 = vunpack.c.l.b16 %v17938_v49  ;;  %v6694_v19 = vunpack.c.l.b16 %v17947_v55  ;;  %v6695_v33 = vunpack.c.l.b16 %v17952_v45  ;;  %v18055_v49 = vld [vmem:[%s21356_s4 + $0xbc] ss:$0 sps:$4 sm:$0x22]  }
 0x2f1   :  { %v6109_v29 = vpack.c.b16 %v6101_v63, %v6087_v34  ;;  %v6810_v2 = vrot.slane %v6682_v37, 2  ;;  %v6696_v21 = vunpack.c.l.b16 %v17961_v44  ;;  %v6697_v54 = vunpack.c.l.b16 %v17966_v60  ;;  %v18011_v60 = vld [vmem:[%s21356_s4 + $0x8c] ss:$0 sps:$4 sm:$0x22]  }
 0x2f2   :  { %v6811_v35 = vrot.slane %v6683_v48, 1  ;;  %v6814_v39 = vrot.slane %v6685_v30, 7  ;;  %v6816_v42 = vrot.slane %v6686_v20, 6  ;;  %v6818_v12 = vrot.slane %v6687_v5, 5 }
 0x2f3   :  { %11386 = vmatpush3.bf16.xpose.msra.mxu1 %v6109_v29  ;;  %11368 = vmatmul.mubr.bf16.vlgmr.msra.gmra.mrb[16].mxu0 %v12572_v25  ;;  %v6820_v58 = vrot.slane %v6688_v6, 4  ;;  %v6822_v7 = vrot.slane %v6689_v10, 3  ;;  %v6824_v46 = vrot.slane %v6690_v36, 2  ;;  %v6825_v27 = vrot.slane %v6691_v50, 1 }
 0x2f4   :  { %v6812_v23 = vsel %vm678_vm0, %v6811_v35, %v6810_v2  ;;  %v6828_v13 = vrot.slane %v6693_v3, 7  ;;  %11411 = vmatprep.subr.bf16.mxu1 %v12576_v0  ;;  %11407 = vmatprep.mubr.msk.bf16.mxu0 %vm12577_vm7, %v12576_v0  ;;  %v6830_v18 = vrot.slane %v6694_v19, 6  ;;  %v6832_v24 = vrot.slane %v6695_v33, 5 }
 0x2f5   :  { %v6813_v26 = vsel %vm681_vm1, %v6684_v59, %v6812_v23  ;;  %v6834_v56 = vrot.slane %v6696_v21, 4  ;;  %v6826_v16 = vsel %vm678_vm0, %v6825_v27, %v6824_v46  ;;  %v6836_v61 = vrot.slane %v6697_v54, 3 }
 0x2f6   :  { %v6815_v14 = vsel %vm684_vm2, %v6814_v39, %v6813_v26  ;;  %v7102_v15 = vrot.slane %v6682_v37, 3  ;;  %v6827_v34 = vsel %vm681_vm1, %v6692_v53, %v6826_v16  ;;  %v7103_v8 = vrot.slane %v6683_v48, 2  ;;  %v18068_v26 = vld [vmem:[%s21356_s4 + $0xcc] ss:$0 sps:$4 sm:$0x22]  }
 0x2f7   :  { %v6817_v32 = vsel %vm687_vm3, %v6816_v42, %v6815_v14  ;;  %v7105_v47 = vrot.slane %v6684_v59, 1  ;;  %v6829_v28 = vsel %vm684_vm2, %v6828_v13, %v6827_v34  ;;  %v7108_v51 = vrot.slane %v6686_v20, 7  ;;  %v18002_v20 = vld [vmem:[%s21356_s4 + $0x84] ss:$0 sps:$4 sm:$0x22]  }
 0x2f8   :  { %v6819_v41 = vsel %vm690_vm4, %v6818_v12, %v6817_v32  ;;  %v7110_v38 = vrot.slane %v6687_v5, 6  ;;  %v6831_v57 = vsel %vm687_vm3, %v6830_v18, %v6829_v28  ;;  %v7104_v40 = vsel %vm678_vm0, %v7103_v8, %v7102_v15  ;;  %v18073_v18 = vld [vmem:[%s21356_s4 + $0xd4] ss:$0 sps:$4 sm:$0x22]  }
 0x2f9   :  { %v6821_v4 = vsel %vm693_vm5, %v6820_v58, %v6819_v41  ;;  %v7112_v55 = vrot.slane %v6688_v6, 5  ;;  %v6833_v45 = vsel %vm690_vm4, %v6832_v24, %v6831_v57  ;;  %v7106_v48 = vsel %vm681_vm1, %v7105_v47, %v7104_v40  ;;  %v18034_v58 = vld [vmem:[%s21356_s4 + $0xa4] ss:$0 sps:$4 sm:$0x22]  }
 0x2fa   :  { %v6823_v37 = vsel %vm696_vm6, %v6822_v7, %v6821_v4  ;;  %11388 = vmatmul.mubr.bf16.vlgmr.msra.gmra.mrb[16].mxu1 %v12572_v25  ;;  %v7114_v59 = vrot.slane %v6689_v10, 4  ;;  %v6835_v5 = vsel %vm693_vm5, %v6834_v56, %v6833_v45  ;;  %v7107_v63 = vsel %vm684_vm2, %v6685_v30, %v7106_v48  ;;  %v18027_v25 = vld [vmem:[%s21356_s4 + $0x9c] ss:$0 sps:$4 sm:$0x22]  }
 0x2fb   :  { %v7116_v6 = vrot.slane %v6690_v36, 3  ;;  %v7117_v44 = vrot.slane %v6691_v50, 2  ;;  %11427 = vmatprep.mubr.msk.bf16.mxu1 %vm12577_vm7, %v12576_v0  ;;  %v6837_v10 = vsel %vm696_vm6, %v6836_v61, %v6835_v5  ;;  %v7109_v29 = vsel %vm687_vm3, %v7108_v51, %v7107_v63  ;;  %v18042_v7 = vld [vmem:[%s21356_s4 + $0xac] ss:$0 sps:$4 sm:$0x22]  }
 0x2fc   :  { %v7119_v2 = vrot.slane %v6692_v53, 1  ;;  %v7122_v35 = vrot.slane %v6694_v19, 7  ;;  %v7034_v30 = vpack.c.b16 %v6837_v10, %v6823_v37  ;;  %v7111_v36 = vsel %vm690_vm4, %v7110_v38, %v7109_v29  ;;  %v18082_v61 = vld [vmem:[%s21356_s4 + $0xdc] ss:$0 sps:$4 sm:$0x22]  }
 0x2fd   :  { %v7118_v50 = vsel %vm678_vm0, %v7117_v44, %v7116_v6  ;;  %v7124_v39 = vrot.slane %v6695_v33, 6  ;;  %v7113_v42 = vsel %vm693_vm5, %v7112_v55, %v7111_v36  ;;  %v7126_v19 = vrot.slane %v6696_v21, 5  ;;  %v18047_v21 = vld [vmem:[%s21356_s4 + $0xb4] ss:$0 sps:$4 sm:$0x22]  }
 0x2fe   :  { %v7120_v53 = vsel %vm681_vm1, %v7119_v2, %v7118_v50  ;;  %v7128_v12 = vrot.slane %v6697_v54, 4  ;;  %11392 = vmatpush3.bf16.xpose.msra.mxu0 %v7034_v30  ;;  %v7115_v54 = vsel %vm696_vm6, %v7114_v59, %v7113_v42  ;;  %v6698_v46 = vunpack.c.l.b16 %v18002_v20  ;;  %v18087_v15 = vld [vmem:[%s21356_s4 + $0xe4] ss:$0 sps:$4 sm:$0x22]  }
 0x2ff   :  { %v7121_v33 = vsel %vm684_vm2, %v6693_v3, %v7120_v53  ;;  %11393 = vmatprep.subr.bf16.mxu0 %v12576_v0  ;;  %v18060_v3 = vld [vmem:[%s21356_s4 + $0xc4] ss:$0 sps:$4 sm:$0x22]   ;;  %v6699_v27 = vunpack.c.l.b16 %v18011_v60  ;;  %v6700_v24 = vunpack.c.l.b16 %v18020_v31  ;;  %v6701_v56 = vunpack.c.l.b16 %v18027_v25  ;;  %v12206_v41 = vld [vmem:[%s21356_s4 + $0xec] ss:$0 sps:$4 sm:$0x22]  }
 0x300   :  { %v7123_v23 = vsel %vm687_vm3, %v7122_v35, %v7121_v33  ;;  %v6702_v14 = vunpack.c.l.b16 %v18034_v58  ;;  %v6703_v32 = vunpack.c.l.b16 %v18042_v7  ;;  %v6704_v34 = vunpack.c.l.b16 %v18047_v21  ;;  %v18099_v28 = vld [vmem:[%s21356_s4 + $0xf4] ss:$0 sps:$4 sm:$0x22]   ;;  %v12208_v40 = vld [vmem:[%s21356_s4 + $0xfc] ss:$0 sps:$4 sm:$0x22]  }
 0x301   :  { %v7125_v13 = vsel %vm690_vm4, %v7124_v39, %v7123_v23  ;;  %v6705_v8 = vunpack.c.l.b16 %v18055_v49  ;;  %v6706_v51 = vunpack.c.l.b16 %v18060_v3  ;;  %v6707_v38 = vunpack.c.l.b16 %v18068_v26 }
 0x302   :  { %v7127_v16 = vsel %vm693_vm5, %v7126_v19, %v7125_v13  ;;  %v6708_v4 = vunpack.c.l.b16 %v18073_v18  ;;  %v6709_v55 = vunpack.c.l.b16 %v18082_v61  ;;  %v6710_v37 = vunpack.c.l.b16 %v18087_v15  ;;  %v18130_v15 = vld [vmem:[%s21356_s4 + $0x104] ss:$0 sps:$4 sm:$0x22]  }
 0x303   :  { %v7129_v47 = vsel %vm696_vm6, %v7128_v12, %v7127_v16  ;;  %v6838_v45 = vrot.slane %v6698_v46, 2  ;;  %v6711_v48 = vunpack.c.l.b16 %v12206_v41  ;;  %v6712_v59 = vunpack.c.l.b16 %v18099_v28 }
 0x304   :  { %v7326_v57 = vpack.c.b16 %v7129_v47, %v7115_v54  ;;  %v6839_v20 = vrot.slane %v6699_v27, 1  ;;  %v6842_v5 = vrot.slane %v6701_v56, 7  ;;  %v6713_v63 = vunpack.c.l.b16 %v12208_v40 }
 0x305   :  { %v6844_v6 = vrot.slane %v6702_v14, 6  ;;  %v6846_v44 = vrot.slane %v6703_v32, 5  ;;  %v6848_v60 = vrot.slane %v6704_v34, 4  ;;  %v6850_v29 = vrot.slane %v6705_v8, 3 }
 0x306   :  { %11412 = vmatpush3.bf16.xpose.msra.mxu1 %v7326_v57  ;;  %v6840_v10 = vsel %vm678_vm0, %v6839_v20, %v6838_v45  ;;  %v6852_v2 = vrot.slane %v6706_v51, 2  ;;  %v6853_v35 = vrot.slane %v6707_v38, 1  ;;  %v6856_v30 = vrot.slane %v6709_v55, 7  ;;  %v18144_v45 = vld [vmem:[%s21356_s4 + $0x114] ss:$0 sps:$4 sm:$0x22]  }
 0x307   :  { %11413 = vmatprep.subr.bf16.mxu1 %v12576_v0  ;;  %v6841_v31 = vsel %vm681_vm1, %v6700_v24, %v6840_v10  ;;  %v6858_v36 = vrot.slane %v6710_v37, 6  ;;  %v6860_v50 = vrot.slane %v6711_v48, 5  ;;  %v6862_v42 = vrot.slane %v6712_v59, 4 }
 0x308   :  { %v6843_v39 = vsel %vm684_vm2, %v6842_v5, %v6841_v31  ;;  %v6854_v25 = vsel %vm678_vm0, %v6853_v35, %v6852_v2  ;;  %v6864_v53 = vrot.slane %v6713_v63, 3  ;;  %v7130_v58 = vrot.slane %v6698_v46, 3  ;;  %v18150_v5 = vld [vmem:[%s21356_s4 + $0x11c] ss:$0 sps:$4 sm:$0x22]  }
 0x309   :  { %v6845_v19 = vsel %vm687_vm3, %v6844_v6, %v6843_v39  ;;  %v6855_v12 = vsel %vm681_vm1, %v6708_v4, %v6854_v25  ;;  %v7131_v33 = vrot.slane %v6699_v27, 2  ;;  %v7133_v54 = vrot.slane %v6700_v24, 1  ;;  %v18183_v2 = vld [vmem:[%s21356_s4 + $0x13c] ss:$0 sps:$4 sm:$0x22]  }
 0x30a   :  { %v6847_v7 = vsel %vm690_vm4, %v6846_v44, %v6845_v19  ;;  %v6857_v21 = vsel %vm684_vm2, %v6856_v30, %v6855_v12  ;;  %v7136_v23 = vrot.slane %v6702_v14, 7  ;;  %v7138_v26 = vrot.slane %v6703_v32, 6  ;;  %v18137_v32 = vld [vmem:[%s21356_s4 + $0x10c] ss:$0 sps:$4 sm:$0x22]  }
 0x30b   :  { %v6849_v49 = vsel %vm693_vm5, %v6848_v60, %v6847_v7  ;;  %v6859_v3 = vsel %vm687_vm3, %v6858_v36, %v6857_v21  ;;  %v7132_v13 = vsel %vm678_vm0, %v7131_v33, %v7130_v58  ;;  %v7140_v27 = vrot.slane %v6704_v34, 5  ;;  %v18188_v35 = vld [vmem:[%s21356_s4 + $0x144] ss:$0 sps:$4 sm:$0x22]  }
 0x30c   :  { %v6851_v18 = vsel %vm696_vm6, %v6850_v29, %v6849_v49  ;;  %v6861_v16 = vsel %vm690_vm4, %v6860_v50, %v6859_v3  ;;  %v7134_v46 = vsel %vm681_vm1, %v7133_v54, %v7132_v13  ;;  %v7142_v47 = vrot.slane %v6705_v8, 4  ;;  %v18169_v29 = vld [vmem:[%s21356_s4 + $0x12c] ss:$0 sps:$4 sm:$0x22]  }
 0x30d   :  { %v6863_v24 = vsel %vm693_vm5, %v6862_v42, %v6861_v16  ;;  %v7135_v14 = vsel %vm684_vm2, %v6701_v56, %v7134_v46  ;;  %v7144_v41 = vrot.slane %v6706_v51, 3  ;;  %v7145_v57 = vrot.slane %v6707_v38, 2  ;;  %v18155_v38 = vld [vmem:[%s21359_s5 + $0x2] ss:$0 sm:$0xff] }
 0x30e   :  { %v6865_v28 = vsel %vm696_vm6, %v6864_v53, %v6863_v24  ;;  %v7137_v34 = vsel %vm687_vm3, %v7136_v23, %v7135_v14  ;;  %v7147_v40 = vrot.slane %v6708_v4, 1  ;;  %v7150_v8 = vrot.slane %v6710_v37, 7  ;;  %v18162_v37 = vld [vmem:[%s21356_s4 + $0x124] ss:$0 sps:$4 sm:$0x22]  }
 0x30f   :  { %v7035_v20 = vpack.c.b16 %v6865_v28, %v6851_v18  ;;  %v7139_v56 = vsel %vm690_vm4, %v7138_v26, %v7137_v34  ;;  %v7152_v51 = vrot.slane %v6711_v48, 6  ;;  %v7146_v6 = vsel %vm678_vm0, %v7145_v57, %v7144_v41  ;;  %v18197_v36 = vld [vmem:[%s21356_s4 + $0x14c] ss:$0 sps:$4 sm:$0x22]  }
 0x310   :  { %v7141_v4 = vsel %vm693_vm5, %v7140_v27, %v7139_v56  ;;  %v7154_v44 = vrot.slane %v6712_v59, 5  ;;  %v7156_v60 = vrot.slane %v6713_v63, 4  ;;  %v7148_v10 = vsel %vm681_vm1, %v7147_v40, %v7146_v6  ;;  %v18174_v59 = vld [vmem:[%s21356_s4 + $0x134] ss:$0 sps:$4 sm:$0x22]  }
 0x311   :  { %11394 = vmatpush3.bf16.xpose.msra.mxu0 %v7035_v20  ;;  %v7143_v48 = vsel %vm696_vm6, %v7142_v47, %v7141_v4  ;;  %v7149_v63 = vsel %vm684_vm2, %v6709_v55, %v7148_v10  ;;  %v6714_v31 = vunpack.c.l.b16 %v18130_v15  ;;  %v6715_v30 = vunpack.c.l.b16 %v18137_v32  ;;  %v18202_v50 = vld [vmem:[%s21356_s4 + $0x154] ss:$0 sps:$4 sm:$0x22]   ;;  %v18211_v19 = vld [vmem:[%s21356_s4 + $0x15c] ss:$0 sps:$4 sm:$0x22]  }
 0x312   :  { %11395 = vmatprep.subr.bf16.mxu0 %v12576_v0  ;;  %v6716_v61 = vunpack.c.l.b16 %v18144_v45  ;;  %v7151_v55 = vsel %vm687_vm3, %v7150_v8, %v7149_v63  ;;  %v6717_v39 = vunpack.c.l.b16 %v18150_v5  ;;  %v6718_v25 = vunpack.c.l.b16 %v18162_v37  ;;  %v18216_v12 = vld [vmem:[%s21356_s4 + $0x164] ss:$0 sps:$4 sm:$0x22]   ;;  %v18226_v21 = vld [vmem:[%s21356_s4 + $0x16c] ss:$0 sps:$4 sm:$0x22]  }
 0x313   :  { %v6719_v42 = vunpack.c.l.b16 %v18169_v29  ;;  %v7153_v53 = vsel %vm690_vm4, %v7152_v51, %v7151_v55  ;;  %v6720_v58 = vunpack.c.l.b16 %v18174_v59  ;;  %v6721_v33 = vunpack.c.l.b16 %v18183_v2  ;;  %v18231_v54 = vld [vmem:[%s21356_s4 + $0x174] ss:$0 sps:$4 sm:$0x22]   ;;  %v18240_v26 = vld [vmem:[%s21356_s4 + $0x17c] ss:$0 sps:$4 sm:$0x22]  }
 0x314   :  { %vm2200_vm12 = vcmp.eq.s32.totalorder %v17144_v1, %v18155_v38  ;;  %v7155_v7 = vsel %vm693_vm5, %v7154_v44, %v7153_v53  ;;  %v6722_v23 = vunpack.c.l.b16 %v18188_v35  ;;  %v6723_v49 = vunpack.c.l.b16 %v18197_v36 }
 0x315   :  { %v6724_v3 = vunpack.c.l.b16 %v18202_v50  ;;  %v7157_v13 = vsel %vm696_vm6, %v7156_v60, %v7155_v7  ;;  %v6725_v18 = vunpack.c.l.b16 %v18211_v19  ;;  %v6726_v16 = vunpack.c.l.b16 %v18216_v12 }
 0x316   :  { %v6866_v46 = vrot.slane %v6714_v31, 2  ;;  %v7327_v27 = vpack.c.b16 %v7157_v13, %v7143_v48  ;;  %v6727_v15 = vunpack.c.l.b16 %v18226_v21  ;;  %v6728_v24 = vunpack.c.l.b16 %v18231_v54 }
 0x317   :  { %v6867_v14 = vrot.slane %v6715_v30, 1  ;;  %v6729_v47 = vunpack.c.l.b16 %v18240_v26  ;;  %v6870_v41 = vrot.slane %v6717_v39, 7  ;;  %v6872_v32 = vrot.slane %v6718_v25, 6 }
 0x318   :  { %v6874_v28 = vrot.slane %v6719_v42, 5  ;;  %11414 = vmatpush3.bf16.xpose.msra.mxu1 %v7327_v27  ;;  %v6876_v57 = vrot.slane %v6720_v58, 4  ;;  %v6878_v40 = vrot.slane %v6721_v33, 3  ;;  %v6880_v45 = vrot.slane %v6722_v23, 2 }
 0x319   :  { %v6868_v34 = vsel %vm678_vm0, %v6867_v14, %v6866_v46  ;;  %v6881_v56 = vrot.slane %v6723_v49, 1  ;;  %v6884_v8 = vrot.slane %v6725_v18, 7  ;;  %v6886_v51 = vrot.slane %v6726_v16, 6  ;;  %11415 = vmatprep.subr.bf16.mxu1 %v12576_v0  ;;  %v10249_v46 = vld [vmem:[%s21359_s5 + $0x3] ss:$0 sm:$0xff] }
 0x31a   :  { %v6869_v20 = vsel %vm681_vm1, %v6716_v61, %v6868_v34  ;;  %vm2201_vm13 = vcmp.eq.s32.totalorder %v17076_v11, %v18155_v38  ;;  %v6888_v6 = vrot.slane %v6727_v15, 5  ;;  %v6890_v44 = vrot.slane %v6728_v24, 4  ;;  %v18299_v34 = vld [vmem:[%s21356_s4 + $0x194] ss:$0 sps:$4 sm:$0x22]  }
 0x31b   :  { %v6871_v4 = vsel %vm684_vm2, %v6870_v41, %v6869_v20  ;;  %v6892_v60 = vrot.slane %v6729_v47, 3  ;;  %v6882_v48 = vsel %vm678_vm0, %v6881_v56, %v6880_v45  ;;  %v2202_v10 = vsel %vm2200_vm12, %v17461_v52, 0.0 }
 0x31c   :  { %v6873_v37 = vsel %vm687_vm3, %v6872_v32, %v6871_v4  ;;  %v7158_v29 = vrot.slane %v6714_v31, 3  ;;  %v6883_v63 = vsel %vm681_vm1, %v6724_v3, %v6882_v48  ;;  %v2204_v2 = vmax.f32 %v17282_v43, %v2202_v10  ;;  %v18350_v4 = vld [vmem:[%s21356_s4 + $0x1c4] ss:$0 sps:$4 sm:$0x22]  }
 0x31d   :  { %v6875_v59 = vsel %vm690_vm4, %v6874_v28, %v6873_v37  ;;  %v7159_v35 = vrot.slane %v6715_v30, 2  ;;  %v6885_v36 = vsel %vm684_vm2, %v6884_v8, %v6883_v63  ;;  %v7161_v50 = vrot.slane %v6716_v61, 1  ;;  %v18363_v37 = vld [vmem:[%s21356_s4 + $0x1d4] ss:$0 sps:$4 sm:$0x22]  }
 0x31e   :  { %v6877_v55 = vsel %vm693_vm5, %v6876_v57, %v6875_v59  ;;  %v7164_v53 = vrot.slane %v6718_v25, 7  ;;  %v6887_v7 = vsel %vm687_vm3, %v6886_v51, %v6885_v36  ;;  %v7166_v31 = vrot.slane %v6719_v42, 6  ;;  %v18345_v51 = vld [vmem:[%s21356_s4 + $0x1bc] ss:$0 sps:$4 sm:$0x22]  }
 0x31f   :  { %v6879_v12 = vsel %vm696_vm6, %v6878_v40, %v6877_v55  ;;  %v7160_v52 = vsel %vm678_vm0, %v7159_v35, %v7158_v29  ;;  %v6889_v21 = vsel %vm690_vm4, %v6888_v6, %v6887_v7  ;;  %v7168_v13 = vrot.slane %v6720_v58, 5  ;;  %v18285_v58 = vld [vmem:[%s21356_s4 + $0x184] ss:$0 sps:$4 sm:$0x22]  }
 0x320   :  { %v7162_v54 = vsel %vm681_vm1, %v7161_v50, %v7160_v52  ;;  %v7170_v43 = vrot.slane %v6721_v33, 4  ;;  %v6891_v30 = vsel %vm693_vm5, %v6890_v44, %v6889_v21  ;;  %v7172_v25 = vrot.slane %v6722_v23, 3  ;;  %v18370_v59 = vld [vmem:[%s21356_s4 + $0x1dc] ss:$0 sps:$4 sm:$0x22]  }
 0x321   :  { %v7163_v61 = vsel %vm684_vm2, %v6717_v39, %v7162_v54  ;;  %v7173_v26 = vrot.slane %v6723_v49, 2  ;;  %v6893_v42 = vsel %vm696_vm6, %v6892_v60, %v6891_v30  ;;  %v7175_v14 = vrot.slane %v6724_v3, 1  ;;  %v18292_v49 = vld [vmem:[%s21356_s4 + $0x18c] ss:$0 sps:$4 sm:$0x22]  }
 0x322   :  { %v7165_v27 = vsel %vm687_vm3, %v7164_v53, %v7163_v61  ;;  %v7178_v41 = vrot.slane %v6726_v16, 7  ;;  %v7036_v5 = vpack.c.b16 %v6893_v42, %v6879_v12  ;;  %v7180_v23 = vrot.slane %v6727_v15, 6  ;;  %v18304_v15 = vld [vmem:[%s21356_s4 + $0x19c] ss:$0 sps:$4 sm:$0x22]  }
 0x323   :  { %v7167_v39 = vsel %vm690_vm4, %v7166_v31, %v7165_v27  ;;  %v7174_v33 = vsel %vm678_vm0, %v7173_v26, %v7172_v25  ;;  %v7182_v16 = vrot.slane %v6728_v24, 5  ;;  %v7184_v28 = vrot.slane %v6729_v47, 4  ;;  %v18317_v47 = vld [vmem:[%s21356_s4 + $0x1a4] ss:$0 sps:$4 sm:$0x22]  }
 0x324   :  { %v7169_v32 = vsel %vm693_vm5, %v7168_v13, %v7167_v39  ;;  %v7176_v3 = vsel %vm681_vm1, %v7175_v14, %v7174_v33  ;;  %11396 = vmatpush3.bf16.xpose.msra.mxu0 %v7036_v5  ;;  %v2203_v24 = vsel %vm2201_vm13, %v17489_v22, 0.0  ;;  %vm2492_vm14 = vcmp.eq.s32.totalorder %v17144_v1, %v10249_v46  ;;  %v18327_v22 = vld [vmem:[%s21356_s4 + $0x1ac] ss:$0 sps:$4 sm:$0x22]  }
 0x325   :  { %v7177_v57 = vsel %vm684_vm2, %v6725_v18, %v7176_v3  ;;  %v2205_v45 = vmax.f32 %v17284_v62, %v2203_v24  ;;  %v2494_v19 = vsel %vm2492_vm14, %v17498_v17, 0.0  ;;  %vm2493_vm15 = vcmp.eq.s32.totalorder %v17076_v11, %v10249_v46  ;;  %11397 = vmatprep.subr.bf16.mxu0 %v12576_v0  ;;  %v18337_v62 = vld [vmem:[%s21356_s4 + $0x1b4] ss:$0 sps:$4 sm:$0x22]  }
 0x326   :  { %v7179_v40 = vsel %vm687_vm3, %v7178_v41, %v7177_v57  ;;  %v7171_v38 = vsel %vm696_vm6, %v7170_v43, %v7169_v32  ;;  %v18331_v20 = vmax.f32 %v2204_v2, %v2494_v19  ;;  %v2495_v56 = vsel %vm2493_vm15, %v17593_v9, 0.0  ;;  %v18358_v60 = vld [vmem:[%s21356_s4 + $0x1cc] ss:$0 sps:$4 sm:$0x22]  }
 0x327   :  { %v7181_v18 = vsel %vm690_vm4, %v7180_v23, %v7179_v40  ;;  %v18340_v8 = vmax.f32 %v2205_v45, %v2495_v56  ;;  %v6730_v9 = vunpack.c.l.b16 %v18285_v58  ;;  %v6731_v6 = vunpack.c.l.b16 %v18292_v49  ;;  %v18375_v63 = vld [vmem:[%s21356_s4 + $0x1e4] ss:$0 sps:$4 sm:$0x22]   ;;  %v18383_v36 = vld [vmem:[%s21356_s4 + $0x1ec] ss:$0 sps:$4 sm:$0x22]  }
 0x328   :  { %v7183_v17 = vsel %vm693_vm5, %v7182_v16, %v7181_v18  ;;  %v6733_v48 = vunpack.c.l.b16 %v18304_v15  ;;  %v6734_v10 = vunpack.c.l.b16 %v18317_v47  ;;  %v6732_v2 = vunpack.c.l.b16 %v18299_v34  ;;  %v18388_v50 = vld [vmem:[%s21356_s4 + $0x1f4] ss:$0 sps:$4 sm:$0x22]   ;;  %v12240_v31 = vld [vmem:[%s21356_s4 + $0x1fc] ss:$0 sps:$4 sm:$0x22]  }
 0x329   :  { %v7185_v44 = vsel %vm696_vm6, %v7184_v28, %v7183_v17  ;;  %v6735_v35 = vunpack.c.l.b16 %v18327_v22  ;;  %v6736_v55 = vunpack.c.l.b16 %v18337_v62  ;;  %v6737_v53 = vunpack.c.l.b16 %v18345_v51 }
 0x32a   :  { %v7328_v29 = vpack.c.b16 %v7185_v44, %v7171_v38  ;;  %v6738_v12 = vunpack.c.l.b16 %v18350_v4  ;;  %v6739_v7 = vunpack.c.l.b16 %v18358_v60  ;;  %v6740_v52 = vunpack.c.l.b16 %v18363_v37  ;;  %v18426_v44 = vld [vmem:[%s21356_s4 + $0x20c] ss:$0 sps:$4 sm:$0x22]  }
 0x32b   :  { %v6741_v21 = vunpack.c.l.b16 %v18370_v59  ;;  %v6742_v54 = vunpack.c.l.b16 %v18375_v63  ;;  %v6894_v13 = vrot.slane %v6730_v9, 2  ;;  %v6895_v43 = vrot.slane %v6731_v6, 1  ;;  %v18433_v63 = vld [vmem:[%s21356_s4 + $0x214] ss:$0 sps:$4 sm:$0x22]  }
 0x32c   :  { %11416 = vmatpush3.bf16.xpose.msra.mxu1 %v7328_v29  ;;  %v6743_v30 = vunpack.c.l.b16 %v18383_v36  ;;  %v6744_v61 = vunpack.c.l.b16 %v18388_v50  ;;  %v6898_v25 = vrot.slane %v6733_v48, 7  ;;  %v6900_v26 = vrot.slane %v6734_v10, 6  ;;  %v18440_v50 = vld [vmem:[%s21356_s4 + $0x21c] ss:$0 sps:$4 sm:$0x22]  }
 0x32d   :  { %11417 = vmatprep.subr.bf16.mxu1 %v12576_v0  ;;  %v6745_v46 = vunpack.c.l.b16 %v12240_v31  ;;  %v6896_v42 = vsel %vm678_vm0, %v6895_v43, %v6894_v13  ;;  %v6902_v27 = vrot.slane %v6735_v35, 5  ;;  %v6904_v14 = vrot.slane %v6736_v55, 4  ;;  %v18447_v31 = vld [vmem:[%s21356_s4 + $0x224] ss:$0 sps:$4 sm:$0x22]  }
 0x32e   :  { %v6897_v41 = vsel %vm681_vm1, %v6732_v2, %v6896_v42  ;;  %v6906_v58 = vrot.slane %v6737_v53, 3  ;;  %v6908_v5 = vrot.slane %v6738_v12, 2  ;;  %v6909_v39 = vrot.slane %v6739_v7, 1  ;;  %v18463_v42 = vld [vmem:[%s21356_s4 + $0x234] ss:$0 sps:$4 sm:$0x22]  }
 0x32f   :  { %v6899_v33 = vsel %vm684_vm2, %v6898_v25, %v6897_v41  ;;  %v6912_v23 = vrot.slane %v6741_v21, 7  ;;  %v6914_v49 = vrot.slane %v6742_v54, 6  ;;  %v6916_v32 = vrot.slane %v6743_v30, 5  ;;  %v18454_v25 = vld [vmem:[%s21356_s4 + $0x22c] ss:$0 sps:$4 sm:$0x22]  }
 0x330   :  { %v6901_v3 = vsel %vm687_vm3, %v6900_v26, %v6899_v33  ;;  %v6910_v16 = vsel %vm678_vm0, %v6909_v39, %v6908_v5  ;;  %v6918_v28 = vrot.slane %v6744_v61, 4  ;;  %v6920_v34 = vrot.slane %v6745_v46, 3  ;;  %v18475_v59 = vld [vmem:[%s21356_s4 + $0x244] ss:$0 sps:$4 sm:$0x22]  }
 0x331   :  { %v6903_v15 = vsel %vm690_vm4, %v6902_v27, %v6901_v3  ;;  %v6911_v57 = vsel %vm681_vm1, %v6740_v52, %v6910_v16  ;;  %v7186_v24 = vrot.slane %v6730_v9, 3  ;;  %v7187_v47 = vrot.slane %v6731_v6, 2  ;;  %v18421_v6 = vld [vmem:[%s21356_s4 + $0x204] ss:$0 sps:$4 sm:$0x22]  }
 0x332   :  { %v6905_v40 = vsel %vm693_vm5, %v6904_v14, %v6903_v15  ;;  %v6913_v45 = vsel %vm684_vm2, %v6912_v23, %v6911_v57  ;;  %v7189_v19 = vrot.slane %v6732_v2, 1  ;;  %v7192_v22 = vrot.slane %v6734_v10, 7  ;;  %v18489_v5 = vld [vmem:[%s21356_s4 + $0x254] ss:$0 sps:$4 sm:$0x22]  }
 0x333   :  { %v6907_v38 = vsel %vm696_vm6, %v6906_v58, %v6905_v40  ;;  %v6915_v18 = vsel %vm687_vm3, %v6914_v49, %v6913_v45  ;;  %v7188_v56 = vsel %vm678_vm0, %v7187_v47, %v7186_v24  ;;  %v7194_v62 = vrot.slane %v6735_v35, 6  ;;  %v18494_v39 = vld [vmem:[%s21356_s4 + $0x25c] ss:$0 sps:$4 sm:$0x22]  }
 0x334   :  { %v6917_v17 = vsel %vm690_vm4, %v6916_v32, %v6915_v18  ;;  %v7190_v51 = vsel %vm681_vm1, %v7189_v19, %v7188_v56  ;;  %v7196_v4 = vrot.slane %v6736_v55, 5  ;;  %v7198_v9 = vrot.slane %v6737_v53, 4  ;;  %v18503_v3 = vld [vmem:[%s21356_s4 + $0x264] ss:$0 sps:$4 sm:$0x22]  }
 0x335   :  { %v6919_v60 = vsel %vm693_vm5, %v6918_v28, %v6917_v17  ;;  %v7191_v37 = vsel %vm684_vm2, %v6733_v48, %v7190_v51  ;;  %v7200_v10 = vrot.slane %v6738_v12, 3  ;;  %v7201_v29 = vrot.slane %v6739_v7, 2  ;;  %v18508_v16 = vld [vmem:[%s21356_s4 + $0x26c] ss:$0 sps:$4 sm:$0x22]  }
 0x336   :  { %v6921_v2 = vsel %vm696_vm6, %v6920_v34, %v6919_v60  ;;  %v7193_v35 = vsel %vm687_vm3, %v7192_v22, %v7191_v37  ;;  %v7203_v55 = vrot.slane %v6740_v52, 1  ;;  %v7206_v36 = vrot.slane %v6742_v54, 7  ;;  %v18517_v24 = vld [vmem:[%s21356_s4 + $0x274] ss:$0 sps:$4 sm:$0x22]  }
 0x337   :  { %v7037_v53 = vpack.c.b16 %v6921_v2, %v6907_v38  ;;  %v7195_v48 = vsel %vm690_vm4, %v7194_v62, %v7193_v35  ;;  %v7202_v12 = vsel %vm678_vm0, %v7201_v29, %v7200_v10  ;;  %v7208_v7 = vrot.slane %v6743_v30, 6  ;;  %v18522_v47 = vld [vmem:[%s21356_s4 + $0x27c] ss:$0 sps:$4 sm:$0x22]   ;;  %v18529_v62 = vpop.f32.mrb[8].mxu0 }
 0x338   :  { %v7197_v13 = vsel %vm693_vm5, %v7196_v4, %v7195_v48  ;;  %v7204_v52 = vsel %vm681_vm1, %v7203_v55, %v7202_v12  ;;  %v7210_v54 = vrot.slane %v6744_v61, 5  ;;  %v7212_v43 = vrot.slane %v6745_v46, 4  ;;  %v18468_v61 = vld [vmem:[%s21356_s4 + $0x23c] ss:$0 sps:$4 sm:$0x22]   ;;  %v11289_v35 = vpop.f32.mrb[9].mxu0 }
 0x339   :  { %11398 = vmatpush3.bf16.xpose.msra.mxu0 %v7037_v53  ;;  %v7199_v26 = vsel %vm696_vm6, %v7198_v9, %v7197_v13  ;;  %v7205_v30 = vsel %vm684_vm2, %v6741_v21, %v7204_v52  ;;  %v18480_v21 = vld [vmem:[%s21356_s4 + $0x24c] ss:$0 sps:$4 sm:$0x22]   ;;  %v6746_v27 = vunpack.c.l.b16 %v18421_v6  ;;  %v6747_v14 = vunpack.c.l.b16 %v18426_v44 }
 0x33a   :  { %v7207_v46 = vsel %vm687_vm3, %v7206_v36, %v7205_v30  ;;  %11399 = vmatprep.subr.bf16.mxu0 %v12576_v0  ;;  %v6748_v41 = vunpack.c.l.b16 %v18433_v63  ;;  %v6749_v33 = vunpack.c.l.b16 %v18440_v50  ;;  %v6750_v23 = vunpack.c.l.b16 %v18447_v31  ;;  %v18578_v50 = vld [vmem:[%s21356_s4 + $0x29c] ss:$0 sps:$4 sm:$0x22]  }
 0x33b   :  { %v7209_v58 = vsel %vm690_vm4, %v7208_v7, %v7207_v46  ;;  %v6751_v49 = vunpack.c.l.b16 %v18454_v25  ;;  %v6752_v28 = vunpack.c.l.b16 %v18463_v42  ;;  %v6753_v34 = vunpack.c.l.b16 %v18468_v61 }
 0x33c   :  { %v7211_v32 = vsel %vm693_vm5, %v7210_v54, %v7209_v58  ;;  %v6754_v15 = vunpack.c.l.b16 %v18475_v59  ;;  %v6755_v40 = vunpack.c.l.b16 %v18480_v21  ;;  %v6756_v45 = vunpack.c.l.b16 %v18489_v5 }
 0x33d   :  { %v7213_v57 = vsel %vm696_vm6, %v7212_v43, %v7211_v32  ;;  %v6757_v19 = vunpack.c.l.b16 %v18494_v39  ;;  %v6758_v38 = vunpack.c.l.b16 %v18503_v3  ;;  %v6759_v18 = vunpack.c.l.b16 %v18508_v16  ;;  %v18555_v32 = vld [vmem:[%s21356_s4 + $0x284] ss:$0 sps:$4 sm:$0x22]  }
 0x33e   :  { %v7329_v22 = vpack.c.b16 %v7213_v57, %v7199_v26  ;;  %v6922_v56 = vrot.slane %v6746_v27, 2  ;;  %v6760_v17 = vunpack.c.l.b16 %v18517_v24  ;;  %v6761_v51 = vunpack.c.l.b16 %v18522_v47  ;;  %v18571_v57 = vpop.f32.mrb[10].mxu0  ;;  %v18615_v39 = vld [vmem:[%s21356_s4 + $0x2c4] ss:$0 sps:$4 sm:$0x22]  }
 0x33f   :  { %v6923_v4 = vrot.slane %v6747_v14, 1  ;;  %v6926_v9 = vrot.slane %v6749_v33, 7  ;;  %v6928_v6 = vrot.slane %v6750_v23, 6  ;;  %v6930_v44 = vrot.slane %v6751_v49, 5 }
 0x340   :  { %11418 = vmatpush3.bf16.xpose.msra.mxu1 %v7329_v22  ;;  %v6932_v60 = vrot.slane %v6752_v28, 4  ;;  %v6934_v37 = vrot.slane %v6753_v34, 3  ;;  %v6936_v29 = vrot.slane %v6754_v15, 2  ;;  %v6937_v63 = vrot.slane %v6755_v40, 1 }
 0x341   :  { %v6924_v10 = vsel %vm678_vm0, %v6923_v4, %v6922_v56  ;;  %v6940_v2 = vrot.slane %v6757_v19, 7  ;;  %11419 = vmatprep.subr.bf16.mxu1 %v12576_v0  ;;  %v6942_v36 = vrot.slane %v6758_v38, 6  ;;  %v6944_v53 = vrot.slane %v6759_v18, 5 }
 0x342   :  { %v6925_v55 = vsel %vm681_vm1, %v6748_v41, %v6924_v10  ;;  %v6946_v48 = vrot.slane %v6760_v17, 4  ;;  %v6938_v7 = vsel %vm678_vm0, %v6937_v63, %v6936_v29  ;;  %v6948_v31 = vrot.slane %v6761_v51, 3  ;;  %v11290_v10 = vpop.f32.mrb[11].mxu0  ;;  %v18603_v63 = vld [vmem:[%s21356_s4 + $0x2b4] ss:$0 sps:$4 sm:$0x22]  }
 0x343   :  { %v6927_v12 = vsel %vm684_vm2, %v6926_v9, %v6925_v55  ;;  %v7214_v13 = vrot.slane %v6746_v27, 3  ;;  %v6939_v54 = vsel %vm681_vm1, %v6756_v45, %v6938_v7  ;;  %v7215_v43 = vrot.slane %v6747_v14, 2 }
 0x344   :  { %v6929_v52 = vsel %vm687_vm3, %v6928_v6, %v6927_v12  ;;  %v7217_v25 = vrot.slane %v6748_v41, 1  ;;  %v6941_v30 = vsel %vm684_vm2, %v6940_v2, %v6939_v54  ;;  %v7220_v42 = vrot.slane %v6750_v23, 7  ;;  %v18560_v23 = vld [vmem:[%s21356_s4 + $0x28c] ss:$0 sps:$4 sm:$0x22]  }
 0x345   :  { %v6931_v26 = vsel %vm690_vm4, %v6930_v44, %v6929_v52  ;;  %v7222_v61 = vrot.slane %v6751_v49, 6  ;;  %v6943_v59 = vsel %vm687_vm3, %v6942_v36, %v6941_v30  ;;  %v7216_v21 = vsel %vm678_vm0, %v7215_v43, %v7214_v13  ;;  %v18587_v6 = vld [vmem:[%s21356_s4 + $0x2a4] ss:$0 sps:$4 sm:$0x22]  }
 0x346   :  { %v6933_v46 = vsel %vm693_vm5, %v6932_v60, %v6931_v26  ;;  %v7224_v58 = vrot.slane %v6752_v28, 5  ;;  %v6945_v5 = vsel %vm690_vm4, %v6944_v53, %v6943_v59  ;;  %v7218_v14 = vsel %vm681_vm1, %v7217_v25, %v7216_v21  ;;  %v18629_v53 = vld [vmem:[%s21356_s4 + $0x2d4] ss:$0 sps:$4 sm:$0x22]  }
 0x347   :  { %v6935_v27 = vsel %vm696_vm6, %v6934_v37, %v6933_v46  ;;  %v7226_v41 = vrot.slane %v6753_v34, 4  ;;  %v6947_v49 = vsel %vm693_vm5, %v6946_v48, %v6945_v5  ;;  %v7219_v3 = vsel %vm684_vm2, %v6749_v33, %v7218_v14  ;;  %v18569_v34 = vld [vmem:[%s21356_s4 + $0x294] ss:$0 sps:$4 sm:$0x22]   ;;  %v18580_v33 = vpop.f32.mrb[8].mxu1 }
 0x348   :  { %v7228_v16 = vrot.slane %v6754_v15, 3  ;;  %v7229_v28 = vrot.slane %v6755_v40, 2  ;;  %v6949_v24 = vsel %vm696_vm6, %v6948_v31, %v6947_v49  ;;  %v7221_v47 = vsel %vm687_vm3, %v7220_v42, %v7219_v3  ;;  %v18594_v37 = vld [vmem:[%s21356_s4 + $0x2ac] ss:$0 sps:$4 sm:$0x22]  }
 0x349   :  { %v7231_v22 = vrot.slane %v6756_v45, 1  ;;  %v7234_v56 = vrot.slane %v6758_v38, 7  ;;  %v7038_v15 = vpack.c.b16 %v6949_v24, %v6935_v27  ;;  %v7223_v40 = vsel %vm690_vm4, %v7222_v61, %v7221_v47  ;;  %v18634_v48 = vld [vmem:[%s21356_s4 + $0x2dc] ss:$0 sps:$4 sm:$0x22]  }
 0x34a   :  { %v7230_v4 = vsel %vm678_vm0, %v7229_v28, %v7228_v16  ;;  %v7236_v9 = vrot.slane %v6759_v18, 6  ;;  %v7225_v45 = vsel %vm693_vm5, %v7224_v58, %v7223_v40  ;;  %v7238_v44 = vrot.slane %v6760_v17, 5  ;;  %v18608_v17 = vld [vmem:[%s21356_s4 + $0x2bc] ss:$0 sps:$4 sm:$0x22]  }
 0x34b   :  { %v7232_v38 = vsel %vm681_vm1, %v7231_v22, %v7230_v4  ;;  %v7240_v60 = vrot.slane %v6761_v51, 4  ;;  %11400 = vmatpush3.bf16.xpose.msra.mxu0 %v7038_v15  ;;  %v7227_v18 = vsel %vm696_vm6, %v7226_v41, %v7225_v45  ;;  %v6762_v2 = vunpack.c.l.b16 %v18555_v32  ;;  %v18643_v52 = vld [vmem:[%s21356_s4 + $0x2e4] ss:$0 sps:$4 sm:$0x22]   ;;  %v11309_v41 = vpop.f32.mrb[9].mxu1 }
 0x34c   :  { %v7233_v29 = vsel %vm684_vm2, %v6757_v19, %v7232_v38  ;;  %11401 = vmatprep.subr.bf16.mxu0 %v12576_v0  ;;  %v18620_v19 = vld [vmem:[%s21356_s4 + $0x2cc] ss:$0 sps:$4 sm:$0x22]   ;;  %v6763_v35 = vunpack.c.l.b16 %v18560_v23  ;;  %v6764_v55 = vunpack.c.l.b16 %v18569_v34  ;;  %v6765_v12 = vunpack.c.l.b16 %v18578_v50  ;;  %v18657_v42 = vld [vmem:[%s21356_s4 + $0x2f4] ss:$0 sps:$4 sm:$0x22]  }
 0x34d   :  { %v7235_v51 = vsel %vm687_vm3, %v7234_v56, %v7233_v29  ;;  %v6766_v7 = vunpack.c.l.b16 %v18587_v6  ;;  %v6767_v31 = vunpack.c.l.b16 %v18594_v37  ;;  %v18648_v54 = vld [vmem:[%s21356_s4 + $0x2ec] ss:$0 sps:$4 sm:$0x22]   ;;  %v6768_v43 = vunpack.c.l.b16 %v18603_v63  ;;  %v18662_v61 = vld [vmem:[%s21356_s4 + $0x2fc] ss:$0 sps:$4 sm:$0x22]  }
 0x34e   :  { %v7237_v36 = vsel %vm690_vm4, %v7236_v9, %v7235_v51  ;;  %v6769_v25 = vunpack.c.l.b16 %v18608_v17  ;;  %v6770_v26 = vunpack.c.l.b16 %v18615_v39  ;;  %v6771_v46 = vunpack.c.l.b16 %v18620_v19  ;;  %v18677_v40 = vpop.f32.mrb[10].mxu1 }
 0x34f   :  { %v7239_v13 = vsel %vm693_vm5, %v7238_v44, %v7237_v36  ;;  %v6772_v59 = vunpack.c.l.b16 %v18629_v53  ;;  %v6773_v21 = vunpack.c.l.b16 %v18634_v48  ;;  %v6774_v27 = vunpack.c.l.b16 %v18643_v52  ;;  %v11310_v38 = vpop.f32.mrb[11].mxu1  ;;  %v18751_v48 = vld [vmem:[%s21356_s4 + $0x344] ss:$0 sps:$4 sm:$0x22]  }
 0x350   :  { %v7241_v30 = vsel %vm696_vm6, %v7240_v60, %v7239_v13  ;;  %v6775_v5 = vunpack.c.l.b16 %v18648_v54  ;;  %v6950_v14 = vrot.slane %v6762_v2, 2  ;;  %v6776_v32 = vunpack.c.l.b16 %v18657_v42  ;;  %v18695_v42 = vld [vmem:[%s21356_s4 + $0x304] ss:$0 sps:$4 sm:$0x22]  }
 0x351   :  { %v7330_v58 = vpack.c.b16 %v7241_v30, %v7227_v18  ;;  %v6777_v23 = vunpack.c.l.b16 %v18662_v61  ;;  %v6951_v49 = vrot.slane %v6763_v35, 1  ;;  %v6954_v3 = vrot.slane %v6765_v12, 7  ;;  %v18770_v38 = vld [vmem:[%s21356_s4 + $0x35c] ss:$0 sps:$4 sm:$0x22]  }
 0x352   :  { %v6956_v16 = vrot.slane %v6766_v7, 6  ;;  %v6958_v28 = vrot.slane %v6767_v31, 5  ;;  %v6960_v34 = vrot.slane %v6768_v43, 4  ;;  %v6962_v24 = vrot.slane %v6769_v25, 3 }
 0x353   :  { %11420 = vmatpush3.bf16.xpose.msra.mxu1 %v7330_v58  ;;  %v6952_v47 = vsel %vm678_vm0, %v6951_v49, %v6950_v14  ;;  %v6964_v22 = vrot.slane %v6770_v26, 2  ;;  %v6965_v56 = vrot.slane %v6771_v46, 1  ;;  %v6968_v15 = vrot.slane %v6773_v21, 7 }
 0x354   :  { %11421 = vmatprep.subr.bf16.mxu1 %v12576_v0  ;;  %v6953_v4 = vsel %vm681_vm1, %v6764_v55, %v6952_v47  ;;  %v6970_v9 = vrot.slane %v6774_v27, 6  ;;  %v6972_v6 = vrot.slane %v6775_v5, 5  ;;  %v6974_v45 = vrot.slane %v6776_v32, 4  ;;  %v18730_v47 = vld [vmem:[%s21356_s4 + $0x32c] ss:$0 sps:$4 sm:$0x22]  }
 0x355   :  { %v6955_v44 = vsel %vm684_vm2, %v6954_v3, %v6953_v4  ;;  %v6966_v60 = vsel %vm678_vm0, %v6965_v56, %v6964_v22  ;;  %v6976_v37 = vrot.slane %v6777_v23, 3  ;;  %v7242_v10 = vrot.slane %v6762_v2, 3  ;;  %v18739_v56 = vld [vmem:[%s21356_s4 + $0x334] ss:$0 sps:$4 sm:$0x22]  }
 0x356   :  { %v6957_v18 = vsel %vm687_vm3, %v6956_v16, %v6955_v44  ;;  %v6967_v29 = vsel %vm681_vm1, %v6772_v59, %v6966_v60  ;;  %v7243_v63 = vrot.slane %v6763_v35, 2  ;;  %v7245_v17 = vrot.slane %v6764_v55, 1  ;;  %v18716_v16 = vld [vmem:[%s21356_s4 + $0x31c] ss:$0 sps:$4 sm:$0x22]  }
 0x357   :  { %v6959_v51 = vsel %vm690_vm4, %v6958_v28, %v6957_v18  ;;  %v6969_v39 = vsel %vm684_vm2, %v6968_v15, %v6967_v29  ;;  %v7248_v19 = vrot.slane %v6766_v7, 7  ;;  %v7250_v36 = vrot.slane %v6767_v31, 6  ;;  %v18700_v7 = vld [vmem:[%s21356_s4 + $0x30c] ss:$0 sps:$4 sm:$0x22]  }
 0x358   :  { %v6961_v53 = vsel %vm693_vm5, %v6960_v34, %v6959_v51  ;;  %v6971_v13 = vsel %vm687_vm3, %v6970_v9, %v6969_v39  ;;  %v7244_v52 = vsel %vm678_vm0, %v7243_v63, %v7242_v10  ;;  %v7252_v54 = vrot.slane %v6768_v43, 5  ;;  %v18723_v28 = vld [vmem:[%s21356_s4 + $0x324] ss:$0 sps:$4 sm:$0x22]  }
 0x359   :  { %v6963_v2 = vsel %vm696_vm6, %v6962_v24, %v6961_v53  ;;  %v6973_v30 = vsel %vm690_vm4, %v6972_v6, %v6971_v13  ;;  %v7246_v35 = vsel %vm681_vm1, %v7245_v17, %v7244_v52  ;;  %v7254_v55 = vrot.slane %v6769_v25, 4  ;;  %v18709_v25 = vld [vmem:[%s21356_s4 + $0x314] ss:$0 sps:$4 sm:$0x22]  }
 0x35a   :  { %v6975_v31 = vsel %vm693_vm5, %v6974_v45, %v6973_v30  ;;  %v7247_v43 = vsel %vm684_vm2, %v6765_v12, %v7246_v35  ;;  %v7256_v61 = vrot.slane %v6770_v26, 3  ;;  %v7257_v58 = vrot.slane %v6771_v46, 2  ;;  %v18765_v45 = vld [vmem:[%s21356_s4 + $0x354] ss:$0 sps:$4 sm:$0x22]  }
 0x35b   :  { %v6977_v14 = vsel %vm696_vm6, %v6976_v37, %v6975_v31  ;;  %v7249_v41 = vsel %vm687_vm3, %v7248_v19, %v7247_v43  ;;  %v7259_v49 = vrot.slane %v6772_v59, 1  ;;  %v7262_v3 = vrot.slane %v6774_v27, 7  ;;  %v18779_v18 = vld [vmem:[%s21356_s4 + $0x364] ss:$0 sps:$4 sm:$0x22]  }
 0x35c   :  { %v7039_v50 = vpack.c.b16 %v6977_v14, %v6963_v2  ;;  %v7251_v12 = vsel %vm690_vm4, %v7250_v36, %v7249_v41  ;;  %v7258_v26 = vsel %vm678_vm0, %v7257_v58, %v7256_v61  ;;  %v7264_v46 = vrot.slane %v6775_v5, 6  ;;  %v18784_v29 = vld [vmem:[%s21356_s4 + $0x36c] ss:$0 sps:$4 sm:$0x22]  }
 0x35d   :  { %v7253_v34 = vsel %vm693_vm5, %v7252_v54, %v7251_v12  ;;  %v7260_v59 = vsel %vm681_vm1, %v7259_v49, %v7258_v26  ;;  %v7266_v27 = vrot.slane %v6776_v32, 5  ;;  %v7268_v24 = vrot.slane %v6777_v23, 4  ;;  %v18744_v32 = vld [vmem:[%s21356_s4 + $0x33c] ss:$0 sps:$4 sm:$0x22]  }
 0x35e   :  { %11402 = vmatpush3.bf16.xpose.msra.mxu0 %v7039_v50  ;;  %v7255_v22 = vsel %vm696_vm6, %v7254_v55, %v7253_v34  ;;  %v7261_v5 = vsel %vm684_vm2, %v6773_v21, %v7260_v59  ;;  %v18756_v21 = vld [vmem:[%s21356_s4 + $0x34c] ss:$0 sps:$4 sm:$0x22]   ;;  %v6778_v15 = vunpack.c.l.b16 %v18695_v42  ;;  %v6779_v4 = vunpack.c.l.b16 %v18700_v7  ;;  %v18793_v19 = vld [vmem:[%s21356_s4 + $0x374] ss:$0 sps:$4 sm:$0x22]  }
 0x35f   :  { %v7263_v23 = vsel %vm687_vm3, %v7262_v3, %v7261_v5  ;;  %11403 = vmatprep.subr.bf16.mxu0 %v12576_v0  ;;  %v6780_v9 = vunpack.c.l.b16 %v18709_v25  ;;  %v6781_v44 = vunpack.c.l.b16 %v18716_v16  ;;  %v6782_v60 = vunpack.c.l.b16 %v18723_v28  ;;  %v18798_v36 = vld [vmem:[%s21356_s4 + $0x37c] ss:$0 sps:$4 sm:$0x22]  }
 0x360   :  { %v7265_v6 = vsel %vm690_vm4, %v7264_v46, %v7263_v23  ;;  %v6783_v37 = vunpack.c.l.b16 %v18730_v47  ;;  %v6784_v63 = vunpack.c.l.b16 %v18739_v56  ;;  %v6785_v17 = vunpack.c.l.b16 %v18744_v32 }
 0x361   :  { %v7267_v10 = vsel %vm693_vm5, %v7266_v27, %v7265_v6  ;;  %v6786_v51 = vunpack.c.l.b16 %v18751_v48  ;;  %v6787_v53 = vunpack.c.l.b16 %v18756_v21  ;;  %v6788_v13 = vunpack.c.l.b16 %v18765_v45 }
 0x362   :  { %v7269_v39 = vsel %vm696_vm6, %v7268_v24, %v7267_v10  ;;  %v6789_v52 = vunpack.c.l.b16 %v18770_v38  ;;  %v6790_v2 = vunpack.c.l.b16 %v18779_v18  ;;  %v6791_v30 = vunpack.c.l.b16 %v18784_v29  ;;  %v18827_v18 = vld [vmem:[%s21356_s4 + $0x384] ss:$0 sps:$4 sm:$0x22]  }
 0x363   :  { %v7331_v54 = vpack.c.b16 %v7269_v39, %v7255_v22  ;;  %v6978_v35 = vrot.slane %v6778_v15, 2  ;;  %v6792_v55 = vunpack.c.l.b16 %v18793_v19  ;;  %v6793_v42 = vunpack.c.l.b16 %v18798_v36  ;;  %v18881_v38 = vld [vmem:[%s21356_s4 + $0x3c4] ss:$0 sps:$4 sm:$0x22]  }
 0x364   :  { %v6979_v7 = vrot.slane %v6779_v4, 1  ;;  %v6982_v31 = vrot.slane %v6781_v44, 7  ;;  %v6984_v43 = vrot.slane %v6782_v60, 6  ;;  %v6986_v61 = vrot.slane %v6783_v37, 5 }
 0x365   :  { %11422 = vmatpush3.bf16.xpose.msra.mxu1 %v7331_v54  ;;  %v6988_v58 = vrot.slane %v6784_v63, 4  ;;  %v6990_v25 = vrot.slane %v6785_v17, 3  ;;  %v6992_v41 = vrot.slane %v6786_v51, 2  ;;  %v6993_v49 = vrot.slane %v6787_v53, 1 }
 0x366   :  { %v6980_v14 = vsel %vm678_vm0, %v6979_v7, %v6978_v35  ;;  %v6996_v3 = vrot.slane %v6789_v52, 7  ;;  %11423 = vmatprep.subr.bf16.mxu1 %v12576_v0  ;;  %v6998_v50 = vrot.slane %v6790_v2, 6  ;;  %v7000_v12 = vrot.slane %v6791_v30, 5  ;;  %v18846_v7 = vld [vmem:[%s21356_s4 + $0x39c] ss:$0 sps:$4 sm:$0x22]  }
 0x367   :  { %v6981_v16 = vsel %vm681_vm1, %v6780_v9, %v6980_v14  ;;  %v7002_v26 = vrot.slane %v6792_v55, 4  ;;  %v6994_v28 = vsel %vm678_vm0, %v6993_v49, %v6992_v41  ;;  %v7004_v34 = vrot.slane %v6793_v42, 3  ;;  %v18869_v41 = vld [vmem:[%s21356_s4 + $0x3b4] ss:$0 sps:$4 sm:$0x22]  }
 0x368   :  { %v6983_v46 = vsel %vm684_vm2, %v6982_v31, %v6981_v16  ;;  %v7270_v59 = vrot.slane %v6778_v15, 3  ;;  %v6995_v24 = vsel %vm681_vm1, %v6788_v13, %v6994_v28  ;;  %v7271_v47 = vrot.slane %v6779_v4, 2 }
 0x369   :  { %v6985_v27 = vsel %vm687_vm3, %v6984_v43, %v6983_v46  ;;  %v7273_v22 = vrot.slane %v6780_v9, 1  ;;  %v6997_v56 = vsel %vm684_vm2, %v6996_v3, %v6995_v24  ;;  %v7276_v32 = vrot.slane %v6782_v60, 7  ;;  %v18832_v60 = vld [vmem:[%s21356_s4 + $0x38c] ss:$0 sps:$4 sm:$0x22]  }
 0x36a   :  { %v6987_v5 = vsel %vm690_vm4, %v6986_v61, %v6985_v27  ;;  %v7278_v23 = vrot.slane %v6783_v37, 6  ;;  %v6999_v21 = vsel %vm687_vm3, %v6998_v50, %v6997_v56  ;;  %v7272_v6 = vsel %vm678_vm0, %v7271_v47, %v7270_v59  ;;  %v18853_v43 = vld [vmem:[%s21356_s4 + $0x3a4] ss:$0 sps:$4 sm:$0x22]  }
 0x36b   :  { %v6989_v48 = vsel %vm693_vm5, %v6988_v58, %v6987_v5  ;;  %v7280_v45 = vrot.slane %v6784_v63, 5  ;;  %v7001_v10 = vsel %vm690_vm4, %v7000_v12, %v6999_v21  ;;  %v7274_v4 = vsel %vm681_vm1, %v7273_v22, %v7272_v6  ;;  %v18895_v12 = vld [vmem:[%s21356_s4 + $0x3d4] ss:$0 sps:$4 sm:$0x22]  }
 0x36c   :  { %v6991_v15 = vsel %vm696_vm6, %v6990_v25, %v6989_v48  ;;  %v7282_v9 = vrot.slane %v6785_v17, 4  ;;  %v7003_v37 = vsel %vm693_vm5, %v7002_v26, %v7001_v10  ;;  %v7275_v29 = vsel %vm684_vm2, %v6781_v44, %v7274_v4  ;;  %v18839_v17 = vld [vmem:[%s21356_s4 + $0x394] ss:$0 sps:$4 sm:$0x22]  }
 0x36d   :  { %v7284_v63 = vrot.slane %v6786_v51, 3  ;;  %v7285_v39 = vrot.slane %v6787_v53, 2  ;;  %v7005_v19 = vsel %vm696_vm6, %v7004_v34, %v7003_v37  ;;  %v7277_v36 = vsel %vm687_vm3, %v7276_v32, %v7275_v29  ;;  %v18860_v25 = vld [vmem:[%s21356_s4 + $0x3ac] ss:$0 sps:$4 sm:$0x22]  }
 0x36e   :  { %v7287_v54 = vrot.slane %v6788_v13, 1  ;;  %v7290_v35 = vrot.slane %v6790_v2, 7  ;;  %v7040_v31 = vpack.c.b16 %v7005_v19, %v6991_v15  ;;  %v7279_v44 = vsel %vm690_vm4, %v7278_v23, %v7277_v36  ;;  %v18900_v26 = vld [vmem:[%s21356_s4 + $0x3dc] ss:$0 sps:$4 sm:$0x22]  }
 0x36f   :  { %v7286_v51 = vsel %vm678_vm0, %v7285_v39, %v7284_v63  ;;  %v7292_v53 = vrot.slane %v6791_v30, 6  ;;  %v7281_v61 = vsel %vm693_vm5, %v7280_v45, %v7279_v44  ;;  %v7294_v2 = vrot.slane %v6792_v55, 5  ;;  %v18874_v55 = vld [vmem:[%s21356_s4 + $0x3bc] ss:$0 sps:$4 sm:$0x22]  }
 0x370   :  { %v7288_v13 = vsel %vm681_vm1, %v7287_v54, %v7286_v51  ;;  %v7296_v58 = vrot.slane %v6793_v42, 4  ;;  %11404 = vmatpush3.bf16.xpose.msra.mxu0 %v7040_v31  ;;  %v7283_v14 = vsel %vm696_vm6, %v7282_v9, %v7281_v61  ;;  %v6794_v49 = vunpack.c.l.b16 %v18827_v18  ;;  %v18909_v27 = vld [vmem:[%s21356_s4 + $0x3e4] ss:$0 sps:$4 sm:$0x22]  }
 0x371   :  { %v7289_v30 = vsel %vm684_vm2, %v6789_v52, %v7288_v13  ;;  %11405 = vmatprep.subr.bf16.mxu0 %v12576_v0  ;;  %v18886_v52 = vld [vmem:[%s21356_s4 + $0x3cc] ss:$0 sps:$4 sm:$0x22]   ;;  %v6795_v3 = vunpack.c.l.b16 %v18832_v60  ;;  %v6796_v16 = vunpack.c.l.b16 %v18839_v17  ;;  %v6797_v46 = vunpack.c.l.b16 %v18846_v7  ;;  %v18923_v32 = vld [vmem:[%s21356_s4 + $0x3f4] ss:$0 sps:$4 sm:$0x22]  }
 0x372   :  { %v7291_v42 = vsel %vm687_vm3, %v7290_v35, %v7289_v30  ;;  %v6798_v28 = vunpack.c.l.b16 %v18853_v43  ;;  %v6799_v34 = vunpack.c.l.b16 %v18860_v25  ;;  %v18914_v24 = vld [vmem:[%s21356_s4 + $0x3ec] ss:$0 sps:$4 sm:$0x22]   ;;  %v6800_v47 = vunpack.c.l.b16 %v18869_v41  ;;  %v18928_v23 = vld [vmem:[%s21356_s4 + $0x3fc] ss:$0 sps:$4 sm:$0x22]  }
 0x373   :  { %v7293_v50 = vsel %vm690_vm4, %v7292_v53, %v7291_v42  ;;  %v6801_v22 = vunpack.c.l.b16 %v18874_v55  ;;  %v6802_v5 = vunpack.c.l.b16 %v18881_v38  ;;  %v6803_v48 = vunpack.c.l.b16 %v18886_v52 }
 0x374   :  { %v7295_v59 = vsel %vm693_vm5, %v7294_v2, %v7293_v50  ;;  %v6804_v21 = vunpack.c.l.b16 %v18895_v12  ;;  %v6805_v6 = vunpack.c.l.b16 %v18900_v26  ;;  %v6806_v15 = vunpack.c.l.b16 %v18909_v27  ;;  %v18957_v27 = vld [vmem:[%s21356_s4 + $0x4] ss:$0 sps:$4 sm:$0x44]  }
 0x375   :  { %v7297_v56 = vsel %vm696_vm6, %v7296_v58, %v7295_v59  ;;  %v6807_v10 = vunpack.c.l.b16 %v18914_v24  ;;  %v7006_v4 = vrot.slane %v6794_v49, 2  ;;  %v6808_v9 = vunpack.c.l.b16 %v18923_v32  ;;  %v19011_v26 = vld [vmem:[%s21356_s4 + $0x44] ss:$0 sps:$4 sm:$0x44]  }
 0x376   :  { %v7332_v45 = vpack.c.b16 %v7297_v56, %v7283_v14  ;;  %v6809_v18 = vunpack.c.l.b16 %v18928_v23  ;;  %v7007_v60 = vrot.slane %v6795_v3, 1  ;;  %v7010_v37 = vrot.slane %v6797_v46, 7 }
 0x377   :  { %v7012_v29 = vrot.slane %v6798_v28, 6  ;;  %v7014_v63 = vrot.slane %v6799_v34, 5  ;;  %v7016_v39 = vrot.slane %v6800_v47, 4  ;;  %v7018_v17 = vrot.slane %v6801_v22, 3 }
 0x378   :  { %11424 = vmatpush3.bf16.xpose.msra.mxu1 %v7332_v45  ;;  %v7008_v19 = vsel %vm678_vm0, %v7007_v60, %v7006_v4  ;;  %v7020_v36 = vrot.slane %v6802_v5, 2  ;;  %v7021_v54 = vrot.slane %v6803_v48, 1  ;;  %v7024_v35 = vrot.slane %v6805_v6, 7  ;;  %v18976_v60 = vld [vmem:[%s21356_s4 + $0x1c] ss:$0 sps:$4 sm:$0x44]  }
 0x379   :  { %11425 = vmatprep.subr.bf16.mxu1 %v12576_v0  ;;  %v7009_v7 = vsel %vm681_vm1, %v6796_v16, %v7008_v19  ;;  %v7026_v31 = vrot.slane %v6806_v15, 6  ;;  %v7028_v44 = vrot.slane %v6807_v10, 5  ;;  %v7030_v51 = vrot.slane %v6808_v9, 4 }
 0x37a   :  { %v7011_v53 = vsel %vm684_vm2, %v7010_v37, %v7009_v7  ;;  %v7022_v43 = vsel %vm678_vm0, %v7021_v54, %v7020_v36  ;;  %v7032_v61 = vrot.slane %v6809_v18, 3  ;;  %v7298_v13 = vrot.slane %v6794_v49, 3  ;;  %v18999_v36 = vld [vmem:[%s21356_s4 + $0x34] ss:$0 sps:$4 sm:$0x44]  }
 0x37b   :  { %v7013_v2 = vsel %vm687_vm3, %v7012_v29, %v7011_v53  ;;  %v7023_v58 = vsel %vm681_vm1, %v6804_v21, %v7022_v43  ;;  %v7299_v25 = vrot.slane %v6795_v3, 2  ;;  %v7301_v14 = vrot.slane %v6796_v16, 1  ;;  %v18983_v29 = vld [vmem:[%s21356_s4 + $0x24] ss:$0 sps:$4 sm:$0x44]  }
 0x37c   :  { %v7015_v30 = vsel %vm690_vm4, %v7014_v63, %v7013_v2  ;;  %v7025_v41 = vsel %vm684_vm2, %v7024_v35, %v7023_v58  ;;  %v7304_v55 = vrot.slane %v6798_v28, 7  ;;  %v7306_v42 = vrot.slane %v6799_v34, 6  ;;  %v18962_v28 = vld [vmem:[%s21356_s4 + $0xc] ss:$0 sps:$4 sm:$0x44]  }
 0x37d   :  { %v7017_v38 = vsel %vm693_vm5, %v7016_v39, %v7015_v30  ;;  %v7027_v52 = vsel %vm687_vm3, %v7026_v31, %v7025_v41  ;;  %v7300_v50 = vsel %vm678_vm0, %v7299_v25, %v7298_v13  ;;  %v7308_v12 = vrot.slane %v6800_v47, 5  ;;  %v19039_v2 = vld [vmem:[%s21356_s4 + $0x64] ss:$0 sps:$4 sm:$0x44]  }
 0x37e   :  { %v7019_v49 = vsel %vm696_vm6, %v7018_v17, %v7017_v38  ;;  %v7029_v59 = vsel %vm690_vm4, %v7028_v44, %v7027_v52  ;;  %v7302_v3 = vsel %vm681_vm1, %v7301_v14, %v7300_v50  ;;  %v7310_v16 = vrot.slane %v6801_v22, 4  ;;  %v18969_v22 = vld [vmem:[%s21356_s4 + $0x14] ss:$0 sps:$4 sm:$0x44]  }
 0x37f   :  { %v7031_v34 = vsel %vm693_vm5, %v7030_v51, %v7029_v59  ;;  %v7303_v24 = vsel %vm684_vm2, %v6797_v46, %v7302_v3  ;;  %v7312_v47 = vrot.slane %v6802_v5, 3  ;;  %v7313_v56 = vrot.slane %v6803_v48, 2  ;;  %v18990_v17 = vld [vmem:[%s21356_s4 + $0x2c] ss:$0 sps:$4 sm:$0x44]  }
 0x380   :  { %v7033_v32 = vsel %vm696_vm6, %v7032_v61, %v7031_v34  ;;  %v7305_v23 = vsel %vm687_vm3, %v7304_v55, %v7303_v24  ;;  %v7315_v45 = vrot.slane %v6804_v21, 1  ;;  %v7318_v4 = vrot.slane %v6806_v15, 7  ;;  %v19025_v44 = vld [vmem:[%s21356_s4 + $0x54] ss:$0 sps:$4 sm:$0x44]   ;;  %v12573_v24 = vld [vmem:[%s21357_s0] sm:$0xff]  }
 0x381   :  { %v7041_v37 = vpack.c.b16 %v7033_v32, %v7019_v49  ;;  %v7307_v46 = vsel %vm690_vm4, %v7306_v42, %v7305_v23  ;;  %v7314_v5 = vsel %vm678_vm0, %v7313_v56, %v7312_v47  ;;  %v7320_v48 = vrot.slane %v6807_v10, 6  ;;  %v19030_v51 = vld [vmem:[%s21356_s4 + $0x5c] ss:$0 sps:$4 sm:$0x44]  }
 0x382   :  { %v7309_v63 = vsel %vm693_vm5, %v7308_v12, %v7307_v46  ;;  %v7316_v21 = vsel %vm681_vm1, %v7315_v45, %v7314_v5  ;;  %v7322_v15 = vrot.slane %v6808_v9, 5  ;;  %v7324_v39 = vrot.slane %v6809_v18, 4  ;;  %v19004_v9 = vld [vmem:[%s21356_s4 + $0x3c] ss:$0 sps:$4 sm:$0x44]  }
 0x383   :  { %11406 = vmatpush3.bf16.xpose.msra.mxu0 %v7041_v37  ;;  %v7311_v19 = vsel %vm696_vm6, %v7310_v16, %v7309_v63  ;;  %v7317_v10 = vsel %vm684_vm2, %v6805_v6, %v7316_v21  ;;  %v19016_v6 = vld [vmem:[%s21356_s4 + $0x4c] ss:$0 sps:$4 sm:$0x44]   ;;  %v7906_v54 = vunpack.c.l.b16 %v18957_v27  ;;  %v7907_v35 = vunpack.c.l.b16 %v18962_v28  ;;  %v19053_v55 = vld [vmem:[%s21356_s4 + $0x74] ss:$0 sps:$4 sm:$0x44]  }
 0x384   :  { %v7319_v18 = vsel %vm687_vm3, %v7318_v4, %v7317_v10  ;;  %11431 = vmatprep.subr.bf16.mxu0 %v12576_v0  ;;  %v7908_v7 = vunpack.c.l.b16 %v18969_v22  ;;  %v7909_v53 = vunpack.c.l.b16 %v18976_v60  ;;  %v7910_v43 = vunpack.c.l.b16 %v18983_v29  ;;  %v19044_v58 = vld [vmem:[%s21356_s4 + $0x6c] ss:$0 sps:$4 sm:$0x44]   ;;  %v19058_v42 = vld [vmem:[%s21356_s4 + $0x7c] ss:$0 sps:$4 sm:$0x44]  }
 0x385   :  { %v7321_v31 = vsel %vm690_vm4, %v7320_v48, %v7319_v18  ;;  %v7911_v61 = vunpack.c.l.b16 %v18990_v17  ;;  %v7912_v25 = vunpack.c.l.b16 %v18999_v36  ;;  %v7913_v14 = vunpack.c.l.b16 %v19004_v9  ;;  %v19135_v17 = vld [vmem:[%s21356_s4 + $0xac] ss:$0 sps:$4 sm:$0x44]  }
 0x386   :  { %v7323_v13 = vsel %vm693_vm5, %v7322_v15, %v7321_v31  ;;  %v7914_v30 = vunpack.c.l.b16 %v19011_v26  ;;  %v7915_v38 = vunpack.c.l.b16 %v19016_v6  ;;  %v7916_v52 = vunpack.c.l.b16 %v19025_v44 }
 0x387   :  { %v7325_v41 = vsel %vm696_vm6, %v7324_v39, %v7323_v13  ;;  %v7917_v50 = vunpack.c.l.b16 %v19030_v51  ;;  %v7918_v49 = vunpack.c.l.b16 %v19039_v2  ;;  %v7919_v59 = vunpack.c.l.b16 %v19044_v58 }
 0x388   :  { %v7333_v12 = vpack.c.b16 %v7325_v41, %v7311_v19  ;;  %v8034_v3 = vrot.slane %v7906_v54, 4  ;;  %v7920_v16 = vunpack.c.l.b16 %v19053_v55  ;;  %v7921_v27 = vunpack.c.l.b16 %v19058_v42  ;;  %v19147_v55 = vld [vmem:[%s21356_s4 + $0xbc] ss:$0 sps:$4 sm:$0x44]  }
 0x389   :  { %v8035_v28 = vrot.slane %v7907_v35, 3  ;;  %v8037_v34 = vrot.slane %v7908_v7, 2  ;;  %v8039_v47 = vrot.slane %v7909_v53, 1  ;;  %v8042_v56 = vrot.slane %v7911_v61, 7 }
 0x38a   :  { %11426 = vmatpush3.bf16.xpose.msra.mxu1 %v7333_v12  ;;  %11408 = vmatmul.mubr.bf16.vlgmr.msra.gmra.mrb[20].mxu0 %v12573_v24  ;;  %v8044_v22 = vrot.slane %v7912_v25, 6  ;;  %v8046_v32 = vrot.slane %v7913_v14, 5  ;;  %v8048_v45 = vrot.slane %v7914_v30, 4  ;;  %v8049_v4 = vrot.slane %v7915_v38, 3 }
 0x38b   :  { %v8036_v23 = vsel %vm678_vm0, %v8035_v28, %v8034_v3  ;;  %v8051_v60 = vrot.slane %v7916_v52, 2  ;;  %11451 = vmatprep.subr.bf16.mxu1 %v12576_v0  ;;  %11447 = vmatprep.mubr.msk.bf16.mxu0 %vm12577_vm7, %v12576_v0  ;;  %v8053_v46 = vrot.slane %v7917_v50, 1  ;;  %v8056_v5 = vrot.slane %v7919_v59, 7 }
 0x38c   :  { %v8038_v37 = vsel %vm681_vm1, %v8037_v34, %v8036_v23  ;;  %v8058_v48 = vrot.slane %v7920_v16, 6  ;;  %v8050_v63 = vsel %vm678_vm0, %v8049_v4, %v8048_v45  ;;  %v8060_v21 = vrot.slane %v7921_v27, 5  ;;  %v19142_v4 = vld [vmem:[%s21356_s4 + $0xb4] ss:$0 sps:$4 sm:$0x44]  }
 0x38d   :  { %v8040_v29 = vsel %vm684_vm2, %v8039_v47, %v8038_v37  ;;  %v8326_v15 = vrot.slane %v7906_v54, 5  ;;  %v8052_v19 = vsel %vm681_vm1, %v8051_v60, %v8050_v63  ;;  %v8327_v10 = vrot.slane %v7907_v35, 4  ;;  %v19117_v47 = vld [vmem:[%s21356_s4 + $0x9c] ss:$0 sps:$4 sm:$0x44]  }
 0x38e   :  { %v8041_v39 = vsel %vm687_vm3, %v7910_v43, %v8040_v29  ;;  %v8329_v36 = vrot.slane %v7908_v7, 3  ;;  %v8054_v18 = vsel %vm684_vm2, %v8053_v46, %v8052_v19  ;;  %v8331_v26 = vrot.slane %v7909_v53, 2  ;;  %v19096_v53 = vld [vmem:[%s21356_s4 + $0x84] ss:$0 sps:$4 sm:$0x44]  }
 0x38f   :  { %v8043_v9 = vsel %vm690_vm4, %v8042_v56, %v8041_v39  ;;  %v8333_v6 = vrot.slane %v7910_v43, 1  ;;  %v8055_v44 = vsel %vm687_vm3, %v7918_v49, %v8054_v18  ;;  %v8328_v51 = vsel %vm678_vm0, %v8327_v10, %v8326_v15  ;;  %v19101_v43 = vld [vmem:[%s21356_s4 + $0x8c] ss:$0 sps:$4 sm:$0x44]  }
 0x390   :  { %v8045_v31 = vsel %vm693_vm5, %v8044_v22, %v8043_v9  ;;  %v8336_v13 = vrot.slane %v7912_v25, 7  ;;  %v8057_v2 = vsel %vm690_vm4, %v8056_v5, %v8055_v44  ;;  %v8330_v35 = vsel %vm681_vm1, %v8329_v36, %v8328_v51  ;;  %v19159_v60 = vld [vmem:[%s21356_s4 + $0xcc] ss:$0 sps:$4 sm:$0x44]  }
 0x391   :  { %v8047_v54 = vsel %vm696_vm6, %v8046_v32, %v8045_v31  ;;  %11428 = vmatmul.mubr.bf16.vlgmr.msra.gmra.mrb[20].mxu1 %v12573_v24  ;;  %v8338_v7 = vrot.slane %v7913_v14, 6  ;;  %v8059_v25 = vsel %vm693_vm5, %v8058_v48, %v8057_v2  ;;  %v8332_v41 = vsel %vm684_vm2, %v8331_v26, %v8330_v35  ;;  %v19108_v14 = vld [vmem:[%s21356_s4 + $0x94] ss:$0 sps:$4 sm:$0x44]  }
 0x392   :  { %v8340_v42 = vrot.slane %v7914_v30, 5  ;;  %v8341_v12 = vrot.slane %v7915_v38, 4  ;;  %11467 = vmatprep.mubr.msk.bf16.mxu1 %vm12577_vm7, %v12576_v0  ;;  %v8061_v3 = vsel %vm696_vm6, %v8060_v21, %v8059_v25  ;;  %v8334_v28 = vsel %vm687_vm3, %v8333_v6, %v8332_v41  ;;  %v19126_v32 = vld [vmem:[%s21356_s4 + $0xa4] ss:$0 sps:$4 sm:$0x44]  }
 0x393   :  { %v8343_v34 = vrot.slane %v7916_v52, 3  ;;  %v8345_v24 = vrot.slane %v7917_v50, 2  ;;  %v8258_v30 = vpack.c.b16 %v8061_v3, %v8047_v54  ;;  %v8335_v38 = vsel %vm690_vm4, %v7911_v61, %v8334_v28  ;;  %v19170_v29 = vld [vmem:[%s21356_s4 + $0xd4] ss:$0 sps:$4 sm:$0x44]  }
 0x394   :  { %v8342_v56 = vsel %vm678_vm0, %v8341_v12, %v8340_v42  ;;  %v8347_v22 = vrot.slane %v7918_v49, 1  ;;  %v8337_v52 = vsel %vm693_vm5, %v8336_v13, %v8335_v38  ;;  %v8350_v23 = vrot.slane %v7920_v16, 7  ;;  %v19175_v63 = vld [vmem:[%s21356_s4 + $0xdc] ss:$0 sps:$4 sm:$0x44]  }
 0x395   :  { %v8344_v50 = vsel %vm681_vm1, %v8343_v34, %v8342_v56  ;;  %v8352_v45 = vrot.slane %v7921_v27, 6  ;;  %11432 = vmatpush3.bf16.xpose.msra.mxu0 %v8258_v30  ;;  %v8339_v61 = vsel %vm696_vm6, %v8338_v7, %v8337_v52  ;;  %v19154_v27 = vld [vmem:[%s21356_s4 + $0xc4] ss:$0 sps:$4 sm:$0x44]   ;;  %v7922_v37 = vunpack.c.l.b16 %v19096_v53 }
 0x396   :  { %v8346_v49 = vsel %vm684_vm2, %v8345_v24, %v8344_v50  ;;  %11433 = vmatprep.subr.bf16.mxu0 %v12576_v0  ;;  %v7923_v46 = vunpack.c.l.b16 %v19101_v43  ;;  %v7924_v5 = vunpack.c.l.b16 %v19108_v14  ;;  %v7925_v21 = vunpack.c.l.b16 %v19117_v47  ;;  %v19189_v19 = vld [vmem:[%s21356_s4 + $0xec] ss:$0 sps:$4 sm:$0x44]   ;;  %v19198_v26 = vld [vmem:[%s21356_s4 + $0xf4] ss:$0 sps:$4 sm:$0x44]  }
 0x397   :  { %v8348_v16 = vsel %vm687_vm3, %v8347_v22, %v8346_v49  ;;  %v7926_v15 = vunpack.c.l.b16 %v19126_v32  ;;  %v7927_v39 = vunpack.c.l.b16 %v19135_v17  ;;  %v7928_v10 = vunpack.c.l.b16 %v19142_v4  ;;  %v19203_v6 = vld [vmem:[%s21356_s4 + $0xfc] ss:$0 sps:$4 sm:$0x44]   ;;  %v19269_v17 = vld [vmem:[%s21356_s4 + $0x12c] ss:$0 sps:$4 sm:$0x44]  }
 0x398   :  { %v8349_v48 = vsel %vm690_vm4, %v7919_v59, %v8348_v16  ;;  %v19184_v59 = vld [vmem:[%s21356_s4 + $0xe4] ss:$0 sps:$4 sm:$0x44]   ;;  %v7929_v36 = vunpack.c.l.b16 %v19147_v55  ;;  %v7930_v9 = vunpack.c.l.b16 %v19154_v27  ;;  %v7931_v31 = vunpack.c.l.b16 %v19159_v60 }
 0x399   :  { %v8351_v58 = vsel %vm693_vm5, %v8350_v23, %v8349_v48  ;;  %v7932_v44 = vunpack.c.l.b16 %v19170_v29  ;;  %v7933_v51 = vunpack.c.l.b16 %v19175_v63  ;;  %v7934_v54 = vunpack.c.l.b16 %v19184_v59 }
 0x39a   :  { %v8353_v18 = vsel %vm696_vm6, %v8352_v45, %v8351_v58  ;;  %v7935_v2 = vunpack.c.l.b16 %v19189_v19  ;;  %v8062_v35 = vrot.slane %v7922_v37, 4  ;;  %v7936_v7 = vunpack.c.l.b16 %v19198_v26 }
 0x39b   :  { %v8550_v13 = vpack.c.b16 %v8353_v18, %v8339_v61  ;;  %v7937_v53 = vunpack.c.l.b16 %v19203_v6  ;;  %v8063_v43 = vrot.slane %v7923_v46, 3  ;;  %v8065_v25 = vrot.slane %v7924_v5, 2  ;;  %v19246_v6 = vld [vmem:[%s21356_s4 + $0x114] ss:$0 sps:$4 sm:$0x44]  }
 0x39c   :  { %v8067_v41 = vrot.slane %v7925_v21, 1  ;;  %v8070_v42 = vrot.slane %v7927_v39, 7  ;;  %v8072_v12 = vrot.slane %v7928_v10, 6  ;;  %v8074_v14 = vrot.slane %v7929_v36, 5 }
 0x39d   :  { %11452 = vmatpush3.bf16.xpose.msra.mxu1 %v8550_v13  ;;  %v8064_v3 = vsel %vm678_vm0, %v8063_v43, %v8062_v35  ;;  %v8076_v28 = vrot.slane %v7930_v9, 4  ;;  %v8077_v34 = vrot.slane %v7931_v31, 3  ;;  %v8079_v24 = vrot.slane %v7932_v44, 2 }
 0x39e   :  { %11453 = vmatprep.subr.bf16.mxu1 %v12576_v0  ;;  %v8066_v47 = vsel %vm681_vm1, %v8065_v25, %v8064_v3  ;;  %v8081_v30 = vrot.slane %v7933_v51, 1  ;;  %v8084_v38 = vrot.slane %v7935_v2, 7  ;;  %v8086_v56 = vrot.slane %v7936_v7, 6  ;;  %v19253_v25 = vld [vmem:[%s21356_s4 + $0x11c] ss:$0 sps:$4 sm:$0x44]  }
 0x39f   :  { %v8068_v22 = vsel %vm684_vm2, %v8067_v41, %v8066_v47  ;;  %v8078_v32 = vsel %vm678_vm0, %v8077_v34, %v8076_v28  ;;  %v8088_v52 = vrot.slane %v7937_v53, 5  ;;  %v8354_v50 = vrot.slane %v7922_v37, 5  ;;  %v19231_v37 = vld [vmem:[%s21356_s4 + $0x104] ss:$0 sps:$4 sm:$0x44]  }
 0x3a0   :  { %v8069_v23 = vsel %vm687_vm3, %v7926_v15, %v8068_v22  ;;  %v8080_v45 = vsel %vm681_vm1, %v8079_v24, %v8078_v32  ;;  %v8355_v61 = vrot.slane %v7923_v46, 4  ;;  %v8357_v49 = vrot.slane %v7924_v5, 3  ;;  %v19294_v47 = vld [vmem:[%s21356_s4 + $0x144] ss:$0 sps:$4 sm:$0x44]  }
 0x3a1   :  { %v8071_v4 = vsel %vm690_vm4, %v8070_v42, %v8069_v23  ;;  %v8082_v55 = vsel %vm684_vm2, %v8081_v30, %v8080_v45  ;;  %v8359_v16 = vrot.slane %v7925_v21, 2  ;;  %v8361_v27 = vrot.slane %v7926_v15, 1  ;;  %v19239_v15 = vld [vmem:[%s21356_s4 + $0x10c] ss:$0 sps:$4 sm:$0x44]  }
 0x3a2   :  { %v8073_v60 = vsel %vm693_vm5, %v8072_v12, %v8071_v4  ;;  %v8083_v48 = vsel %vm687_vm3, %v7934_v54, %v8082_v55  ;;  %v8356_v29 = vsel %vm678_vm0, %v8355_v61, %v8354_v50  ;;  %v8364_v63 = vrot.slane %v7928_v10, 7  ;;  %v19262_v12 = vld [vmem:[%s21356_s4 + $0x124] ss:$0 sps:$4 sm:$0x44]  }
 0x3a3   :  { %v8075_v46 = vsel %vm696_vm6, %v8074_v14, %v8073_v60  ;;  %v8085_v5 = vsel %vm690_vm4, %v8084_v38, %v8083_v48  ;;  %v8358_v58 = vsel %vm681_vm1, %v8357_v49, %v8356_v29  ;;  %v8366_v21 = vrot.slane %v7929_v36, 6  ;;  %v19299_v30 = vld [vmem:[%s21356_s4 + $0x14c] ss:$0 sps:$4 sm:$0x44]  }
 0x3a4   :  { %v8087_v59 = vsel %vm693_vm5, %v8086_v56, %v8085_v5  ;;  %v8360_v10 = vsel %vm684_vm2, %v8359_v16, %v8358_v58  ;;  %v8368_v18 = vrot.slane %v7930_v9, 5  ;;  %v8369_v26 = vrot.slane %v7931_v31, 4  ;;  %v19315_v50 = vld [vmem:[%s21356_s4 + $0x15c] ss:$0 sps:$4 sm:$0x44]  }
 0x3a5   :  { %v8089_v13 = vsel %vm696_vm6, %v8088_v52, %v8087_v59  ;;  %v8362_v36 = vsel %vm687_vm3, %v8361_v27, %v8360_v10  ;;  %v8371_v35 = vrot.slane %v7932_v44, 3  ;;  %v8373_v43 = vrot.slane %v7933_v51, 2  ;;  %v19310_v52 = vld [vmem:[%s21356_s4 + $0x154] ss:$0 sps:$4 sm:$0x44]  }
 0x3a6   :  { %v8259_v41 = vpack.c.b16 %v8089_v13, %v8075_v46  ;;  %v8363_v9 = vsel %vm690_vm4, %v7927_v39, %v8362_v36  ;;  %v8370_v31 = vsel %vm678_vm0, %v8369_v26, %v8368_v18  ;;  %v8375_v42 = vrot.slane %v7934_v54, 1  ;;  %v19274_v39 = vld [vmem:[%s21359_s5 + $0x4] ss:$0 sm:$0xff]  ;;  %v19329_v49 = vld [vmem:[%s21356_s4 + $0x16c] ss:$0 sps:$4 sm:$0x44]  }
 0x3a7   :  { %v8365_v44 = vsel %vm693_vm5, %v8364_v63, %v8363_v9  ;;  %v8372_v51 = vsel %vm681_vm1, %v8371_v35, %v8370_v31  ;;  %v8378_v14 = vrot.slane %v7936_v7, 7  ;;  %v8380_v3 = vrot.slane %v7937_v53, 6  ;;  %v19281_v7 = vld [vmem:[%s21356_s4 + $0x134] ss:$0 sps:$4 sm:$0x44]  }
 0x3a8   :  { %11434 = vmatpush3.bf16.xpose.msra.mxu0 %v8259_v41  ;;  %v8367_v54 = vsel %vm696_vm6, %v8366_v21, %v8365_v44  ;;  %v8374_v28 = vsel %vm684_vm2, %v8373_v43, %v8372_v51  ;;  %v19286_v53 = vld [vmem:[%s21356_s4 + $0x13c] ss:$0 sps:$4 sm:$0x44]   ;;  %v7938_v34 = vunpack.c.l.b16 %v19231_v37  ;;  %v7939_v38 = vunpack.c.l.b16 %v19239_v15  ;;  %v19338_v60 = vld [vmem:[%s21356_s4 + $0x174] ss:$0 sps:$4 sm:$0x44]  }
 0x3a9   :  { %v8376_v24 = vsel %vm687_vm3, %v8375_v42, %v8374_v28  ;;  %11435 = vmatprep.subr.bf16.mxu0 %v12576_v0  ;;  %v7940_v56 = vunpack.c.l.b16 %v19246_v6  ;;  %v7941_v22 = vunpack.c.l.b16 %v19253_v25  ;;  %v7942_v23 = vunpack.c.l.b16 %v19262_v12  ;;  %v19343_v48 = vld [vmem:[%s21356_s4 + $0x17c] ss:$0 sps:$4 sm:$0x44]  }
 0x3aa   :  { %v8377_v32 = vsel %vm690_vm4, %v7935_v2, %v8376_v24  ;;  %v7943_v45 = vunpack.c.l.b16 %v19269_v17  ;;  %v7944_v61 = vunpack.c.l.b16 %v19281_v7  ;;  %v19324_v2 = vld [vmem:[%s21356_s4 + $0x164] ss:$0 sps:$4 sm:$0x44]   ;;  %v7945_v4 = vunpack.c.l.b16 %v19286_v53 }
 0x3ab   :  { %v8379_v19 = vsel %vm693_vm5, %v8378_v14, %v8377_v32  ;;  %v7946_v55 = vunpack.c.l.b16 %v19294_v47  ;;  %v7947_v16 = vunpack.c.l.b16 %v19299_v30  ;;  %v7948_v29 = vunpack.c.l.b16 %v19310_v52 }
 0x3ac   :  { %v8381_v27 = vsel %vm696_vm6, %v8380_v3, %v8379_v19  ;;  %v7949_v63 = vunpack.c.l.b16 %v19315_v50  ;;  %vm3424_vm8 = vcmp.eq.s32.totalorder %v17144_v1, %v19274_v39  ;;  %v7950_v46 = vunpack.c.l.b16 %v19324_v2 }
 0x3ad   :  { %v8551_v37 = vpack.c.b16 %v8381_v27, %v8367_v54  ;;  %v7951_v5 = vunpack.c.l.b16 %v19329_v49  ;;  %v8090_v58 = vrot.slane %v7938_v34, 4  ;;  %v7952_v21 = vunpack.c.l.b16 %v19338_v60  ;;  %v19469_v49 = vld [vmem:[%s21356_s4 + $0x1d4] ss:$0 sps:$4 sm:$0x44]  }
 0x3ae   :  { %v7953_v15 = vunpack.c.l.b16 %v19343_v48  ;;  %v8091_v59 = vrot.slane %v7939_v38, 3  ;;  %v8093_v10 = vrot.slane %v7940_v56, 2  ;;  %v8095_v18 = vrot.slane %v7941_v22, 1 }
 0x3af   :  { %11454 = vmatpush3.bf16.xpose.msra.mxu1 %v8551_v37  ;;  %v8098_v26 = vrot.slane %v7943_v45, 7  ;;  %v8100_v6 = vrot.slane %v7944_v61, 6  ;;  %v8102_v13 = vrot.slane %v7945_v4, 5  ;;  %v8104_v35 = vrot.slane %v7946_v55, 4 }
 0x3b0   :  { %v8092_v36 = vsel %vm678_vm0, %v8091_v59, %v8090_v58  ;;  %v8105_v43 = vrot.slane %v7947_v16, 3  ;;  %v8107_v25 = vrot.slane %v7948_v29, 2  ;;  %11455 = vmatprep.subr.bf16.mxu1 %v12576_v0  ;;  %vm3425_vm9 = vcmp.eq.s32.totalorder %v17076_v11, %v19274_v39  ;;  %v19393_v59 = vld [vmem:[%s21356_s4 + $0x18c] ss:$0 sps:$4 sm:$0x44]  }
 0x3b1   :  { %v8094_v41 = vsel %vm681_vm1, %v8093_v10, %v8092_v36  ;;  %v8109_v9 = vrot.slane %v7949_v63, 1  ;;  %v8112_v31 = vrot.slane %v7951_v5, 7  ;;  %v8114_v42 = vrot.slane %v7952_v21, 6 }
 0x3b2   :  { %v8096_v12 = vsel %vm684_vm2, %v8095_v18, %v8094_v41  ;;  %v8106_v44 = vsel %vm678_vm0, %v8105_v43, %v8104_v35  ;;  %v8116_v51 = vrot.slane %v7953_v15, 5  ;;  %v3426_v14 = vsel %vm3424_vm8, %v18529_v62, 0.0  ;;  %v19413_v35 = vld [vmem:[%s21356_s4 + $0x1a4] ss:$0 sps:$4 sm:$0x44]  }
 0x3b3   :  { %v8097_v3 = vsel %vm687_vm3, %v7942_v23, %v8096_v12  ;;  %v8108_v54 = vsel %vm681_vm1, %v8107_v25, %v8106_v44  ;;  %v3428_v28 = vmax.f32 %v18331_v20, %v3426_v14  ;;  %v8382_v7 = vrot.slane %v7938_v34, 5  ;;  %v10379_v34 = vld [vmem:[%s21359_s5 + $0x5] ss:$0 sm:$0xff]  ;;  %v19459_v12 = vld [vmem:[%s21356_s4 + $0x1cc] ss:$0 sps:$4 sm:$0x44]  }
 0x3b4   :  { %v8099_v53 = vsel %vm690_vm4, %v8098_v26, %v8097_v3  ;;  %v8110_v24 = vsel %vm684_vm2, %v8109_v9, %v8108_v54  ;;  %v8383_v47 = vrot.slane %v7939_v38, 4  ;;  %v8385_v30 = vrot.slane %v7940_v56, 3  ;;  %v19444_v9 = vld [vmem:[%s21356_s4 + $0x1bc] ss:$0 sps:$4 sm:$0x44]  }
 0x3b5   :  { %v8101_v32 = vsel %vm693_vm5, %v8100_v6, %v8099_v53  ;;  %v8111_v52 = vsel %vm687_vm3, %v7950_v46, %v8110_v24  ;;  %v8387_v50 = vrot.slane %v7941_v22, 2  ;;  %v8389_v19 = vrot.slane %v7942_v23, 1  ;;  %v19386_v22 = vld [vmem:[%s21356_s4 + $0x184] ss:$0 sps:$4 sm:$0x44]  }
 0x3b6   :  { %v8103_v62 = vsel %vm696_vm6, %v8102_v13, %v8101_v32  ;;  %v8113_v2 = vsel %vm690_vm4, %v8112_v31, %v8111_v52  ;;  %v8384_v27 = vsel %vm678_vm0, %v8383_v47, %v8382_v7  ;;  %v8392_v20 = vrot.slane %v7944_v61, 7  ;;  %v19482_v7 = vld [vmem:[%s21356_s4 + $0x1e4] ss:$0 sps:$4 sm:$0x44]  }
 0x3b7   :  { %v8115_v38 = vsel %vm693_vm5, %v8114_v42, %v8113_v2  ;;  %v8386_v56 = vsel %vm681_vm1, %v8385_v30, %v8384_v27  ;;  %v8394_v60 = vrot.slane %v7945_v4, 6  ;;  %v8396_v48 = vrot.slane %v7946_v55, 5  ;;  %v19398_v4 = vld [vmem:[%s21356_s4 + $0x194] ss:$0 sps:$4 sm:$0x44]  }
 0x3b8   :  { %v8117_v23 = vsel %vm696_vm6, %v8116_v51, %v8115_v38  ;;  %v8388_v37 = vsel %vm684_vm2, %v8387_v50, %v8386_v56  ;;  %v8397_v61 = vrot.slane %v7947_v16, 4  ;;  %v8399_v58 = vrot.slane %v7948_v29, 3  ;;  %v19404_v16 = vld [vmem:[%s21356_s4 + $0x19c] ss:$0 sps:$4 sm:$0x44]  }
 0x3b9   :  { %v8260_v55 = vpack.c.b16 %v8117_v23, %v8103_v62  ;;  %v8390_v10 = vsel %vm687_vm3, %v8389_v19, %v8388_v37  ;;  %v8401_v18 = vrot.slane %v7949_v63, 2  ;;  %v8403_v26 = vrot.slane %v7950_v46, 1  ;;  %v19487_v53 = vld [vmem:[%s21356_s4 + $0x1ec] ss:$0 sps:$4 sm:$0x44]  }
 0x3ba   :  { %v8391_v29 = vsel %vm690_vm4, %v7943_v45, %v8390_v10  ;;  %v8398_v6 = vsel %vm678_vm0, %v8397_v61, %v8396_v48  ;;  %v8406_v13 = vrot.slane %v7952_v21, 7  ;;  %v8408_v36 = vrot.slane %v7953_v15, 6  ;;  %v19425_v45 = vld [vmem:[%s21356_s4 + $0x1ac] ss:$0 sps:$4 sm:$0x44]  }
 0x3bb   :  { %11436 = vmatpush3.bf16.xpose.msra.mxu0 %v8260_v55  ;;  %v8393_v63 = vsel %vm693_vm5, %v8392_v20, %v8391_v29  ;;  %v8400_v46 = vsel %vm681_vm1, %v8399_v58, %v8398_v6  ;;  %v3427_v17 = vsel %vm3425_vm9, %v18571_v57, 0.0  ;;  %vm3716_vm10 = vcmp.eq.s32.totalorder %v17144_v1, %v10379_v34  ;;  %v19435_v57 = vld [vmem:[%s21356_s4 + $0x1b4] ss:$0 sps:$4 sm:$0x44]  }
 0x3bc   :  { %v8395_v21 = vsel %vm696_vm6, %v8394_v60, %v8393_v63  ;;  %v8402_v15 = vsel %vm684_vm2, %v8401_v18, %v8400_v46  ;;  %v3429_v43 = vmax.f32 %v18340_v8, %v3427_v17  ;;  %v3718_v25 = vsel %vm3716_vm10, %v18580_v33, 0.0  ;;  %11437 = vmatprep.subr.bf16.mxu0 %v12576_v0  ;;  %v19449_v8 = vld [vmem:[%s21356_s4 + $0x1c4] ss:$0 sps:$4 sm:$0x44]  }
 0x3bd   :  { %v8404_v39 = vsel %vm687_vm3, %v8403_v26, %v8402_v15  ;;  %v19438_v41 = vmax.f32 %v3428_v28, %v3718_v25  ;;  %vm3717_vm11 = vcmp.eq.s32.totalorder %v17076_v11, %v10379_v34  ;;  %v7954_v33 = vunpack.c.l.b16 %v19386_v22  ;;  %v19495_v52 = vld [vmem:[%s21356_s4 + $0x1f4] ss:$0 sps:$4 sm:$0x44]   ;;  %v19500_v50 = vld [vmem:[%s21356_s4 + $0x1fc] ss:$0 sps:$4 sm:$0x44]  }
 0x3be   :  { %v8405_v31 = vsel %vm690_vm4, %v7951_v5, %v8404_v39  ;;  %v3719_v42 = vsel %vm3717_vm11, %v18677_v40, 0.0  ;;  %v7955_v44 = vunpack.c.l.b16 %v19393_v59  ;;  %v7956_v51 = vunpack.c.l.b16 %v19398_v4  ;;  %v19474_v40 = vld [vmem:[%s21356_s4 + $0x1dc] ss:$0 sps:$4 sm:$0x44]  }
 0x3bf   :  { %v8407_v14 = vsel %vm693_vm5, %v8406_v13, %v8405_v31  ;;  %v19464_v3 = vmax.f32 %v3429_v43, %v3719_v42  ;;  %v7957_v5 = vunpack.c.l.b16 %v19404_v16  ;;  %v7958_v54 = vunpack.c.l.b16 %v19413_v35 }
 0x3c0   :  { %v8409_v28 = vsel %vm696_vm6, %v8408_v36, %v8407_v14  ;;  %v7959_v24 = vunpack.c.l.b16 %v19425_v45  ;;  %v7960_v47 = vunpack.c.l.b16 %v19435_v57  ;;  %v7961_v30 = vunpack.c.l.b16 %v19444_v9  ;;  %v19537_v14 = vld [vmem:[%s21356_s4 + $0x20c] ss:$0 sps:$4 sm:$0x44]  }
 0x3c1   :  { %v8552_v32 = vpack.c.b16 %v8409_v28, %v8395_v21  ;;  %v7962_v19 = vunpack.c.l.b16 %v19449_v8  ;;  %v7963_v62 = vunpack.c.l.b16 %v19459_v12  ;;  %v7964_v2 = vunpack.c.l.b16 %v19469_v49  ;;  %v19544_v28 = vld [vmem:[%s21356_s4 + $0x214] ss:$0 sps:$4 sm:$0x44]   ;;  %v19567_v45 = vld [vmem:[%s21356_s4 + $0x22c] ss:$0 sps:$4 sm:$0x44]  }
 0x3c2   :  { %v7965_v27 = vunpack.c.l.b16 %v19474_v40  ;;  %v7966_v20 = vunpack.c.l.b16 %v19482_v7  ;;  %v7967_v34 = vunpack.c.l.b16 %v19487_v53  ;;  %v8118_v38 = vrot.slane %v7954_v33, 4 }
 0x3c3   :  { %11456 = vmatpush3.bf16.xpose.msra.mxu1 %v8552_v32  ;;  %v7968_v56 = vunpack.c.l.b16 %v19495_v52  ;;  %v7969_v60 = vunpack.c.l.b16 %v19500_v50  ;;  %v8119_v48 = vrot.slane %v7955_v44, 3  ;;  %v8121_v22 = vrot.slane %v7956_v51, 2  ;;  %v19551_v52 = vld [vmem:[%s21356_s4 + $0x21c] ss:$0 sps:$4 sm:$0x44]  }
 0x3c4   :  { %v8123_v23 = vrot.slane %v7957_v5, 1  ;;  %v8126_v37 = vrot.slane %v7959_v24, 7  ;;  %v8128_v61 = vrot.slane %v7960_v47, 6  ;;  %v8130_v58 = vrot.slane %v7961_v30, 5  ;;  %11457 = vmatprep.subr.bf16.mxu1 %v12576_v0 }
 0x3c5   :  { %v8120_v59 = vsel %vm678_vm0, %v8119_v48, %v8118_v38  ;;  %v8132_v4 = vrot.slane %v7962_v19, 4  ;;  %v8133_v55 = vrot.slane %v7963_v62, 3  ;;  %v8135_v10 = vrot.slane %v7964_v2, 2  ;;  %v19560_v48 = vld [vmem:[%s21356_s4 + $0x224] ss:$0 sps:$4 sm:$0x44]  }
 0x3c6   :  { %v8122_v18 = vsel %vm681_vm1, %v8121_v22, %v8120_v59  ;;  %v8137_v26 = vrot.slane %v7965_v27, 1  ;;  %v8140_v16 = vrot.slane %v7967_v34, 7  ;;  %v8142_v29 = vrot.slane %v7968_v56, 6 }
 0x3c7   :  { %v8124_v6 = vsel %vm684_vm2, %v8123_v23, %v8122_v18  ;;  %v8134_v13 = vsel %vm678_vm0, %v8133_v55, %v8132_v4  ;;  %v8144_v36 = vrot.slane %v7969_v60, 5  ;;  %v8410_v35 = vrot.slane %v7954_v33, 5  ;;  %v19602_v18 = vld [vmem:[%s21356_s4 + $0x254] ss:$0 sps:$4 sm:$0x44]  }
 0x3c8   :  { %v8125_v63 = vsel %vm687_vm3, %v7958_v54, %v8124_v6  ;;  %v8136_v46 = vsel %vm681_vm1, %v8135_v10, %v8134_v13  ;;  %v8411_v17 = vrot.slane %v7955_v44, 4  ;;  %v8413_v21 = vrot.slane %v7956_v51, 3  ;;  %v19532_v51 = vld [vmem:[%s21356_s4 + $0x204] ss:$0 sps:$4 sm:$0x44]  }
 0x3c9   :  { %v8127_v15 = vsel %vm690_vm4, %v8126_v37, %v8125_v63  ;;  %v8138_v43 = vsel %vm684_vm2, %v8137_v26, %v8136_v46  ;;  %v8415_v25 = vrot.slane %v7957_v5, 2  ;;  %v8417_v57 = vrot.slane %v7958_v54, 1  ;;  %v19574_v37 = vld [vmem:[%s21356_s4 + $0x234] ss:$0 sps:$4 sm:$0x44]  }
 0x3ca   :  { %v8129_v39 = vsel %vm693_vm5, %v8128_v61, %v8127_v15  ;;  %v8139_v9 = vsel %vm687_vm3, %v7966_v20, %v8138_v43  ;;  %v8412_v8 = vsel %vm678_vm0, %v8411_v17, %v8410_v35  ;;  %v8420_v31 = vrot.slane %v7960_v47, 7  ;;  %v19586_v61 = vld [vmem:[%s21356_s4 + $0x244] ss:$0 sps:$4 sm:$0x44]  }
 0x3cb   :  { %v8131_v33 = vsel %vm696_vm6, %v8130_v58, %v8129_v39  ;;  %v8141_v42 = vsel %vm690_vm4, %v8140_v16, %v8139_v9  ;;  %v8414_v12 = vsel %vm681_vm1, %v8413_v21, %v8412_v8  ;;  %v8422_v44 = vrot.slane %v7961_v30, 6  ;;  %v19591_v58 = vld [vmem:[%s21356_s4 + $0x24c] ss:$0 sps:$4 sm:$0x44]  }
 0x3cc   :  { %v8143_v49 = vsel %vm693_vm5, %v8142_v29, %v8141_v42  ;;  %v8416_v40 = vsel %vm684_vm2, %v8415_v25, %v8414_v12  ;;  %v8424_v5 = vrot.slane %v7962_v19, 5  ;;  %v8425_v54 = vrot.slane %v7963_v62, 4  ;;  %v19607_v26 = vld [vmem:[%s21356_s4 + $0x25c] ss:$0 sps:$4 sm:$0x44]  }
 0x3cd   :  { %v8145_v7 = vsel %vm696_vm6, %v8144_v36, %v8143_v49  ;;  %v8418_v47 = vsel %vm687_vm3, %v8417_v57, %v8416_v40  ;;  %v8427_v30 = vrot.slane %v7964_v2, 3  ;;  %v8429_v32 = vrot.slane %v7965_v27, 2  ;;  %v19621_v13 = vld [vmem:[%s21356_s4 + $0x26c] ss:$0 sps:$4 sm:$0x44]  }
 0x3ce   :  { %v8261_v50 = vpack.c.b16 %v8145_v7, %v8131_v33  ;;  %v8419_v19 = vsel %vm690_vm4, %v7959_v24, %v8418_v47  ;;  %v8426_v62 = vsel %vm678_vm0, %v8425_v54, %v8424_v5  ;;  %v8431_v38 = vrot.slane %v7966_v20, 1  ;;  %v19630_v17 = vld [vmem:[%s21356_s4 + $0x274] ss:$0 sps:$4 sm:$0x44]  }
 0x3cf   :  { %v8421_v2 = vsel %vm693_vm5, %v8420_v31, %v8419_v19  ;;  %v8428_v27 = vsel %vm681_vm1, %v8427_v30, %v8426_v62  ;;  %v8434_v22 = vrot.slane %v7968_v56, 7  ;;  %v8436_v23 = vrot.slane %v7969_v60, 6  ;;  %v19579_v56 = vld [vmem:[%s21356_s4 + $0x23c] ss:$0 sps:$4 sm:$0x44]   ;;  %v19642_v31 = vpop.f32.mrb[12].mxu0 }
 0x3d0   :  { %11438 = vmatpush3.bf16.xpose.msra.mxu0 %v8261_v50  ;;  %v8423_v24 = vsel %vm696_vm6, %v8422_v44, %v8421_v2  ;;  %v8430_v20 = vsel %vm684_vm2, %v8429_v32, %v8428_v27  ;;  %v7970_v59 = vunpack.c.l.b16 %v19532_v51  ;;  %v7971_v4 = vunpack.c.l.b16 %v19537_v14  ;;  %v19635_v21 = vld [vmem:[%s21356_s4 + $0x27c] ss:$0 sps:$4 sm:$0x44]   ;;  %v11329_v47 = vpop.f32.mrb[13].mxu0 }
 0x3d1   :  { %v8432_v60 = vsel %vm687_vm3, %v8431_v38, %v8430_v20  ;;  %11439 = vmatprep.subr.bf16.mxu0 %v12576_v0  ;;  %v7972_v55 = vunpack.c.l.b16 %v19544_v28  ;;  %v7973_v16 = vunpack.c.l.b16 %v19551_v52  ;;  %v7974_v29 = vunpack.c.l.b16 %v19560_v48  ;;  %v19731_v47 = vld [vmem:[%s21356_s4 + $0x2cc] ss:$0 sps:$4 sm:$0x44]  }
 0x3d2   :  { %v8433_v10 = vsel %vm690_vm4, %v7967_v34, %v8432_v60  ;;  %v7975_v6 = vunpack.c.l.b16 %v19567_v45  ;;  %v19616_v34 = vld [vmem:[%s21356_s4 + $0x264] ss:$0 sps:$4 sm:$0x44]   ;;  %v7976_v36 = vunpack.c.l.b16 %v19574_v37  ;;  %v7977_v35 = vunpack.c.l.b16 %v19579_v56  ;;  %v19707_v45 = vld [vmem:[%s21356_s4 + $0x2ac] ss:$0 sps:$4 sm:$0x44]  }
 0x3d3   :  { %v8435_v53 = vsel %vm693_vm5, %v8434_v22, %v8433_v10  ;;  %v7978_v63 = vunpack.c.l.b16 %v19586_v61  ;;  %v7979_v15 = vunpack.c.l.b16 %v19591_v58  ;;  %v7980_v43 = vunpack.c.l.b16 %v19602_v18 }
 0x3d4   :  { %v8437_v46 = vsel %vm696_vm6, %v8436_v23, %v8435_v53  ;;  %v7981_v25 = vunpack.c.l.b16 %v19607_v26  ;;  %v7982_v39 = vunpack.c.l.b16 %v19616_v34  ;;  %v7983_v9 = vunpack.c.l.b16 %v19621_v13  ;;  %v19668_v26 = vld [vmem:[%s21356_s4 + $0x284] ss:$0 sps:$4 sm:$0x44]  }
 0x3d5   :  { %v8553_v57 = vpack.c.b16 %v8437_v46, %v8423_v24  ;;  %v8146_v8 = vrot.slane %v7970_v59, 4  ;;  %v7984_v33 = vunpack.c.l.b16 %v19630_v17  ;;  %v7985_v42 = vunpack.c.l.b16 %v19635_v21  ;;  %v19682_v46 = vpop.f32.mrb[14].mxu0 }
 0x3d6   :  { %v8147_v12 = vrot.slane %v7971_v4, 3  ;;  %v8149_v44 = vrot.slane %v7972_v55, 2  ;;  %v8151_v51 = vrot.slane %v7973_v16, 1  ;;  %v8154_v14 = vrot.slane %v7975_v6, 7 }
 0x3d7   :  { %11458 = vmatpush3.bf16.xpose.msra.mxu1 %v8553_v57  ;;  %v8156_v49 = vrot.slane %v7976_v36, 6  ;;  %v8158_v40 = vrot.slane %v7977_v35, 5  ;;  %v8160_v54 = vrot.slane %v7978_v63, 4  ;;  %v8161_v28 = vrot.slane %v7979_v15, 3 }
 0x3d8   :  { %v8148_v5 = vsel %vm678_vm0, %v8147_v12, %v8146_v8  ;;  %v8163_v7 = vrot.slane %v7980_v43, 2  ;;  %11459 = vmatprep.subr.bf16.mxu1 %v12576_v0  ;;  %v8165_v32 = vrot.slane %v7981_v25, 1  ;;  %v8168_v52 = vrot.slane %v7983_v9, 7  ;;  %v19689_v12 = vld [vmem:[%s21356_s4 + $0x29c] ss:$0 sps:$4 sm:$0x44]  }
 0x3d9   :  { %v8150_v30 = vsel %vm681_vm1, %v8149_v44, %v8148_v5  ;;  %v8170_v50 = vrot.slane %v7984_v33, 6  ;;  %v8162_v62 = vsel %vm678_vm0, %v8161_v28, %v8160_v54  ;;  %v8172_v38 = vrot.slane %v7985_v42, 5  ;;  %v19714_v28 = vld [vmem:[%s21356_s4 + $0x2b4] ss:$0 sps:$4 sm:$0x44]  }
 0x3da   :  { %v8152_v19 = vsel %vm684_vm2, %v8151_v51, %v8150_v30  ;;  %v8438_v48 = vrot.slane %v7970_v59, 5  ;;  %v8164_v27 = vsel %vm681_vm1, %v8163_v7, %v8162_v62  ;;  %v8439_v22 = vrot.slane %v7971_v4, 4  ;;  %v19726_v7 = vld [vmem:[%s21356_s4 + $0x2c4] ss:$0 sps:$4 sm:$0x44]  }
 0x3db   :  { %v8153_v2 = vsel %vm687_vm3, %v7974_v29, %v8152_v19  ;;  %v8441_v23 = vrot.slane %v7972_v55, 3  ;;  %v8166_v20 = vsel %vm684_vm2, %v8165_v32, %v8164_v27  ;;  %v8443_v37 = vrot.slane %v7973_v16, 2  ;;  %v19673_v16 = vld [vmem:[%s21356_s4 + $0x28c] ss:$0 sps:$4 sm:$0x44]  }
 0x3dc   :  { %v8155_v24 = vsel %vm690_vm4, %v8154_v14, %v8153_v2  ;;  %v8445_v56 = vrot.slane %v7974_v29, 1  ;;  %v8167_v61 = vsel %vm687_vm3, %v7982_v39, %v8166_v20  ;;  %v8440_v58 = vsel %vm678_vm0, %v8439_v22, %v8438_v48  ;;  %v19742_v19 = vld [vmem:[%s21356_s4 + $0x2d4] ss:$0 sps:$4 sm:$0x44]  }
 0x3dd   :  { %v8157_v60 = vsel %vm693_vm5, %v8156_v49, %v8155_v24  ;;  %v8448_v10 = vrot.slane %v7976_v36, 7  ;;  %v8169_v18 = vsel %vm690_vm4, %v8168_v52, %v8167_v61  ;;  %v8442_v4 = vsel %vm681_vm1, %v8441_v23, %v8440_v58  ;;  %v19747_v62 = vld [vmem:[%s21356_s4 + $0x2dc] ss:$0 sps:$4 sm:$0x44]  }
 0x3de   :  { %v8159_v59 = vsel %vm696_vm6, %v8158_v40, %v8157_v60  ;;  %v8450_v55 = vrot.slane %v7977_v35, 6  ;;  %v8171_v29 = vsel %vm693_vm5, %v8170_v50, %v8169_v18  ;;  %v8444_v53 = vsel %vm684_vm2, %v8443_v37, %v8442_v4  ;;  %v19680_v35 = vld [vmem:[%s21356_s4 + $0x294] ss:$0 sps:$4 sm:$0x44]  }
 0x3df   :  { %v8452_v34 = vrot.slane %v7978_v63, 5  ;;  %v8453_v36 = vrot.slane %v7979_v15, 4  ;;  %v8173_v17 = vsel %vm696_vm6, %v8172_v38, %v8171_v29  ;;  %v8446_v21 = vsel %vm687_vm3, %v8445_v56, %v8444_v53  ;;  %v19691_v63 = vpop.f32.mrb[12].mxu1  ;;  %v19761_v27 = vld [vmem:[%s21356_s4 + $0x2ec] ss:$0 sps:$4 sm:$0x44]  }
 0x3e0   :  { %v8455_v57 = vrot.slane %v7980_v43, 3  ;;  %v8457_v8 = vrot.slane %v7981_v25, 2  ;;  %v8262_v15 = vpack.c.b16 %v8173_v17, %v8159_v59  ;;  %v8447_v44 = vsel %vm690_vm4, %v7975_v6, %v8446_v21  ;;  %v19700_v43 = vld [vmem:[%s21356_s4 + $0x2a4] ss:$0 sps:$4 sm:$0x44]   ;;  %v11330_v6 = vpop.f32.mrb[15].mxu0 }
 0x3e1   :  { %v8454_v51 = vsel %vm678_vm0, %v8453_v36, %v8452_v34  ;;  %v8459_v14 = vrot.slane %v7982_v39, 1  ;;  %v8449_v25 = vsel %vm693_vm5, %v8448_v10, %v8447_v44  ;;  %v8462_v40 = vrot.slane %v7984_v33, 7  ;;  %v19719_v33 = vld [vmem:[%s21356_s4 + $0x2bc] ss:$0 sps:$4 sm:$0x44]  }
 0x3e2   :  { %v8456_v49 = vsel %vm681_vm1, %v8455_v57, %v8454_v51  ;;  %v8464_v5 = vrot.slane %v7985_v42, 6  ;;  %11440 = vmatpush3.bf16.xpose.msra.mxu0 %v8262_v15  ;;  %v8451_v39 = vsel %vm696_vm6, %v8450_v55, %v8449_v25  ;;  %v7986_v30 = vunpack.c.l.b16 %v19668_v26  ;;  %v19770_v37 = vld [vmem:[%s21356_s4 + $0x2f4] ss:$0 sps:$4 sm:$0x44]   ;;  %v11349_v55 = vpop.f32.mrb[13].mxu1 }
 0x3e3   :  { %v8458_v54 = vsel %vm684_vm2, %v8457_v8, %v8456_v49  ;;  %11441 = vmatprep.subr.bf16.mxu0 %v12576_v0  ;;  %v7987_v32 = vunpack.c.l.b16 %v19673_v16  ;;  %v7988_v52 = vunpack.c.l.b16 %v19680_v35  ;;  %v7989_v38 = vunpack.c.l.b16 %v19689_v12  ;;  %v19775_v56 = vld [vmem:[%s21356_s4 + $0x2fc] ss:$0 sps:$4 sm:$0x44]   ;;  %v19788_v15 = vpop.f32.mrb[14].mxu1 }
 0x3e4   :  { %v8460_v42 = vsel %vm687_vm3, %v8459_v14, %v8458_v54  ;;  %v7990_v48 = vunpack.c.l.b16 %v19700_v43  ;;  %v7991_v2 = vunpack.c.l.b16 %v19707_v45  ;;  %v7992_v22 = vunpack.c.l.b16 %v19714_v28  ;;  %v11350_v25 = vpop.f32.mrb[15].mxu1  ;;  %v19843_v45 = vld [vmem:[%s21356_s4 + $0x32c] ss:$0 sps:$4 sm:$0x44]  }
 0x3e5   :  { %v8461_v50 = vsel %vm690_vm4, %v7983_v9, %v8460_v42  ;;  %v19756_v9 = vld [vmem:[%s21356_s4 + $0x2e4] ss:$0 sps:$4 sm:$0x44]   ;;  %v7993_v23 = vunpack.c.l.b16 %v19719_v33  ;;  %v7994_v24 = vunpack.c.l.b16 %v19726_v7  ;;  %v7995_v60 = vunpack.c.l.b16 %v19731_v47 }
 0x3e6   :  { %v8463_v13 = vsel %vm693_vm5, %v8462_v40, %v8461_v50  ;;  %v7996_v61 = vunpack.c.l.b16 %v19742_v19  ;;  %v7997_v58 = vunpack.c.l.b16 %v19747_v62  ;;  %v7998_v59 = vunpack.c.l.b16 %v19756_v9 }
 0x3e7   :  { %v8465_v20 = vsel %vm696_vm6, %v8464_v5, %v8463_v13  ;;  %v7999_v18 = vunpack.c.l.b16 %v19761_v27  ;;  %v8174_v4 = vrot.slane %v7986_v30, 4  ;;  %v8000_v26 = vunpack.c.l.b16 %v19770_v37  ;;  %v19808_v37 = vld [vmem:[%s21356_s4 + $0x304] ss:$0 sps:$4 sm:$0x44]  }
 0x3e8   :  { %v8554_v10 = vpack.c.b16 %v8465_v20, %v8451_v39  ;;  %v8001_v16 = vunpack.c.l.b16 %v19775_v56  ;;  %v8175_v29 = vrot.slane %v7987_v32, 3  ;;  %v8177_v53 = vrot.slane %v7988_v52, 2 }
 0x3e9   :  { %v8179_v34 = vrot.slane %v7989_v38, 1  ;;  %v8182_v36 = vrot.slane %v7991_v2, 7  ;;  %v8184_v35 = vrot.slane %v7992_v22, 6  ;;  %v8186_v17 = vrot.slane %v7993_v23, 5 }
 0x3ea   :  { %11460 = vmatpush3.bf16.xpose.msra.mxu1 %v8554_v10  ;;  %v8176_v21 = vsel %vm678_vm0, %v8175_v29, %v8174_v4  ;;  %v8188_v57 = vrot.slane %v7994_v24, 4  ;;  %v8189_v8 = vrot.slane %v7995_v60, 3  ;;  %v8191_v12 = vrot.slane %v7996_v61, 2 }
 0x3eb   :  { %11461 = vmatprep.subr.bf16.mxu1 %v12576_v0  ;;  %v8178_v44 = vsel %vm681_vm1, %v8177_v53, %v8176_v21  ;;  %v8193_v51 = vrot.slane %v7997_v58, 1  ;;  %v8196_v14 = vrot.slane %v7999_v18, 7  ;;  %v8198_v43 = vrot.slane %v8000_v26, 6 }
 0x3ec   :  { %v8180_v49 = vsel %vm684_vm2, %v8179_v34, %v8178_v44  ;;  %v8190_v40 = vsel %vm678_vm0, %v8189_v8, %v8188_v57  ;;  %v8200_v5 = vrot.slane %v8001_v16, 5  ;;  %v8466_v6 = vrot.slane %v7986_v30, 5  ;;  %v19827_v34 = vld [vmem:[%s21356_s4 + $0x31c] ss:$0 sps:$4 sm:$0x44]  }
 0x3ed   :  { %v8181_v39 = vsel %vm687_vm3, %v7990_v48, %v8180_v49  ;;  %v8192_v54 = vsel %vm681_vm1, %v8191_v12, %v8190_v40  ;;  %v8467_v28 = vrot.slane %v7987_v32, 4  ;;  %v8469_v33 = vrot.slane %v7988_v52, 3  ;;  %v19850_v8 = vld [vmem:[%s21356_s4 + $0x334] ss:$0 sps:$4 sm:$0x44]  }
 0x3ee   :  { %v8183_v42 = vsel %vm690_vm4, %v8182_v36, %v8181_v39  ;;  %v8194_v7 = vsel %vm684_vm2, %v8193_v51, %v8192_v54  ;;  %v8471_v47 = vrot.slane %v7989_v38, 2  ;;  %v8473_v50 = vrot.slane %v7990_v48, 1  ;;  %v19813_v38 = vld [vmem:[%s21356_s4 + $0x30c] ss:$0 sps:$4 sm:$0x44]  }
 0x3ef   :  { %v8185_v19 = vsel %vm693_vm5, %v8184_v35, %v8183_v42  ;;  %v8195_v62 = vsel %vm687_vm3, %v7998_v59, %v8194_v7  ;;  %v8468_v13 = vsel %vm678_vm0, %v8467_v28, %v8466_v6  ;;  %v8476_v9 = vrot.slane %v7992_v22, 7  ;;  %v19862_v12 = vld [vmem:[%s21356_s4 + $0x344] ss:$0 sps:$4 sm:$0x44]  }
 0x3f0   :  { %v8187_v30 = vsel %vm696_vm6, %v8186_v17, %v8185_v19  ;;  %v8197_v20 = vsel %vm690_vm4, %v8196_v14, %v8195_v62  ;;  %v8470_v32 = vsel %vm681_vm1, %v8469_v33, %v8468_v13  ;;  %v8478_v52 = vrot.slane %v7993_v23, 6  ;;  %v19820_v23 = vld [vmem:[%s21356_s4 + $0x314] ss:$0 sps:$4 sm:$0x44]  }
 0x3f1   :  { %v8199_v48 = vsel %vm693_vm5, %v8198_v43, %v8197_v20  ;;  %v8472_v22 = vsel %vm684_vm2, %v8471_v47, %v8470_v32  ;;  %v8480_v56 = vrot.slane %v7994_v24, 5  ;;  %v8481_v10 = vrot.slane %v7995_v60, 4  ;;  %v19836_v17 = vld [vmem:[%s21356_s4 + $0x324] ss:$0 sps:$4 sm:$0x44]  }
 0x3f2   :  { %v8201_v4 = vsel %vm696_vm6, %v8200_v5, %v8199_v48  ;;  %v8474_v55 = vsel %vm687_vm3, %v8473_v50, %v8472_v22  ;;  %v8483_v29 = vrot.slane %v7996_v61, 3  ;;  %v8485_v53 = vrot.slane %v7997_v58, 2  ;;  %v19867_v44 = vld [vmem:[%s21356_s4 + $0x34c] ss:$0 sps:$4 sm:$0x44]  }
 0x3f3   :  { %v8263_v36 = vpack.c.b16 %v8201_v4, %v8187_v30  ;;  %v8475_v24 = vsel %vm690_vm4, %v7991_v2, %v8474_v55  ;;  %v8482_v60 = vsel %vm678_vm0, %v8481_v10, %v8480_v56  ;;  %v8487_v35 = vrot.slane %v7998_v59, 1  ;;  %v19878_v49 = vld [vmem:[%s21356_s4 + $0x354] ss:$0 sps:$4 sm:$0x44]  }
 0x3f4   :  { %v8477_v61 = vsel %vm693_vm5, %v8476_v9, %v8475_v24  ;;  %v8484_v58 = vsel %vm681_vm1, %v8483_v29, %v8482_v60  ;;  %v8490_v21 = vrot.slane %v8000_v26, 7  ;;  %v8492_v57 = vrot.slane %v8001_v16, 6  ;;  %v19855_v26 = vld [vmem:[%s21356_s4 + $0x33c] ss:$0 sps:$4 sm:$0x44]  }
 0x3f5   :  { %11442 = vmatpush3.bf16.xpose.msra.mxu0 %v8263_v36  ;;  %v8479_v2 = vsel %vm696_vm6, %v8478_v52, %v8477_v61  ;;  %v8486_v59 = vsel %vm684_vm2, %v8485_v53, %v8484_v58  ;;  %v8002_v51 = vunpack.c.l.b16 %v19808_v37  ;;  %v8003_v14 = vunpack.c.l.b16 %v19813_v38  ;;  %v19883_v40 = vld [vmem:[%s21356_s4 + $0x35c] ss:$0 sps:$4 sm:$0x44]   ;;  %v19897_v54 = vld [vmem:[%s21356_s4 + $0x36c] ss:$0 sps:$4 sm:$0x44]  }
 0x3f6   :  { %v8488_v16 = vsel %vm687_vm3, %v8487_v35, %v8486_v59  ;;  %11443 = vmatprep.subr.bf16.mxu0 %v12576_v0  ;;  %v8004_v43 = vunpack.c.l.b16 %v19820_v23  ;;  %v8005_v5 = vunpack.c.l.b16 %v19827_v34  ;;  %v8006_v6 = vunpack.c.l.b16 %v19836_v17  ;;  %v19906_v47 = vld [vmem:[%s21356_s4 + $0x374] ss:$0 sps:$4 sm:$0x44]   ;;  %v19911_v50 = vld [vmem:[%s21356_s4 + $0x37c] ss:$0 sps:$4 sm:$0x44]  }
 0x3f7   :  { %v8489_v25 = vsel %vm690_vm4, %v7999_v18, %v8488_v16  ;;  %v8007_v39 = vunpack.c.l.b16 %v19843_v45  ;;  %v19892_v18 = vld [vmem:[%s21356_s4 + $0x364] ss:$0 sps:$4 sm:$0x44]   ;;  %v8008_v28 = vunpack.c.l.b16 %v19850_v8  ;;  %v8009_v33 = vunpack.c.l.b16 %v19855_v26  ;;  %v19977_v45 = vld [vmem:[%s21356_s4 + $0x3ac] ss:$0 sps:$4 sm:$0x44]  }
 0x3f8   :  { %v8491_v27 = vsel %vm693_vm5, %v8490_v21, %v8489_v25  ;;  %v8010_v42 = vunpack.c.l.b16 %v19862_v12  ;;  %v8011_v19 = vunpack.c.l.b16 %v19867_v44  ;;  %v8012_v62 = vunpack.c.l.b16 %v19878_v49 }
 0x3f9   :  { %v8493_v7 = vsel %vm696_vm6, %v8492_v57, %v8491_v27  ;;  %v8013_v13 = vunpack.c.l.b16 %v19883_v40  ;;  %v8014_v30 = vunpack.c.l.b16 %v19892_v18  ;;  %v8015_v20 = vunpack.c.l.b16 %v19897_v54  ;;  %v19942_v18 = vld [vmem:[%s21356_s4 + $0x384] ss:$0 sps:$4 sm:$0x44]  }
 0x3fa   :  { %v8555_v9 = vpack.c.b16 %v8493_v7, %v8479_v2  ;;  %v8202_v32 = vrot.slane %v8002_v51, 4  ;;  %v8016_v52 = vunpack.c.l.b16 %v19906_v47  ;;  %v8017_v37 = vunpack.c.l.b16 %v19911_v50 }
 0x3fb   :  { %v8203_v38 = vrot.slane %v8003_v14, 3  ;;  %v8205_v48 = vrot.slane %v8004_v43, 2  ;;  %v8207_v22 = vrot.slane %v8005_v5, 1  ;;  %v8210_v56 = vrot.slane %v8007_v39, 7 }
 0x3fc   :  { %11462 = vmatpush3.bf16.xpose.msra.mxu1 %v8555_v9  ;;  %v8212_v10 = vrot.slane %v8008_v28, 6  ;;  %v8214_v23 = vrot.slane %v8009_v33, 5  ;;  %v8216_v55 = vrot.slane %v8010_v42, 4  ;;  %v8217_v29 = vrot.slane %v8011_v19, 3 }
 0x3fd   :  { %v8204_v4 = vsel %vm678_vm0, %v8203_v38, %v8202_v32  ;;  %v8219_v53 = vrot.slane %v8012_v62, 2  ;;  %11463 = vmatprep.subr.bf16.mxu1 %v12576_v0  ;;  %v8221_v36 = vrot.slane %v8013_v13, 1  ;;  %v8224_v24 = vrot.slane %v8015_v20, 7 }
 0x3fe   :  { %v8206_v34 = vsel %vm681_vm1, %v8205_v48, %v8204_v4  ;;  %v8226_v60 = vrot.slane %v8016_v52, 6  ;;  %v8218_v17 = vsel %vm678_vm0, %v8217_v29, %v8216_v55  ;;  %v8228_v61 = vrot.slane %v8017_v37, 5  ;;  %v19961_v48 = vld [vmem:[%s21356_s4 + $0x39c] ss:$0 sps:$4 sm:$0x44]  }
 0x3ff   :  { %v8208_v35 = vsel %vm684_vm2, %v8207_v22, %v8206_v34  ;;  %v8494_v58 = vrot.slane %v8002_v51, 5  ;;  %v8220_v57 = vsel %vm681_vm1, %v8219_v53, %v8218_v17  ;;  %v8495_v2 = vrot.slane %v8003_v14, 4  ;;  %v19984_v55 = vld [vmem:[%s21356_s4 + $0x3b4] ss:$0 sps:$4 sm:$0x44]  }
 0x400   :  { %v8209_v21 = vsel %vm687_vm3, %v8006_v6, %v8208_v35  ;;  %v8497_v59 = vrot.slane %v8004_v43, 3  ;;  %v8222_v26 = vsel %vm684_vm2, %v8221_v36, %v8220_v57  ;;  %v8499_v16 = vrot.slane %v8005_v5, 2  ;;  %v19947_v5 = vld [vmem:[%s21356_s4 + $0x38c] ss:$0 sps:$4 sm:$0x44]  }
 0x401   :  { %v8211_v8 = vsel %vm690_vm4, %v8210_v56, %v8209_v21  ;;  %v8501_v12 = vrot.slane %v8006_v6, 1  ;;  %v8223_v25 = vsel %vm687_vm3, %v8014_v30, %v8222_v26  ;;  %v8496_v49 = vsel %vm678_vm0, %v8495_v2, %v8494_v58  ;;  %v19996_v29 = vld [vmem:[%s21356_s4 + $0x3c4] ss:$0 sps:$4 sm:$0x44]  }
 0x402   :  { %v8213_v44 = vsel %vm693_vm5, %v8212_v10, %v8211_v8  ;;  %v8504_v40 = vrot.slane %v8008_v28, 7  ;;  %v8225_v27 = vsel %vm690_vm4, %v8224_v24, %v8223_v25  ;;  %v8498_v14 = vsel %vm681_vm1, %v8497_v59, %v8496_v49  ;;  %v19970_v10 = vld [vmem:[%s21356_s4 + $0x3a4] ss:$0 sps:$4 sm:$0x44]  }
 0x403   :  { %v8215_v51 = vsel %vm696_vm6, %v8214_v23, %v8213_v44  ;;  %v8506_v43 = vrot.slane %v8009_v33, 6  ;;  %v8227_v6 = vsel %vm693_vm5, %v8226_v60, %v8225_v27  ;;  %v8500_v28 = vsel %vm684_vm2, %v8499_v16, %v8498_v14  ;;  %v19954_v33 = vld [vmem:[%s21356_s4 + $0x394] ss:$0 sps:$4 sm:$0x44]  }
 0x404   :  { %v8508_v7 = vrot.slane %v8010_v42, 5  ;;  %v8509_v47 = vrot.slane %v8011_v19, 4  ;;  %v8229_v50 = vsel %vm696_vm6, %v8228_v61, %v8227_v6  ;;  %v8502_v9 = vsel %vm687_vm3, %v8501_v12, %v8500_v28  ;;  %v20001_v53 = vld [vmem:[%s21356_s4 + $0x3cc] ss:$0 sps:$4 sm:$0x44]  }
 0x405   :  { %v8511_v32 = vrot.slane %v8012_v62, 3  ;;  %v8513_v38 = vrot.slane %v8013_v13, 2  ;;  %v8264_v22 = vpack.c.b16 %v8229_v50, %v8215_v51  ;;  %v8503_v42 = vsel %vm690_vm4, %v8007_v39, %v8502_v9  ;;  %v20012_v35 = vld [vmem:[%s21356_s4 + $0x3d4] ss:$0 sps:$4 sm:$0x44]  }
 0x406   :  { %v8510_v19 = vsel %vm678_vm0, %v8509_v47, %v8508_v7  ;;  %v8515_v56 = vrot.slane %v8014_v30, 1  ;;  %v8505_v62 = vsel %vm693_vm5, %v8504_v40, %v8503_v42  ;;  %v8518_v23 = vrot.slane %v8016_v52, 7  ;;  %v19989_v52 = vld [vmem:[%s21356_s4 + $0x3bc] ss:$0 sps:$4 sm:$0x44]  }
 0x407   :  { %v8512_v13 = vsel %vm681_vm1, %v8511_v32, %v8510_v19  ;;  %v8520_v4 = vrot.slane %v8017_v37, 6  ;;  %11444 = vmatpush3.bf16.xpose.msra.mxu0 %v8264_v22  ;;  %v8507_v39 = vsel %vm696_vm6, %v8506_v43, %v8505_v62  ;;  %v8018_v34 = vunpack.c.l.b16 %v19942_v18  ;;  %v20017_v17 = vld [vmem:[%s21356_s4 + $0x3dc] ss:$0 sps:$4 sm:$0x44]  }
 0x408   :  { %v8514_v30 = vsel %vm684_vm2, %v8513_v38, %v8512_v13  ;;  %11445 = vmatprep.subr.bf16.mxu0 %v12576_v0  ;;  %v8019_v36 = vunpack.c.l.b16 %v19947_v5  ;;  %v8020_v24 = vunpack.c.l.b16 %v19954_v33  ;;  %v8021_v61 = vunpack.c.l.b16 %v19961_v48  ;;  %v20031_v57 = vld [vmem:[%s21356_s4 + $0x3ec] ss:$0 sps:$4 sm:$0x44]   ;;  %v20040_v16 = vld [vmem:[%s21356_s4 + $0x3f4] ss:$0 sps:$4 sm:$0x44]  }
 0x409   :  { %v8516_v37 = vsel %vm687_vm3, %v8515_v56, %v8514_v30  ;;  %v8022_v58 = vunpack.c.l.b16 %v19970_v10  ;;  %v8023_v21 = vunpack.c.l.b16 %v19977_v45  ;;  %v8024_v2 = vunpack.c.l.b16 %v19984_v55  ;;  %v20045_v12 = vld [vmem:[%s21356_s4 + $0x3fc] ss:$0 sps:$4 sm:$0x44]   ;;  %v20111_v45 = vld [vmem:[%s21356_s4 + $0x2c] ss:$0 sps:$4 sm:$0x88]  }
 0x40a   :  { %v8517_v60 = vsel %vm690_vm4, %v8015_v20, %v8516_v37  ;;  %v20026_v20 = vld [vmem:[%s21356_s4 + $0x3e4] ss:$0 sps:$4 sm:$0x44]   ;;  %v8025_v59 = vunpack.c.l.b16 %v19989_v52  ;;  %v8026_v8 = vunpack.c.l.b16 %v19996_v29  ;;  %v8027_v44 = vunpack.c.l.b16 %v20001_v53 }
 0x40b   :  { %v8519_v54 = vsel %vm693_vm5, %v8518_v23, %v8517_v60  ;;  %v8028_v25 = vunpack.c.l.b16 %v20012_v35  ;;  %v8029_v49 = vunpack.c.l.b16 %v20017_v17  ;;  %v8030_v51 = vunpack.c.l.b16 %v20026_v20  ;;  %v20076_v20 = vld [vmem:[%s21356_s4 + $0x4] ss:$0 sps:$4 sm:$0x88]  }
 0x40c   :  { %v8521_v26 = vsel %vm696_vm6, %v8520_v4, %v8519_v54  ;;  %v8031_v27 = vunpack.c.l.b16 %v20031_v57  ;;  %v8230_v14 = vrot.slane %v8018_v34, 4  ;;  %v8032_v43 = vunpack.c.l.b16 %v20040_v16 }
 0x40d   :  { %v8556_v40 = vpack.c.b16 %v8521_v26, %v8507_v39  ;;  %v8033_v18 = vunpack.c.l.b16 %v20045_v12  ;;  %v8231_v5 = vrot.slane %v8019_v36, 3  ;;  %v8233_v6 = vrot.slane %v8020_v24, 2 }
 0x40e   :  { %v8235_v28 = vrot.slane %v8021_v61, 1  ;;  %v8238_v7 = vrot.slane %v8023_v21, 7  ;;  %v8240_v47 = vrot.slane %v8024_v2, 6  ;;  %v8242_v33 = vrot.slane %v8025_v59, 5 }
 0x40f   :  { %11464 = vmatpush3.bf16.xpose.msra.mxu1 %v8556_v40  ;;  %v8232_v50 = vsel %vm678_vm0, %v8231_v5, %v8230_v14  ;;  %v8244_v9 = vrot.slane %v8026_v8, 4  ;;  %v8245_v32 = vrot.slane %v8027_v44, 3  ;;  %v8247_v38 = vrot.slane %v8028_v25, 2 }
 0x410   :  { %11465 = vmatprep.subr.bf16.mxu1 %v12576_v0  ;;  %v8234_v48 = vsel %vm681_vm1, %v8233_v6, %v8232_v50  ;;  %v8249_v22 = vrot.slane %v8029_v49, 1  ;;  %v8252_v42 = vrot.slane %v8031_v27, 7  ;;  %v8254_v19 = vrot.slane %v8032_v43, 6  ;;  %v20095_v6 = vld [vmem:[%s21356_s4 + $0x1c] ss:$0 sps:$4 sm:$0x88]  }
 0x411   :  { %v8236_v56 = vsel %vm684_vm2, %v8235_v28, %v8234_v48  ;;  %v8246_v10 = vsel %vm678_vm0, %v8245_v32, %v8244_v9  ;;  %v8256_v62 = vrot.slane %v8033_v18, 5  ;;  %v8522_v13 = vrot.slane %v8018_v34, 5  ;;  %v20118_v9 = vld [vmem:[%s21356_s4 + $0x34] ss:$0 sps:$4 sm:$0x88]  }
 0x412   :  { %v8237_v23 = vsel %vm687_vm3, %v8022_v58, %v8236_v56  ;;  %v8248_v4 = vsel %vm681_vm1, %v8247_v38, %v8246_v10  ;;  %v8523_v39 = vrot.slane %v8019_v36, 4  ;;  %v8525_v30 = vrot.slane %v8020_v24, 3  ;;  %v20130_v32 = vld [vmem:[%s21356_s4 + $0x44] ss:$0 sps:$4 sm:$0x88]  }
 0x413   :  { %v8239_v55 = vsel %vm690_vm4, %v8238_v7, %v8237_v23  ;;  %v8250_v52 = vsel %vm684_vm2, %v8249_v22, %v8248_v4  ;;  %v8527_v37 = vrot.slane %v8021_v61, 2  ;;  %v8529_v29 = vrot.slane %v8022_v58, 1  ;;  %v20081_v61 = vld [vmem:[%s21356_s4 + $0xc] ss:$0 sps:$4 sm:$0x88]  }
 0x414   :  { %v8241_v53 = vsel %vm693_vm5, %v8240_v47, %v8239_v55  ;;  %v8251_v60 = vsel %vm687_vm3, %v8030_v51, %v8250_v52  ;;  %v8524_v35 = vsel %vm678_vm0, %v8523_v39, %v8522_v13  ;;  %v8532_v17 = vrot.slane %v8024_v2, 7  ;;  %v20104_v47 = vld [vmem:[%s21356_s4 + $0x24] ss:$0 sps:$4 sm:$0x88]  }
 0x415   :  { %v8243_v34 = vsel %vm696_vm6, %v8242_v33, %v8241_v53  ;;  %v8253_v54 = vsel %vm690_vm4, %v8252_v42, %v8251_v60  ;;  %v8526_v36 = vsel %vm681_vm1, %v8525_v30, %v8524_v35  ;;  %v8534_v24 = vrot.slane %v8025_v59, 6  ;;  %v20088_v59 = vld [vmem:[%s21356_s4 + $0x14] ss:$0 sps:$4 sm:$0x88]  }
 0x416   :  { %v8255_v58 = vsel %vm693_vm5, %v8254_v19, %v8253_v54  ;;  %v8528_v2 = vsel %vm684_vm2, %v8527_v37, %v8526_v36  ;;  %v8536_v26 = vrot.slane %v8026_v8, 5  ;;  %v8537_v16 = vrot.slane %v8027_v44, 4  ;;  %v20135_v38 = vld [vmem:[%s21356_s4 + $0x4c] ss:$0 sps:$4 sm:$0x88]  }
 0x417   :  { %v8257_v12 = vsel %vm696_vm6, %v8256_v62, %v8255_v58  ;;  %v8530_v40 = vsel %vm687_vm3, %v8529_v29, %v8528_v2  ;;  %v8539_v14 = vrot.slane %v8028_v25, 3  ;;  %v8541_v5 = vrot.slane %v8029_v49, 2  ;;  %v20146_v56 = vld [vmem:[%s21356_s4 + $0x54] ss:$0 sps:$4 sm:$0x88]   ;;  %v12574_v2 = vld [vmem:[%s21357_s0] sm:$0xff]  }
 0x418   :  { %v8265_v28 = vpack.c.b16 %v8257_v12, %v8243_v34  ;;  %v8531_v8 = vsel %vm690_vm4, %v8023_v21, %v8530_v40  ;;  %v8538_v44 = vsel %vm678_vm0, %v8537_v16, %v8536_v26  ;;  %v8543_v7 = vrot.slane %v8030_v51, 1  ;;  %v20151_v10 = vld [vmem:[%s21356_s4 + $0x5c] ss:$0 sps:$4 sm:$0x88]  }
 0x419   :  { %v8533_v25 = vsel %vm693_vm5, %v8532_v17, %v8531_v8  ;;  %v8540_v49 = vsel %vm681_vm1, %v8539_v14, %v8538_v44  ;;  %v8546_v33 = vrot.slane %v8032_v43, 7  ;;  %v8548_v50 = vrot.slane %v8033_v18, 6  ;;  %v20123_v43 = vld [vmem:[%s21356_s4 + $0x3c] ss:$0 sps:$4 sm:$0x88]  }
 0x41a   :  { %11446 = vmatpush3.bf16.xpose.msra.mxu0 %v8265_v28  ;;  %v8535_v21 = vsel %vm696_vm6, %v8534_v24, %v8533_v25  ;;  %v8542_v51 = vsel %vm684_vm2, %v8541_v5, %v8540_v49  ;;  %v9130_v48 = vunpack.c.l.b16 %v20076_v20  ;;  %v9131_v22 = vunpack.c.l.b16 %v20081_v61  ;;  %v20165_v4 = vld [vmem:[%s21356_s4 + $0x6c] ss:$0 sps:$4 sm:$0x88]   ;;  %v20174_v37 = vld [vmem:[%s21356_s4 + $0x74] ss:$0 sps:$4 sm:$0x88]  }
 0x41b   :  { %v8544_v18 = vsel %vm687_vm3, %v8543_v7, %v8542_v51  ;;  %11471 = vmatprep.subr.bf16.mxu0 %v12576_v0  ;;  %v9132_v42 = vunpack.c.l.b16 %v20088_v59  ;;  %v9133_v62 = vunpack.c.l.b16 %v20095_v6  ;;  %v9134_v13 = vunpack.c.l.b16 %v20104_v47  ;;  %v20179_v29 = vld [vmem:[%s21356_s4 + $0x7c] ss:$0 sps:$4 sm:$0x88]  }
 0x41c   :  { %v8545_v19 = vsel %vm690_vm4, %v8031_v27, %v8544_v18  ;;  %v9135_v23 = vunpack.c.l.b16 %v20111_v45  ;;  %v20160_v27 = vld [vmem:[%s21356_s4 + $0x64] ss:$0 sps:$4 sm:$0x88]   ;;  %v9136_v39 = vunpack.c.l.b16 %v20118_v9  ;;  %v9137_v30 = vunpack.c.l.b16 %v20123_v43 }
 0x41d   :  { %v8547_v57 = vsel %vm693_vm5, %v8546_v33, %v8545_v19  ;;  %v9138_v55 = vunpack.c.l.b16 %v20130_v32  ;;  %v9139_v53 = vunpack.c.l.b16 %v20135_v38  ;;  %v9140_v60 = vunpack.c.l.b16 %v20146_v56  ;;  %v20279_v43 = vld [vmem:[%s21356_s4 + $0xc4] ss:$0 sps:$4 sm:$0x88]  }
 0x41e   :  { %v8549_v52 = vsel %vm696_vm6, %v8548_v50, %v8547_v57  ;;  %v9141_v35 = vunpack.c.l.b16 %v20151_v10  ;;  %v9142_v34 = vunpack.c.l.b16 %v20160_v27  ;;  %v9143_v54 = vunpack.c.l.b16 %v20165_v4  ;;  %v20267_v4 = vld [vmem:[%s21356_s4 + $0xb4] ss:$0 sps:$4 sm:$0x88]  }
 0x41f   :  { %v8557_v17 = vpack.c.b16 %v8549_v52, %v8535_v21  ;;  %v9258_v36 = vrot.slane %v9130_v48, 6  ;;  %v9144_v24 = vunpack.c.l.b16 %v20174_v37  ;;  %v9145_v20 = vunpack.c.l.b16 %v20179_v29  ;;  %v20272_v37 = vld [vmem:[%s21356_s4 + $0xbc] ss:$0 sps:$4 sm:$0x88]  }
 0x420   :  { %v9259_v61 = vrot.slane %v9131_v22, 5  ;;  %v9261_v58 = vrot.slane %v9132_v42, 4  ;;  %v9263_v26 = vrot.slane %v9133_v62, 3  ;;  %v9265_v16 = vrot.slane %v9134_v13, 2 }
 0x421   :  { %11466 = vmatpush3.bf16.xpose.msra.mxu1 %v8557_v17  ;;  %11448 = vmatmul.mubr.bf16.vlgmr.msra.gmra.mrb[24].mxu0 %v12574_v2  ;;  %v9267_v59 = vrot.slane %v9135_v23, 1  ;;  %v9270_v12 = vrot.slane %v9137_v30, 7  ;;  %v9272_v14 = vrot.slane %v9138_v55, 6  ;;  %v9273_v5 = vrot.slane %v9139_v53, 5 }
 0x422   :  { %v9260_v40 = vsel %vm678_vm0, %v9259_v61, %v9258_v36  ;;  %v9275_v6 = vrot.slane %v9140_v60, 4  ;;  %11491 = vmatprep.subr.bf16.mxu1 %v12576_v0  ;;  %11487 = vmatprep.mubr.msk.bf16.mxu0 %vm12577_vm7, %v12576_v0  ;;  %v9277_v8 = vrot.slane %v9141_v35, 3  ;;  %v9279_v44 = vrot.slane %v9142_v34, 2 }
 0x423   :  { %v9262_v28 = vsel %vm681_vm1, %v9261_v58, %v9260_v40  ;;  %v9281_v7 = vrot.slane %v9143_v54, 1  ;;  %v9274_v25 = vsel %vm678_vm0, %v9273_v5, %v9272_v14  ;;  %v9284_v49 = vrot.slane %v9145_v20, 7  ;;  %v20247_v40 = vld [vmem:[%s21356_s4 + $0xa4] ss:$0 sps:$4 sm:$0x88]  }
 0x424   :  { %v9264_v47 = vsel %vm684_vm2, %v9263_v26, %v9262_v28  ;;  %v9550_v33 = vrot.slane %v9130_v48, 7  ;;  %v9276_v45 = vsel %vm681_vm1, %v9275_v6, %v9274_v25  ;;  %v9551_v21 = vrot.slane %v9131_v22, 6  ;;  %v20258_v6 = vld [vmem:[%s21356_s4 + $0xac] ss:$0 sps:$4 sm:$0x88]  }
 0x425   :  { %v9266_v50 = vsel %vm687_vm3, %v9265_v16, %v9264_v47  ;;  %v9553_v51 = vrot.slane %v9132_v42, 5  ;;  %v9278_v18 = vsel %vm684_vm2, %v9277_v8, %v9276_v45  ;;  %v9555_v32 = vrot.slane %v9133_v62, 4  ;;  %v20217_v62 = vld [vmem:[%s21356_s4 + $0x84] ss:$0 sps:$4 sm:$0x88]  }
 0x426   :  { %v9268_v9 = vsel %vm690_vm4, %v9267_v59, %v9266_v50  ;;  %v9557_v38 = vrot.slane %v9134_v13, 3  ;;  %v9280_v56 = vsel %vm687_vm3, %v9279_v44, %v9278_v18  ;;  %v9552_v10 = vsel %vm678_vm0, %v9551_v21, %v9550_v33  ;;  %v20222_v13 = vld [vmem:[%s21356_s4 + $0x8c] ss:$0 sps:$4 sm:$0x88]  }
 0x427   :  { %v9269_v19 = vsel %vm693_vm5, %v9136_v39, %v9268_v9  ;;  %v9559_v57 = vrot.slane %v9135_v23, 2  ;;  %v9282_v27 = vsel %vm690_vm4, %v9281_v7, %v9280_v56  ;;  %v9554_v22 = vsel %vm681_vm1, %v9553_v51, %v9552_v10  ;;  %v20240_v16 = vld [vmem:[%s21356_s4 + $0x9c] ss:$0 sps:$4 sm:$0x88]  }
 0x428   :  { %v9271_v48 = vsel %vm696_vm6, %v9270_v12, %v9269_v19  ;;  %11468 = vmatmul.mubr.bf16.vlgmr.msra.gmra.mrb[24].mxu1 %v12574_v2  ;;  %v9561_v42 = vrot.slane %v9136_v39, 1  ;;  %v9283_v23 = vsel %vm693_vm5, %v9144_v24, %v9282_v27  ;;  %v9556_v52 = vsel %vm684_vm2, %v9555_v32, %v9554_v22  ;;  %v20231_v39 = vld [vmem:[%s21356_s4 + $0x94] ss:$0 sps:$4 sm:$0x88]  }
 0x429   :  { %v9564_v17 = vrot.slane %v9138_v55, 7  ;;  %v9565_v36 = vrot.slane %v9139_v53, 6  ;;  %11507 = vmatprep.mubr.msk.bf16.mxu1 %vm12577_vm7, %v12576_v0  ;;  %v9285_v61 = vsel %vm696_vm6, %v9284_v49, %v9283_v23  ;;  %v9558_v58 = vsel %vm687_vm3, %v9557_v38, %v9556_v52  ;;  %v20293_v47 = vld [vmem:[%s21356_s4 + $0xd4] ss:$0 sps:$4 sm:$0x88]  }
 0x42a   :  { %v9567_v2 = vrot.slane %v9140_v60, 5  ;;  %v9569_v26 = vrot.slane %v9141_v35, 4  ;;  %v9482_v55 = vpack.c.b16 %v9285_v61, %v9271_v48  ;;  %v9560_v53 = vsel %vm690_vm4, %v9559_v57, %v9558_v58  ;;  %v20298_v25 = vld [vmem:[%s21356_s4 + $0xdc] ss:$0 sps:$4 sm:$0x88]  }
 0x42b   :  { %v9566_v59 = vsel %vm678_vm0, %v9565_v36, %v9564_v17  ;;  %v9571_v12 = vrot.slane %v9142_v34, 3  ;;  %v9562_v14 = vsel %vm693_vm5, %v9561_v42, %v9560_v53  ;;  %v9573_v35 = vrot.slane %v9143_v54, 2  ;;  %v20307_v21 = vld [vmem:[%s21356_s4 + $0xe4] ss:$0 sps:$4 sm:$0x88]  }
 0x42c   :  { %v9568_v60 = vsel %vm681_vm1, %v9567_v2, %v9566_v59  ;;  %v9575_v5 = vrot.slane %v9144_v24, 1  ;;  %11472 = vmatpush3.bf16.xpose.msra.mxu0 %v9482_v55  ;;  %v9563_v34 = vsel %vm696_vm6, %v9137_v30, %v9562_v14  ;;  %v20284_v30 = vld [vmem:[%s21356_s4 + $0xcc] ss:$0 sps:$4 sm:$0x88]   ;;  %v9146_v24 = vunpack.c.l.b16 %v20217_v62 }
 0x42d   :  { %v9570_v28 = vsel %vm684_vm2, %v9569_v26, %v9568_v60  ;;  %11473 = vmatprep.subr.bf16.mxu0 %v12576_v0  ;;  %v9147_v8 = vunpack.c.l.b16 %v20222_v13  ;;  %v9148_v44 = vunpack.c.l.b16 %v20231_v39  ;;  %v9149_v49 = vunpack.c.l.b16 %v20240_v16  ;;  %v20312_v51 = vld [vmem:[%s21356_s4 + $0xec] ss:$0 sps:$4 sm:$0x88]   ;;  %v20323_v19 = vld [vmem:[%s21356_s4 + $0xf4] ss:$0 sps:$4 sm:$0x88]  }
 0x42e   :  { %v9572_v54 = vsel %vm687_vm3, %v9571_v12, %v9570_v28  ;;  %v9150_v33 = vunpack.c.l.b16 %v20247_v40  ;;  %v9151_v50 = vunpack.c.l.b16 %v20258_v6  ;;  %v9152_v9 = vunpack.c.l.b16 %v20267_v4  ;;  %v20328_v56 = vld [vmem:[%s21356_s4 + $0xfc] ss:$0 sps:$4 sm:$0x88]  }
 0x42f   :  { %v9574_v7 = vsel %vm690_vm4, %v9573_v35, %v9572_v54  ;;  %v9153_v18 = vunpack.c.l.b16 %v20272_v37  ;;  %v9154_v32 = vunpack.c.l.b16 %v20279_v43  ;;  %v9155_v10 = vunpack.c.l.b16 %v20284_v30  ;;  %v20419_v37 = vld [vmem:[%s21356_s4 + $0x144] ss:$0 sps:$4 sm:$0x88]  }
 0x430   :  { %v9576_v45 = vsel %vm693_vm5, %v9575_v5, %v9574_v7  ;;  %v9156_v57 = vunpack.c.l.b16 %v20293_v47  ;;  %v9157_v48 = vunpack.c.l.b16 %v20298_v25  ;;  %v9158_v29 = vunpack.c.l.b16 %v20307_v21 }
 0x431   :  { %v9577_v38 = vsel %vm696_vm6, %v9145_v20, %v9576_v45  ;;  %v9159_v20 = vunpack.c.l.b16 %v20312_v51  ;;  %v9286_v22 = vrot.slane %v9146_v24, 6  ;;  %v9160_v42 = vunpack.c.l.b16 %v20323_v19  ;;  %v20371_v19 = vld [vmem:[%s21356_s4 + $0x114] ss:$0 sps:$4 sm:$0x88]  }
 0x432   :  { %v9774_v27 = vpack.c.b16 %v9577_v38, %v9563_v34  ;;  %v9161_v62 = vunpack.c.l.b16 %v20328_v56  ;;  %v9287_v13 = vrot.slane %v9147_v8, 5  ;;  %v9289_v23 = vrot.slane %v9148_v44, 4 }
 0x433   :  { %v9291_v52 = vrot.slane %v9149_v49, 3  ;;  %v9293_v17 = vrot.slane %v9150_v33, 2  ;;  %v9295_v36 = vrot.slane %v9151_v50, 1  ;;  %v9298_v39 = vrot.slane %v9153_v18, 7 }
 0x434   :  { %11492 = vmatpush3.bf16.xpose.msra.mxu1 %v9774_v27  ;;  %v9288_v61 = vsel %vm678_vm0, %v9287_v13, %v9286_v22  ;;  %v9300_v58 = vrot.slane %v9154_v32, 6  ;;  %v9301_v2 = vrot.slane %v9155_v10, 5  ;;  %v9303_v26 = vrot.slane %v9156_v57, 4 }
 0x435   :  { %11493 = vmatprep.subr.bf16.mxu1 %v12576_v0  ;;  %v9290_v16 = vsel %vm681_vm1, %v9289_v23, %v9288_v61  ;;  %v9305_v55 = vrot.slane %v9157_v48, 3  ;;  %v9307_v53 = vrot.slane %v9158_v29, 2  ;;  %v9309_v59 = vrot.slane %v9159_v20, 1  ;;  %v20378_v23 = vld [vmem:[%s21356_s4 + $0x11c] ss:$0 sps:$4 sm:$0x88]  }
 0x436   :  { %v9292_v12 = vsel %vm684_vm2, %v9291_v52, %v9290_v16  ;;  %v9302_v40 = vsel %vm678_vm0, %v9301_v2, %v9300_v58  ;;  %v9312_v14 = vrot.slane %v9161_v62, 7  ;;  %v9578_v60 = vrot.slane %v9146_v24, 7  ;;  %v20356_v24 = vld [vmem:[%s21356_s4 + $0x104] ss:$0 sps:$4 sm:$0x88]  }
 0x437   :  { %v9294_v35 = vsel %vm687_vm3, %v9293_v17, %v9292_v12  ;;  %v9304_v5 = vsel %vm681_vm1, %v9303_v26, %v9302_v40  ;;  %v9579_v6 = vrot.slane %v9147_v8, 6  ;;  %v9581_v34 = vrot.slane %v9148_v44, 5  ;;  %v20392_v58 = vld [vmem:[%s21356_s4 + $0x12c] ss:$0 sps:$4 sm:$0x88]  }
 0x438   :  { %v9296_v28 = vsel %vm690_vm4, %v9295_v36, %v9294_v35  ;;  %v9306_v4 = vsel %vm684_vm2, %v9305_v55, %v9304_v5  ;;  %v9583_v54 = vrot.slane %v9149_v49, 4  ;;  %v9585_v43 = vrot.slane %v9150_v33, 3  ;;  %v20364_v33 = vld [vmem:[%s21356_s4 + $0x10c] ss:$0 sps:$4 sm:$0x88]  }
 0x439   :  { %v9297_v30 = vsel %vm693_vm5, %v9152_v9, %v9296_v28  ;;  %v9308_v7 = vsel %vm687_vm3, %v9307_v53, %v9306_v4  ;;  %v9580_v47 = vsel %vm678_vm0, %v9579_v6, %v9578_v60  ;;  %v9587_v25 = vrot.slane %v9151_v50, 2  ;;  %v20385_v36 = vld [vmem:[%s21356_s4 + $0x124] ss:$0 sps:$4 sm:$0x88]  }
 0x43a   :  { %v9299_v8 = vsel %vm696_vm6, %v9298_v39, %v9297_v30  ;;  %v9310_v44 = vsel %vm690_vm4, %v9309_v59, %v9308_v7  ;;  %v9582_v45 = vsel %vm681_vm1, %v9581_v34, %v9580_v47  ;;  %v9589_v49 = vrot.slane %v9152_v9, 1  ;;  %v20438_v60 = vld [vmem:[%s21356_s4 + $0x15c] ss:$0 sps:$4 sm:$0x88]  }
 0x43b   :  { %v9311_v21 = vsel %vm693_vm5, %v9160_v42, %v9310_v44  ;;  %v9584_v50 = vsel %vm684_vm2, %v9583_v54, %v9582_v45  ;;  %v9592_v51 = vrot.slane %v9154_v32, 7  ;;  %v9593_v38 = vrot.slane %v9155_v10, 6  ;;  %v20447_v28 = vld [vmem:[%s21356_s4 + $0x164] ss:$0 sps:$4 sm:$0x88]  }
 0x43c   :  { %v9313_v27 = vsel %vm696_vm6, %v9312_v14, %v9311_v21  ;;  %v9586_v9 = vsel %vm687_vm3, %v9585_v43, %v9584_v50  ;;  %v9595_v22 = vrot.slane %v9156_v57, 5  ;;  %v9597_v13 = vrot.slane %v9157_v48, 4  ;;  %v20433_v14 = vld [vmem:[%s21356_s4 + $0x154] ss:$0 sps:$4 sm:$0x88]  }
 0x43d   :  { %v9483_v52 = vpack.c.b16 %v9313_v27, %v9299_v8  ;;  %v9588_v32 = vsel %vm690_vm4, %v9587_v25, %v9586_v9  ;;  %v9594_v10 = vsel %vm678_vm0, %v9593_v38, %v9592_v51  ;;  %v9599_v17 = vrot.slane %v9158_v29, 3  ;;  %v20397_v29 = vld [vmem:[%s21359_s5 + $0x6] ss:$0 sm:$0xff]  ;;  %v20452_v4 = vld [vmem:[%s21356_s4 + $0x16c] ss:$0 sps:$4 sm:$0x88]  }
 0x43e   :  { %v9590_v39 = vsel %vm693_vm5, %v9589_v49, %v9588_v32  ;;  %v9596_v57 = vsel %vm681_vm1, %v9595_v22, %v9594_v10  ;;  %v9601_v48 = vrot.slane %v9159_v20, 2  ;;  %v9603_v61 = vrot.slane %v9160_v42, 1  ;;  %v20406_v20 = vld [vmem:[%s21356_s4 + $0x134] ss:$0 sps:$4 sm:$0x88]  }
 0x43f   :  { %11474 = vmatpush3.bf16.xpose.msra.mxu0 %v9483_v52  ;;  %v9591_v2 = vsel %vm696_vm6, %v9153_v18, %v9590_v39  ;;  %v9598_v26 = vsel %vm684_vm2, %v9597_v13, %v9596_v57  ;;  %v20411_v42 = vld [vmem:[%s21356_s4 + $0x13c] ss:$0 sps:$4 sm:$0x88]   ;;  %v9162_v16 = vunpack.c.l.b16 %v20356_v24  ;;  %v20424_v18 = vld [vmem:[%s21356_s4 + $0x14c] ss:$0 sps:$4 sm:$0x88]   ;;  %v9163_v53 = vunpack.c.l.b16 %v20364_v33 }
 0x440   :  { %v9600_v55 = vsel %vm687_vm3, %v9599_v17, %v9598_v26  ;;  %11475 = vmatprep.subr.bf16.mxu0 %v12576_v0  ;;  %v9164_v59 = vunpack.c.l.b16 %v20371_v19  ;;  %v9165_v12 = vunpack.c.l.b16 %v20378_v23  ;;  %v9166_v35 = vunpack.c.l.b16 %v20385_v36  ;;  %v20463_v47 = vld [vmem:[%s21356_s4 + $0x174] ss:$0 sps:$4 sm:$0x88]   ;;  %v20468_v25 = vld [vmem:[%s21356_s4 + $0x17c] ss:$0 sps:$4 sm:$0x88]  }
 0x441   :  { %v9602_v40 = vsel %vm690_vm4, %v9601_v48, %v9600_v55  ;;  %v9167_v5 = vunpack.c.l.b16 %v20392_v58  ;;  %v9168_v6 = vunpack.c.l.b16 %v20406_v20  ;;  %v9169_v54 = vunpack.c.l.b16 %v20411_v42  ;;  %v20579_v42 = vld [vmem:[%s21356_s4 + $0x1bc] ss:$0 sps:$4 sm:$0x88]  }
 0x442   :  { %v9604_v34 = vsel %vm693_vm5, %v9603_v61, %v9602_v40  ;;  %v9170_v43 = vunpack.c.l.b16 %v20419_v37  ;;  %v9171_v30 = vunpack.c.l.b16 %v20424_v18  ;;  %v9172_v24 = vunpack.c.l.b16 %v20433_v14 }
 0x443   :  { %v9605_v7 = vsel %vm696_vm6, %v9161_v62, %v9604_v34  ;;  %v9173_v8 = vunpack.c.l.b16 %v20438_v60  ;;  %vm4648_vm12 = vcmp.eq.s32.totalorder %v17144_v1, %v20397_v29  ;;  %v9174_v62 = vunpack.c.l.b16 %v20447_v28 }
 0x444   :  { %v9775_v56 = vpack.c.b16 %v9605_v7, %v9591_v2  ;;  %v9175_v44 = vunpack.c.l.b16 %v20452_v4  ;;  %v9314_v45 = vrot.slane %v9162_v16, 6  ;;  %v9176_v49 = vunpack.c.l.b16 %v20463_v47  ;;  %v20558_v4 = vld [vmem:[%s21356_s4 + $0x1ac] ss:$0 sps:$4 sm:$0x88]  }
 0x445   :  { %v9177_v33 = vunpack.c.l.b16 %v20468_v25  ;;  %v9315_v21 = vrot.slane %v9163_v53, 5  ;;  %v9317_v50 = vrot.slane %v9164_v59, 4  ;;  %v9319_v51 = vrot.slane %v9165_v12, 3  ;;  %v20630_v25 = vld [vmem:[%s21356_s4 + $0x1f4] ss:$0 sps:$4 sm:$0x88]  }
 0x446   :  { %11494 = vmatpush3.bf16.xpose.msra.mxu1 %v9775_v56  ;;  %v9321_v38 = vrot.slane %v9166_v35, 2  ;;  %v9323_v19 = vrot.slane %v9167_v5, 1  ;;  %v9326_v27 = vrot.slane %v9169_v54, 7  ;;  %v9328_v22 = vrot.slane %v9170_v43, 6 }
 0x447   :  { %v9316_v9 = vsel %vm678_vm0, %v9315_v21, %v9314_v45  ;;  %v9329_v13 = vrot.slane %v9171_v30, 5  ;;  %v9331_v23 = vrot.slane %v9172_v24, 4  ;;  %11495 = vmatprep.subr.bf16.mxu1 %v12576_v0  ;;  %vm4649_vm13 = vcmp.eq.s32.totalorder %v17076_v11, %v20397_v29 }
 0x448   :  { %v9318_v52 = vsel %vm681_vm1, %v9317_v50, %v9316_v9  ;;  %v9333_v32 = vrot.slane %v9173_v8, 3  ;;  %v9335_v10 = vrot.slane %v9174_v62, 2  ;;  %v9337_v17 = vrot.slane %v9175_v44, 1 }
 0x449   :  { %v9320_v36 = vsel %vm684_vm2, %v9319_v51, %v9318_v52  ;;  %v9330_v39 = vsel %vm678_vm0, %v9329_v13, %v9328_v22  ;;  %v9340_v57 = vrot.slane %v9177_v33, 7  ;;  %v4650_v48 = vsel %vm4648_vm12, %v19642_v31, 0.0  ;;  %v20522_v51 = vld [vmem:[%s21356_s4 + $0x18c] ss:$0 sps:$4 sm:$0x88]  }
 0x44a   :  { %v9322_v61 = vsel %vm687_vm3, %v9321_v38, %v9320_v36  ;;  %v9332_v58 = vsel %vm681_vm1, %v9331_v23, %v9330_v39  ;;  %v4652_v2 = vmax.f32 %v19438_v41, %v4650_v48  ;;  %v9606_v26 = vrot.slane %v9162_v16, 7  ;;  %v10509_v16 = vld [vmem:[%s21359_s5 + $0x7] ss:$0 sm:$0xff] }
 0x44b   :  { %v9324_v20 = vsel %vm690_vm4, %v9323_v19, %v9322_v61  ;;  %v9334_v55 = vsel %vm684_vm2, %v9333_v32, %v9332_v58  ;;  %v9607_v37 = vrot.slane %v9163_v53, 6  ;;  %v9609_v18 = vrot.slane %v9164_v59, 5  ;;  %v20592_v61 = vld [vmem:[%s21356_s4 + $0x1cc] ss:$0 sps:$4 sm:$0x88]  }
 0x44c   :  { %v9325_v40 = vsel %vm693_vm5, %v9168_v6, %v9324_v20  ;;  %v9336_v14 = vsel %vm687_vm3, %v9335_v10, %v9334_v55  ;;  %v9611_v60 = vrot.slane %v9165_v12, 4  ;;  %v9613_v34 = vrot.slane %v9166_v35, 3  ;;  %v20513_v12 = vld [vmem:[%s21356_s4 + $0x184] ss:$0 sps:$4 sm:$0x88]   ;;  %v20515_v35 = vpop.f32.mrb[16].mxu0 }
 0x44d   :  { %v9327_v31 = vsel %vm696_vm6, %v9326_v27, %v9325_v40  ;;  %v9338_v28 = vsel %vm690_vm4, %v9337_v17, %v9336_v14  ;;  %v9608_v7 = vsel %vm678_vm0, %v9607_v37, %v9606_v26  ;;  %v9615_v41 = vrot.slane %v9167_v5, 2  ;;  %v20602_v55 = vld [vmem:[%s21356_s4 + $0x1d4] ss:$0 sps:$4 sm:$0x88]  }
 0x44e   :  { %v9339_v53 = vsel %vm693_vm5, %v9176_v49, %v9338_v28  ;;  %v9610_v59 = vsel %vm681_vm1, %v9609_v18, %v9608_v7  ;;  %v9617_v47 = vrot.slane %v9168_v6, 1  ;;  %v9620_v56 = vrot.slane %v9170_v43, 7  ;;  %v20527_v6 = vld [vmem:[%s21356_s4 + $0x194] ss:$0 sps:$4 sm:$0x88]   ;;  %v11369_v43 = vpop.f32.mrb[17].mxu0 }
 0x44f   :  { %v9341_v45 = vsel %vm696_vm6, %v9340_v57, %v9339_v53  ;;  %v9612_v5 = vsel %vm684_vm2, %v9611_v60, %v9610_v59  ;;  %v9621_v21 = vrot.slane %v9171_v30, 6  ;;  %v9623_v50 = vrot.slane %v9172_v24, 5  ;;  %v20533_v30 = vld [vmem:[%s21356_s4 + $0x19c] ss:$0 sps:$4 sm:$0x88]   ;;  %v20535_v24 = vpop.f32.mrb[18].mxu0 }
 0x450   :  { %v9484_v38 = vpack.c.b16 %v9341_v45, %v9327_v31  ;;  %v9614_v19 = vsel %vm687_vm3, %v9613_v34, %v9612_v5  ;;  %v9625_v27 = vrot.slane %v9173_v8, 4  ;;  %v9627_v9 = vrot.slane %v9174_v62, 3  ;;  %v20544_v8 = vld [vmem:[%s21356_s4 + $0x1a4] ss:$0 sps:$4 sm:$0x88]   ;;  %v20546_v62 = vpop.f32.mrb[16].mxu1 }
 0x451   :  { %v9616_v22 = vsel %vm690_vm4, %v9615_v41, %v9614_v19  ;;  %v9622_v13 = vsel %vm678_vm0, %v9621_v21, %v9620_v56  ;;  %v9629_v23 = vrot.slane %v9175_v44, 2  ;;  %v9631_v52 = vrot.slane %v9176_v49, 1  ;;  %v20617_v14 = vld [vmem:[%s21356_s4 + $0x1e4] ss:$0 sps:$4 sm:$0x88]   ;;  %v11370_v45 = vpop.f32.mrb[19].mxu0 }
 0x452   :  { %11476 = vmatpush3.bf16.xpose.msra.mxu0 %v9484_v38  ;;  %v9618_v32 = vsel %vm693_vm5, %v9617_v47, %v9616_v22  ;;  %v9624_v10 = vsel %vm681_vm1, %v9623_v50, %v9622_v13  ;;  %v4651_v17 = vsel %vm4649_vm13, %v19682_v46, 0.0  ;;  %vm4940_vm14 = vcmp.eq.s32.totalorder %v17144_v1, %v10509_v16  ;;  %v20570_v46 = vld [vmem:[%s21356_s4 + $0x1b4] ss:$0 sps:$4 sm:$0x88]   ;;  %v11389_v13 = vpop.f32.mrb[17].mxu1 }
 0x453   :  { %v9619_v44 = vsel %vm696_vm6, %v9169_v54, %v9618_v32  ;;  %v9626_v49 = vsel %vm684_vm2, %v9625_v27, %v9624_v10  ;;  %v4653_v36 = vmax.f32 %v19464_v3, %v4651_v17  ;;  %v4942_v39 = vsel %vm4940_vm14, %v19691_v63, 0.0  ;;  %11477 = vmatprep.subr.bf16.mxu0 %v12576_v0  ;;  %v20584_v3 = vld [vmem:[%s21356_s4 + $0x1c4] ss:$0 sps:$4 sm:$0x88]   ;;  %v20652_v10 = vpop.f32.mrb[18].mxu1 }
 0x454   :  { %v9628_v29 = vsel %vm687_vm3, %v9627_v9, %v9626_v49  ;;  %v20573_v57 = vmax.f32 %v4652_v2, %v4942_v39  ;;  %vm4941_vm15 = vcmp.eq.s32.totalorder %v17076_v11, %v10509_v16  ;;  %v9178_v63 = vunpack.c.l.b16 %v20513_v12  ;;  %v20622_v60 = vld [vmem:[%s21356_s4 + $0x1ec] ss:$0 sps:$4 sm:$0x88]  }
 0x455   :  { %v9630_v54 = vsel %vm690_vm4, %v9629_v23, %v9628_v29  ;;  %v4943_v48 = vsel %vm4941_vm15, %v19788_v15, 0.0  ;;  %v9179_v58 = vunpack.c.l.b16 %v20522_v51  ;;  %v9180_v2 = vunpack.c.l.b16 %v20527_v6  ;;  %v20607_v15 = vld [vmem:[%s21356_s4 + $0x1dc] ss:$0 sps:$4 sm:$0x88]  }
 0x456   :  { %v9632_v26 = vsel %vm693_vm5, %v9631_v52, %v9630_v54  ;;  %v20597_v20 = vmax.f32 %v4653_v36, %v4943_v48  ;;  %v9181_v37 = vunpack.c.l.b16 %v20533_v30  ;;  %v9182_v18 = vunpack.c.l.b16 %v20544_v8 }
 0x457   :  { %v9633_v40 = vsel %vm696_vm6, %v9177_v33, %v9632_v26  ;;  %v9183_v34 = vunpack.c.l.b16 %v20558_v4  ;;  %v9184_v31 = vunpack.c.l.b16 %v20570_v46  ;;  %v9185_v28 = vunpack.c.l.b16 %v20579_v42  ;;  %v20635_v33 = vld [vmem:[%s21356_s4 + $0x1fc] ss:$0 sps:$4 sm:$0x88]   ;;  %v20727_v42 = vld [vmem:[%s21356_s4 + $0x244] ss:$0 sps:$4 sm:$0x88]  }
 0x458   :  { %v9776_v7 = vpack.c.b16 %v9633_v40, %v9619_v44  ;;  %v9186_v41 = vunpack.c.l.b16 %v20584_v3  ;;  %v9187_v16 = vunpack.c.l.b16 %v20592_v61  ;;  %v9188_v53 = vunpack.c.l.b16 %v20602_v55 }
 0x459   :  { %v9189_v59 = vunpack.c.l.b16 %v20607_v15  ;;  %v9190_v47 = vunpack.c.l.b16 %v20617_v14  ;;  %v9191_v56 = vunpack.c.l.b16 %v20622_v60  ;;  %v9342_v12 = vrot.slane %v9178_v63, 6  ;;  %v20720_v60 = vld [vmem:[%s21356_s4 + $0x23c] ss:$0 sps:$4 sm:$0x88]  }
 0x45a   :  { %11496 = vmatpush3.bf16.xpose.msra.mxu1 %v9776_v7  ;;  %v9192_v5 = vunpack.c.l.b16 %v20630_v25  ;;  %v9193_v21 = vunpack.c.l.b16 %v20635_v33  ;;  %v9343_v50 = vrot.slane %v9179_v58, 5  ;;  %v9345_v51 = vrot.slane %v9180_v2, 4  ;;  %v20671_v7 = vld [vmem:[%s21356_s4 + $0x204] ss:$0 sps:$4 sm:$0x88]  }
 0x45b   :  { %v9347_v6 = vrot.slane %v9181_v37, 3  ;;  %v9349_v43 = vrot.slane %v9182_v18, 2  ;;  %v9351_v38 = vrot.slane %v9183_v34, 1  ;;  %v9354_v19 = vrot.slane %v9185_v28, 7  ;;  %11497 = vmatprep.subr.bf16.mxu1 %v12576_v0 }
 0x45c   :  { %v9344_v27 = vsel %vm678_vm0, %v9343_v50, %v9342_v12  ;;  %v9356_v9 = vrot.slane %v9186_v41, 6  ;;  %v9357_v30 = vrot.slane %v9187_v16, 5  ;;  %v9359_v22 = vrot.slane %v9188_v53, 4 }
 0x45d   :  { %v9346_v23 = vsel %vm681_vm1, %v9345_v51, %v9344_v27  ;;  %v9361_v52 = vrot.slane %v9189_v59, 3  ;;  %v9363_v8 = vrot.slane %v9190_v47, 2  ;;  %v9365_v32 = vrot.slane %v9191_v56, 1  ;;  %v20697_v27 = vld [vmem:[%s21356_s4 + $0x224] ss:$0 sps:$4 sm:$0x88]  }
 0x45e   :  { %v9348_v17 = vsel %vm684_vm2, %v9347_v6, %v9346_v23  ;;  %v9358_v4 = vsel %vm678_vm0, %v9357_v30, %v9356_v9  ;;  %v9368_v44 = vrot.slane %v9193_v21, 7  ;;  %v9634_v49 = vrot.slane %v9178_v63, 7  ;;  %v20715_v23 = vld [vmem:[%s21356_s4 + $0x234] ss:$0 sps:$4 sm:$0x88]  }
 0x45f   :  { %v9350_v36 = vsel %vm687_vm3, %v9349_v43, %v9348_v17  ;;  %v9360_v39 = vsel %vm681_vm1, %v9359_v22, %v9358_v4  ;;  %v9635_v46 = vrot.slane %v9179_v58, 6  ;;  %v9637_v29 = vrot.slane %v9180_v2, 5  ;;  %v20690_v43 = vld [vmem:[%s21356_s4 + $0x21c] ss:$0 sps:$4 sm:$0x88]  }
 0x460   :  { %v9352_v3 = vsel %vm690_vm4, %v9351_v38, %v9350_v36  ;;  %v9362_v54 = vsel %vm684_vm2, %v9361_v52, %v9360_v39  ;;  %v9639_v48 = vrot.slane %v9181_v37, 4  ;;  %v9641_v61 = vrot.slane %v9182_v18, 3  ;;  %v20676_v37 = vld [vmem:[%s21356_s4 + $0x20c] ss:$0 sps:$4 sm:$0x88]  }
 0x461   :  { %v9353_v26 = vsel %vm693_vm5, %v9184_v31, %v9352_v3  ;;  %v9364_v55 = vsel %vm687_vm3, %v9363_v8, %v9362_v54  ;;  %v9636_v15 = vsel %vm678_vm0, %v9635_v46, %v9634_v49  ;;  %v9643_v40 = vrot.slane %v9183_v34, 2  ;;  %v20706_v22 = vld [vmem:[%s21356_s4 + $0x22c] ss:$0 sps:$4 sm:$0x88]  }
 0x462   :  { %v9355_v63 = vsel %vm696_vm6, %v9354_v19, %v9353_v26  ;;  %v9366_v14 = vsel %vm690_vm4, %v9365_v32, %v9364_v55  ;;  %v9638_v58 = vsel %vm681_vm1, %v9637_v29, %v9636_v15  ;;  %v9645_v2 = vrot.slane %v9184_v31, 1  ;;  %v20683_v31 = vld [vmem:[%s21356_s4 + $0x214] ss:$0 sps:$4 sm:$0x88]  }
 0x463   :  { %v9367_v18 = vsel %vm693_vm5, %v9192_v5, %v9366_v14  ;;  %v9640_v34 = vsel %vm684_vm2, %v9639_v48, %v9638_v58  ;;  %v9648_v25 = vrot.slane %v9186_v41, 7  ;;  %v9649_v12 = vrot.slane %v9187_v16, 6  ;;  %v20741_v17 = vld [vmem:[%s21356_s4 + $0x254] ss:$0 sps:$4 sm:$0x88]  }
 0x464   :  { %v9369_v45 = vsel %vm696_vm6, %v9368_v44, %v9367_v18  ;;  %v9642_v50 = vsel %vm687_vm3, %v9641_v61, %v9640_v34  ;;  %v9651_v51 = vrot.slane %v9188_v53, 5  ;;  %v9653_v6 = vrot.slane %v9189_v59, 4  ;;  %v20746_v4 = vld [vmem:[%s21356_s4 + $0x25c] ss:$0 sps:$4 sm:$0x88]  }
 0x465   :  { %v9485_v38 = vpack.c.b16 %v9369_v45, %v9355_v63  ;;  %v9644_v41 = vsel %vm690_vm4, %v9643_v40, %v9642_v50  ;;  %v9650_v16 = vsel %vm678_vm0, %v9649_v12, %v9648_v25  ;;  %v9655_v19 = vrot.slane %v9190_v47, 3  ;;  %v20755_v46 = vld [vmem:[%s21356_s4 + $0x264] ss:$0 sps:$4 sm:$0x88]  }
 0x466   :  { %v9646_v9 = vsel %vm693_vm5, %v9645_v2, %v9644_v41  ;;  %v9652_v53 = vsel %vm681_vm1, %v9651_v51, %v9650_v16  ;;  %v9657_v59 = vrot.slane %v9191_v56, 2  ;;  %v9659_v30 = vrot.slane %v9192_v5, 1  ;;  %v20760_v29 = vld [vmem:[%s21356_s4 + $0x26c] ss:$0 sps:$4 sm:$0x88]  }
 0x467   :  { %11478 = vmatpush3.bf16.xpose.msra.mxu0 %v9485_v38  ;;  %v9647_v47 = vsel %vm696_vm6, %v9185_v28, %v9646_v9  ;;  %v9654_v13 = vsel %vm684_vm2, %v9653_v6, %v9652_v53  ;;  %v20732_v28 = vld [vmem:[%s21356_s4 + $0x24c] ss:$0 sps:$4 sm:$0x88]   ;;  %v9194_v5 = vunpack.c.l.b16 %v20671_v7  ;;  %v9195_v52 = vunpack.c.l.b16 %v20676_v37  ;;  %v20771_v26 = vld [vmem:[%s21356_s4 + $0x274] ss:$0 sps:$4 sm:$0x88]  }
 0x468   :  { %v9656_v56 = vsel %vm687_vm3, %v9655_v19, %v9654_v13  ;;  %11479 = vmatprep.subr.bf16.mxu0 %v12576_v0  ;;  %v9196_v8 = vunpack.c.l.b16 %v20683_v31  ;;  %v9197_v44 = vunpack.c.l.b16 %v20690_v43  ;;  %v9198_v49 = vunpack.c.l.b16 %v20697_v27  ;;  %v20776_v55 = vld [vmem:[%s21356_s4 + $0x27c] ss:$0 sps:$4 sm:$0x88]   ;;  %v11390_v19 = vpop.f32.mrb[19].mxu1 }
 0x469   :  { %v9658_v32 = vsel %vm690_vm4, %v9657_v59, %v9656_v56  ;;  %v9199_v36 = vunpack.c.l.b16 %v20706_v22  ;;  %v9200_v3 = vunpack.c.l.b16 %v20715_v23  ;;  %v9201_v54 = vunpack.c.l.b16 %v20720_v60  ;;  %v20861_v60 = vld [vmem:[%s21356_s4 + $0x2c4] ss:$0 sps:$4 sm:$0x88]  }
 0x46a   :  { %v9660_v39 = vsel %vm693_vm5, %v9659_v30, %v9658_v32  ;;  %v9202_v48 = vunpack.c.l.b16 %v20727_v42  ;;  %v9203_v15 = vunpack.c.l.b16 %v20732_v28  ;;  %v9204_v40 = vunpack.c.l.b16 %v20741_v17 }
 0x46b   :  { %v9661_v61 = vsel %vm696_vm6, %v9193_v21, %v9660_v39  ;;  %v9205_v63 = vunpack.c.l.b16 %v20746_v4  ;;  %v9206_v33 = vunpack.c.l.b16 %v20755_v46  ;;  %v9207_v21 = vunpack.c.l.b16 %v20760_v29  ;;  %v20807_v29 = vld [vmem:[%s21356_s4 + $0x284] ss:$0 sps:$4 sm:$0x88]  }
 0x46c   :  { %v9777_v14 = vpack.c.b16 %v9661_v61, %v9647_v47  ;;  %v9370_v58 = vrot.slane %v9194_v5, 6  ;;  %v9208_v2 = vunpack.c.l.b16 %v20771_v26  ;;  %v9209_v7 = vunpack.c.l.b16 %v20776_v55 }
 0x46d   :  { %v9371_v37 = vrot.slane %v9195_v52, 5  ;;  %v9373_v18 = vrot.slane %v9196_v8, 4  ;;  %v9375_v34 = vrot.slane %v9197_v44, 3  ;;  %v9377_v25 = vrot.slane %v9198_v49, 2 }
 0x46e   :  { %11498 = vmatpush3.bf16.xpose.msra.mxu1 %v9777_v14  ;;  %v9379_v12 = vrot.slane %v9199_v36, 1  ;;  %v9382_v31 = vrot.slane %v9201_v54, 7  ;;  %v9384_v50 = vrot.slane %v9202_v48, 6  ;;  %v9385_v51 = vrot.slane %v9203_v15, 5 }
 0x46f   :  { %v9372_v45 = vsel %vm678_vm0, %v9371_v37, %v9370_v58  ;;  %v9387_v6 = vrot.slane %v9204_v40, 4  ;;  %11499 = vmatprep.subr.bf16.mxu1 %v12576_v0  ;;  %v9389_v38 = vrot.slane %v9205_v63, 3  ;;  %v9391_v41 = vrot.slane %v9206_v33, 2 }
 0x470   :  { %v9374_v43 = vsel %vm681_vm1, %v9373_v18, %v9372_v45  ;;  %v9393_v16 = vrot.slane %v9207_v21, 1  ;;  %v9386_v9 = vsel %vm678_vm0, %v9385_v51, %v9384_v50  ;;  %v9396_v53 = vrot.slane %v9209_v7, 7  ;;  %v20840_v51 = vld [vmem:[%s21356_s4 + $0x2ac] ss:$0 sps:$4 sm:$0x88]  }
 0x471   :  { %v9376_v27 = vsel %vm684_vm2, %v9375_v34, %v9374_v43  ;;  %v9662_v59 = vrot.slane %v9194_v5, 7  ;;  %v9388_v22 = vsel %vm681_vm1, %v9387_v6, %v9386_v9  ;;  %v9663_v47 = vrot.slane %v9195_v52, 6  ;;  %v20826_v34 = vld [vmem:[%s21356_s4 + $0x29c] ss:$0 sps:$4 sm:$0x88]  }
 0x472   :  { %v9378_v30 = vsel %vm687_vm3, %v9377_v25, %v9376_v27  ;;  %v9665_v13 = vrot.slane %v9196_v8, 5  ;;  %v9390_v56 = vsel %vm684_vm2, %v9389_v38, %v9388_v22  ;;  %v9667_v42 = vrot.slane %v9197_v44, 4  ;;  %v20812_v44 = vld [vmem:[%s21356_s4 + $0x28c] ss:$0 sps:$4 sm:$0x88]  }
 0x473   :  { %v9380_v23 = vsel %vm690_vm4, %v9379_v12, %v9378_v30  ;;  %v9669_v28 = vrot.slane %v9198_v49, 3  ;;  %v9392_v17 = vsel %vm687_vm3, %v9391_v41, %v9390_v56  ;;  %v9664_v4 = vsel %vm678_vm0, %v9663_v47, %v9662_v59  ;;  %v20849_v43 = vld [vmem:[%s21356_s4 + $0x2b4] ss:$0 sps:$4 sm:$0x88]  }
 0x474   :  { %v9381_v32 = vsel %vm693_vm5, %v9200_v3, %v9380_v23  ;;  %v9671_v39 = vrot.slane %v9199_v36, 2  ;;  %v9394_v46 = vsel %vm690_vm4, %v9393_v16, %v9392_v17  ;;  %v9666_v52 = vsel %vm681_vm1, %v9665_v13, %v9664_v4  ;;  %v20875_v27 = vld [vmem:[%s21356_s4 + $0x2d4] ss:$0 sps:$4 sm:$0x88]  }
 0x475   :  { %v9383_v5 = vsel %vm696_vm6, %v9382_v31, %v9381_v32  ;;  %v9673_v8 = vrot.slane %v9200_v3, 1  ;;  %v9395_v49 = vsel %vm693_vm5, %v9208_v2, %v9394_v46  ;;  %v9668_v36 = vsel %vm684_vm2, %v9667_v42, %v9666_v52  ;;  %v20819_v3 = vld [vmem:[%s21356_s4 + $0x294] ss:$0 sps:$4 sm:$0x88]  }
 0x476   :  { %v9676_v61 = vrot.slane %v9202_v48, 7  ;;  %v9677_v26 = vrot.slane %v9203_v15, 6  ;;  %v9397_v14 = vsel %vm696_vm6, %v9396_v53, %v9395_v49  ;;  %v9670_v58 = vsel %vm687_vm3, %v9669_v28, %v9668_v36  ;;  %v20833_v31 = vld [vmem:[%s21356_s4 + $0x2a4] ss:$0 sps:$4 sm:$0x88]  }
 0x477   :  { %v9679_v37 = vrot.slane %v9204_v40, 5  ;;  %v9681_v18 = vrot.slane %v9205_v63, 4  ;;  %v9486_v25 = vpack.c.b16 %v9397_v14, %v9383_v5  ;;  %v9672_v48 = vsel %vm690_vm4, %v9671_v39, %v9670_v58  ;;  %v20880_v9 = vld [vmem:[%s21356_s4 + $0x2dc] ss:$0 sps:$4 sm:$0x88]  }
 0x478   :  { %v9678_v15 = vsel %vm678_vm0, %v9677_v26, %v9676_v61  ;;  %v9683_v12 = vrot.slane %v9206_v33, 3  ;;  %v9674_v45 = vsel %vm693_vm5, %v9673_v8, %v9672_v48  ;;  %v9685_v63 = vrot.slane %v9207_v21, 2  ;;  %v20854_v21 = vld [vmem:[%s21356_s4 + $0x2bc] ss:$0 sps:$4 sm:$0x88]   ;;  %v20917_v8 = vpop.f32.mrb[20].mxu0 }
 0x479   :  { %v9680_v40 = vsel %vm681_vm1, %v9679_v37, %v9678_v15  ;;  %v9687_v50 = vrot.slane %v9208_v2, 1  ;;  %11480 = vmatpush3.bf16.xpose.msra.mxu0 %v9486_v25  ;;  %v9675_v33 = vsel %vm696_vm6, %v9201_v54, %v9674_v45  ;;  %v20866_v54 = vld [vmem:[%s21356_s4 + $0x2cc] ss:$0 sps:$4 sm:$0x88]   ;;  %v9210_v38 = vunpack.c.l.b16 %v20807_v29  ;;  %v11409_v25 = vpop.f32.mrb[21].mxu0 }
 0x47a   :  { %v9682_v6 = vsel %vm684_vm2, %v9681_v18, %v9680_v40  ;;  %11481 = vmatprep.subr.bf16.mxu0 %v12576_v0  ;;  %v9211_v41 = vunpack.c.l.b16 %v20812_v44  ;;  %v9212_v16 = vunpack.c.l.b16 %v20819_v3  ;;  %v9213_v53 = vunpack.c.l.b16 %v20826_v34  ;;  %v20889_v47 = vld [vmem:[%s21356_s4 + $0x2e4] ss:$0 sps:$4 sm:$0x88]   ;;  %v20894_v13 = vld [vmem:[%s21356_s4 + $0x2ec] ss:$0 sps:$4 sm:$0x88]  }
 0x47b   :  { %v9684_v2 = vsel %vm687_vm3, %v9683_v12, %v9682_v6  ;;  %v9214_v59 = vunpack.c.l.b16 %v20833_v31  ;;  %v9215_v30 = vunpack.c.l.b16 %v20840_v51  ;;  %v9216_v23 = vunpack.c.l.b16 %v20849_v43  ;;  %v20905_v32 = vld [vmem:[%s21356_s4 + $0x2f4] ss:$0 sps:$4 sm:$0x88]   ;;  %v20910_v17 = vld [vmem:[%s21356_s4 + $0x2fc] ss:$0 sps:$4 sm:$0x88]  }
 0x47c   :  { %v9686_v19 = vsel %vm690_vm4, %v9685_v63, %v9684_v2  ;;  %v9217_v56 = vunpack.c.l.b16 %v20854_v21  ;;  %v9218_v42 = vunpack.c.l.b16 %v20861_v60  ;;  %v9219_v4 = vunpack.c.l.b16 %v20866_v54  ;;  %v9843_v45 = vld [vmem:[%s21360_s2 + $0x8] sm:$0xff]  ;;  %v21016_v21 = vld [vmem:[%s21356_s4 + $0x344] ss:$0 sps:$4 sm:$0x88]  }
 0x47d   :  { %v9688_v22 = vsel %vm693_vm5, %v9687_v50, %v9686_v19  ;;  %v9220_v39 = vunpack.c.l.b16 %v20875_v27  ;;  %v9221_v5 = vunpack.c.l.b16 %v20880_v9  ;;  %v9222_v55 = vunpack.c.l.b16 %v20889_v47  ;;  %9851 = vperm.xlu1 %11535, %v9843_v45   ;;  %v20995_v47 = vld [vmem:[%s21356_s4 + $0x32c] ss:$0 sps:$4 sm:$0x88]  }
 0x47e   :  { %v9689_v28 = vsel %vm696_vm6, %v9209_v7, %v9688_v22  ;;  %v9223_v7 = vunpack.c.l.b16 %v20894_v13  ;;  %v9398_v52 = vrot.slane %v9210_v38, 6  ;;  %v9224_v29 = vunpack.c.l.b16 %v20905_v32  ;;  %v21004_v13 = vld [vmem:[%s21356_s4 + $0x334] ss:$0 sps:$4 sm:$0x88]  }
 0x47f   :  { %v9778_v46 = vpack.c.b16 %v9689_v28, %v9675_v33  ;;  %v9225_v44 = vunpack.c.l.b16 %v20910_v17  ;;  %v9399_v49 = vrot.slane %v9211_v41, 5  ;;  %v9401_v36 = vrot.slane %v9212_v16, 4  ;;  %v21009_v32 = vld [vmem:[%s21356_s4 + $0x33c] ss:$0 sps:$4 sm:$0x88]  }
 0x480   :  { %v9403_v61 = vrot.slane %v9213_v53, 3  ;;  %v9405_v26 = vrot.slane %v9214_v59, 2  ;;  %v9407_v3 = vrot.slane %v9215_v30, 1  ;;  %v9410_v14 = vrot.slane %v9217_v56, 7 }
 0x481   :  { %11500 = vmatpush3.bf16.xpose.msra.mxu1 %v9778_v46  ;;  %v9400_v58 = vsel %vm678_vm0, %v9399_v49, %v9398_v52  ;;  %v9412_v37 = vrot.slane %v9218_v42, 6  ;;  %v9413_v18 = vrot.slane %v9219_v4, 5  ;;  %v9415_v34 = vrot.slane %v9220_v39, 4  ;;  %v20950_v49 = vld [vmem:[%s21356_s4 + $0x304] ss:$0 sps:$4 sm:$0x88]  }
 0x482   :  { %11501 = vmatprep.subr.bf16.mxu1 %v12576_v0  ;;  %v9402_v48 = vsel %vm681_vm1, %v9401_v36, %v9400_v58  ;;  %v9417_v15 = vrot.slane %v9221_v5, 3  ;;  %v9419_v12 = vrot.slane %v9222_v55, 2  ;;  %v9421_v31 = vrot.slane %v9223_v7, 1 }
 0x483   :  { %v9404_v40 = vsel %vm684_vm2, %v9403_v61, %v9402_v48  ;;  %v9414_v63 = vsel %vm678_vm0, %v9413_v18, %v9412_v37  ;;  %v9424_v50 = vrot.slane %v9225_v44, 7  ;;  %v9690_v51 = vrot.slane %v9210_v38, 7  ;;  %v20973_v18 = vld [vmem:[%s21356_s4 + $0x31c] ss:$0 sps:$4 sm:$0x88]  }
 0x484   :  { %v9406_v33 = vsel %vm687_vm3, %v9405_v26, %v9404_v40  ;;  %v9416_v6 = vsel %vm681_vm1, %v9415_v34, %v9414_v63  ;;  %v9691_v43 = vrot.slane %v9211_v41, 6  ;;  %v9693_v2 = vrot.slane %v9212_v16, 5  ;;  %v20966_v26 = vpop.f32.mrb[22].mxu0 }
 0x485   :  { %v9408_v60 = vsel %vm690_vm4, %v9407_v3, %v9406_v33  ;;  %v9418_v54 = vsel %vm684_vm2, %v9417_v15, %v9416_v6  ;;  %v9695_v19 = vrot.slane %v9213_v53, 4  ;;  %v9697_v27 = vrot.slane %v9214_v59, 3  ;;  %v20955_v53 = vld [vmem:[%s21356_s4 + $0x30c] ss:$0 sps:$4 sm:$0x88]  }
 0x486   :  { %v9409_v9 = vsel %vm693_vm5, %v9216_v23, %v9408_v60  ;;  %v9420_v22 = vsel %vm687_vm3, %v9419_v12, %v9418_v54  ;;  %v9692_v28 = vsel %vm678_vm0, %v9691_v43, %v9690_v51  ;;  %v9699_v38 = vrot.slane %v9215_v30, 2  ;;  %v21030_v33 = vld [vmem:[%s21356_s4 + $0x354] ss:$0 sps:$4 sm:$0x88]  }
 0x487   :  { %v9411_v46 = vsel %vm696_vm6, %v9410_v14, %v9409_v9  ;;  %v9422_v52 = vsel %vm690_vm4, %v9421_v31, %v9420_v22  ;;  %v9694_v41 = vsel %vm681_vm1, %v9693_v2, %v9692_v28  ;;  %v9701_v16 = vrot.slane %v9216_v23, 1  ;;  %v20964_v23 = vld [vmem:[%s21356_s4 + $0x314] ss:$0 sps:$4 sm:$0x88]  }
 0x488   :  { %v9423_v59 = vsel %vm693_vm5, %v9224_v29, %v9422_v52  ;;  %v9696_v30 = vsel %vm684_vm2, %v9695_v19, %v9694_v41  ;;  %v9704_v36 = vrot.slane %v9218_v42, 7  ;;  %v9705_v61 = vrot.slane %v9219_v4, 6  ;;  %v20975_v42 = vpop.f32.mrb[20].mxu1  ;;  %v21035_v6 = vld [vmem:[%s21356_s4 + $0x35c] ss:$0 sps:$4 sm:$0x88]  }
 0x489   :  { %v9425_v3 = vsel %vm696_vm6, %v9424_v50, %v9423_v59  ;;  %v9698_v14 = vsel %vm687_vm3, %v9697_v27, %v9696_v30  ;;  %v9707_v58 = vrot.slane %v9220_v39, 5  ;;  %v9709_v37 = vrot.slane %v9221_v5, 4  ;;  %v20984_v39 = vld [vmem:[%s21356_s4 + $0x324] ss:$0 sps:$4 sm:$0x88]   ;;  %v11429_v30 = vpop.f32.mrb[21].mxu1 }
 0x48a   :  { %v9487_v4 = vpack.c.b16 %v9425_v3, %v9411_v46  ;;  %v9700_v34 = vsel %vm690_vm4, %v9699_v38, %v9698_v14  ;;  %v9706_v25 = vsel %vm678_vm0, %v9705_v61, %v9704_v36  ;;  %v9711_v48 = vrot.slane %v9222_v55, 3  ;;  %v11410_v55 = vpop.f32.mrb[23].mxu0  ;;  %v21044_v19 = vld [vmem:[%s21356_s4 + $0x364] ss:$0 sps:$4 sm:$0x88]  }
 0x48b   :  { %v9702_v5 = vsel %vm693_vm5, %v9701_v16, %v9700_v34  ;;  %v9708_v15 = vsel %vm681_vm1, %v9707_v58, %v9706_v25  ;;  %v9713_v12 = vrot.slane %v9223_v7, 2  ;;  %v9715_v31 = vrot.slane %v9224_v29, 1  ;;  %v21049_v27 = vld [vmem:[%s21356_s4 + $0x36c] ss:$0 sps:$4 sm:$0x88]  }
 0x48c   :  { %11482 = vmatpush3.bf16.xpose.msra.mxu0 %v9487_v4  ;;  %v9703_v45 = vsel %vm696_vm6, %v9217_v56, %v9702_v5  ;;  %v9710_v40 = vsel %vm684_vm2, %v9709_v37, %v9708_v15  ;;  %v21021_v56 = vld [vmem:[%s21356_s4 + $0x34c] ss:$0 sps:$4 sm:$0x88]   ;;  %v9226_v29 = vunpack.c.l.b16 %v20950_v49  ;;  %v9227_v63 = vunpack.c.l.b16 %v20955_v53  ;;  %v21060_v46 = vld [vmem:[%s21356_s4 + $0x374] ss:$0 sps:$4 sm:$0x88]  }
 0x48d   :  { %v9712_v7 = vsel %vm687_vm3, %v9711_v48, %v9710_v40  ;;  %11483 = vmatprep.subr.bf16.mxu0 %v12576_v0  ;;  %v9228_v50 = vunpack.c.l.b16 %v20964_v23  ;;  %v9229_v43 = vunpack.c.l.b16 %v20973_v18  ;;  %v9230_v2 = vunpack.c.l.b16 %v20984_v39  ;;  %v21065_v52 = vld [vmem:[%s21356_s4 + $0x37c] ss:$0 sps:$4 sm:$0x88]   ;;  %v21078_v39 = vpop.f32.mrb[22].mxu1 }
 0x48e   :  { %v9714_v51 = vsel %vm690_vm4, %v9713_v12, %v9712_v7  ;;  %v9231_v60 = vunpack.c.l.b16 %v20995_v47  ;;  %v9232_v9 = vunpack.c.l.b16 %v21004_v13  ;;  %v9233_v22 = vunpack.c.l.b16 %v21009_v32  ;;  %v9842_v47 = vld [vmem:[%s21360_s2] sm:$0xff] }
 0x48f   :  { %v9716_v54 = vsel %vm693_vm5, %v9715_v31, %v9714_v51  ;;  %v9234_v28 = vunpack.c.l.b16 %v21016_v21  ;;  %v9235_v41 = vunpack.c.l.b16 %v21021_v56  ;;  %v9236_v16 = vunpack.c.l.b16 %v21030_v33  ;;  %9846 = vperm.xlu1 %11535, %v9842_v47   ;;  %v21167_v32 = vld [vmem:[%s21356_s4 + $0x3c4] ss:$0 sps:$4 sm:$0x88]  }
 0x490   :  { %v9717_v38 = vsel %vm696_vm6, %v9225_v44, %v9716_v54  ;;  %v9237_v49 = vunpack.c.l.b16 %v21035_v6  ;;  %v9238_v17 = vunpack.c.l.b16 %v21044_v19  ;;  %v9239_v44 = vunpack.c.l.b16 %v21049_v27  ;;  %v21146_v19 = vld [vmem:[%s21356_s4 + $0x3ac] ss:$0 sps:$4 sm:$0x88]   ;;  %v21155_v27 = vld [vmem:[%s21356_s4 + $0x3b4] ss:$0 sps:$4 sm:$0x88]  }
 0x491   :  { %v9779_v53 = vpack.c.b16 %v9717_v38, %v9703_v45  ;;  %v9426_v59 = vrot.slane %v9226_v29, 6  ;;  %v9240_v36 = vunpack.c.l.b16 %v21060_v46  ;;  %v9241_v61 = vunpack.c.l.b16 %v21065_v52  ;;  %v21160_v46 = vld [vmem:[%s21356_s4 + $0x3bc] ss:$0 sps:$4 sm:$0x88]  }
 0x492   :  { %v9427_v23 = vrot.slane %v9227_v63, 5  ;;  %v9429_v3 = vrot.slane %v9228_v50, 4  ;;  %v9431_v14 = vrot.slane %v9229_v43, 3  ;;  %v9433_v58 = vrot.slane %v9230_v2, 2 }
 0x493   :  { %11502 = vmatpush3.bf16.xpose.msra.mxu1 %v9779_v53  ;;  %v9435_v37 = vrot.slane %v9231_v60, 1  ;;  %v9438_v18 = vrot.slane %v9233_v22, 7  ;;  %v9440_v34 = vrot.slane %v9234_v28, 6  ;;  %v9441_v25 = vrot.slane %v9235_v41, 5 }
 0x494   :  { %v9428_v4 = vsel %vm678_vm0, %v9427_v23, %v9426_v59  ;;  %v9443_v48 = vrot.slane %v9236_v16, 4  ;;  %11503 = vmatprep.subr.bf16.mxu1 %v12576_v0  ;;  %v9445_v15 = vrot.slane %v9237_v49, 3  ;;  %v9447_v12 = vrot.slane %v9238_v17, 2 }
 0x495   :  { %v9430_v5 = vsel %vm681_vm1, %v9429_v3, %v9428_v4  ;;  %v9449_v31 = vrot.slane %v9239_v44, 1  ;;  %v9442_v45 = vsel %vm678_vm0, %v9441_v25, %v9440_v34  ;;  %v9452_v40 = vrot.slane %v9241_v61, 7 }
 0x496   :  { %v9432_v55 = vsel %vm684_vm2, %v9431_v14, %v9430_v5  ;;  %v9718_v13 = vrot.slane %v9226_v29, 7  ;;  %v9444_v21 = vsel %vm681_vm1, %v9443_v48, %v9442_v45  ;;  %v9719_v56 = vrot.slane %v9227_v63, 6  ;;  %v21105_v14 = vld [vmem:[%s21356_s4 + $0x384] ss:$0 sps:$4 sm:$0x88]  }
 0x497   :  { %v9434_v7 = vsel %vm687_vm3, %v9433_v58, %v9432_v55  ;;  %v9721_v51 = vrot.slane %v9228_v50, 5  ;;  %v9446_v6 = vsel %vm684_vm2, %v9445_v15, %v9444_v21  ;;  %v9723_v54 = vrot.slane %v9229_v43, 4  ;;  %v21110_v43 = vld [vmem:[%s21356_s4 + $0x38c] ss:$0 sps:$4 sm:$0x88]  }
 0x498   :  { %v9436_v33 = vsel %vm690_vm4, %v9435_v37, %v9434_v7  ;;  %v9725_v38 = vrot.slane %v9230_v2, 3  ;;  %v9448_v59 = vsel %vm687_vm3, %v9447_v12, %v9446_v6  ;;  %v9720_v30 = vsel %vm678_vm0, %v9719_v56, %v9718_v13  ;;  %v21126_v5 = vld [vmem:[%s21356_s4 + $0x39c] ss:$0 sps:$4 sm:$0x88]  }
 0x499   :  { %v9437_v53 = vsel %vm693_vm5, %v9232_v9, %v9436_v33  ;;  %v9727_v29 = vrot.slane %v9231_v60, 2  ;;  %v9450_v3 = vsel %vm690_vm4, %v9449_v31, %v9448_v59  ;;  %v9722_v63 = vsel %vm681_vm1, %v9721_v51, %v9720_v30  ;;  %v21135_v31 = vld [vmem:[%s21356_s4 + $0x3a4] ss:$0 sps:$4 sm:$0x88]  }
 0x49a   :  { %v9439_v23 = vsel %vm696_vm6, %v9438_v18, %v9437_v53  ;;  %v9729_v50 = vrot.slane %v9232_v9, 1  ;;  %v9451_v2 = vsel %vm693_vm5, %v9240_v36, %v9450_v3  ;;  %v9724_v60 = vsel %vm684_vm2, %v9723_v54, %v9722_v63  ;;  %v21119_v9 = vld [vmem:[%s21356_s4 + $0x394] ss:$0 sps:$4 sm:$0x88]   ;;  %v11430_v18 = vpop.f32.mrb[23].mxu1 }
 0x49b   :  { %v9732_v58 = vrot.slane %v9234_v28, 7  ;;  %v9733_v37 = vrot.slane %v9235_v41, 6  ;;  %v9453_v4 = vsel %vm696_vm6, %v9452_v40, %v9451_v2  ;;  %v9726_v34 = vsel %vm687_vm3, %v9725_v38, %v9724_v60  ;;  %v21181_v21 = vld [vmem:[%s21356_s4 + $0x3d4] ss:$0 sps:$4 sm:$0x88]  }
 0x49c   :  { %v9735_v25 = vrot.slane %v9236_v16, 5  ;;  %v9737_v48 = vrot.slane %v9237_v49, 4  ;;  %v9488_v15 = vpack.c.b16 %v9453_v4, %v9439_v23  ;;  %v9728_v28 = vsel %vm690_vm4, %v9727_v29, %v9726_v34  ;;  %v21186_v56 = vld [vmem:[%s21356_s4 + $0x3dc] ss:$0 sps:$4 sm:$0x88]  }
 0x49d   :  { %v9734_v41 = vsel %vm678_vm0, %v9733_v37, %v9732_v58  ;;  %v9739_v12 = vrot.slane %v9238_v17, 3  ;;  %v9730_v16 = vsel %vm693_vm5, %v9729_v50, %v9728_v28  ;;  %v9741_v47 = vrot.slane %v9239_v44, 2  ;;  %v21195_v38 = vld [vmem:[%s21356_s4 + $0x3e4] ss:$0 sps:$4 sm:$0x88]  }
 0x49e   :  { %v9736_v49 = vsel %vm681_vm1, %v9735_v25, %v9734_v41  ;;  %v9743_v55 = vrot.slane %v9240_v36, 1  ;;  %11484 = vmatpush3.bf16.xpose.msra.mxu0 %v9488_v15  ;;  %v9731_v17 = vsel %vm696_vm6, %v9233_v22, %v9730_v16  ;;  %v21172_v22 = vld [vmem:[%s21356_s4 + $0x3cc] ss:$0 sps:$4 sm:$0x88]   ;;  %v9242_v36 = vunpack.c.l.b16 %v21105_v14 }
 0x49f   :  { %v9738_v45 = vsel %vm684_vm2, %v9737_v48, %v9736_v49  ;;  %11485 = vmatprep.subr.bf16.mxu0 %v12576_v0  ;;  %v9243_v40 = vunpack.c.l.b16 %v21110_v43  ;;  %v9244_v13 = vunpack.c.l.b16 %v21119_v9  ;;  %v9245_v51 = vunpack.c.l.b16 %v21126_v5  ;;  %v21200_v53 = vld [vmem:[%s21356_s4 + $0x3ec] ss:$0 sps:$4 sm:$0x88]   ;;  %v21211_v3 = vld [vmem:[%s21356_s4 + $0x3f4] ss:$0 sps:$4 sm:$0x88]  }
 0x4a0   :  { %v9740_v44 = vsel %vm687_vm3, %v9739_v12, %v9738_v45  ;;  %v9246_v33 = vunpack.c.l.b16 %v21135_v31  ;;  %v9247_v6 = vunpack.c.l.b16 %v21146_v19  ;;  %v9248_v59 = vunpack.c.l.b16 %v21155_v27  ;;  %v21216_v63 = vld [vmem:[%s21356_s4 + $0x3fc] ss:$0 sps:$4 sm:$0x88]  }
 0x4a1   :  { %v9742_v7 = vsel %vm690_vm4, %v9741_v47, %v9740_v44  ;;  %v9249_v30 = vunpack.c.l.b16 %v21160_v46  ;;  %v9250_v29 = vunpack.c.l.b16 %v21167_v32  ;;  %v9251_v50 = vunpack.c.l.b16 %v21172_v22 }
 0x4a2   :  { %v9744_v54 = vsel %vm693_vm5, %v9743_v55, %v9742_v7  ;;  %v9252_v14 = vunpack.c.l.b16 %v21181_v21  ;;  %v9253_v43 = vunpack.c.l.b16 %v21186_v56  ;;  %v9254_v52 = vunpack.c.l.b16 %v21195_v38 }
 0x4a3   :  { %v9745_v23 = vsel %vm696_vm6, %v9241_v61, %v9744_v54  ;;  %v9255_v61 = vunpack.c.l.b16 %v21200_v53  ;;  %v9454_v60 = vrot.slane %v9242_v36, 6  ;;  %v9256_v58 = vunpack.c.l.b16 %v21211_v3 }
 0x4a4   :  { %v9780_v2 = vpack.c.b16 %v9745_v23, %v9731_v17  ;;  %v9257_v37 = vunpack.c.l.b16 %v21216_v63  ;;  %v9455_v9 = vrot.slane %v9243_v40, 5  ;;  %v9457_v18 = vrot.slane %v9244_v13, 4 }
 0x4a5   :  { %v9459_v4 = vrot.slane %v9245_v51, 3  ;;  %v9461_v34 = vrot.slane %v9246_v33, 2  ;;  %v9463_v25 = vrot.slane %v9247_v6, 1  ;;  %v9466_v48 = vrot.slane %v9249_v30, 7 }
 0x4a6   :  { %11504 = vmatpush3.bf16.xpose.msra.mxu1 %v9780_v2  ;;  %v9456_v5 = vsel %vm678_vm0, %v9455_v9, %v9454_v60  ;;  %v9468_v15 = vrot.slane %v9250_v29, 6  ;;  %v9469_v28 = vrot.slane %v9251_v50, 5  ;;  %v9471_v41 = vrot.slane %v9252_v14, 4 }
 0x4a7   :  { %11505 = vmatprep.subr.bf16.mxu1 %v12576_v0  ;;  %v9458_v12 = vsel %vm681_vm1, %v9457_v18, %v9456_v5  ;;  %v9473_v31 = vrot.slane %v9253_v43, 3  ;;  %v9475_v16 = vrot.slane %v9254_v52, 2  ;;  %v9477_v49 = vrot.slane %v9255_v61, 1 }
 0x4a8   :  { %v9460_v47 = vsel %vm684_vm2, %v9459_v4, %v9458_v12  ;;  %v9470_v55 = vsel %vm678_vm0, %v9469_v28, %v9468_v15  ;;  %v9480_v19 = vrot.slane %v9257_v37, 7  ;;  %v9746_v17 = vrot.slane %v9242_v36, 7 }
 0x4a9   :  { %v9462_v45 = vsel %vm687_vm3, %v9461_v34, %v9460_v47  ;;  %v9472_v27 = vsel %vm681_vm1, %v9471_v41, %v9470_v55  ;;  %v9747_v44 = vrot.slane %v9243_v40, 6  ;;  %v9749_v32 = vrot.slane %v9244_v13, 5 }
 0x4aa   :  { %v9464_v22 = vsel %vm690_vm4, %v9463_v25, %v9462_v45  ;;  %v9474_v7 = vsel %vm684_vm2, %v9473_v31, %v9472_v27  ;;  %v9751_v21 = vrot.slane %v9245_v51, 4  ;;  %v9753_v56 = vrot.slane %v9246_v33, 3 }
 0x4ab   :  { %v9465_v54 = vsel %vm693_vm5, %v9248_v59, %v9464_v22  ;;  %v9476_v38 = vsel %vm687_vm3, %v9475_v16, %v9474_v7  ;;  %v9748_v53 = vsel %vm678_vm0, %v9747_v44, %v9746_v17  ;;  %v9755_v23 = vrot.slane %v9247_v6, 2  ;;  %v10638_v6 = vld [vmem:[%s21359_s5 + $0x8] ss:$0 sm:$0xff]  ;;  %v12564_v44 = vld [vmem:[%s21361_s6 + $0x18] sm:$0xff]   ;;  %v12567_v7 = vld [vmem:[%s21361_s6 + $0x30] sm:$0xff]  }
 0x4ac   :  { %v9467_v36 = vsel %vm696_vm6, %v9466_v48, %v9465_v54  ;;  %v9478_v3 = vsel %vm690_vm4, %v9477_v49, %v9476_v38  ;;  %v9750_v40 = vsel %vm681_vm1, %v9749_v32, %v9748_v53  ;;  %v9757_v13 = vrot.slane %v9248_v59, 1  ;;  %v10769_v49 = vld [vmem:[%s21359_s5 + $0xb] ss:$0 sm:$0xff]  ;;  %v12565_v32 = vld [vmem:[%s21361_s6 + $0x20] sm:$0xff]  }
 0x4ad   :  { %v9479_v2 = vsel %vm693_vm5, %v9256_v58, %v9478_v3  ;;  %v9752_v60 = vsel %vm684_vm2, %v9751_v21, %v9750_v40  ;;  %v9760_v51 = vrot.slane %v9250_v29, 7  ;;  %v9761_v33 = vrot.slane %v9251_v50, 6  ;;  %v10639_v29 = vld [vmem:[%s21359_s5 + $0x9] ss:$0 sm:$0xff]  ;;  %v10898_v21 = vld [vmem:[%s21359_s5 + $0xc] ss:$0 sm:$0xff] }
 0x4ae   :  { %v9481_v9 = vsel %vm696_vm6, %v9480_v19, %v9479_v2  ;;  %v9754_v18 = vsel %vm687_vm3, %v9753_v56, %v9752_v60  ;;  %v9763_v4 = vrot.slane %v9252_v14, 5  ;;  %v9765_v34 = vrot.slane %v9253_v43, 4  ;;  %v12566_v22 = vld [vmem:[%s21361_s6 + $0x28] sm:$0xff]   ;;  %v12568_v56 = vld [vmem:[%s21361_s6 + $0x38] sm:$0xff]  }
 0x4af   :  { %v9489_v25 = vpack.c.b16 %v9481_v9, %v9467_v36  ;;  %v9756_v48 = vsel %vm690_vm4, %v9755_v23, %v9754_v18  ;;  %v9762_v59 = vsel %vm678_vm0, %v9761_v33, %v9760_v51  ;;  %v9767_v5 = vrot.slane %v9254_v52, 3  ;;  %v10768_v52 = vld [vmem:[%s21359_s5 + $0xa] ss:$0 sm:$0xff] }
 0x4b0   :  { %v9758_v50 = vsel %vm693_vm5, %v9757_v13, %v9756_v48  ;;  %v9764_v15 = vsel %vm681_vm1, %v9763_v4, %v9762_v59  ;;  %v9769_v14 = vrot.slane %v9255_v61, 2  ;;  %v9771_v43 = vrot.slane %v9256_v58, 1  ;;  %v9868_v13 = vld [vmem:[%s21362_s3] sm:$0x1] }
 0x4b1   :  { %11486 = vmatpush3.bf16.xpose.msra.mxu0 %v9489_v25  ;;  %v9759_v28 = vsel %vm696_vm6, %v9249_v30, %v9758_v50  ;;  %v9766_v41 = vsel %vm684_vm2, %v9765_v34, %v9764_v15  ;;  %vm5872_vm8 = vcmp.eq.s32.totalorder %v17144_v1, %v10638_v6  ;;  %vm5873_vm9 = vcmp.eq.s32.totalorder %v17076_v11, %v10638_v6  ;;  %v11028_v25 = vld [vmem:[%s21359_s5 + $0xe] ss:$0 sm:$0xff]  ;;  %v11029_v15 = vld [vmem:[%s21359_s5 + $0xf] ss:$0 sm:$0xff] }
 0x4b2   :  { %v9768_v12 = vsel %vm687_vm3, %v9767_v5, %v9766_v41  ;;  %11511 = vmatprep.subr.bf16.mxu0 %v12576_v0  ;;  %v5874_v61 = vsel %vm5872_vm8, %v20515_v35, 0.0  ;;  %v5875_v46 = vsel %vm5873_vm9, %v20535_v24, 0.0  ;;  %vm6164_vm1 = vcmp.eq.s32.totalorder %v17144_v1, %v10639_v29  ;;  %v12561_v24 = vld [vmem:[%s21361_s6] sm:$0xff]  }
 0x4b3   :  { %v9770_v30 = vsel %vm690_vm4, %v9769_v14, %v9768_v12  ;;  %v5876_v58 = vmax.f32 %v20573_v57, %v5874_v61  ;;  %v5877_v31 = vmax.f32 %v20597_v20, %v5875_v46  ;;  %v6166_v16 = vsel %vm6164_vm1, %v20546_v62, 0.0 }
 0x4b4   :  { %v9772_v47 = vsel %vm693_vm5, %v9771_v43, %v9770_v30  ;;  %vm6165_vm2 = vcmp.eq.s32.totalorder %v17076_v11, %v10639_v29  ;;  %vm7096_vm3 = vcmp.eq.s32.totalorder %v17144_v1, %v10768_v52  ;;  %vm7097_vm10 = vcmp.eq.s32.totalorder %v17076_v11, %v10768_v52 }
 0x4b5   :  { %v9773_v35 = vsel %vm696_vm6, %v9257_v37, %v9772_v47  ;;  %v6168_v62 = vmax.f32 %v5876_v58, %v6166_v16  ;;  %v6167_v57 = vsel %vm6165_vm2, %v20652_v10, 0.0  ;;  %v7098_v20 = vsel %vm7096_vm3, %v20917_v8, 0.0  ;;  %v12575_v37 = vld [vmem:[%s21357_s0] sm:$0xff]  }
 0x4b6   :  { %v9781_v55 = vpack.c.b16 %v9773_v35, %v9759_v28  ;;  %v6169_v19 = vmax.f32 %v5877_v31, %v6167_v57  ;;  %v7099_v17 = vsel %vm7097_vm10, %v20966_v26, 0.0  ;;  %vm7388_vm4 = vcmp.eq.s32.totalorder %v17144_v1, %v10769_v49 }
 0x4b7   :  { %v7100_v45 = vmax.f32 %v6168_v62, %v7098_v20  ;;  %v7390_v63 = vsel %vm7388_vm4, %v20975_v42, 0.0  ;;  %vm7389_vm5 = vcmp.eq.s32.totalorder %v17076_v11, %v10769_v49  ;;  %v12562_v42 = vld [vmem:[%s21361_s6 + $0x8] sm:$0xff]   ;;  %vm8320_vm6 = vcmp.eq.s32.totalorder %v17144_v1, %v10898_v21 }
 0x4b8   :  { %11506 = vmatpush3.bf16.xpose.msra.mxu1 %v9781_v55  ;;  %11488 = vmatmul.mubr.bf16.vlgmr.msra.gmra.mrb[28].mxu0 %v12575_v37  ;;  %v7101_v10 = vmax.f32 %v6169_v19, %v7099_v17  ;;  %v7391_v8 = vsel %vm7389_vm5, %v21078_v39, 0.0  ;;  %v12563_v39 = vld [vmem:[%s21361_s6 + $0x10] sm:$0xff]   ;;  %vm9544_vm13 = vcmp.eq.s32.totalorder %v17144_v1, %v11028_v25  ;;  %vm9545_vm14 = vcmp.eq.s32.totalorder %v17076_v11, %v11028_v25 }
 0x4b9   :  { %11512 = vmatpush3.bf16.xpose.msra.mxu0 %v12561_v24  ;;  %11527 = vmatprep.mubr.msk.bf16.mxu0 %vm12577_vm7, %v12576_v0  ;;  %v7392_v26 = vmax.f32 %v7100_v45, %v7390_v63  ;;  %vm8321_vm7 = vcmp.eq.s32.totalorder %v17076_v11, %v10898_v21  ;;  %vm9836_vm15 = vcmp.eq.s32.totalorder %v17144_v1, %v11029_v15 }
 0x4ba   :  { %11513 = vmatprep.subr.bf16.mxu0 %v12576_v0  ;;  %v7393_v27 = vmax.f32 %v7101_v10, %v7391_v8  ;;  %vm9837_vm8 = vcmp.eq.s32.totalorder %v17076_v11, %v11029_v15 }
 0x4bf   :  { %11508 = vmatmul.mubr.bf16.vlgmr.msra.gmra.mrb[28].mxu1 %v12575_v37 }
 0x4c1   :  { %11514 = vmatpush3.bf16.xpose.msra.mxu0 %v12562_v42 }
 0x4c2   :  { %11515 = vmatprep.subr.bf16.mxu0 %v12576_v0 }
 0x4c9   :  { %11516 = vmatpush3.bf16.xpose.msra.mxu0 %v12563_v39 }
 0x4ca   :  { %11517 = vmatprep.subr.bf16.mxu0 %v12576_v0 }
 0x4d1   :  { %11518 = vmatpush3.bf16.xpose.msra.mxu0 %v12564_v44 }
 0x4d2   :  { %11519 = vmatprep.subr.bf16.mxu0 %v12576_v0 }
 0x4d9   :  { %11520 = vmatpush3.bf16.xpose.msra.mxu0 %v12565_v32 }
 0x4da   :  { %11521 = vmatprep.subr.bf16.mxu0 %v12576_v0 }
 0x4e1   :  { %11522 = vmatpush3.bf16.xpose.msra.mxu0 %v12566_v22 }
 0x4e2   :  { %11523 = vmatprep.subr.bf16.mxu0 %v12576_v0 }
 0x4e9   :  { %11524 = vmatpush3.bf16.xpose.msra.mxu0 %v12567_v7 }
 0x4ea   :  { %11525 = vmatprep.subr.bf16.mxu0 %v12576_v0  ;;  %v10899_v0 = vld [vmem:[%s21359_s5 + $0xd] ss:$0 sm:$0xff] }
 0x4eb   :  { %vm8612_vm11 = vcmp.eq.s32.totalorder %v17144_v1, %v10899_v0  ;;  %vm8613_vm12 = vcmp.eq.s32.totalorder %v17076_v11, %v10899_v0 }
 0x4f1   :  { %11526 = vmatpush3.bf16.xpose.msra.mxu0 %v12568_v56 }
 0x4f4   :  { %v8308_v54 = vpop.f32.mrb[24].mxu0 }
 0x4f5   :  { %v8322_v38 = vsel %vm8320_vm6, %v8308_v54, 0.0  ;;  %v11449_v53 = vpop.f32.mrb[25].mxu0 }
 0x4f6   :  { %v8324_v23 = vmax.f32 %v7392_v26, %v8322_v38  ;;  %v8311_v36 = vpop.f32.mrb[26].mxu0 }
 0x4f7   :  { %v8323_v3 = vsel %vm8321_vm7, %v8311_v36, 0.0  ;;  %v11450_v40 = vpop.f32.mrb[27].mxu0 }
 0x4f8   :  { %v8325_v2 = vmax.f32 %v7393_v27, %v8323_v3  ;;  %11528 = vmatmul.mubr.bf16.vlgmr.msra.gmra.mrb[32].mxu0 %v9868_v13 }
 0x4fb   :  { %v8600_v60 = vpop.f32.mrb[24].mxu1 }
 0x4fc   :  { %v8614_v51 = vsel %vm8612_vm11, %v8600_v60, 0.0  ;;  %v11469_v33 = vpop.f32.mrb[25].mxu1  ;;  %v9852_v16 = vpop.permute.xlu1 %9851 }
 0x4fd   :  { %v8616_v9 = vmax.f32 %v8324_v23, %v8614_v51  ;;  %v8603_v18 = vpop.f32.mrb[26].mxu1 }
 0x4fe   :  { %v8615_v4 = vsel %vm8613_vm12, %v8603_v18, 0.0  ;;  %v11470_v34 = vpop.f32.mrb[27].mxu1 }
 0x4ff   :  { %v8617_v6 = vmax.f32 %v8325_v2, %v8615_v4 }
 0x50e   :  { %v9847_v49 = vpop.permute.xlu1 %9846 }
 0x58b   :  { %v9532_v48 = vpop.f32.mrb[28].mxu0 }
 0x58c   :  { %v9546_v59 = vsel %vm9544_vm13, %v9532_v48, 0.0  ;;  %v11489_v5 = vpop.f32.mrb[29].mxu0 }
 0x58d   :  { %v9548_v29 = vmax.f32 %v8616_v9, %v9546_v59  ;;  %v9535_v50 = vpop.f32.mrb[30].mxu0 }
 0x58e   :  { %v9547_v14 = vsel %vm9545_vm14, %v9535_v50, 0.0  ;;  %v11490_v43 = vpop.f32.mrb[31].mxu0 }
 0x58f   :  { %v9549_v28 = vmax.f32 %v8617_v6, %v9547_v14 }
 0x592   :  { %v9824_v41 = vpop.f32.mrb[28].mxu1 }
 0x593   :  { %v9838_v52 = vsel %vm9836_vm15, %v9824_v41, 0.0  ;;  %v11509_v12 = vpop.f32.mrb[29].mxu1 }
 0x594   :  { %v9840_v61 = vmax.f32 %v9548_v29, %v9838_v52  ;;  %v9827_v46 = vpop.f32.mrb[30].mxu1 }
 0x595   :  { %v9839_v30 = vsel %vm9837_vm8, %v9827_v46, 0.0  ;;  %v11510_v58 = vpop.f32.mrb[31].mxu1 }
 0x596   :  { %v9841_v31 = vmax.f32 %v9549_v28, %v9839_v30  ;;  %v9854_v47 = vmul.f32 %v9847_v49, %v9840_v61 }
 0x598   :  { %v9855_v35 = vmul.f32 %v9852_v16, %v9841_v31  ;;  %v9856_v24 = vrot.slane %v9854_v47, 4 }
 0x59a   :  { %v9862_v62 = vrot.slane %v9855_v35, 4  ;;  %v9857_v57 = vadd.f32 %v9856_v24, %v9854_v47 }
 0x59c   :  { %v9863_v20 = vadd.f32 %v9862_v62, %v9855_v35  ;;  %v9858_v55 = vrot.slane %v9857_v57, 2 }
 0x59e   :  { %v9864_v1 = vrot.slane %v9863_v20, 2  ;;  %v9859_v19 = vadd.f32 %v9858_v55, %v9857_v57 }
 0x5a0   :  { %v9865_v17 = vadd.f32 %v9864_v1, %v9863_v20  ;;  %v9860_v11 = vrot.slane %v9859_v19, 1 }
 0x5a2   :  { %v9866_v45 = vrot.slane %v9865_v17, 1  ;;  %v9861_v63 = vadd.f32 %v9860_v11, %v9859_v19 }
 0x5a4   :  { %v9867_v10 = vadd.f32 %v9866_v45, %v9865_v17 }
 0x5cb   :  { %v9967_v37 = vpop.f32.mrb[32].mxu0 }
 0x5cc   :  { %v9974_v8 = vrot.slane %v9967_v37, 1  ;;  %v9977_v26 = vadd.f32 %v9967_v37, %v9861_v63  ;;  %v11529_v27 = vpop.f32.mrb[33].mxu0 }
 0x5cd   :  { %v9970_v42 = vpop.f32.mrb[34].mxu0 }
 0x5ce   :  { %v9978_v39 = vadd.f32 %v9974_v8, %v9867_v10  ;;  %v11530_v44 = vpop.f32.mrb[35].mxu0 }
 0x5d0   :  { %v9981_v32 = vrot.slane %v9978_v39, 7 }
 0x5d2   :  { %v9982_v22 = vsel %vm678_vm0, %v9981_v32, %v9977_v26 }
 0x5d3   :  { %9984 = vst [vmem:[%s21363_s7] sm:$0x3] %v9982_v22 }

</bundles_post_ra>
